<compile_context>
chip_gen: v6e
topology: v6e:2x2x1
jax: 0.10.0
libtpu: 0.0.40
codegen_flags: <defaults>
</compile_context>

<pallas_src>
import jax
import jax.numpy as jnp
from jax.experimental import pallas as pl
from jax.experimental.pallas import tpu as pltpu

FC1_IN = 256 * 7 * 7   # 12544, fixed by the backbone + (7,7) ROI align
FC1_OUT = 1024


def _round_up(x, m):
    return ((x + m - 1) // m) * m


# ----------------------------------------------------------------------------
# Fused fc1 -> ReLU -> fc2 Pallas kernel (fc1 reduction tiled over K)
# ----------------------------------------------------------------------------
def _object_mlp_kernel(x_ref, w1_ref, b1_ref, w2_ref, b2_ref, o_ref, acc_ref):
    k = pl.program_id(1)

    @pl.when(k == 0)
    def _():
        acc_ref[...] = jnp.zeros_like(acc_ref)

    # fc1 partial product for this K tile (bf16 operands, f32 accumulate).
    acc_ref[...] += jnp.dot(x_ref[...], w1_ref[...],
                            preferred_element_type=jnp.float32)

    @pl.when(k == pl.num_programs(1) - 1)
    def _():
        # ReLU in f32 (v5e has no bf16 VPU), cast only at the MXU input.
        h = jnp.maximum(acc_ref[...] + b1_ref[...], 0.0).astype(w2_ref.dtype)
        o_ref[...] = (jnp.dot(h, w2_ref[...], preferred_element_type=jnp.float32)
                      + b2_ref[...]).astype(o_ref.dtype)


def prepare_object_encoder_params(w1, b1, w2, b2):
    """One-time parameter prep (load time, NOT per forward):
    transpose to [in, out], cast weights to bf16, pad embedding dim to 128."""
    E = w2.shape[0]
    e_pad = _round_up(E, 128)
    w1_t = jnp.asarray(w1.T, dtype=jnp.bfloat16)                      # [12544, 1024]
    b1_r = jnp.asarray(b1, dtype=jnp.float32).reshape(1, -1)          # [1, 1024]
    w2_t = jnp.zeros((w2.shape[1], e_pad), jnp.bfloat16)
    w2_t = w2_t.at[:, :E].set(jnp.asarray(w2.T, dtype=jnp.bfloat16))  # [1024, E_pad]
    b2_r = jnp.zeros((1, e_pad), jnp.float32).at[:, :E].set(b2)       # [1, E_pad]
    return {"w1_t": w1_t, "b1": b1_r, "w2_t": w2_t, "b2": b2_r, "embed_dim": E}


_BUFFERED_CONST_OK = None  # does this jax accept pipeline_mode=pl.Buffered(1)?


def _const_spec(shape, single_buffer):
    """BlockSpec for a grid-invariant (VMEM-resident) operand."""
    if single_buffer:
        return pl.BlockSpec(shape, lambda i, k: (0, 0),
                            pipeline_mode=pl.Buffered(1))
    return pl.BlockSpec(shape, lambda i, k: (0, 0))


def object_mlp_forward(roi_features, params, *, tm=512, tk=1792):
    """roi_features: [N, 12544] (f32 or bf16) -> [N, embedding_dim] float32."""
    N, K = roi_features.shape
    w1_t, b1_r, w2_t, b2_r = params["w1_t"], params["b1"], params["w2_t"], params["b2"]
    E = params["embed_dim"]
    H = w1_t.shape[1]
    e_pad = w2_t.shape[1]
    assert K == w1_t.shape[0]
    # tk must be a 128-multiple divisor of K so W1 / x are never re-padded
    # (re-materializing the 25.7 MB W1 per call would dominate the kernel).
    assert tk % 128 == 0 and K % tk == 0, (K, tk)

    # bf16 packs 16 rows per sublane group -> round the row tile to 16.
    tm = _round_up(min(tm, _round_up(N, 16)), 16)
    n_pad = _round_up(N, tm)

    x = roi_features if roi_features.dtype == jnp.bfloat16 \
        else roi_features.astype(jnp.bfloat16)
    if n_pad != N:
        # Row-only pad (never pads along K). Padded rows compute
        # relu(b1) @ w2 + b2 garbage, which is sliced off before returning.
        x = jnp.pad(x, ((0, n_pad - N), (0, 0)))

    grid = (n_pad // tm, K // tk)

    # Per-step VMEM footprint (worst case: constants double-buffered), so the
    # scoped limit never silently blocks larger tm (v5e default is 16 MiB).
    vmem_bytes = (2 * tm * tk * 2                              # x tiles, bf16, 2 bufs
                  + 2 * tk * H * 2                             # w1 tiles, bf16, 2 bufs
                  + 2 * (H * e_pad * 2 + (H + e_pad) * 4)      # resident constants
                  + 2 * tm * e_pad * 4                         # out tiles, f32, 2 bufs
                  + tm * H * 4)                                # fc1 f32 accumulator
    vmem_limit = int(vmem_bytes) + (4 << 20)

    cost = pl.CostEstimate(
        flops=2 * n_pad * K * H + 2 * n_pad * H * e_pad,
        transcendentals=0,
        bytes_accessed=(n_pad * K * 2                          # x (bf16)
                        + (n_pad // tm) * K * H * 2            # W1, re-streamed / row tile
                        + H * e_pad * 2 + (H + e_pad) * 4      # constants
                        + n_pad * e_pad * 4))                  # output

    def run(single_buffer_consts):
        in_specs = [
            pl.BlockSpec((tm, tk), lambda i, k: (i, k)),       # x tile
            pl.BlockSpec((tk, H), lambda i, k: (k, 0)),        # fc1 weight tile
            _const_spec((1, H), single_buffer_consts),         # fc1 bias (resident)
            _const_spec((H, e_pad), single_buffer_consts),     # fc2 weight (resident)
            _const_spec((1, e_pad), single_buffer_consts),     # fc2 bias (resident)
        ]
        return pl.pallas_call(
            _object_mlp_kernel,
            out_shape=jax.ShapeDtypeStruct((n_pad, e_pad), jnp.float32),
            grid=grid,
            in_specs=in_specs,
            out_specs=pl.BlockSpec((tm, e_pad), lambda i, k: (i, 0)),
            scratch_shapes=[pltpu.VMEM((tm, H), jnp.float32)],  # fc1 f32 accumulator
            compiler_params=pltpu.CompilerParams(
                # Keep both axes "arbitrary": sharding rows across v7x's two
                # TensorCores would make both cores stream the full W1 from
                # HBM, doubling the dominant traffic of this BW-bound kernel.
                dimension_semantics=("arbitrary", "arbitrary"),
                vmem_limit_bytes=vmem_limit,
            ),
            cost_estimate=cost,
        )(x, w1_t, b1_r, w2_t, b2_r)

    # Single-buffering of constants via pl.Buffered(1) with a fallback if this
    # jax/Mosaic build rejects pipeline_mode (only effective under eager
    # dispatch, which is how the demo below runs).
    global _BUFFERED_CONST_OK
    if _BUFFERED_CONST_OK is None:
        try:
            out = run(True)
            _BUFFERED_CONST_OK = True
        except Exception:
            _BUFFERED_CONST_OK = False
            out = run(False)
    else:
        out = run(_BUFFERED_CONST_OK)

    return out[:N, :E]


# ----------------------------------------------------------------------------
# ROI align — two formulations (plain JAX pre-processing)
# ----------------------------------------------------------------------------
def roi_align_matmul(feature_map, rois, output_size=(7, 7), spatial_scale=1.0,
                     sampling_ratio=2, out_dtype=jnp.float32):
    """ROI align as separable one-hot bilinear-weight matmuls (MXU-friendly,
    no data-dependent gathers). Mathematically identical to the gather form."""
    # TODO(synk): torchvision's default sampling_ratio=-1 adapts the per-bin
    # sample count to the ROI size; a fixed sampling_ratio=2 is used here.
    B, C, H, W = feature_map.shape
    ph, pw = output_size
    N = rois.shape[0]
    sr = sampling_ratio

    batch_idx = rois[:, 0].astype(jnp.int32)
    x1 = rois[:, 1] * spatial_scale
    y1 = rois[:, 2] * spatial_scale
    x2 = rois[:, 3] * spatial_scale
    y2 = rois[:, 4] * spatial_scale
    roi_w = jnp.maximum(x2 - x1, 1.0)
    roi_h = jnp.maximum(y2 - y1, 1.0)
    bin_h = roi_h / ph
    bin_w = roi_w / pw

    sub = (jnp.arange(sr, dtype=jnp.float32) + 0.5) / sr
    ys = (y1[:, None, None]
          + (jnp.arange(ph, dtype=jnp.float32)[None, :, None] + sub[None, None, :])
          * bin_h[:, None, None]).reshape(N, ph * sr)
    xs = (x1[:, None, None]
          + (jnp.arange(pw, dtype=jnp.float32)[None, :, None] + sub[None, None, :])
          * bin_w[:, None, None]).reshape(N, pw * sr)

    def interp_weights(coords, size):
        # coords: [N, S] sample positions -> bilinear one-hot weights [N, S, size].
        valid = ((coords >= -1.0) & (coords <= size)).astype(jnp.float32)
        c = jnp.clip(coords, 0.0, size - 1.0)
        c0 = jnp.floor(c).astype(jnp.int32)
        c1 = jnp.minimum(c0 + 1, size - 1)
        frac = c - c0.astype(jnp.float32)
        grid = jnp.arange(size, dtype=jnp.int32)
        w = ((1.0 - frac)[..., None] * (c0[..., None] == grid).astype(jnp.float32)
             + frac[..., None] * (c1[..., None] == grid).astype(jnp.float32))
        return w * valid[..., None]

    wy = interp_weights(ys, H)                                 # [N, ph*sr, H]
    wx = interp_weights(xs, W)                                 # [N, pw*sr, W]

    # TODO(synk): feature_map[batch_idx] copies the per-image map once per ROI;
    # for large real feature maps, group ROIs per image instead.
    fm = feature_map[batch_idx]                                # [N, C, H, W]
    hp = jnp.einsum('nph,nchw->ncpw', wy, fm,
                    precision=jax.lax.Precision.HIGHEST)
    samples = jnp.einsum('ncpw,nqw->ncpq', hp, wx,
                         precision=jax.lax.Precision.HIGHEST)
    pooled = samples.reshape(N, C, ph, sr, pw, sr).mean(axis=(3, 5))
    return pooled.astype(out_dtype)


def roi_align_jax(feature_map, rois, output_size=(7, 7), spatial_scale=1.0,
                  sampling_ratio=2):
    """Gather-based reference ROI align (used for cross-checking only)."""
    B, C, H, W = feature_map.shape
    ph, pw = output_size
    N = rois.shape[0]
    sr = sampling_ratio

    batch_idx = rois[:, 0].astype(jnp.int32)
    x1 = rois[:, 1] * spatial_scale
    y1 = rois[:, 2] * spatial_scale
    x2 = rois[:, 3] * spatial_scale
    y2 = rois[:, 4] * spatial_scale
    roi_w = jnp.maximum(x2 - x1, 1.0)
    roi_h = jnp.maximum(y2 - y1, 1.0)
    bin_h = roi_h / ph
    bin_w = roi_w / pw

    sub = (jnp.arange(sr, dtype=jnp.float32) + 0.5) / sr
    ys = (y1[:, None, None]
          + (jnp.arange(ph, dtype=jnp.float32)[None, :, None] + sub[None, None, :])
          * bin_h[:, None, None]).reshape(N, ph * sr)
    xs = (x1[:, None, None]
          + (jnp.arange(pw, dtype=jnp.float32)[None, :, None] + sub[None, None, :])
          * bin_w[:, None, None]).reshape(N, pw * sr)

    def sample_one(b, ys_n, xs_n):
        fm = feature_map[b]                                            # [C, H, W]
        valid = (((ys_n >= -1.0) & (ys_n <= H))[:, None]
                 & ((xs_n >= -1.0) & (xs_n <= W))[None, :])
        y = jnp.clip(ys_n, 0.0, H - 1.0)
        x = jnp.clip(xs_n, 0.0, W - 1.0)
        y0 = jnp.floor(y).astype(jnp.int32)
        x0 = jnp.floor(x).astype(jnp.int32)
        y1i = jnp.minimum(y0 + 1, H - 1)
        x1i = jnp.minimum(x0 + 1, W - 1)
        ly = y - y0.astype(jnp.float32)
        lx = x - x0.astype(jnp.float32)
        hy = 1.0 - ly
        hx = 1.0 - lx
        fy0 = fm[:, y0, :]                                             # [C, P, W]
        fy1 = fm[:, y1i, :]
        val = (fy0[:, :, x0] * (hy[:, None] * hx[None, :])
               + fy0[:, :, x1i] * (hy[:, None] * lx[None, :])
               + fy1[:, :, x0] * (ly[:, None] * hx[None, :])
               + fy1[:, :, x1i] * (ly[:, None] * lx[None, :]))
        return val * valid[None, :, :].astype(val.dtype)

    samples = jax.vmap(sample_one)(batch_idx, ys, xs)                  # [N, C, P, Q]
    return samples.reshape(N, C, ph, sr, pw, sr).mean(axis=(3, 5))


def _build_rois(bboxes):
    """bboxes: [B, nb, 4] -> [B*nb, 5] with leading batch index (as in forward)."""
    B, nb, _ = bboxes.shape
    batch_ids = jnp.repeat(jnp.arange(B, dtype=bboxes.dtype), nb)[:, None]
    return jnp.concatenate([batch_ids, bboxes.reshape(-1, 4)], axis=1)


def object_encoder_forward(feature_map, bboxes, params):
    """feature_map: [B, 256, H, W] ('0' FPN level of the frozen backbone).
    bboxes: [B, num_boxes, 4] (x1, y1, x2, y2). Returns [B, num_boxes, E]."""
    B = feature_map.shape[0]
    nb = bboxes.shape[1]
    rois = _build_rois(bboxes)
    # ROI align emits bf16 directly so the MLP kernel reads x without an extra
    # astype/pad HBM round trip (perf feedback).
    roi_feats = roi_align_matmul(feature_map, rois, output_size=(7, 7),
                                 out_dtype=jnp.bfloat16)               # [N, 256, 7, 7]
    roi_flat = roi_feats.reshape(roi_feats.shape[0], -1)               # [N, 12544]
    emb = object_mlp_forward(roi_flat, params)                         # [N, E]
    return emb.reshape(B, nb, -1)


if __name__ == "__main__":
    key = jax.random.PRNGKey(0)
    k_fm, k_box, k_w1, k_b1, k_w2, k_b2 = jax.random.split(key, 6)

    B = 2            # images
    NUM_BOXES = 4    # boxes per image
    C = 256          # FPN '0' level channels (fixed by the backbone)
    Hf = Wf = 16     # small synthetic feature-map spatial size
    EMBED_DIM = 32

    # TODO(synk): the frozen Mask R-CNN ResNet50-FPN backbone (images ->
    # feature pyramid) is an external pretrained model with no Pallas
    # equivalent; its '0'-level feature map is synthesized directly.
    feature_map = jax.random.normal(k_fm, (B, C, Hf, Wf), dtype=jnp.float32)

    # Random boxes (x1, y1, x2, y2) inside the feature map.
    xy0 = jax.random.uniform(k_box, (B, NUM_BOXES, 2), minval=0.0, maxval=Wf / 2)
    wh = jax.random.uniform(jax.random.fold_in(k_box, 1), (B, NUM_BOXES, 2),
                            minval=2.0, maxval=Wf / 2)
    bboxes = jnp.concatenate([xy0, xy0 + wh], axis=-1).astype(jnp.float32)

    # nn.Linear parameters: fc1 (12544 -> 1024), fc2 (1024 -> EMBED_DIM).
    w1 = jax.random.normal(k_w1, (FC1_OUT, FC1_IN), dtype=jnp.float32) * 0.01
    b1 = jax.random.normal(k_b1, (FC1_OUT,), dtype=jnp.float32) * 0.01
    w2 = jax.random.normal(k_w2, (EMBED_DIM, FC1_OUT), dtype=jnp.float32) * 0.02
    b2 = jax.random.normal(k_b2, (EMBED_DIM,), dtype=jnp.float32) * 0.01

    params = prepare_object_encoder_params(w1, b1, w2, b2)

    out = object_encoder_forward(feature_map, bboxes, params)
    out = jax.block_until_ready(out)
    assert out.shape == (B, NUM_BOXES, EMBED_DIM)

    # Cross-check the matmul-form ROI align against the gather form.
    rois = _build_rois(bboxes)
    ra_gather = roi_align_jax(feature_map, rois, output_size=(7, 7))
    ra_matmul = roi_align_matmul(feature_map, rois, output_size=(7, 7),
                                 out_dtype=jnp.float32)
    assert jnp.allclose(ra_matmul, ra_gather, atol=1e-4, rtol=1e-4), \
        float(jnp.max(jnp.abs(ra_matmul - ra_gather)))

    # End-to-end reference in plain JAX with the same bf16 operand rounding /
    # f32 accumulation (intentional precision change vs. the f32 PyTorch MLP).
    roi_flat_ref = ra_gather.reshape(B * NUM_BOXES, -1)
    h_ref = jnp.maximum(
        jnp.dot(roi_flat_ref.astype(jnp.bfloat16), w1.T.astype(jnp.bfloat16),
                preferred_element_type=jnp.float32) + b1, 0.0)
    ref = (jnp.dot(h_ref.astype(jnp.bfloat16), w2.T.astype(jnp.bfloat16),
                   preferred_element_type=jnp.float32) + b2)
    ref = ref.reshape(B, NUM_BOXES, EMBED_DIM)

    assert jnp.allclose(out, ref, atol=2e-2, rtol=2e-2), \
        float(jnp.max(jnp.abs(out - ref)))
    print("KERNEL_OK")
</pallas_src>

<mosaic_0001>
module attributes {stable_mosaic.version = 11 : i64} {
  func.func @_object_mlp_kernel(%arg0: i32, %arg1: i32, %arg2: memref<16x1792xbf16, #tpu.memory_space<vmem>>, %arg3: memref<1792x1024xbf16, #tpu.memory_space<vmem>>, %arg4: memref<1x1024xf32, #tpu.memory_space<vmem>>, %arg5: memref<1024x128xbf16, #tpu.memory_space<vmem>>, %arg6: memref<1x128xf32, #tpu.memory_space<vmem>>, %arg7: memref<16x128xf32, #tpu.memory_space<vmem>>, %arg8: memref<16x1024xf32, #tpu.memory_space<vmem>>) attributes {dimension_semantics = [#tpu.dimension_semantics<arbitrary>, #tpu.dimension_semantics<arbitrary>], iteration_bounds = array<i64: 1, 7>, scalar_prefetch = 0 : i64, scratch_operands = 1 : i64, tpu.core_type = #tpu.core_type<tc>, window_params = [{transform_indices = @transform_0, window_bounds = array<i64: 16, 1792>}, {transform_indices = @transform_1, window_bounds = array<i64: 1792, 1024>}, {pipeline_mode = #tpu.pipeline_mode<synchronous>, transform_indices = @transform_2, window_bounds = array<i64: 1, 1024>}, {pipeline_mode = #tpu.pipeline_mode<synchronous>, transform_indices = @transform_3, window_bounds = array<i64: 1024, 128>}, {pipeline_mode = #tpu.pipeline_mode<synchronous>, transform_indices = @transform_4, window_bounds = array<i64: 1, 128>}, {transform_indices = @transform_5, window_bounds = array<i64: 16, 128>}]} {
    %c0_i32 = arith.constant 0 : i32
    %0 = arith.cmpi eq, %arg1, %c0_i32 : i32
    %1 = arith.extui %0 : i1 to i32
    %c0_i32_0 = arith.constant 0 : i32
    %2 = arith.cmpi ne, %1, %c0_i32_0 : i32
    scf.if %2 {
      %cst_9 = arith.constant 0.000000e+00 : f32
      %12 = vector.broadcast %cst_9 : f32 to vector<16x1024xf32>
      %c0_10 = arith.constant 0 : index
      %c0_11 = arith.constant 0 : index
      %13 = vector.load %arg8[%c0_10, %c0_11] : memref<16x1024xf32, #tpu.memory_space<vmem>>, vector<16x1024xf32>
      tpu.vector_store %arg8[%c0_10, %c0_11], %12 {strides = array<i32>} : memref<16x1024xf32, #tpu.memory_space<vmem>>, vector<16x1024xf32>,
    } else {
    }
    %c0 = arith.constant 0 : index
    %c0_1 = arith.constant 0 : index
    %3 = vector.load %arg8[%c0, %c0_1] : memref<16x1024xf32, #tpu.memory_space<vmem>>, vector<16x1024xf32>
    %c0_2 = arith.constant 0 : index
    %c0_3 = arith.constant 0 : index
    %4 = vector.load %arg2[%c0_2, %c0_3] : memref<16x1792xbf16, #tpu.memory_space<vmem>>, vector<16x1792xbf16>
    %c0_4 = arith.constant 0 : index
    %c0_5 = arith.constant 0 : index
    %5 = vector.load %arg3[%c0_4, %c0_5] : memref<1792x1024xbf16, #tpu.memory_space<vmem>>, vector<1792x1024xbf16>
    %cst = arith.constant dense<0.000000e+00> : vector<16x1024xf32>
    %6 = tpu.matmul %4, %5, %cst {dimension_numbers = #tpu.dot_dimension_numbers<[1], [0], [0], [1], [0, 0, 1, 1], [], []>} : vector<16x1792xbf16>, vector<1792x1024xbf16>, vector<16x1024xf32> -> vector<16x1024xf32>
    %7 = arith.addf %3, %6 : vector<16x1024xf32>
    %c0_6 = arith.constant 0 : index
    %c0_7 = arith.constant 0 : index
    %8 = vector.load %arg8[%c0_6, %c0_7] : memref<16x1024xf32, #tpu.memory_space<vmem>>, vector<16x1024xf32>
    tpu.vector_store %arg8[%c0_6, %c0_7], %7 {strides = array<i32>} : memref<16x1024xf32, #tpu.memory_space<vmem>>, vector<16x1024xf32>,
    %c6_i32 = arith.constant 6 : i32
    %9 = arith.cmpi eq, %arg1, %c6_i32 : i32
    %10 = arith.extui %9 : i1 to i32
    %c0_i32_8 = arith.constant 0 : i32
    %11 = arith.cmpi ne, %10, %c0_i32_8 : i32
    scf.if %11 {
      %c0_9 = arith.constant 0 : index
      %c0_10 = arith.constant 0 : index
      %12 = vector.load %arg8[%c0_9, %c0_10] : memref<16x1024xf32, #tpu.memory_space<vmem>>, vector<16x1024xf32>
      %c0_11 = arith.constant 0 : index
      %c0_12 = arith.constant 0 : index
      %13 = vector.load %arg4[%c0_11, %c0_12] : memref<1x1024xf32, #tpu.memory_space<vmem>>, vector<1x1024xf32>
      %14 = vector.broadcast %13 : vector<1x1024xf32> to vector<16x1024xf32>
      %15 = arith.addf %12, %14 : vector<16x1024xf32>
      %cst_13 = arith.constant 0.000000e+00 : f32
      %16 = vector.broadcast %cst_13 : f32 to vector<16x1024xf32>
      %17 = arith.maximumf %15, %16 : vector<16x1024xf32>
      %18 = arith.truncf %17 : vector<16x1024xf32> to vector<16x1024xbf16>
      %c0_14 = arith.constant 0 : index
      %c0_15 = arith.constant 0 : index
      %19 = vector.load %arg5[%c0_14, %c0_15] : memref<1024x128xbf16, #tpu.memory_space<vmem>>, vector<1024x128xbf16>
      %cst_16 = arith.constant dense<0.000000e+00> : vector<16x128xf32>
      %20 = tpu.matmul %18, %19, %cst_16 {dimension_numbers = #tpu.dot_dimension_numbers<[1], [0], [0], [1], [0, 0, 1, 1], [], []>} : vector<16x1024xbf16>, vector<1024x128xbf16>, vector<16x128xf32> -> vector<16x128xf32>
      %c0_17 = arith.constant 0 : index
      %c0_18 = arith.constant 0 : index
      %21 = vector.load %arg6[%c0_17, %c0_18] : memref<1x128xf32, #tpu.memory_space<vmem>>, vector<1x128xf32>
      %22 = vector.broadcast %21 : vector<1x128xf32> to vector<16x128xf32>
      %23 = arith.addf %20, %22 : vector<16x128xf32>
      %c0_19 = arith.constant 0 : index
      %c0_20 = arith.constant 0 : index
      %24 = vector.load %arg7[%c0_19, %c0_20] : memref<16x128xf32, #tpu.memory_space<vmem>>, vector<16x128xf32>
      tpu.vector_store %arg7[%c0_19, %c0_20], %23 {strides = array<i32>} : memref<16x128xf32, #tpu.memory_space<vmem>>, vector<16x128xf32>,
    } else {
    }
    return
  }
  func.func @transform_0(%arg0: i32, %arg1: i32) -> (i32, i32) {
    %c0_i32 = arith.constant 0 : i32
    return %arg0, %arg1 : i32, i32
  }
  func.func @transform_1(%arg0: i32, %arg1: i32) -> (i32, i32) {
    %c0_i32 = arith.constant 0 : i32
    %c0_i32_0 = arith.constant 0 : i32
    return %arg1, %c0_i32 : i32, i32
  }
  func.func @transform_2(%arg0: i32, %arg1: i32) -> (i32, i32) {
    %c0_i32 = arith.constant 0 : i32
    %c0_i32_0 = arith.constant 0 : i32
    %c0_i32_1 = arith.constant 0 : i32
    return %c0_i32, %c0_i32_0 : i32, i32
  }
  func.func @transform_3(%arg0: i32, %arg1: i32) -> (i32, i32) {
    %c0_i32 = arith.constant 0 : i32
    %c0_i32_0 = arith.constant 0 : i32
    %c0_i32_1 = arith.constant 0 : i32
    return %c0_i32, %c0_i32_0 : i32, i32
  }
  func.func @transform_4(%arg0: i32, %arg1: i32) -> (i32, i32) {
    %c0_i32 = arith.constant 0 : i32
    %c0_i32_0 = arith.constant 0 : i32
    %c0_i32_1 = arith.constant 0 : i32
    return %c0_i32, %c0_i32_0 : i32, i32
  }
  func.func @transform_5(%arg0: i32, %arg1: i32) -> (i32, i32) {
    %c0_i32 = arith.constant 0 : i32
    %c0_i32_0 = arith.constant 0 : i32
    return %arg0, %c0_i32 : i32, i32
  }
}

module attributes {stable_mosaic.version = 11 : i64} {
  func.func @_object_mlp_kernel(%arg0: i32, %arg1: i32, %arg2: memref<16x1792xbf16, #tpu.memory_space<vmem>>, %arg3: memref<1792x1024xbf16, #tpu.memory_space<vmem>>, %arg4: memref<1x1024xf32, #tpu.memory_space<vmem>>, %arg5: memref<1024x128xbf16, #tpu.memory_space<vmem>>, %arg6: memref<1x128xf32, #tpu.memory_space<vmem>>, %arg7: memref<16x128xf32, #tpu.memory_space<vmem>>, %arg8: memref<16x1024xf32, #tpu.memory_space<vmem>>) attributes {dimension_semantics = [#tpu.dimension_semantics<arbitrary>, #tpu.dimension_semantics<arbitrary>], iteration_bounds = array<i64: 1, 7>, scalar_prefetch = 0 : i64, scratch_operands = 1 : i64, tpu.core_type = #tpu.core_type<tc>, window_params = [{transform_indices = @transform_0, window_bounds = array<i64: 16, 1792>}, {transform_indices = @transform_1, window_bounds = array<i64: 1792, 1024>}, {pipeline_mode = #tpu.pipeline_mode<synchronous>, transform_indices = @transform_2, window_bounds = array<i64: 1, 1024>}, {pipeline_mode = #tpu.pipeline_mode<synchronous>, transform_indices = @transform_3, window_bounds = array<i64: 1024, 128>}, {pipeline_mode = #tpu.pipeline_mode<synchronous>, transform_indices = @transform_4, window_bounds = array<i64: 1, 128>}, {transform_indices = @transform_5, window_bounds = array<i64: 16, 128>}]} {
    %c0_i32 = arith.constant 0 : i32
    %0 = arith.cmpi eq, %arg1, %c0_i32 : i32
    %1 = arith.extui %0 : i1 to i32
    %c0_i32_0 = arith.constant 0 : i32
    %2 = arith.cmpi ne, %1, %c0_i32_0 : i32
    scf.if %2 {
      %cst_9 = arith.constant 0.000000e+00 : f32
      %12 = vector.broadcast %cst_9 : f32 to vector<16x1024xf32>
      %c0_10 = arith.constant 0 : index
      %c0_11 = arith.constant 0 : index
      %13 = vector.load %arg8[%c0_10, %c0_11] : memref<16x1024xf32, #tpu.memory_space<vmem>>, vector<16x1024xf32>
      tpu.vector_store %arg8[%c0_10, %c0_11], %12 {strides = array<i32>} : memref<16x1024xf32, #tpu.memory_space<vmem>>, vector<16x1024xf32>,
    } else {
    }
    %c0 = arith.constant 0 : index
    %c0_1 = arith.constant 0 : index
    %3 = vector.load %arg8[%c0, %c0_1] : memref<16x1024xf32, #tpu.memory_space<vmem>>, vector<16x1024xf32>
    %c0_2 = arith.constant 0 : index
    %c0_3 = arith.constant 0 : index
    %4 = vector.load %arg2[%c0_2, %c0_3] : memref<16x1792xbf16, #tpu.memory_space<vmem>>, vector<16x1792xbf16>
    %c0_4 = arith.constant 0 : index
    %c0_5 = arith.constant 0 : index
    %5 = vector.load %arg3[%c0_4, %c0_5] : memref<1792x1024xbf16, #tpu.memory_space<vmem>>, vector<1792x1024xbf16>
    %cst = arith.constant dense<0.000000e+00> : vector<16x1024xf32>
    %6 = tpu.matmul %4, %5, %cst {dimension_numbers = #tpu.dot_dimension_numbers<[1], [0], [0], [1], [0, 0, 1, 1], [], []>} : vector<16x1792xbf16>, vector<1792x1024xbf16>, vector<16x1024xf32> -> vector<16x1024xf32>
    %7 = arith.addf %3, %6 : vector<16x1024xf32>
    %c0_6 = arith.constant 0 : index
    %c0_7 = arith.constant 0 : index
    %8 = vector.load %arg8[%c0_6, %c0_7] : memref<16x1024xf32, #tpu.memory_space<vmem>>, vector<16x1024xf32>
    tpu.vector_store %arg8[%c0_6, %c0_7], %7 {strides = array<i32>} : memref<16x1024xf32, #tpu.memory_space<vmem>>, vector<16x1024xf32>,
    %c6_i32 = arith.constant 6 : i32
    %9 = arith.cmpi eq, %arg1, %c6_i32 : i32
    %10 = arith.extui %9 : i1 to i32
    %c0_i32_8 = arith.constant 0 : i32
    %11 = arith.cmpi ne, %10, %c0_i32_8 : i32
    scf.if %11 {
      %c0_9 = arith.constant 0 : index
      %c0_10 = arith.constant 0 : index
      %12 = vector.load %arg8[%c0_9, %c0_10] : memref<16x1024xf32, #tpu.memory_space<vmem>>, vector<16x1024xf32>
      %c0_11 = arith.constant 0 : index
      %c0_12 = arith.constant 0 : index
      %13 = vector.load %arg4[%c0_11, %c0_12] : memref<1x1024xf32, #tpu.memory_space<vmem>>, vector<1x1024xf32>
      %14 = vector.broadcast %13 : vector<1x1024xf32> to vector<16x1024xf32>
      %15 = arith.addf %12, %14 : vector<16x1024xf32>
      %cst_13 = arith.constant 0.000000e+00 : f32
      %16 = vector.broadcast %cst_13 : f32 to vector<16x1024xf32>
      %17 = arith.maximumf %15, %16 : vector<16x1024xf32>
      %18 = arith.truncf %17 : vector<16x1024xf32> to vector<16x1024xbf16>
      %c0_14 = arith.constant 0 : index
      %c0_15 = arith.constant 0 : index
      %19 = vector.load %arg5[%c0_14, %c0_15] : memref<1024x128xbf16, #tpu.memory_space<vmem>>, vector<1024x128xbf16>
      %cst_16 = arith.constant dense<0.000000e+00> : vector<16x128xf32>
      %20 = tpu.matmul %18, %19, %cst_16 {dimension_numbers = #tpu.dot_dimension_numbers<[1], [0], [0], [1], [0, 0, 1, 1], [], []>} : vector<16x1024xbf16>, vector<1024x128xbf16>, vector<16x128xf32> -> vector<16x128xf32>
      %c0_17 = arith.constant 0 : index
      %c0_18 = arith.constant 0 : index
      %21 = vector.load %arg6[%c0_17, %c0_18] : memref<1x128xf32, #tpu.memory_space<vmem>>, vector<1x128xf32>
      %22 = vector.broadcast %21 : vector<1x128xf32> to vector<16x128xf32>
      %23 = arith.addf %20, %22 : vector<16x128xf32>
      %c0_19 = arith.constant 0 : index
      %c0_20 = arith.constant 0 : index
      %24 = vector.load %arg7[%c0_19, %c0_20] : memref<16x128xf32, #tpu.memory_space<vmem>>, vector<16x128xf32>
      tpu.vector_store %arg7[%c0_19, %c0_20], %23 {strides = array<i32>} : memref<16x128xf32, #tpu.memory_space<vmem>>, vector<16x128xf32>,
    } else {
    }
    return
  }
  func.func @transform_0(%arg0: i32, %arg1: i32) -> (i32, i32) {
    %c0_i32 = arith.constant 0 : i32
    return %arg0, %arg1 : i32, i32
  }
  func.func @transform_1(%arg0: i32, %arg1: i32) -> (i32, i32) {
    %c0_i32 = arith.constant 0 : i32
    %c0_i32_0 = arith.constant 0 : i32
    return %arg1, %c0_i32 : i32, i32
  }
  func.func @transform_2(%arg0: i32, %arg1: i32) -> (i32, i32) {
    %c0_i32 = arith.constant 0 : i32
    %c0_i32_0 = arith.constant 0 : i32
    %c0_i32_1 = arith.constant 0 : i32
    return %c0_i32, %c0_i32_0 : i32, i32
  }
  func.func @transform_3(%arg0: i32, %arg1: i32) -> (i32, i32) {
    %c0_i32 = arith.constant 0 : i32
    %c0_i32_0 = arith.constant 0 : i32
    %c0_i32_1 = arith.constant 0 : i32
    return %c0_i32, %c0_i32_0 : i32, i32
  }
  func.func @transform_4(%arg0: i32, %arg1: i32) -> (i32, i32) {
    %c0_i32 = arith.constant 0 : i32
    %c0_i32_0 = arith.constant 0 : i32
    %c0_i32_1 = arith.constant 0 : i32
    return %c0_i32, %c0_i32_0 : i32, i32
  }
  func.func @transform_5(%arg0: i32, %arg1: i32) -> (i32, i32) {
    %c0_i32 = arith.constant 0 : i32
    %c0_i32_0 = arith.constant 0 : i32
    return %arg0, %c0_i32 : i32, i32
  }
}

</mosaic_0001>

<bundles_post_ra>
// kernel: tpu_custom_call.1
= control target key start
LH: loop header
LB: loop body
LE: loop exit
PB: predicated region body
PF: predicated region fallthrough
CT: control target
= control target key end

     0   :  { %s10820_s0 = inlined_call_operand.hbm [shape: bf16[16,12544], index: 0, kind: input, shape index: {}]   ;;  %s10821_s1 = inlined_call_operand.hbm [shape: bf16[12544,1024], index: 1, kind: input, shape index: {}]   ;;  %s10822_s2 = inlined_call_operand.hbm [shape: f32[1,1024], index: 2, kind: input, shape index: {}]   ;;  %s10823_s3 = inlined_call_operand.hbm [shape: bf16[1024,128], index: 3, kind: input, shape index: {}]   ;;  %s10824_s4 = inlined_call_operand.hbm [shape: f32[1,128], index: 4, kind: input, shape index: {}]   ;;  %s10825_s5 = inlined_call_operand.hbm [shape: f32[16,128], index: 5, kind: output, shape index: {}]  }
   0x1   :  { %10830 = sst [smem:[#allocation19_spill]] %s10820_s0 }
   0x2   :  { %10831 = sst [smem:[#allocation20_spill]] %s10822_s2 }
   0x3   :  { %10832 = sst [smem:[#allocation21_spill]] %s10823_s3 }
   0x4   :  { %10833 = sst [smem:[#allocation22_spill]] %s10824_s4 }
   0x5   :  { %10 = vsyncpa [#allocation4], 0 }
   0x6   :  { %12 = vsyncpa [#allocation4 + $0x1], 0 }
   0x7   :  { %13 = vsyncpa [#allocation7], 0 }
   0x8   :  { %15 = vsyncpa [#allocation7 + $0x1], 0 }
   0x9   :  { %16 = vsyncpa [#allocation10], 0 }
   0xa   :  { %17 = vsyncpa [#allocation5], 0  ;;  %s9581_s18 = smov 0   ;;  %s9583_s19 = smov 0  }
   0xb   :  { %s9585_s20 = smov 0   ;;  %s9587_s21 = smov 0  }
   0xc   :  { %s9589_s22 = smov 0   ;;  %s9591_s23 = smov 0  }
   0xd LB: > { %s9610_s24 = sadd.s32 4294967295, %s9533_s23   ;;  %s44_s25 = sadd.s32 1, %s9521_s20  ;;  %s9533_s23 = sphi %s9591_s23, %s23_s23   ;;  %s9529_s22 = sphi %s9589_s22, %s10855_s22   ;;  %s9525_s21 = sphi %s9587_s21, %s10854_s21   ;;  %s9521_s20 = sphi %s9585_s20, %s10853_s20   ;;  %s9517_s19 = sphi %s9583_s19, %s10852_s19   ;;  %s9513_s18 = sphi %s9581_s18, %s10851_s18  }
   0xe   : > { %p51_p0 = scmp.ne.s32.totalorder %s9521_s20, %s9517_s19  ;;  %p52_p1 = scmp.eq.s32.totalorder %s9533_s23, 0 }
   0xf   : > { %p57_p2 = scmp.ne.s32.totalorder %s9517_s19, %s9513_s18  ;;  %p10826_p3 = scmp.eq.s32.totalorder %s9610_s24, 0 }
  0x10   : > { %p53_p4 = por %p52_p1, %p51_p0  ;;  %p7985_p5 = scmp.ge.s32.totalorder %s9533_s23, 1 }
  0x11   : > { %p9621_p6 = por %p10826_p3, %p57_p2  ;;  %p183_p7 = scmp.lt.s32.totalorder %s9533_s23, 8 }
  0x12   : > { %s9535_s28 = smov [#allocation8]   ;;  %p9114_p10 = scmp.lt.s32.totalorder %s9533_s23, 7 }
  0x13   : > { %s10834_s26 = scalar_select %p9621_p6, 1, 0 }
  0x14   : > { %p9626_p8 = pnand %p7985_p5, %p183_p7  ;;  %s196_s29 = sshll.u32 %s9535_s28, 4  ;;  %s197_s29 = int_to_ptr.vmem [resolvable:$true] %s196_s29 }
  0x15   : > { %p9639_p12 = pnand %p9114_p10, %p53_p4  ;;  %s9536_s7 = smov [#allocation9]  }
  0x16   : > { %s10835_s27 = scalar_select %p9626_p8, 1, 0 }
  0x17   : > { %p9094_p9 = pneg %p9626_p8  ;;  %s206_s8 = sshll.u32 %s9536_s7, 4  ;;  %s207_s8 = int_to_ptr.vmem [resolvable:$true] %s206_s8 }
  0x18   : > { %s9320_s9 = scalar_lea.vmem %s197_s29, 128  ;;  %p9328_p5 = scmp.lt.s32.totalorder %s197_s29, %s197_s29 }
  0x19   : > { %p9635_p11 = pnand %p9094_p9, %p10826_p3  ;;  %p9321_p0 = scmp.ne.s32.totalorder %s197_s29, %s9320_s9 }
  0x1a   : > { %p9329_p7 = scmp.lt.s32.totalorder %s9320_s9, %s9320_s9 }
  0x1b   : > { %p9311_p13 = pneg %p9635_p11 }
  0x1c   : > { %p9330_p9 = por %p9329_p7, %p9328_p5 }
  0x1d   : > { %p9323_p1 = pnand %p9321_p0, %p9311_p13 }
  0x1f   : > { %p9324_p2 = pneg %p9323_p1 }
  0x21   : > { %p9331_p3 = pnand %p9330_p9, %p9324_p2 }
  0x23   : > { %9334 = shalt.err (!%p9331_p3)
}
  0x24   : > { %s10838_s2 = sld [smem:[#allocation20_spill]]  ;;  %s9346_s12 = scalar_lea.vmem %s207_s8, 8192 }
  0x25   : > { %p9347_p4 = scmp.ne.s32.totalorder %s207_s8, %s9346_s12  ;;  %p9354_p1 = scmp.lt.s32.totalorder %s207_s8, %s207_s8 }
  0x26   : > { %p9355_p6 = scmp.lt.s32.totalorder %s9346_s12, %s9346_s12 }
  0x27   : > { %p9349_p10 = pnand %p9347_p4, %p9311_p13 }
  0x28   : > { %p9356_p8 = por %p9355_p6, %p9354_p1 }
  0x29   : > { %p9350_p0 = pneg %p9349_p10 }
  0x2a   : > { %9097 = dma.hbm_to_vmem [thread:$0]  (!%p9635_p11), %s10838_s2, 128, %s197_s29, [#allocation7]  }
  0x2b   : > { %p9357_p5 = pnand %p9356_p8, %p9350_p0 }
  0x2d   : > { %9360 = shalt.err (!%p9357_p5)
}
  0x2e   : > { %s9537_s13 = smov 64   ;;  %s9538_s14 = smov 4  }
  0x2f   : > { %s10839_s3 = sld [smem:[#allocation21_spill]]  ;;  %s9539_s17 = smov [#allocation11]  }
  0x30   : > { %s220_s18 = sshll.u32 %s9539_s17, 4  ;;  %s221_s18 = int_to_ptr.vmem [resolvable:$true] %s220_s18 }
  0x31   : > { %s9372_s28 = scalar_lea.vmem %s221_s18, 16  ;;  %s9379_s29 = scalar_lea.vmem %s221_s18, 32 }
  0x32   : > { %p9373_p3 = scmp.ne.s32.totalorder %s221_s18, %s9372_s28  ;;  %p9380_p8 = scmp.lt.s32.totalorder %s221_s18, %s221_s18 }
  0x33   : > { %p9381_p7 = scmp.lt.s32.totalorder %s9379_s29, %s9372_s28 }
  0x34   : > { %p9375_p2 = pnand %p9373_p3, %p9311_p13 }
  0x35   : > { %9100 = dma.hbm_to_vmem [thread:$0]  (!%p9635_p11), %s10839_s3, 8192, %s207_s8, [#allocation10], %s9537_s13, %s9537_s13, %s9538_s14  }
  0x36   : > { %p9376_p6 = pneg %p9375_p2  ;;  %p9382_p9 = por %p9381_p7, %p9380_p8 }
  0x38   : > { %p9383_p4 = pnand %p9382_p9, %p9376_p6 }
  0x3a   : > { %9386 = shalt.err (!%p9383_p4)
}
  0x3b   : > { %s10840_s4 = sld [smem:[#allocation22_spill]]  ;;  %s32_s8 = sadd.s32 1, %s9529_s22 }
  0x3c   : > { %s9671_s10 = sand.u32 1, %s9521_s20   ;;  %p33_p13 = scmp.ge.s32.totalorder %s32_s8, 7 }
  0x3d   : > { %s9070_s30 = smul.u32 112, %s9671_s10  ;;  %s10842_s0 = sld [smem:[#allocation19_spill]] }
  0x3e   : > { %s10857_s8 = smov (%p33_p13, %s32_s8), 0  ;;  %s8978_s11 = smul.u32 896, %s9529_s22 }
  0x3f   : > { %10841 = sst [smem:[#allocation18_spill]] %s10857_s8  ;;  %s40_s12 = ssub.s32 %s9529_s22, %s10857_s8 }
  0x40   : > { %s235_s13 = scalar_lea.vmem [#allocation3], %s9070_s30  ;;  %p42_p10 = scmp.eq.s32.totalorder %s40_s12, 0 }
  0x41   : > { %9103 = dma.hbm_to_vmem [thread:$0]  (!%p9635_p11), %s10840_s4, 16, %s221_s18, [#allocation10]  }
  0x42   : > { %s245_s14 = sshll.u32 %s235_s13, 4  ;;  %s255_s28 = sand.u32 1, %s9533_s23   ;;  %s246_s14 = int_to_ptr.vmem [resolvable:$true] %s245_s14 }
  0x43   : > { %s244_s17 = scalar_lea.hbm %s10842_s0, %s8978_s11  ;;  %s232_s29 = scalar_lea.sflag [#allocation4], %s9671_s10 }
  0x44   : > { %s9685_s18 = scalar_select %p42_p10, %s9521_s20, %s44_s25  }
  0x45   : > { %p9389_p11 = pneg %p9639_p12  ;;  %s9400_s7 = scalar_lea.vmem %s246_s14, 1792 }
  0x46   : > { %p9401_p0 = scmp.ne.s32.totalorder %s246_s14, %s9400_s7  ;;  %s9540_s9 = smov [#allocation3]  }
  0x47   : > { %s9405_s30 = sshll.u32 %s9540_s9, 4  ;;  %s9406_s30 = int_to_ptr.vmem [resolvable:$false] %s9405_s30 }
  0x48   : > { %p9403_p1 = pnand %p9401_p0, %p9389_p11  ;;  %s9407_s12 = scalar_lea.vmem %s9406_s30, 3584 }
  0x49   : > { %p9408_p3 = scmp.lt.s32.totalorder %s246_s14, %s9406_s30  ;;  %p9409_p2 = scmp.lt.s32.totalorder %s9407_s12, %s9400_s7 }
  0x4a   : > { %p9404_p5 = pneg %p9403_p1 }
  0x4b   : > { %p9410_p6 = por %p9409_p2, %p9408_p3 }
  0x4d   : > { %p9411_p8 = pnand %p9410_p6, %p9404_p5 }
  0x4f   : > { %9414 = shalt.err (!%p9411_p8)
}
  0x50   : > { %s9541_s25 = smov 6272   ;;  %s9542_s11 = smov 896  }
  0x51   : > { %s9543_s13 = smov 56   ;;  %s9071_s15 = smul.u32 7168, %s9671_s10 }
  0x52   : > { %9107 = dma.hbm_to_vmem [thread:$0]  (!%p9639_p12), %s244_s17, 1792, %s246_s14, %s232_s29, %s9541_s25, %s9542_s11, %s9543_s13  }
  0x53   : > { %s8981_s16 = smul.u32 114688, %s9529_s22  ;;  %s259_s30 = scalar_lea.vmem [#allocation6], %s9071_s15 }
  0x54   : > { %s267_s7 = sshll.u32 %s259_s30, 4  ;;  %s256_s12 = scalar_lea.sflag [#allocation7], %s255_s28  ;;  %s268_s7 = int_to_ptr.vmem [resolvable:$true] %s267_s7 }
  0x55   : > { %s266_s2 = scalar_lea.hbm %s10821_s1, %s8981_s16  ;;  %s9428_s3 = scalar_lea.vmem %s268_s7, 114688 }
  0x56   : > { %p9429_p7 = scmp.ne.s32.totalorder %s268_s7, %s9428_s3  ;;  %s9544_s4 = smov [#allocation6]  }
  0x57   : > { %s9433_s8 = sshll.u32 %s9544_s4, 4  ;;  %s9434_s8 = int_to_ptr.vmem [resolvable:$false] %s9433_s8 }
  0x58   : > { %p9431_p9 = pnand %p9429_p7, %p9389_p11  ;;  %s9435_s14 = scalar_lea.vmem %s9434_s8, 229376 }
  0x59   : > { %p9436_p13 = scmp.lt.s32.totalorder %s268_s7, %s9434_s8  ;;  %p9437_p10 = scmp.lt.s32.totalorder %s9435_s14, %s9428_s3 }
  0x5a   : > { %p9432_p4 = pneg %p9431_p9 }
  0x5b   : > { %p9438_p0 = por %p9437_p10, %p9436_p13 }
  0x5d   : > { %p9439_p1 = pnand %p9438_p0, %p9432_p4 }
  0x5f   : > { %9442 = shalt.err (!%p9439_p1)
}
  0x60   : > { %s9545_s0 = smov 512   ;;  %s9546_s10 = smov 32  }
  0x61   : > { %9110 = dma.hbm_to_vmem [thread:$0]  (!%p9639_p12), %s266_s2, 114688, %s268_s7, %s256_s12, %s9545_s0, %s9545_s0, %s9546_s10  }
  0x62   : > { %p10843_p5 = scmp.ne.s32.totalorder %s10835_s27, 0 }
  0x63   : > { %s281_s17 = sand.u32 (!%p10843_p5), 1, %s9517_s19   ;;  %p10844_p11 = scmp.ne.s32.totalorder (!%p10843_p5), %s10834_s26, 0 }
  0x64   : > { %279 = sbr.rel (%p10843_p5) target bundleno = 1535 (0x5ff), region = 40  ;;  %s282_s4 = scalar_lea.sflag (!%p10843_p5), [#allocation4], %s281_s17 }
  0x65   : > { %s9072_s28 = smul.u32 (!%p10843_p5), 112, %s281_s17 }
  0x67   : > { %s9709_s29 = scalar_lea.vmem (!%p10843_p5), [#allocation3], %s9072_s28 }
  0x69   : > { %9492 = dma.done.wait (%p10844_p11), %s282_s4, 1792  }
  0x6a   : > { %9494 = vsyncadd (%p10844_p11), %s282_s4, 4294965504  ;;  %s290_s3 = sand.u32 1, %s9610_s24   ;;  %s9073_s6 = smul.u32 7168, %s281_s17 }
  0x6b   : > { %s291_s2 = scalar_lea.sflag [#allocation7], %s290_s3 }
  0x6c   : > { %s9716_s8 = scalar_lea.vmem [#allocation6], %s9073_s6 }
  0x6d   : > { %9496 = dma.done.wait (%p10844_p11), %s291_s2, 114688  }
  0x6e   : > { %9498 = vsyncadd (%p10844_p11), %s291_s2, 4294852608  ;;  %p10845_p12 = scmp.eq.s32.totalorder %s9610_s24, 0 }
  0x70   : > { %9500 = dma.done.wait (%p10845_p12), [#allocation7], 128   ;;  %p10846_p3 = pmov %p10845_p12 }
  0x72   : > { %9502 = vsyncadd (%p10846_p3), [#allocation7], 4294967168  ;;  %p10847_p2 = pmov %p10846_p3 }
  0x74   : > { %9504 = dma.done.wait (%p10847_p2), [#allocation10], 8208   ;;  %p10848_p6 = pmov %p10847_p2 }
  0x75   : > { %p7997_p8 = scmp.ne.s32.totalorder %s9525_s21, 0 }
  0x76   : > { %9506 = vsyncadd (%p10848_p6), [#allocation10], 4294959088 }
  0x77   : > { %341 = sbr.rel (%p7997_p8) target bundleno = 133 (0x85), region = 64 }
  0x7c   : > { %v9547_v0 = vmov 0.0  }
  0x7d   : > { %342 = vst [vmem:[#allocation2 + $0x30] sm:$0xff] %v9547_v0  ;;  %343 = vst [vmem:[#allocation2] sm:$0xff] %v9547_v0 }
  0x7e   : > { %344 = vst [vmem:[#allocation2 + $0x58] sm:$0xff] %v9547_v0  ;;  %345 = vst [vmem:[#allocation2 + $0x18] sm:$0xff] %v9547_v0 }
  0x7f   : > { %346 = vst [vmem:[#allocation2 + $0x50] sm:$0xff] %v9547_v0  ;;  %347 = vst [vmem:[#allocation2 + $0x68] sm:$0xff] %v9547_v0 }
  0x80   : > { %348 = vst [vmem:[#allocation2 + $0x8] sm:$0xff] %v9547_v0  ;;  %349 = vst [vmem:[#allocation2 + $0x48] sm:$0xff] %v9547_v0 }
  0x81   : > { %350 = vst [vmem:[#allocation2 + $0x40] sm:$0xff] %v9547_v0  ;;  %351 = vst [vmem:[#allocation2 + $0x20] sm:$0xff] %v9547_v0 }
  0x82   : > { %352 = vst [vmem:[#allocation2 + $0x10] sm:$0xff] %v9547_v0  ;;  %353 = vst [vmem:[#allocation2 + $0x38] sm:$0xff] %v9547_v0 }
  0x83   : > { %354 = vst [vmem:[#allocation2 + $0x60] sm:$0xff] %v9547_v0  ;;  %355 = vst [vmem:[#allocation2 + $0x70] sm:$0xff] %v9547_v0 }
  0x84   : > { %356 = vst [vmem:[#allocation2 + $0x78] sm:$0xff] %v9547_v0  ;;  %357 = vst [vmem:[#allocation2 + $0x28] sm:$0xff] %v9547_v0 }
  0x85 PF: > { %v444_v1 = vld [vmem:[%s9716_s8 + $0x1c0] sm:$0xff]  ;;  %p8908_p7 = scmp.ne.s32.totalorder %s9525_s21, 6 }
  0x86   : > { %v448_v2 = vld [vmem:[%s9716_s8 + $0x1e0] sm:$0xff] }
  0x87   : > { %v572_v3 = vld [vmem:[%s9716_s8 + $0x5c0] sm:$0xff]  ;;  %v8069_v4 = vcombine.high %v444_v1, %v448_v2  ;;  %v8068_v6 = vcombine.low %v444_v1, %v448_v2 }
  0x88   : > { %v576_v5 = vld [vmem:[%s9716_s8 + $0x5e0] sm:$0xff] }
  0x89   : > { %v436_v7 = vld [vmem:[%s9716_s8 + $0x180] sm:$0xff]  ;;  %v8197_v9 = vcombine.high %v572_v3, %v576_v5  ;;  %v8196_v10 = vcombine.low %v572_v3, %v576_v5  ;;  %5834 = vmatprep.subr.bf16.mxu0 %v8069_v4 }
  0x8a   : > { %v440_v8 = vld [vmem:[%s9716_s8 + $0x1a0] sm:$0xff]  ;;  %5835 = vmatpush1.bf16.msra.mxu0 %v8068_v6 }
  0x8b   : > { %v8061_v11 = vcombine.high %v436_v7, %v440_v8  ;;  %v564_v12 = vld [vmem:[%s9716_s8 + $0x580] sm:$0xff]  ;;  %5877 = vmatprep.subr.bf16.mxu1 %v8197_v9  ;;  %v8060_v19 = vcombine.low %v436_v7, %v440_v8 }
  0x8c   : > { %v568_v13 = vld [vmem:[%s9716_s8 + $0x5a0] sm:$0xff]  ;;  %5878 = vmatpush1.bf16.msra.mxu1 %v8196_v10 }
  0x8d   : > { %v428_v14 = vld [vmem:[%s9716_s8 + $0x140] sm:$0xff]  ;;  %v8189_v15 = vcombine.high %v564_v12, %v568_v13  ;;  %5836 = vmatprep.subr.bf16.mxu0 %v8061_v11  ;;  %v8188_v20 = vcombine.low %v564_v12, %v568_v13 }
  0x8e   : > { %v432_v16 = vld [vmem:[%s9716_s8 + $0x160] sm:$0xff]  ;;  %5837 = vmatpush1.bf16.msra.mxu0 %v8060_v19 }
  0x8f   : > { %v556_v17 = vld [vmem:[%s9716_s8 + $0x540] sm:$0xff]  ;;  %v8053_v21 = vcombine.high %v428_v14, %v432_v16  ;;  %5879 = vmatprep.subr.bf16.mxu1 %v8189_v15  ;;  %v8052_v27 = vcombine.low %v428_v14, %v432_v16 }
  0x90   : > { %v560_v18 = vld [vmem:[%s9716_s8 + $0x560] sm:$0xff]  ;;  %5880 = vmatpush1.bf16.msra.mxu1 %v8188_v20 }
  0x91   : > { %v8181_v22 = vcombine.high %v556_v17, %v560_v18  ;;  %v420_v23 = vld [vmem:[%s9716_s8 + $0x100] sm:$0xff]  ;;  %5838 = vmatprep.subr.bf16.mxu0 %v8053_v21  ;;  %v8180_v28 = vcombine.low %v556_v17, %v560_v18 }
  0x92   : > { %v424_v24 = vld [vmem:[%s9716_s8 + $0x120] sm:$0xff]  ;;  %5839 = vmatpush1.bf16.msra.mxu0 %v8052_v27 }
  0x93   : > { %v548_v25 = vld [vmem:[%s9716_s8 + $0x500] sm:$0xff]  ;;  %v8045_v29 = vcombine.high %v420_v23, %v424_v24  ;;  %5881 = vmatprep.subr.bf16.mxu1 %v8181_v22  ;;  %v8044_v35 = vcombine.low %v420_v23, %v424_v24 }
  0x94   : > { %v552_v26 = vld [vmem:[%s9716_s8 + $0x520] sm:$0xff]  ;;  %5882 = vmatpush1.bf16.msra.mxu1 %v8180_v28 }
  0x95   : > { %v8173_v30 = vcombine.high %v548_v25, %v552_v26  ;;  %v412_v31 = vld [vmem:[%s9716_s8 + $0xc0] sm:$0xff]  ;;  %5840 = vmatprep.subr.bf16.mxu0 %v8045_v29  ;;  %v8172_v36 = vcombine.low %v548_v25, %v552_v26 }
  0x96   : > { %v416_v32 = vld [vmem:[%s9716_s8 + $0xe0] sm:$0xff]  ;;  %5841 = vmatpush1.bf16.msra.mxu0 %v8044_v35 }
  0x97   : > { %v540_v33 = vld [vmem:[%s9716_s8 + $0x4c0] sm:$0xff]  ;;  %v8037_v37 = vcombine.high %v412_v31, %v416_v32  ;;  %5883 = vmatprep.subr.bf16.mxu1 %v8173_v30  ;;  %v8036_v43 = vcombine.low %v412_v31, %v416_v32 }
  0x98   : > { %v544_v34 = vld [vmem:[%s9716_s8 + $0x4e0] sm:$0xff]  ;;  %5884 = vmatpush1.bf16.msra.mxu1 %v8172_v36 }
  0x99   : > { %v8165_v38 = vcombine.high %v540_v33, %v544_v34  ;;  %v404_v39 = vld [vmem:[%s9716_s8 + $0x80] sm:$0xff]  ;;  %5842 = vmatprep.subr.bf16.mxu0 %v8037_v37  ;;  %v8164_v44 = vcombine.low %v540_v33, %v544_v34 }
  0x9a   : > { %v408_v40 = vld [vmem:[%s9716_s8 + $0xa0] sm:$0xff]  ;;  %5843 = vmatpush1.bf16.msra.mxu0 %v8036_v43 }
  0x9b   : > { %v532_v41 = vld [vmem:[%s9716_s8 + $0x480] sm:$0xff]  ;;  %v8029_v45 = vcombine.high %v404_v39, %v408_v40  ;;  %5885 = vmatprep.subr.bf16.mxu1 %v8165_v38  ;;  %v8028_v51 = vcombine.low %v404_v39, %v408_v40 }
  0x9c   : > { %v536_v42 = vld [vmem:[%s9716_s8 + $0x4a0] sm:$0xff]  ;;  %5886 = vmatpush1.bf16.msra.mxu1 %v8164_v44 }
  0x9d   : > { %v8157_v46 = vcombine.high %v532_v41, %v536_v42  ;;  %v396_v47 = vld [vmem:[%s9716_s8 + $0x40] sm:$0xff]  ;;  %5844 = vmatprep.subr.bf16.mxu0 %v8029_v45  ;;  %v8156_v53 = vcombine.low %v532_v41, %v536_v42 }
  0x9e   : > { %v400_v48 = vld [vmem:[%s9716_s8 + $0x60] sm:$0xff]  ;;  %5845 = vmatpush1.bf16.msra.mxu0 %v8028_v51 }
  0x9f   : > { %v524_v49 = vld [vmem:[%s9716_s8 + $0x440] sm:$0xff]  ;;  %v8021_v54 = vcombine.high %v396_v47, %v400_v48  ;;  %5887 = vmatprep.subr.bf16.mxu1 %v8157_v46  ;;  %v8020_v61 = vcombine.low %v396_v47, %v400_v48 }
  0xa0   : > { %v528_v50 = vld [vmem:[%s9716_s8 + $0x460] sm:$0xff]  ;;  %5888 = vmatpush1.bf16.msra.mxu1 %v8156_v53 }
  0xa1   : > { %v388_v52 = vld [vmem:[%s9716_s8] sm:$0xff]  ;;  %v8149_v56 = vcombine.high %v524_v49, %v528_v50  ;;  %5846 = vmatprep.subr.bf16.mxu0 %v8021_v54  ;;  %v8148_v62 = vcombine.low %v524_v49, %v528_v50 }
  0xa2   : > { %v392_v55 = vld [vmem:[%s9716_s8 + $0x20] sm:$0xff]  ;;  %5847 = vmatpush1.bf16.msra.mxu0 %v8020_v61 }
  0xa3   : > { %v9182_v57 = vld [vmem:[%s9709_s29 + $0x4] ss:$56 sps:$4 sm:$0xff]   ;;  %v8013_v63 = vcombine.high %v388_v52, %v392_v55  ;;  %5889 = vmatprep.subr.bf16.mxu1 %v8149_v56  ;;  %v8012_v5 = vcombine.low %v388_v52, %v392_v55 }
  0xa4   : > { %v516_v58 = vld [vmem:[%s9716_s8 + $0x400] sm:$0xff]  ;;  %5866 = vmatprep.mubr.bf16.mxu0 %v9182_v57  ;;  %5890 = vmatpush1.bf16.msra.mxu1 %v8148_v62 }
  0xa5   : > { %v520_v59 = vld [vmem:[%s9716_s8 + $0x420] sm:$0xff]  ;;  %5848 = vmatprep.subr.bf16.mxu0 %v8013_v63 }
  0xa6   : > { %v9184_v60 = vld [vmem:[%s9709_s29 + $0xc] ss:$56 sps:$4 sm:$0xff]   ;;  %v8141_v0 = vcombine.high %v516_v58, %v520_v59  ;;  %v8140_v6 = vcombine.low %v516_v58, %v520_v59  ;;  %5849 = vmatpush1.bf16.msra.mxu0 %v8012_v5 }
  0xa7   : > { %v508_v1 = vld [vmem:[%s9716_s8 + $0x3c0] sm:$0xff]  ;;  %5909 = vmatprep.mubr.bf16.mxu1 %v9184_v60 }
  0xa8   : > { %v512_v2 = vld [vmem:[%s9716_s8 + $0x3e0] sm:$0xff]  ;;  %5891 = vmatprep.subr.bf16.mxu1 %v8141_v0 }
  0xa9   : > { %v636_v3 = vld [vmem:[%s9716_s8 + $0x7c0] sm:$0xff]  ;;  %v8133_v7 = vcombine.high %v508_v1, %v512_v2  ;;  %v8132_v13 = vcombine.low %v508_v1, %v512_v2  ;;  %5892 = vmatpush1.bf16.msra.mxu1 %v8140_v6 }
  0xaa   : > { %v640_v4 = vld [vmem:[%s9716_s8 + $0x7e0] sm:$0xff] }
  0xab   : > { %v8261_v8 = vcombine.high %v636_v3, %v640_v4  ;;  %v500_v9 = vld [vmem:[%s9716_s8 + $0x380] sm:$0xff]  ;;  %5850 = vmatprep.subr.bf16.mxu0 %v8133_v7  ;;  %v8260_v14 = vcombine.low %v636_v3, %v640_v4 }
  0xac   : > { %v504_v10 = vld [vmem:[%s9716_s8 + $0x3a0] sm:$0xff]  ;;  %5851 = vmatpush2.bf16.msra.mxu0 %v8132_v13 }
  0xad   : > { %v628_v11 = vld [vmem:[%s9716_s8 + $0x780] sm:$0xff]  ;;  %v8125_v15 = vcombine.high %v500_v9, %v504_v10  ;;  %5893 = vmatprep.subr.bf16.mxu1 %v8261_v8  ;;  %v8124_v21 = vcombine.low %v500_v9, %v504_v10 }
  0xae   : > { %v632_v12 = vld [vmem:[%s9716_s8 + $0x7a0] sm:$0xff]  ;;  %5894 = vmatpush2.bf16.msra.mxu1 %v8260_v14 }
  0xaf   : > { %v8253_v16 = vcombine.high %v628_v11, %v632_v12  ;;  %v492_v17 = vld [vmem:[%s9716_s8 + $0x340] sm:$0xff]  ;;  %5852 = vmatprep.subr.bf16.mxu0 %v8125_v15  ;;  %v8252_v22 = vcombine.low %v628_v11, %v632_v12 }
  0xb0   : > { %v496_v18 = vld [vmem:[%s9716_s8 + $0x360] sm:$0xff]  ;;  %5853 = vmatpush2.bf16.msra.mxu0 %v8124_v21 }
  0xb1   : > { %v620_v19 = vld [vmem:[%s9716_s8 + $0x740] sm:$0xff]  ;;  %v8117_v23 = vcombine.high %v492_v17, %v496_v18  ;;  %5895 = vmatprep.subr.bf16.mxu1 %v8253_v16  ;;  %v8116_v29 = vcombine.low %v492_v17, %v496_v18 }
  0xb2   : > { %v624_v20 = vld [vmem:[%s9716_s8 + $0x760] sm:$0xff]  ;;  %5896 = vmatpush2.bf16.msra.mxu1 %v8252_v22 }
  0xb3   : > { %v8245_v24 = vcombine.high %v620_v19, %v624_v20  ;;  %v484_v25 = vld [vmem:[%s9716_s8 + $0x300] sm:$0xff]  ;;  %5854 = vmatprep.subr.bf16.mxu0 %v8117_v23  ;;  %v8244_v30 = vcombine.low %v620_v19, %v624_v20 }
  0xb4   : > { %v488_v26 = vld [vmem:[%s9716_s8 + $0x320] sm:$0xff]  ;;  %5855 = vmatpush2.bf16.msra.mxu0 %v8116_v29 }
  0xb5   : > { %v612_v27 = vld [vmem:[%s9716_s8 + $0x700] sm:$0xff]  ;;  %v8109_v31 = vcombine.high %v484_v25, %v488_v26  ;;  %5897 = vmatprep.subr.bf16.mxu1 %v8245_v24  ;;  %v8108_v37 = vcombine.low %v484_v25, %v488_v26 }
  0xb6   : > { %v616_v28 = vld [vmem:[%s9716_s8 + $0x720] sm:$0xff]  ;;  %5898 = vmatpush2.bf16.msra.mxu1 %v8244_v30 }
  0xb7   : > { %v8237_v32 = vcombine.high %v612_v27, %v616_v28  ;;  %v476_v33 = vld [vmem:[%s9716_s8 + $0x2c0] sm:$0xff]  ;;  %5856 = vmatprep.subr.bf16.mxu0 %v8109_v31  ;;  %v8236_v38 = vcombine.low %v612_v27, %v616_v28 }
  0xb8   : > { %v480_v34 = vld [vmem:[%s9716_s8 + $0x2e0] sm:$0xff]  ;;  %5857 = vmatpush2.bf16.msra.mxu0 %v8108_v37 }
  0xb9   : > { %v604_v35 = vld [vmem:[%s9716_s8 + $0x6c0] sm:$0xff]  ;;  %v8101_v39 = vcombine.high %v476_v33, %v480_v34  ;;  %5899 = vmatprep.subr.bf16.mxu1 %v8237_v32  ;;  %v8100_v45 = vcombine.low %v476_v33, %v480_v34 }
  0xba   : > { %v608_v36 = vld [vmem:[%s9716_s8 + $0x6e0] sm:$0xff]  ;;  %5900 = vmatpush2.bf16.msra.mxu1 %v8236_v38 }
  0xbb   : > { %v468_v40 = vld [vmem:[%s9716_s8 + $0x280] sm:$0xff]  ;;  %v8229_v41 = vcombine.high %v604_v35, %v608_v36  ;;  %5858 = vmatprep.subr.bf16.mxu0 %v8101_v39  ;;  %v8228_v46 = vcombine.low %v604_v35, %v608_v36 }
  0xbc   : > { %v472_v42 = vld [vmem:[%s9716_s8 + $0x2a0] sm:$0xff]  ;;  %5859 = vmatpush2.bf16.msra.mxu0 %v8100_v45 }
  0xbd   : > { %v596_v43 = vld [vmem:[%s9716_s8 + $0x680] sm:$0xff]  ;;  %v8093_v47 = vcombine.high %v468_v40, %v472_v42  ;;  %5901 = vmatprep.subr.bf16.mxu1 %v8229_v41  ;;  %v8092_v53 = vcombine.low %v468_v40, %v472_v42 }
  0xbe   : > { %v600_v44 = vld [vmem:[%s9716_s8 + $0x6a0] sm:$0xff]  ;;  %5902 = vmatpush2.bf16.msra.mxu1 %v8228_v46 }
  0xbf   : > { %v8221_v48 = vcombine.high %v596_v43, %v600_v44  ;;  %v460_v49 = vld [vmem:[%s9716_s8 + $0x240] sm:$0xff]  ;;  %5860 = vmatprep.subr.bf16.mxu0 %v8093_v47  ;;  %v8220_v54 = vcombine.low %v596_v43, %v600_v44 }
  0xc0   : > { %v464_v50 = vld [vmem:[%s9716_s8 + $0x260] sm:$0xff]  ;;  %5861 = vmatpush2.bf16.msra.mxu0 %v8092_v53 }
  0xc1   : > { %v588_v51 = vld [vmem:[%s9716_s8 + $0x640] sm:$0xff]  ;;  %v8085_v55 = vcombine.high %v460_v49, %v464_v50  ;;  %5903 = vmatprep.subr.bf16.mxu1 %v8221_v48  ;;  %v8084_v61 = vcombine.low %v460_v49, %v464_v50 }
  0xc2   : > { %v592_v52 = vld [vmem:[%s9716_s8 + $0x660] sm:$0xff]  ;;  %5904 = vmatpush2.bf16.msra.mxu1 %v8220_v54 }
  0xc3   : > { %v8213_v56 = vcombine.high %v588_v51, %v592_v52  ;;  %v452_v57 = vld [vmem:[%s9716_s8 + $0x200] sm:$0xff]  ;;  %5862 = vmatprep.subr.bf16.mxu0 %v8085_v55  ;;  %v8212_v62 = vcombine.low %v588_v51, %v592_v52 }
  0xc4   : > { %v456_v58 = vld [vmem:[%s9716_s8 + $0x220] sm:$0xff]  ;;  %5863 = vmatpush2.bf16.msra.mxu0 %v8084_v61 }
  0xc5   : > { %v580_v59 = vld [vmem:[%s9716_s8 + $0x600] sm:$0xff]  ;;  %v8077_v63 = vcombine.high %v452_v57, %v456_v58  ;;  %5905 = vmatprep.subr.bf16.mxu1 %v8213_v56  ;;  %v8076_v5 = vcombine.low %v452_v57, %v456_v58 }
  0xc6   : > { %v584_v60 = vld [vmem:[%s9716_s8 + $0x620] sm:$0xff]  ;;  %5906 = vmatpush2.bf16.msra.mxu1 %v8212_v62 }
  0xc7   : > { %v8205_v0 = vcombine.high %v580_v59, %v584_v60  ;;  %v700_v1 = vld [vmem:[%s9716_s8 + $0x9c0] sm:$0xff]  ;;  %5864 = vmatprep.subr.bf16.mxu0 %v8077_v63  ;;  %v8204_v6 = vcombine.low %v580_v59, %v584_v60 }
  0xc8   : > { %v704_v2 = vld [vmem:[%s9716_s8 + $0x9e0] sm:$0xff]  ;;  %5865 = vmatpush2.bf16.msra.mxu0 %v8076_v5 }
  0xc9   : > { %v828_v3 = vld [vmem:[%s9716_s8 + $0xdc0] sm:$0xff]  ;;  %v8325_v7 = vcombine.high %v700_v1, %v704_v2  ;;  %5907 = vmatprep.subr.bf16.mxu1 %v8205_v0  ;;  %v8324_v15 = vcombine.low %v700_v1, %v704_v2 }
  0xca   : > { %v832_v4 = vld [vmem:[%s9716_s8 + $0xde0] sm:$0xff]  ;;  %5908 = vmatpush2.bf16.msra.mxu1 %v8204_v6 }
  0xcb   : > { %v8453_v8 = vcombine.high %v828_v3, %v832_v4  ;;  %v692_v9 = vld [vmem:[%s9716_s8 + $0x980] sm:$0xff]  ;;  %5920 = vmatprep.subr.bf16.mxu0 %v8325_v7  ;;  %v8452_v16 = vcombine.low %v828_v3, %v832_v4 }
  0xcc   : > { %v696_v10 = vld [vmem:[%s9716_s8 + $0x9a0] sm:$0xff] }
  0xcd   : > { %v9186_v11 = vld [vmem:[%s9709_s29] ss:$56 sps:$4 sm:$0xff]   ;;  %v8317_v17 = vcombine.high %v692_v9, %v696_v10  ;;  %5963 = vmatprep.subr.bf16.mxu1 %v8453_v8  ;;  %v9188_v21 = vld [vmem:[%s9709_s29 + $0x14] ss:$56 sps:$4 sm:$0xff]   ;;  %v8316_v25 = vcombine.low %v692_v9, %v696_v10 }
  0xce   : > { %v820_v12 = vld [vmem:[%s9716_s8 + $0xd80] sm:$0xff]  ;;  %5867 = vmatmul.mubr.bf16.vlgmr.msra.gmra.mxu0 %v9186_v11 }
  0xcf   : > { %v824_v13 = vld [vmem:[%s9716_s8 + $0xda0] sm:$0xff]  ;;  %5921 = vmatpush1.bf16.msra.mxu0 %v8324_v15  ;;  %5952 = vmatprep.mubr.bf16.mxu0 %v9188_v21 }
  0xd0   : > { %v9187_v14 = vld [vmem:[%s9709_s29 + $0x8] ss:$56 sps:$4 sm:$0xff]   ;;  %v8445_v18 = vcombine.high %v820_v12, %v824_v13  ;;  %v9190_v24 = vld [vmem:[%s9709_s29 + $0x1c] ss:$56 sps:$4 sm:$0xff]   ;;  %5922 = vmatprep.subr.bf16.mxu0 %v8317_v17  ;;  %v8444_v26 = vcombine.low %v820_v12, %v824_v13 }
  0xd1   : > { %v684_v19 = vld [vmem:[%s9716_s8 + $0x940] sm:$0xff]  ;;  %5910 = vmatmul.mubr.bf16.vlgmr.msra.gmra.mxu1 %v9187_v14 }
  0xd2   : > { %v688_v20 = vld [vmem:[%s9716_s8 + $0x960] sm:$0xff]  ;;  %5964 = vmatpush1.bf16.msra.mxu1 %v8452_v16  ;;  %5995 = vmatprep.mubr.bf16.mxu1 %v9190_v24 }
  0xd3   : > { %v812_v22 = vld [vmem:[%s9716_s8 + $0xd40] sm:$0xff]  ;;  %v8309_v27 = vcombine.high %v684_v19, %v688_v20  ;;  %5965 = vmatprep.subr.bf16.mxu1 %v8445_v18  ;;  %5923 = vmatpush1.bf16.msra.mxu0 %v8316_v25  ;;  %v8308_v33 = vcombine.low %v684_v19, %v688_v20 }
  0xd4   : > { %v816_v23 = vld [vmem:[%s9716_s8 + $0xd60] sm:$0xff] }
  0xd5   : > { %v676_v28 = vld [vmem:[%s9716_s8 + $0x900] sm:$0xff]  ;;  %v8437_v29 = vcombine.high %v812_v22, %v816_v23  ;;  %5924 = vmatprep.subr.bf16.mxu0 %v8309_v27  ;;  %v8436_v34 = vcombine.low %v812_v22, %v816_v23 }
  0xd6   : > { %v680_v30 = vld [vmem:[%s9716_s8 + $0x920] sm:$0xff]  ;;  %5966 = vmatpush1.bf16.msra.mxu1 %v8444_v26 }
  0xd7   : > { %v804_v31 = vld [vmem:[%s9716_s8 + $0xd00] sm:$0xff]  ;;  %v8301_v35 = vcombine.high %v676_v28, %v680_v30  ;;  %5967 = vmatprep.subr.bf16.mxu1 %v8437_v29  ;;  %5925 = vmatpush1.bf16.msra.mxu0 %v8308_v33  ;;  %v8300_v41 = vcombine.low %v676_v28, %v680_v30 }
  0xd8   : > { %v808_v32 = vld [vmem:[%s9716_s8 + $0xd20] sm:$0xff] }
  0xd9   : > { %v8429_v36 = vcombine.high %v804_v31, %v808_v32  ;;  %v668_v37 = vld [vmem:[%s9716_s8 + $0x8c0] sm:$0xff]  ;;  %5926 = vmatprep.subr.bf16.mxu0 %v8301_v35  ;;  %v8428_v42 = vcombine.low %v804_v31, %v808_v32 }
  0xda   : > { %v672_v38 = vld [vmem:[%s9716_s8 + $0x8e0] sm:$0xff]  ;;  %5968 = vmatpush1.bf16.msra.mxu1 %v8436_v34 }
  0xdb   : > { %v796_v39 = vld [vmem:[%s9716_s8 + $0xcc0] sm:$0xff]  ;;  %v8293_v43 = vcombine.high %v668_v37, %v672_v38  ;;  %5969 = vmatprep.subr.bf16.mxu1 %v8429_v36  ;;  %5927 = vmatpush1.bf16.msra.mxu0 %v8300_v41  ;;  %v8292_v49 = vcombine.low %v668_v37, %v672_v38 }
  0xdc   : > { %v800_v40 = vld [vmem:[%s9716_s8 + $0xce0] sm:$0xff] }
  0xdd   : > { %v8421_v44 = vcombine.high %v796_v39, %v800_v40  ;;  %v660_v45 = vld [vmem:[%s9716_s8 + $0x880] sm:$0xff]  ;;  %5928 = vmatprep.subr.bf16.mxu0 %v8293_v43  ;;  %v8420_v50 = vcombine.low %v796_v39, %v800_v40 }
  0xde   : > { %v664_v46 = vld [vmem:[%s9716_s8 + $0x8a0] sm:$0xff]  ;;  %5970 = vmatpush1.bf16.msra.mxu1 %v8428_v42 }
  0xdf   : > { %v788_v47 = vld [vmem:[%s9716_s8 + $0xc80] sm:$0xff]  ;;  %v8285_v51 = vcombine.high %v660_v45, %v664_v46  ;;  %5971 = vmatprep.subr.bf16.mxu1 %v8421_v44  ;;  %5929 = vmatpush1.bf16.msra.mxu0 %v8292_v49  ;;  %v8284_v57 = vcombine.low %v660_v45, %v664_v46 }
  0xe0   : > { %v792_v48 = vld [vmem:[%s9716_s8 + $0xca0] sm:$0xff] }
  0xe1   : > { %v8413_v52 = vcombine.high %v788_v47, %v792_v48  ;;  %v652_v53 = vld [vmem:[%s9716_s8 + $0x840] sm:$0xff]  ;;  %5930 = vmatprep.subr.bf16.mxu0 %v8285_v51  ;;  %v8412_v58 = vcombine.low %v788_v47, %v792_v48 }
  0xe2   : > { %v656_v54 = vld [vmem:[%s9716_s8 + $0x860] sm:$0xff]  ;;  %5972 = vmatpush1.bf16.msra.mxu1 %v8420_v50 }
  0xe3   : > { %v780_v55 = vld [vmem:[%s9716_s8 + $0xc40] sm:$0xff]  ;;  %v8277_v59 = vcombine.high %v652_v53, %v656_v54  ;;  %5973 = vmatprep.subr.bf16.mxu1 %v8413_v52  ;;  %5931 = vmatpush1.bf16.msra.mxu0 %v8284_v57  ;;  %v8276_v1 = vcombine.low %v652_v53, %v656_v54 }
  0xe4   : > { %v784_v56 = vld [vmem:[%s9716_s8 + $0xc60] sm:$0xff] }
  0xe5   : > { %v8405_v60 = vcombine.high %v780_v55, %v784_v56  ;;  %v644_v61 = vld [vmem:[%s9716_s8 + $0x800] sm:$0xff]  ;;  %5932 = vmatprep.subr.bf16.mxu0 %v8277_v59  ;;  %v8404_v2 = vcombine.low %v780_v55, %v784_v56 }
  0xe6   : > { %v648_v62 = vld [vmem:[%s9716_s8 + $0x820] sm:$0xff]  ;;  %5974 = vmatpush1.bf16.msra.mxu1 %v8412_v58 }
  0xe7   : > { %v772_v63 = vld [vmem:[%s9716_s8 + $0xc00] sm:$0xff]  ;;  %v8269_v3 = vcombine.high %v644_v61, %v648_v62  ;;  %5975 = vmatprep.subr.bf16.mxu1 %v8405_v60  ;;  %5933 = vmatpush1.bf16.msra.mxu0 %v8276_v1  ;;  %v8268_v9 = vcombine.low %v644_v61, %v648_v62 }
  0xe8   : > { %v776_v0 = vld [vmem:[%s9716_s8 + $0xc20] sm:$0xff] }
  0xe9   : > { %v8397_v4 = vcombine.high %v772_v63, %v776_v0  ;;  %v764_v5 = vld [vmem:[%s9716_s8 + $0xbc0] sm:$0xff]  ;;  %5934 = vmatprep.subr.bf16.mxu0 %v8269_v3  ;;  %v8396_v10 = vcombine.low %v772_v63, %v776_v0 }
  0xea   : > { %v768_v6 = vld [vmem:[%s9716_s8 + $0xbe0] sm:$0xff]  ;;  %5976 = vmatpush1.bf16.msra.mxu1 %v8404_v2 }
  0xeb   : > { %v892_v7 = vld [vmem:[%s9716_s8 + $0xfc0] sm:$0xff]  ;;  %v8389_v11 = vcombine.high %v764_v5, %v768_v6  ;;  %5977 = vmatprep.subr.bf16.mxu1 %v8397_v4  ;;  %5935 = vmatpush1.bf16.msra.mxu0 %v8268_v9  ;;  %v8388_v17 = vcombine.low %v764_v5, %v768_v6 }
  0xec   : > { %v896_v8 = vld [vmem:[%s9716_s8 + $0xfe0] sm:$0xff] }
  0xed   : > { %v8517_v12 = vcombine.high %v892_v7, %v896_v8  ;;  %v756_v13 = vld [vmem:[%s9716_s8 + $0xb80] sm:$0xff]  ;;  %5936 = vmatprep.subr.bf16.mxu0 %v8389_v11  ;;  %v8516_v18 = vcombine.low %v892_v7, %v896_v8 }
  0xee   : > { %v760_v14 = vld [vmem:[%s9716_s8 + $0xba0] sm:$0xff]  ;;  %5978 = vmatpush1.bf16.msra.mxu1 %v8396_v10 }
  0xef   : > { %v884_v15 = vld [vmem:[%s9716_s8 + $0xf80] sm:$0xff]  ;;  %v8381_v19 = vcombine.high %v756_v13, %v760_v14  ;;  %5979 = vmatprep.subr.bf16.mxu1 %v8517_v12  ;;  %5937 = vmatpush2.bf16.msra.mxu0 %v8388_v17  ;;  %v8380_v25 = vcombine.low %v756_v13, %v760_v14 }
  0xf0   : > { %v888_v16 = vld [vmem:[%s9716_s8 + $0xfa0] sm:$0xff] }
  0xf1   : > { %v8509_v20 = vcombine.high %v884_v15, %v888_v16  ;;  %v748_v21 = vld [vmem:[%s9716_s8 + $0xb40] sm:$0xff]  ;;  %5938 = vmatprep.subr.bf16.mxu0 %v8381_v19  ;;  %v8508_v26 = vcombine.low %v884_v15, %v888_v16 }
  0xf2   : > { %v752_v22 = vld [vmem:[%s9716_s8 + $0xb60] sm:$0xff]  ;;  %5980 = vmatpush2.bf16.msra.mxu1 %v8516_v18 }
  0xf3   : > { %v876_v23 = vld [vmem:[%s9716_s8 + $0xf40] sm:$0xff]  ;;  %v8373_v27 = vcombine.high %v748_v21, %v752_v22  ;;  %5981 = vmatprep.subr.bf16.mxu1 %v8509_v20  ;;  %5939 = vmatpush2.bf16.msra.mxu0 %v8380_v25  ;;  %v8372_v33 = vcombine.low %v748_v21, %v752_v22 }
  0xf4   : > { %v880_v24 = vld [vmem:[%s9716_s8 + $0xf60] sm:$0xff] }
  0xf5   : > { %v8501_v28 = vcombine.high %v876_v23, %v880_v24  ;;  %v740_v29 = vld [vmem:[%s9716_s8 + $0xb00] sm:$0xff]  ;;  %5940 = vmatprep.subr.bf16.mxu0 %v8373_v27  ;;  %v8500_v34 = vcombine.low %v876_v23, %v880_v24 }
  0xf6   : > { %v744_v30 = vld [vmem:[%s9716_s8 + $0xb20] sm:$0xff]  ;;  %5982 = vmatpush2.bf16.msra.mxu1 %v8508_v26 }
  0xf7   : > { %v868_v31 = vld [vmem:[%s9716_s8 + $0xf00] sm:$0xff]  ;;  %v8365_v35 = vcombine.high %v740_v29, %v744_v30  ;;  %5983 = vmatprep.subr.bf16.mxu1 %v8501_v28  ;;  %5941 = vmatpush2.bf16.msra.mxu0 %v8372_v33  ;;  %v8364_v41 = vcombine.low %v740_v29, %v744_v30 }
  0xf8   : > { %v872_v32 = vld [vmem:[%s9716_s8 + $0xf20] sm:$0xff] }
  0xf9   : > { %v8493_v36 = vcombine.high %v868_v31, %v872_v32  ;;  %v732_v37 = vld [vmem:[%s9716_s8 + $0xac0] sm:$0xff]  ;;  %5942 = vmatprep.subr.bf16.mxu0 %v8365_v35  ;;  %v8492_v42 = vcombine.low %v868_v31, %v872_v32 }
  0xfa   : > { %v736_v38 = vld [vmem:[%s9716_s8 + $0xae0] sm:$0xff]  ;;  %5984 = vmatpush2.bf16.msra.mxu1 %v8500_v34 }
  0xfb   : > { %v860_v39 = vld [vmem:[%s9716_s8 + $0xec0] sm:$0xff]  ;;  %v8357_v43 = vcombine.high %v732_v37, %v736_v38  ;;  %5985 = vmatprep.subr.bf16.mxu1 %v8493_v36  ;;  %5943 = vmatpush2.bf16.msra.mxu0 %v8364_v41  ;;  %v8356_v49 = vcombine.low %v732_v37, %v736_v38 }
  0xfc   : > { %v864_v40 = vld [vmem:[%s9716_s8 + $0xee0] sm:$0xff] }
  0xfd   : > { %v8485_v44 = vcombine.high %v860_v39, %v864_v40  ;;  %v724_v45 = vld [vmem:[%s9716_s8 + $0xa80] sm:$0xff]  ;;  %5944 = vmatprep.subr.bf16.mxu0 %v8357_v43  ;;  %v8484_v50 = vcombine.low %v860_v39, %v864_v40 }
  0xfe   : > { %v728_v46 = vld [vmem:[%s9716_s8 + $0xaa0] sm:$0xff]  ;;  %5986 = vmatpush2.bf16.msra.mxu1 %v8492_v42 }
  0xff   : > { %v852_v47 = vld [vmem:[%s9716_s8 + $0xe80] sm:$0xff]  ;;  %v8349_v51 = vcombine.high %v724_v45, %v728_v46  ;;  %5987 = vmatprep.subr.bf16.mxu1 %v8485_v44  ;;  %5945 = vmatpush2.bf16.msra.mxu0 %v8356_v49  ;;  %v8348_v57 = vcombine.low %v724_v45, %v728_v46 }
 0x100   : > { %v856_v48 = vld [vmem:[%s9716_s8 + $0xea0] sm:$0xff] }
 0x101   : > { %v8477_v52 = vcombine.high %v852_v47, %v856_v48  ;;  %v716_v53 = vld [vmem:[%s9716_s8 + $0xa40] sm:$0xff]  ;;  %5946 = vmatprep.subr.bf16.mxu0 %v8349_v51  ;;  %v8476_v58 = vcombine.low %v852_v47, %v856_v48 }
 0x102   : > { %v720_v54 = vld [vmem:[%s9716_s8 + $0xa60] sm:$0xff]  ;;  %5988 = vmatpush2.bf16.msra.mxu1 %v8484_v50 }
 0x103   : > { %v844_v55 = vld [vmem:[%s9716_s8 + $0xe40] sm:$0xff]  ;;  %v8341_v59 = vcombine.high %v716_v53, %v720_v54  ;;  %5989 = vmatprep.subr.bf16.mxu1 %v8477_v52  ;;  %5947 = vmatpush2.bf16.msra.mxu0 %v8348_v57  ;;  %v8340_v1 = vcombine.low %v716_v53, %v720_v54 }
 0x104   : > { %v848_v56 = vld [vmem:[%s9716_s8 + $0xe60] sm:$0xff] }
 0x105   : > { %v8469_v60 = vcombine.high %v844_v55, %v848_v56  ;;  %v708_v61 = vld [vmem:[%s9716_s8 + $0xa00] sm:$0xff]  ;;  %5948 = vmatprep.subr.bf16.mxu0 %v8341_v59  ;;  %v8468_v2 = vcombine.low %v844_v55, %v848_v56 }
 0x106   : > { %v712_v62 = vld [vmem:[%s9716_s8 + $0xa20] sm:$0xff]  ;;  %5990 = vmatpush2.bf16.msra.mxu1 %v8476_v58 }
 0x107   : > { %v836_v63 = vld [vmem:[%s9716_s8 + $0xe00] sm:$0xff]  ;;  %v8333_v3 = vcombine.high %v708_v61, %v712_v62  ;;  %5991 = vmatprep.subr.bf16.mxu1 %v8469_v60  ;;  %5949 = vmatpush2.bf16.msra.mxu0 %v8340_v1  ;;  %v8332_v9 = vcombine.low %v708_v61, %v712_v62 }
 0x108   : > { %v840_v0 = vld [vmem:[%s9716_s8 + $0xe20] sm:$0xff] }
 0x109   : > { %v8461_v4 = vcombine.high %v836_v63, %v840_v0  ;;  %v956_v5 = vld [vmem:[%s9716_s8 + $0x11c0] sm:$0xff]  ;;  %5950 = vmatprep.subr.bf16.mxu0 %v8333_v3  ;;  %v8460_v10 = vcombine.low %v836_v63, %v840_v0 }
 0x10a   : > { %v960_v6 = vld [vmem:[%s9716_s8 + $0x11e0] sm:$0xff]  ;;  %5992 = vmatpush2.bf16.msra.mxu1 %v8468_v2 }
 0x10b   : > { %v1084_v7 = vld [vmem:[%s9716_s8 + $0x15c0] sm:$0xff]  ;;  %v8581_v11 = vcombine.high %v956_v5, %v960_v6  ;;  %5993 = vmatprep.subr.bf16.mxu1 %v8461_v4  ;;  %5951 = vmatpush2.bf16.msra.mxu0 %v8332_v9  ;;  %v8580_v19 = vcombine.low %v956_v5, %v960_v6 }
 0x10c   : > { %v1088_v8 = vld [vmem:[%s9716_s8 + $0x15e0] sm:$0xff] }
 0x10d   : > { %v8709_v12 = vcombine.high %v1084_v7, %v1088_v8  ;;  %v948_v13 = vld [vmem:[%s9716_s8 + $0x1180] sm:$0xff]  ;;  %6006 = vmatprep.subr.bf16.mxu0 %v8581_v11  ;;  %v8708_v20 = vcombine.low %v1084_v7, %v1088_v8 }
 0x10e   : > { %v952_v14 = vld [vmem:[%s9716_s8 + $0x11a0] sm:$0xff]  ;;  %5994 = vmatpush2.bf16.msra.mxu1 %v8460_v10 }
 0x10f   : > { %v9192_v15 = vld [vmem:[%s9709_s29 + $0x10] ss:$56 sps:$4 sm:$0xff]   ;;  %v8573_v21 = vcombine.high %v948_v13, %v952_v14  ;;  %6049 = vmatprep.subr.bf16.mxu1 %v8709_v12  ;;  %v9194_v25 = vld [vmem:[%s9709_s29 + $0x24] ss:$56 sps:$4 sm:$0xff]   ;;  %v8572_v29 = vcombine.low %v948_v13, %v952_v14 }
 0x110   : > { %v1076_v16 = vld [vmem:[%s9716_s8 + $0x1580] sm:$0xff]  ;;  %5953 = vmatmul.mubr.bf16.vlgmr.msra.gmra.mxu0 %v9192_v15 }
 0x111   : > { %v1080_v17 = vld [vmem:[%s9716_s8 + $0x15a0] sm:$0xff]  ;;  %6007 = vmatpush1.bf16.msra.mxu0 %v8580_v19  ;;  %6038 = vmatprep.mubr.bf16.mxu0 %v9194_v25 }
 0x112   : > { %v9193_v18 = vld [vmem:[%s9709_s29 + $0x18] ss:$56 sps:$4 sm:$0xff]   ;;  %v8701_v22 = vcombine.high %v1076_v16, %v1080_v17  ;;  %v9196_v28 = vld [vmem:[%s9709_s29 + $0x2c] ss:$56 sps:$4 sm:$0xff]   ;;  %6008 = vmatprep.subr.bf16.mxu0 %v8573_v21  ;;  %v8700_v30 = vcombine.low %v1076_v16, %v1080_v17 }
 0x113   : > { %v940_v23 = vld [vmem:[%s9716_s8 + $0x1140] sm:$0xff]  ;;  %5996 = vmatmul.mubr.bf16.vlgmr.msra.gmra.mxu1 %v9193_v18 }
 0x114   : > { %v944_v24 = vld [vmem:[%s9716_s8 + $0x1160] sm:$0xff]  ;;  %6050 = vmatpush1.bf16.msra.mxu1 %v8708_v20  ;;  %6081 = vmatprep.mubr.bf16.mxu1 %v9196_v28 }
 0x115   : > { %v1068_v26 = vld [vmem:[%s9716_s8 + $0x1540] sm:$0xff]  ;;  %v8565_v31 = vcombine.high %v940_v23, %v944_v24  ;;  %6051 = vmatprep.subr.bf16.mxu1 %v8701_v22  ;;  %6009 = vmatpush1.bf16.msra.mxu0 %v8572_v29  ;;  %v8564_v37 = vcombine.low %v940_v23, %v944_v24 }
 0x116   : > { %v1072_v27 = vld [vmem:[%s9716_s8 + $0x1560] sm:$0xff] }
 0x117   : > { %v8693_v32 = vcombine.high %v1068_v26, %v1072_v27  ;;  %v932_v33 = vld [vmem:[%s9716_s8 + $0x1100] sm:$0xff]  ;;  %6010 = vmatprep.subr.bf16.mxu0 %v8565_v31  ;;  %v8692_v38 = vcombine.low %v1068_v26, %v1072_v27 }
 0x118   : > { %v936_v34 = vld [vmem:[%s9716_s8 + $0x1120] sm:$0xff]  ;;  %6052 = vmatpush1.bf16.msra.mxu1 %v8700_v30 }
 0x119   : > { %v1060_v35 = vld [vmem:[%s9716_s8 + $0x1500] sm:$0xff]  ;;  %v8557_v39 = vcombine.high %v932_v33, %v936_v34  ;;  %6053 = vmatprep.subr.bf16.mxu1 %v8693_v32  ;;  %6011 = vmatpush1.bf16.msra.mxu0 %v8564_v37  ;;  %v8556_v45 = vcombine.low %v932_v33, %v936_v34 }
 0x11a   : > { %v1064_v36 = vld [vmem:[%s9716_s8 + $0x1520] sm:$0xff] }
 0x11b   : > { %v8685_v40 = vcombine.high %v1060_v35, %v1064_v36  ;;  %v924_v41 = vld [vmem:[%s9716_s8 + $0x10c0] sm:$0xff]  ;;  %6012 = vmatprep.subr.bf16.mxu0 %v8557_v39  ;;  %v8684_v46 = vcombine.low %v1060_v35, %v1064_v36 }
 0x11c   : > { %v928_v42 = vld [vmem:[%s9716_s8 + $0x10e0] sm:$0xff]  ;;  %6054 = vmatpush1.bf16.msra.mxu1 %v8692_v38 }
 0x11d   : > { %v1052_v43 = vld [vmem:[%s9716_s8 + $0x14c0] sm:$0xff]  ;;  %v8549_v47 = vcombine.high %v924_v41, %v928_v42  ;;  %6055 = vmatprep.subr.bf16.mxu1 %v8685_v40  ;;  %6013 = vmatpush1.bf16.msra.mxu0 %v8556_v45  ;;  %v8548_v53 = vcombine.low %v924_v41, %v928_v42 }
 0x11e   : > { %v1056_v44 = vld [vmem:[%s9716_s8 + $0x14e0] sm:$0xff] }
 0x11f   : > { %v8677_v48 = vcombine.high %v1052_v43, %v1056_v44  ;;  %v916_v49 = vld [vmem:[%s9716_s8 + $0x1080] sm:$0xff]  ;;  %6014 = vmatprep.subr.bf16.mxu0 %v8549_v47  ;;  %v8676_v54 = vcombine.low %v1052_v43, %v1056_v44 }
 0x120   : > { %v920_v50 = vld [vmem:[%s9716_s8 + $0x10a0] sm:$0xff]  ;;  %6056 = vmatpush1.bf16.msra.mxu1 %v8684_v46 }
 0x121   : > { %v1044_v51 = vld [vmem:[%s9716_s8 + $0x1480] sm:$0xff]  ;;  %v8541_v55 = vcombine.high %v916_v49, %v920_v50  ;;  %6057 = vmatprep.subr.bf16.mxu1 %v8677_v48  ;;  %6015 = vmatpush1.bf16.msra.mxu0 %v8548_v53  ;;  %v8540_v61 = vcombine.low %v916_v49, %v920_v50 }
 0x122   : > { %v1048_v52 = vld [vmem:[%s9716_s8 + $0x14a0] sm:$0xff] }
 0x123   : > { %v8669_v56 = vcombine.high %v1044_v51, %v1048_v52  ;;  %v908_v57 = vld [vmem:[%s9716_s8 + $0x1040] sm:$0xff]  ;;  %6016 = vmatprep.subr.bf16.mxu0 %v8541_v55  ;;  %v8668_v62 = vcombine.low %v1044_v51, %v1048_v52 }
 0x124   : > { %v912_v58 = vld [vmem:[%s9716_s8 + $0x1060] sm:$0xff]  ;;  %6058 = vmatpush1.bf16.msra.mxu1 %v8676_v54 }
 0x125   : > { %v1036_v59 = vld [vmem:[%s9716_s8 + $0x1440] sm:$0xff]  ;;  %v8533_v63 = vcombine.high %v908_v57, %v912_v58  ;;  %6059 = vmatprep.subr.bf16.mxu1 %v8669_v56  ;;  %6017 = vmatpush1.bf16.msra.mxu0 %v8540_v61  ;;  %v8532_v5 = vcombine.low %v908_v57, %v912_v58 }
 0x126   : > { %v1040_v60 = vld [vmem:[%s9716_s8 + $0x1460] sm:$0xff] }
 0x127   : > { %v8661_v0 = vcombine.high %v1036_v59, %v1040_v60  ;;  %v900_v1 = vld [vmem:[%s9716_s8 + $0x1000] sm:$0xff]  ;;  %6018 = vmatprep.subr.bf16.mxu0 %v8533_v63  ;;  %v8660_v6 = vcombine.low %v1036_v59, %v1040_v60 }
 0x128   : > { %v904_v2 = vld [vmem:[%s9716_s8 + $0x1020] sm:$0xff]  ;;  %6060 = vmatpush1.bf16.msra.mxu1 %v8668_v62 }
 0x129   : > { %v1028_v3 = vld [vmem:[%s9716_s8 + $0x1400] sm:$0xff]  ;;  %v8525_v7 = vcombine.high %v900_v1, %v904_v2  ;;  %6061 = vmatprep.subr.bf16.mxu1 %v8661_v0  ;;  %6019 = vmatpush1.bf16.msra.mxu0 %v8532_v5  ;;  %v8524_v13 = vcombine.low %v900_v1, %v904_v2 }
 0x12a   : > { %v1032_v4 = vld [vmem:[%s9716_s8 + $0x1420] sm:$0xff] }
 0x12b   : > { %v8653_v8 = vcombine.high %v1028_v3, %v1032_v4  ;;  %v1020_v9 = vld [vmem:[%s9716_s8 + $0x13c0] sm:$0xff]  ;;  %6020 = vmatprep.subr.bf16.mxu0 %v8525_v7  ;;  %v8652_v14 = vcombine.low %v1028_v3, %v1032_v4 }
 0x12c   : > { %v1024_v10 = vld [vmem:[%s9716_s8 + $0x13e0] sm:$0xff]  ;;  %6062 = vmatpush1.bf16.msra.mxu1 %v8660_v6 }
 0x12d   : > { %v1148_v11 = vld [vmem:[%s9716_s8 + $0x17c0] sm:$0xff]  ;;  %v8645_v15 = vcombine.high %v1020_v9, %v1024_v10  ;;  %6063 = vmatprep.subr.bf16.mxu1 %v8653_v8  ;;  %6021 = vmatpush1.bf16.msra.mxu0 %v8524_v13  ;;  %v8644_v21 = vcombine.low %v1020_v9, %v1024_v10 }
 0x12e   : > { %v1152_v12 = vld [vmem:[%s9716_s8 + $0x17e0] sm:$0xff] }
 0x12f   : > { %v8773_v16 = vcombine.high %v1148_v11, %v1152_v12  ;;  %v1012_v17 = vld [vmem:[%s9716_s8 + $0x1380] sm:$0xff]  ;;  %6022 = vmatprep.subr.bf16.mxu0 %v8645_v15  ;;  %v8772_v22 = vcombine.low %v1148_v11, %v1152_v12  ;;  %v445_v11 = vld [vmem:[%s9716_s8 + $0x1c8] sm:$0xff] }
 0x130   : > { %v1016_v18 = vld [vmem:[%s9716_s8 + $0x13a0] sm:$0xff]  ;;  %6064 = vmatpush1.bf16.msra.mxu1 %v8652_v14  ;;  %v449_v12 = vld [vmem:[%s9716_s8 + $0x1e8] sm:$0xff] }
 0x131   : > { %v1140_v19 = vld [vmem:[%s9716_s8 + $0x1780] sm:$0xff]  ;;  %v8637_v23 = vcombine.high %v1012_v17, %v1016_v18  ;;  %6065 = vmatprep.subr.bf16.mxu1 %v8773_v16  ;;  %6023 = vmatpush2.bf16.msra.mxu0 %v8644_v21  ;;  %v8636_v29 = vcombine.low %v1012_v17, %v1016_v18  ;;  %v8071_v16 = vcombine.high %v445_v11, %v449_v12  ;;  %v441_v21 = vld [vmem:[%s9716_s8 + $0x1a8] sm:$0xff] }
 0x132   : > { %v1144_v20 = vld [vmem:[%s9716_s8 + $0x17a0] sm:$0xff] }
 0x133   : > { %v8765_v24 = vcombine.high %v1140_v19, %v1144_v20  ;;  %v1004_v25 = vld [vmem:[%s9716_s8 + $0x1340] sm:$0xff]  ;;  %6024 = vmatprep.subr.bf16.mxu0 %v8637_v23  ;;  %v8764_v30 = vcombine.low %v1140_v19, %v1144_v20  ;;  %v437_v20 = vld [vmem:[%s9716_s8 + $0x188] sm:$0xff] }
 0x134   : > { %v1008_v26 = vld [vmem:[%s9716_s8 + $0x1360] sm:$0xff]  ;;  %6066 = vmatpush2.bf16.msra.mxu1 %v8772_v22 }
 0x135   : > { %v1132_v27 = vld [vmem:[%s9716_s8 + $0x1740] sm:$0xff]  ;;  %v8629_v31 = vcombine.high %v1004_v25, %v1008_v26  ;;  %6067 = vmatprep.subr.bf16.mxu1 %v8765_v24  ;;  %6025 = vmatpush2.bf16.msra.mxu0 %v8636_v29  ;;  %v8628_v37 = vcombine.low %v1004_v25, %v1008_v26  ;;  %v8070_v24 = vcombine.low %v445_v11, %v449_v12 }
 0x136   : > { %v1136_v28 = vld [vmem:[%s9716_s8 + $0x1760] sm:$0xff]  ;;  %v8063_v26 = vcombine.high %v437_v20, %v441_v21 }
 0x137   : > { %v8757_v32 = vcombine.high %v1132_v27, %v1136_v28  ;;  %v996_v33 = vld [vmem:[%s9716_s8 + $0x1300] sm:$0xff]  ;;  %6026 = vmatprep.subr.bf16.mxu0 %v8629_v31  ;;  %v8756_v38 = vcombine.low %v1132_v27, %v1136_v28  ;;  %v433_v31 = vld [vmem:[%s9716_s8 + $0x168] sm:$0xff] }
 0x138   : > { %v1000_v34 = vld [vmem:[%s9716_s8 + $0x1320] sm:$0xff]  ;;  %6068 = vmatpush2.bf16.msra.mxu1 %v8764_v30  ;;  %v429_v30 = vld [vmem:[%s9716_s8 + $0x148] sm:$0xff] }
 0x139   : > { %v1124_v35 = vld [vmem:[%s9716_s8 + $0x1700] sm:$0xff]  ;;  %v8621_v39 = vcombine.high %v996_v33, %v1000_v34  ;;  %6069 = vmatprep.subr.bf16.mxu1 %v8757_v32  ;;  %6027 = vmatpush2.bf16.msra.mxu0 %v8628_v37  ;;  %v8620_v45 = vcombine.low %v996_v33, %v1000_v34  ;;  %v8062_v33 = vcombine.low %v437_v20, %v441_v21 }
 0x13a   : > { %v1128_v36 = vld [vmem:[%s9716_s8 + $0x1720] sm:$0xff] }
 0x13b   : > { %v8749_v40 = vcombine.high %v1124_v35, %v1128_v36  ;;  %v988_v41 = vld [vmem:[%s9716_s8 + $0x12c0] sm:$0xff]  ;;  %6028 = vmatprep.subr.bf16.mxu0 %v8621_v39  ;;  %v8748_v46 = vcombine.low %v1124_v35, %v1128_v36  ;;  %v8055_v35 = vcombine.high %v429_v30, %v433_v31  ;;  %v425_v39 = vld [vmem:[%s9716_s8 + $0x128] sm:$0xff] }
 0x13c   : > { %v992_v42 = vld [vmem:[%s9716_s8 + $0x12e0] sm:$0xff]  ;;  %6070 = vmatpush2.bf16.msra.mxu1 %v8756_v38  ;;  %v421_v38 = vld [vmem:[%s9716_s8 + $0x108] sm:$0xff] }
 0x13d   : > { %v1116_v43 = vld [vmem:[%s9716_s8 + $0x16c0] sm:$0xff]  ;;  %v8613_v47 = vcombine.high %v988_v41, %v992_v42  ;;  %6071 = vmatprep.subr.bf16.mxu1 %v8749_v40  ;;  %6029 = vmatpush2.bf16.msra.mxu0 %v8620_v45  ;;  %v8612_v53 = vcombine.low %v988_v41, %v992_v42  ;;  %v8054_v42 = vcombine.low %v429_v30, %v433_v31  ;;  %v493_v31 = vld [vmem:[%s9716_s8 + $0x348] sm:$0xff] }
 0x13e   : > { %v1120_v44 = vld [vmem:[%s9716_s8 + $0x16e0] sm:$0xff] }
 0x13f   : > { %v8741_v48 = vcombine.high %v1116_v43, %v1120_v44  ;;  %v980_v49 = vld [vmem:[%s9716_s8 + $0x1280] sm:$0xff]  ;;  %6030 = vmatprep.subr.bf16.mxu0 %v8613_v47  ;;  %v8740_v54 = vcombine.low %v1116_v43, %v1120_v44  ;;  %v8047_v44 = vcombine.high %v421_v38, %v425_v39  ;;  %v413_v47 = vld [vmem:[%s9716_s8 + $0xc8] sm:$0xff] }
 0x140   : > { %v984_v50 = vld [vmem:[%s9716_s8 + $0x12a0] sm:$0xff]  ;;  %6072 = vmatpush2.bf16.msra.mxu1 %v8748_v46 }
 0x141   : > { %v1108_v51 = vld [vmem:[%s9716_s8 + $0x1680] sm:$0xff]  ;;  %v8605_v55 = vcombine.high %v980_v49, %v984_v50  ;;  %6073 = vmatprep.subr.bf16.mxu1 %v8741_v48  ;;  %6031 = vmatpush2.bf16.msra.mxu0 %v8612_v53  ;;  %v8604_v61 = vcombine.low %v980_v49, %v984_v50  ;;  %v417_v48 = vld [vmem:[%s9716_s8 + $0xe8] sm:$0xff]  ;;  %v8046_v50 = vcombine.low %v421_v38, %v425_v39 }
 0x142   : > { %v1112_v52 = vld [vmem:[%s9716_s8 + $0x16a0] sm:$0xff]  ;;  %v485_v39 = vld [vmem:[%s9716_s8 + $0x308] sm:$0xff] }
 0x143   : > { %v8733_v56 = vcombine.high %v1108_v51, %v1112_v52  ;;  %v972_v57 = vld [vmem:[%s9716_s8 + $0x1240] sm:$0xff]  ;;  %6032 = vmatprep.subr.bf16.mxu0 %v8605_v55  ;;  %v8732_v62 = vcombine.low %v1108_v51, %v1112_v52  ;;  %v8039_v52 = vcombine.high %v413_v47, %v417_v48  ;;  %v405_v55 = vld [vmem:[%s9716_s8 + $0x88] sm:$0xff] }
 0x144   : > { %v976_v58 = vld [vmem:[%s9716_s8 + $0x1260] sm:$0xff]  ;;  %6074 = vmatpush2.bf16.msra.mxu1 %v8740_v54 }
 0x145   : > { %v1100_v59 = vld [vmem:[%s9716_s8 + $0x1640] sm:$0xff]  ;;  %v8597_v63 = vcombine.high %v972_v57, %v976_v58  ;;  %6075 = vmatprep.subr.bf16.mxu1 %v8733_v56  ;;  %6033 = vmatpush2.bf16.msra.mxu0 %v8604_v61  ;;  %v8596_v5 = vcombine.low %v972_v57, %v976_v58  ;;  %v409_v56 = vld [vmem:[%s9716_s8 + $0xa8] sm:$0xff]  ;;  %v8038_v58 = vcombine.low %v413_v47, %v417_v48 }
 0x146   : > { %v1104_v60 = vld [vmem:[%s9716_s8 + $0x1660] sm:$0xff]  ;;  %v477_v47 = vld [vmem:[%s9716_s8 + $0x2c8] sm:$0xff] }
 0x147   : > { %v8725_v0 = vcombine.high %v1100_v59, %v1104_v60  ;;  %v964_v1 = vld [vmem:[%s9716_s8 + $0x1200] sm:$0xff]  ;;  %6034 = vmatprep.subr.bf16.mxu0 %v8597_v63  ;;  %v8724_v6 = vcombine.low %v1100_v59, %v1104_v60  ;;  %v8031_v60 = vcombine.high %v405_v55, %v409_v56  ;;  %v397_v63 = vld [vmem:[%s9716_s8 + $0x48] sm:$0xff] }
 0x148   : > { %v968_v2 = vld [vmem:[%s9716_s8 + $0x1220] sm:$0xff]  ;;  %6076 = vmatpush2.bf16.msra.mxu1 %v8732_v62  ;;  %v481_v48 = vld [vmem:[%s9716_s8 + $0x2e8] sm:$0xff] }
 0x149   : > { %v1092_v3 = vld [vmem:[%s9716_s8 + $0x1600] sm:$0xff]  ;;  %v8589_v7 = vcombine.high %v964_v1, %v968_v2  ;;  %6077 = vmatprep.subr.bf16.mxu1 %v8725_v0  ;;  %6035 = vmatpush2.bf16.msra.mxu0 %v8596_v5  ;;  %v8588_v13 = vcombine.low %v964_v1, %v968_v2  ;;  %v401_v0 = vld [vmem:[%s9716_s8 + $0x68] sm:$0xff]  ;;  %v8030_v2 = vcombine.low %v405_v55, %v409_v56 }
 0x14a   : > { %v1096_v4 = vld [vmem:[%s9716_s8 + $0x1620] sm:$0xff]  ;;  %v469_v55 = vld [vmem:[%s9716_s8 + $0x288] sm:$0xff] }
 0x14b   : > { %v8717_v8 = vcombine.high %v1092_v3, %v1096_v4  ;;  %v1212_v9 = vld [vmem:[%s9716_s8 + $0x19c0] sm:$0xff]  ;;  %6036 = vmatprep.subr.bf16.mxu0 %v8589_v7  ;;  %v8716_v14 = vcombine.low %v1092_v3, %v1096_v4  ;;  %v8023_v4 = vcombine.high %v397_v63, %v401_v0  ;;  %v389_v7 = vld [vmem:[%s9716_s8 + $0x8] sm:$0xff] }
 0x14c   : > { %v1216_v10 = vld [vmem:[%s9716_s8 + $0x19e0] sm:$0xff]  ;;  %6078 = vmatpush2.bf16.msra.mxu1 %v8724_v6  ;;  %v473_v56 = vld [vmem:[%s9716_s8 + $0x2a8] sm:$0xff] }
 0x14d   : > { %v8837_v15 = vcombine.high %v1212_v9, %v1216_v10  ;;  %6079 = vmatprep.subr.bf16.mxu1 %v8717_v8  ;;  %v1204_v17 = vld [vmem:[%s9716_s8 + $0x1980] sm:$0xff]  ;;  %6037 = vmatpush2.bf16.msra.mxu0 %v8588_v13  ;;  %v8836_v23 = vcombine.low %v1212_v9, %v1216_v10  ;;  %v393_v8 = vld [vmem:[%s9716_s8 + $0x28] sm:$0xff]  ;;  %v8022_v10 = vcombine.low %v397_v63, %v401_v0 }
 0x14e   : > { %v1208_v18 = vld [vmem:[%s9716_s8 + $0x19a0] sm:$0xff]  ;;  %v8015_v12 = vcombine.high %v389_v7, %v393_v8  ;;  %v461_v63 = vld [vmem:[%s9716_s8 + $0x248] sm:$0xff] }
 0x14f   : > { %v9198_v19 = vld [vmem:[%s9709_s29 + $0x20] ss:$56 sps:$4 sm:$0xff]   ;;  %6092 = vmatprep.subr.bf16.mxu0 %v8837_v15  ;;  %v8829_v25 = vcombine.high %v1204_v17, %v1208_v18  ;;  %v9200_v29 = vld [vmem:[%s9709_s29 + $0x34] ss:$56 sps:$4 sm:$0xff]   ;;  %v8828_v32 = vcombine.low %v1204_v17, %v1208_v18  ;;  %v9203_v40 = vld [vmem:[%s9709_s29 + $0x4] ss:$56 sps:$4 sm:$0xff]   ;;  %v8014_v18 = vcombine.low %v389_v7, %v393_v8 }
 0x150   : > { %v9199_v22 = vld [vmem:[%s9709_s29 + $0x28] ss:$56 sps:$4 sm:$0xff]   ;;  %6080 = vmatpush2.bf16.msra.mxu1 %v8716_v14  ;;  %6039 = vmatmul.mubr.bf16.vlgmr.msra.gmra.mxu0 %v9198_v19 }
 0x151   : > { %6135 = vmatprep.subr.bf16.mxu1 %v8071_v16  ;;  %v1196_v27 = vld [vmem:[%s9716_s8 + $0x1940] sm:$0xff]  ;;  %6093 = vmatpush1.bf16.msra.mxu0 %v8836_v23  ;;  %v509_v15 = vld [vmem:[%s9716_s8 + $0x3c8] sm:$0xff] }
 0x152   : > { %v1200_v28 = vld [vmem:[%s9716_s8 + $0x1960] sm:$0xff]  ;;  %6094 = vmatprep.subr.bf16.mxu0 %v8829_v25  ;;  %6124 = vmatprep.mubr.bf16.mxu0 %v9200_v29  ;;  %v513_v16 = vld [vmem:[%s9716_s8 + $0x3e8] sm:$0xff] }
 0x153   : > { %6082 = vmatmul.mubr.bf16.vlgmr.msra.gmra.mxu1 %v9199_v22  ;;  %v8821_v34 = vcombine.high %v1196_v27, %v1200_v28  ;;  %v1188_v36 = vld [vmem:[%s9716_s8 + $0x1900] sm:$0xff]  ;;  %v8820_v41 = vcombine.low %v1196_v27, %v1200_v28  ;;  %v8135_v20 = vcombine.high %v509_v15, %v513_v16  ;;  %v501_v23 = vld [vmem:[%s9716_s8 + $0x388] sm:$0xff] }
 0x154   : > { %6136 = vmatpush1.bf16.msra.mxu1 %v8070_v24  ;;  %v1192_v37 = vld [vmem:[%s9716_s8 + $0x1920] sm:$0xff]  ;;  %6167 = vmatprep.mubr.bf16.mxu1 %v9203_v40  ;;  %v505_v24 = vld [vmem:[%s9716_s8 + $0x3a8] sm:$0xff] }
 0x155   : > { %6137 = vmatprep.subr.bf16.mxu1 %v8063_v26  ;;  %6095 = vmatpush1.bf16.msra.mxu0 %v8828_v32  ;;  %v8813_v43 = vcombine.high %v1188_v36, %v1192_v37  ;;  %v1180_v45 = vld [vmem:[%s9716_s8 + $0x18c0] sm:$0xff]  ;;  %v8812_v49 = vcombine.low %v1188_v36, %v1192_v37  ;;  %v8134_v26 = vcombine.low %v509_v15, %v513_v16  ;;  %v497_v32 = vld [vmem:[%s9716_s8 + $0x368] sm:$0xff] }
 0x156   : > { %6096 = vmatprep.subr.bf16.mxu0 %v8821_v34  ;;  %v1184_v46 = vld [vmem:[%s9716_s8 + $0x18e0] sm:$0xff]  ;;  %v8127_v28 = vcombine.high %v501_v23, %v505_v24  ;;  %v8126_v34 = vcombine.low %v501_v23, %v505_v24  ;;  %v8119_v36 = vcombine.high %v493_v31, %v497_v32  ;;  %v489_v40 = vld [vmem:[%s9716_s8 + $0x328] sm:$0xff] }
 0x157   : > { %v8805_v51 = vcombine.high %v1180_v45, %v1184_v46  ;;  %v1172_v53 = vld [vmem:[%s9716_s8 + $0x1880] sm:$0xff]  ;;  %v8804_v57 = vcombine.low %v1180_v45, %v1184_v46  ;;  %v465_v0 = vld [vmem:[%s9716_s8 + $0x268] sm:$0xff] }
 0x158   : > { %6138 = vmatpush1.bf16.msra.mxu1 %v8062_v33  ;;  %v1176_v54 = vld [vmem:[%s9716_s8 + $0x18a0] sm:$0xff]  ;;  %v453_v7 = vld [vmem:[%s9716_s8 + $0x208] sm:$0xff] }
 0x159   : > { %6139 = vmatprep.subr.bf16.mxu1 %v8055_v35  ;;  %6097 = vmatpush1.bf16.msra.mxu0 %v8820_v41  ;;  %v8797_v59 = vcombine.high %v1172_v53, %v1176_v54  ;;  %v1164_v61 = vld [vmem:[%s9716_s8 + $0x1840] sm:$0xff]  ;;  %v8796_v1 = vcombine.low %v1172_v53, %v1176_v54  ;;  %v457_v8 = vld [vmem:[%s9716_s8 + $0x228] sm:$0xff] }
 0x15a   : > { %6098 = vmatprep.subr.bf16.mxu0 %v8813_v43  ;;  %v1168_v62 = vld [vmem:[%s9716_s8 + $0x1860] sm:$0xff]  ;;  %v701_v15 = vld [vmem:[%s9716_s8 + $0x9c8] sm:$0xff] }
 0x15b   : > { %v8789_v3 = vcombine.high %v1164_v61, %v1168_v62  ;;  %v1156_v5 = vld [vmem:[%s9716_s8 + $0x1800] sm:$0xff]  ;;  %v8788_v9 = vcombine.low %v1164_v61, %v1168_v62  ;;  %v705_v16 = vld [vmem:[%s9716_s8 + $0x9e8] sm:$0xff] }
 0x15c   : > { %6140 = vmatpush1.bf16.msra.mxu1 %v8054_v42  ;;  %v1160_v6 = vld [vmem:[%s9716_s8 + $0x1820] sm:$0xff]  ;;  %v8118_v42 = vcombine.low %v493_v31, %v497_v32  ;;  %v693_v24 = vld [vmem:[%s9716_s8 + $0x988] sm:$0xff] }
 0x15d   : > { %6141 = vmatprep.subr.bf16.mxu1 %v8047_v44  ;;  %6099 = vmatpush1.bf16.msra.mxu0 %v8812_v49  ;;  %v8781_v11 = vcombine.high %v1156_v5, %v1160_v6  ;;  %v1276_v13 = vld [vmem:[%s9716_s8 + $0x1bc0] sm:$0xff]  ;;  %v8780_v17 = vcombine.low %v1156_v5, %v1160_v6  ;;  %v8111_v44 = vcombine.high %v485_v39, %v489_v40  ;;  %v561_v31 = vld [vmem:[%s9716_s8 + $0x568] sm:$0xff] }
 0x15e   : > { %6100 = vmatprep.subr.bf16.mxu0 %v8805_v51  ;;  %v1280_v14 = vld [vmem:[%s9716_s8 + $0x1be0] sm:$0xff]  ;;  %v685_v32 = vld [vmem:[%s9716_s8 + $0x948] sm:$0xff] }
 0x15f   : > { %v8901_v19 = vcombine.high %v1276_v13, %v1280_v14  ;;  %v1268_v21 = vld [vmem:[%s9716_s8 + $0x1b80] sm:$0xff]  ;;  %v8900_v25 = vcombine.low %v1276_v13, %v1280_v14  ;;  %v573_v13 = vld [vmem:[%s9716_s8 + $0x5c8] sm:$0xff] }
 0x160   : > { %6142 = vmatpush1.bf16.msra.mxu1 %v8046_v50  ;;  %v1272_v22 = vld [vmem:[%s9716_s8 + $0x1ba0] sm:$0xff]  ;;  %v8110_v50 = vcombine.low %v485_v39, %v489_v40  ;;  %v577_v14 = vld [vmem:[%s9716_s8 + $0x5e8] sm:$0xff] }
 0x161   : > { %6143 = vmatprep.subr.bf16.mxu1 %v8039_v52  ;;  %6101 = vmatpush1.bf16.msra.mxu0 %v8804_v57  ;;  %v8893_v27 = vcombine.high %v1268_v21, %v1272_v22  ;;  %v1260_v29 = vld [vmem:[%s9716_s8 + $0x1b40] sm:$0xff]  ;;  %v8892_v33 = vcombine.low %v1268_v21, %v1272_v22  ;;  %v8103_v52 = vcombine.high %v477_v47, %v481_v48  ;;  %v565_v21 = vld [vmem:[%s9716_s8 + $0x588] sm:$0xff] }
 0x162   : > { %6102 = vmatprep.subr.bf16.mxu0 %v8797_v59  ;;  %v1264_v30 = vld [vmem:[%s9716_s8 + $0x1b60] sm:$0xff]  ;;  %v569_v22 = vld [vmem:[%s9716_s8 + $0x5a8] sm:$0xff] }
 0x163   : > { %v8885_v35 = vcombine.high %v1260_v29, %v1264_v30  ;;  %v1252_v37 = vld [vmem:[%s9716_s8 + $0x1b00] sm:$0xff]  ;;  %v8884_v41 = vcombine.low %v1260_v29, %v1264_v30  ;;  %v557_v30 = vld [vmem:[%s9716_s8 + $0x548] sm:$0xff] }
 0x164   : > { %6144 = vmatpush1.bf16.msra.mxu1 %v8038_v58  ;;  %v1256_v38 = vld [vmem:[%s9716_s8 + $0x1b20] sm:$0xff]  ;;  %v8102_v58 = vcombine.low %v477_v47, %v481_v48  ;;  %v549_v39 = vld [vmem:[%s9716_s8 + $0x508] sm:$0xff] }
 0x165   : > { %6145 = vmatprep.subr.bf16.mxu1 %v8031_v60  ;;  %6103 = vmatpush1.bf16.msra.mxu0 %v8796_v1  ;;  %v8877_v43 = vcombine.high %v1252_v37, %v1256_v38  ;;  %v1244_v45 = vld [vmem:[%s9716_s8 + $0x1ac0] sm:$0xff]  ;;  %v8876_v49 = vcombine.low %v1252_v37, %v1256_v38  ;;  %v8095_v60 = vcombine.high %v469_v55, %v473_v56  ;;  %v553_v40 = vld [vmem:[%s9716_s8 + $0x528] sm:$0xff] }
 0x166   : > { %6104 = vmatprep.subr.bf16.mxu0 %v8789_v3  ;;  %v1248_v46 = vld [vmem:[%s9716_s8 + $0x1ae0] sm:$0xff]  ;;  %v8183_v37 = vcombine.high %v557_v30, %v561_v31  ;;  %v8175_v47 = vcombine.high %v549_v39, %v553_v40 }
 0x167   : > { %v8869_v51 = vcombine.high %v1244_v45, %v1248_v46  ;;  %v1236_v53 = vld [vmem:[%s9716_s8 + $0x1a80] sm:$0xff]  ;;  %v8868_v57 = vcombine.low %v1244_v45, %v1248_v46  ;;  %v8182_v45 = vcombine.low %v557_v30, %v561_v31 }
 0x168   : > { %6146 = vmatpush1.bf16.msra.mxu1 %v8030_v2  ;;  %v1240_v54 = vld [vmem:[%s9716_s8 + $0x1aa0] sm:$0xff]  ;;  %v8094_v2 = vcombine.low %v469_v55, %v473_v56 }
 0x169   : > { %6147 = vmatprep.subr.bf16.mxu1 %v8023_v4  ;;  %6105 = vmatpush1.bf16.msra.mxu0 %v8788_v9  ;;  %v8861_v59 = vcombine.high %v1236_v53, %v1240_v54  ;;  %v1228_v61 = vld [vmem:[%s9716_s8 + $0x1a40] sm:$0xff]  ;;  %v8860_v1 = vcombine.low %v1236_v53, %v1240_v54  ;;  %v8087_v4 = vcombine.high %v461_v63, %v465_v0 }
 0x16a   : > { %6106 = vmatprep.subr.bf16.mxu0 %v8781_v11  ;;  %v1232_v62 = vld [vmem:[%s9716_s8 + $0x1a60] sm:$0xff]  ;;  %v8174_v53 = vcombine.low %v549_v39, %v553_v40 }
 0x16b   : > { %v8853_v3 = vcombine.high %v1228_v61, %v1232_v62  ;;  %v1220_v5 = vld [vmem:[%s9716_s8 + $0x1a00] sm:$0xff]  ;;  %v8852_v9 = vcombine.low %v1228_v61, %v1232_v62 }
 0x16c   : > { %6148 = vmatpush1.bf16.msra.mxu1 %v8022_v10  ;;  %v1224_v6 = vld [vmem:[%s9716_s8 + $0x1a20] sm:$0xff]  ;;  %v8086_v10 = vcombine.low %v461_v63, %v465_v0 }
 0x16d   : > { %6149 = vmatprep.subr.bf16.mxu1 %v8015_v12  ;;  %6107 = vmatpush1.bf16.msra.mxu0 %v8780_v17  ;;  %v8845_v11 = vcombine.high %v1220_v5, %v1224_v6  ;;  %v8079_v12 = vcombine.high %v453_v7, %v457_v8  ;;  %v8844_v17 = vcombine.low %v1220_v5, %v1224_v6  ;;  %v9202_v23 = vld [vmem:[%s9709_s29 + $0x30] ss:$56 sps:$4 sm:$0xff]  }
 0x16e   : > { %6108 = vmatprep.subr.bf16.mxu0 %v8901_v19  ;;  %v8199_v19 = vcombine.high %v573_v13, %v577_v14 }
 0x170   : > { %6150 = vmatpush1.bf16.msra.mxu1 %v8014_v18  ;;  %v8078_v18 = vcombine.low %v453_v7, %v457_v8 }
 0x171   : > { %6151 = vmatprep.subr.bf16.mxu1 %v8135_v20  ;;  %6109 = vmatpush2.bf16.msra.mxu0 %v8900_v25  ;;  %v8327_v20 = vcombine.high %v701_v15, %v705_v16  ;;  %v697_v25 = vld [vmem:[%s9716_s8 + $0x9a8] sm:$0xff] }
 0x172   : > { %6110 = vmatprep.subr.bf16.mxu0 %v8893_v27  ;;  %v8326_v27 = vcombine.low %v701_v15, %v705_v16  ;;  %v8319_v29 = vcombine.high %v693_v24, %v697_v25 }
 0x174   : > { %6152 = vmatpush2.bf16.msra.mxu1 %v8134_v26  ;;  %v8198_v26 = vcombine.low %v573_v13, %v577_v14 }
 0x175   : > { %6153 = vmatprep.subr.bf16.mxu1 %v8127_v28  ;;  %6111 = vmatpush2.bf16.msra.mxu0 %v8892_v33  ;;  %v8191_v28 = vcombine.high %v565_v21, %v569_v22  ;;  %v689_v33 = vld [vmem:[%s9716_s8 + $0x968] sm:$0xff] }
 0x176   : > { %6112 = vmatprep.subr.bf16.mxu0 %v8885_v35  ;;  %v8190_v35 = vcombine.low %v565_v21, %v569_v22  ;;  %v8311_v38 = vcombine.high %v685_v32, %v689_v33  ;;  %v8310_v46 = vcombine.low %v685_v32, %v689_v33  ;;  %v621_v33 = vld [vmem:[%s9716_s8 + $0x748] sm:$0xff] }
 0x178   : > { %6154 = vmatpush2.bf16.msra.mxu1 %v8126_v34  ;;  %v9204_v34 = vld [vmem:[%s9709_s29] ss:$56 sps:$4 sm:$0xff]  }
 0x179   : > { %6155 = vmatprep.subr.bf16.mxu1 %v8119_v36  ;;  %6113 = vmatpush2.bf16.msra.mxu0 %v8884_v41  ;;  %v8318_v36 = vcombine.low %v693_v24, %v697_v25  ;;  %v9205_v41 = vld [vmem:[%s9709_s29 + $0xc] ss:$56 sps:$4 sm:$0xff]  }
 0x17a   : > { %6114 = vmatprep.subr.bf16.mxu0 %v8877_v43  ;;  %v681_v43 = vld [vmem:[%s9716_s8 + $0x928] sm:$0xff] }
 0x17b   : > { %v629_v25 = vld [vmem:[%s9716_s8 + $0x788] sm:$0xff] }
 0x17c   : > { %6156 = vmatpush2.bf16.msra.mxu1 %v8118_v42  ;;  %v677_v42 = vld [vmem:[%s9716_s8 + $0x908] sm:$0xff] }
 0x17d   : > { %6157 = vmatprep.subr.bf16.mxu1 %v8111_v44  ;;  %6115 = vmatpush2.bf16.msra.mxu0 %v8876_v49  ;;  %v9206_v44 = vld [vmem:[%s9709_s29 + $0x14] ss:$56 sps:$4 sm:$0xff]   ;;  %v8303_v48 = vcombine.high %v677_v42, %v681_v43  ;;  %v8302_v54 = vcombine.low %v677_v42, %v681_v43 }
 0x17e   : > { %6116 = vmatprep.subr.bf16.mxu0 %v8869_v51  ;;  %v541_v49 = vld [vmem:[%s9716_s8 + $0x4c8] sm:$0xff] }
 0x17f   : > { %v669_v51 = vld [vmem:[%s9716_s8 + $0x8c8] sm:$0xff] }
 0x180   : > { %6158 = vmatpush2.bf16.msra.mxu1 %v8110_v50  ;;  %v545_v50 = vld [vmem:[%s9716_s8 + $0x4e8] sm:$0xff] }
 0x181   : > { %6159 = vmatprep.subr.bf16.mxu1 %v8103_v52  ;;  %6117 = vmatpush2.bf16.msra.mxu0 %v8868_v57  ;;  %v673_v52 = vld [vmem:[%s9716_s8 + $0x8e8] sm:$0xff]  ;;  %v8167_v55 = vcombine.high %v541_v49, %v545_v50  ;;  %v8166_v61 = vcombine.low %v541_v49, %v545_v50 }
 0x182   : > { %6118 = vmatprep.subr.bf16.mxu0 %v8861_v59  ;;  %v8295_v56 = vcombine.high %v669_v51, %v673_v52  ;;  %v533_v57 = vld [vmem:[%s9716_s8 + $0x488] sm:$0xff]  ;;  %v8294_v62 = vcombine.low %v669_v51, %v673_v52 }
 0x183   : > { %v661_v59 = vld [vmem:[%s9716_s8 + $0x888] sm:$0xff] }
 0x184   : > { %6160 = vmatpush2.bf16.msra.mxu1 %v8102_v58  ;;  %v537_v58 = vld [vmem:[%s9716_s8 + $0x4a8] sm:$0xff] }
 0x185   : > { %6161 = vmatprep.subr.bf16.mxu1 %v8095_v60  ;;  %6119 = vmatpush2.bf16.msra.mxu0 %v8860_v1  ;;  %v665_v60 = vld [vmem:[%s9716_s8 + $0x8a8] sm:$0xff]  ;;  %v8159_v63 = vcombine.high %v533_v57, %v537_v58  ;;  %v8158_v5 = vcombine.low %v533_v57, %v537_v58 }
 0x186   : > { %6120 = vmatprep.subr.bf16.mxu0 %v8853_v3  ;;  %v8287_v0 = vcombine.high %v661_v59, %v665_v60  ;;  %v525_v1 = vld [vmem:[%s9716_s8 + $0x448] sm:$0xff]  ;;  %v8286_v6 = vcombine.low %v661_v59, %v665_v60 }
 0x187   : > { %v653_v3 = vld [vmem:[%s9716_s8 + $0x848] sm:$0xff] }
 0x188   : > { %6162 = vmatpush2.bf16.msra.mxu1 %v8094_v2  ;;  %v529_v2 = vld [vmem:[%s9716_s8 + $0x468] sm:$0xff] }
 0x189   : > { %6163 = vmatprep.subr.bf16.mxu1 %v8087_v4  ;;  %6121 = vmatpush2.bf16.msra.mxu0 %v8852_v9  ;;  %v657_v4 = vld [vmem:[%s9716_s8 + $0x868] sm:$0xff]  ;;  %v8151_v7 = vcombine.high %v525_v1, %v529_v2  ;;  %v8150_v13 = vcombine.low %v525_v1, %v529_v2 }
 0x18a   : > { %6122 = vmatprep.subr.bf16.mxu0 %v8845_v11  ;;  %v8279_v8 = vcombine.high %v653_v3, %v657_v4  ;;  %v517_v9 = vld [vmem:[%s9716_s8 + $0x408] sm:$0xff]  ;;  %v8278_v14 = vcombine.low %v653_v3, %v657_v4 }
 0x18b   : > { %v645_v11 = vld [vmem:[%s9716_s8 + $0x808] sm:$0xff] }
 0x18c   : > { %6164 = vmatpush2.bf16.msra.mxu1 %v8086_v10  ;;  %v521_v10 = vld [vmem:[%s9716_s8 + $0x428] sm:$0xff] }
 0x18d   : > { %6165 = vmatprep.subr.bf16.mxu1 %v8079_v12  ;;  %6123 = vmatpush2.bf16.msra.mxu0 %v8844_v17  ;;  %v649_v12 = vld [vmem:[%s9716_s8 + $0x828] sm:$0xff]  ;;  %v8143_v15 = vcombine.high %v517_v9, %v521_v10  ;;  %v8142_v21 = vcombine.low %v517_v9, %v521_v10 }
 0x18e   : > { %6178 = vmatprep.subr.bf16.mxu0 %v8199_v19  ;;  %v8271_v16 = vcombine.high %v645_v11, %v649_v12  ;;  %v637_v17 = vld [vmem:[%s9716_s8 + $0x7c8] sm:$0xff]  ;;  %v8270_v22 = vcombine.low %v645_v11, %v649_v12 }
 0x18f   : > { %v765_v19 = vld [vmem:[%s9716_s8 + $0xbc8] sm:$0xff] }
 0x190   : > { %6166 = vmatpush2.bf16.msra.mxu1 %v8078_v18  ;;  %6125 = vmatmul.mubr.bf16.vlgmr.msra.gmra.mxu0 %v9202_v23  ;;  %v641_v18 = vld [vmem:[%s9716_s8 + $0x7e8] sm:$0xff] }
 0x191   : > { %6221 = vmatprep.subr.bf16.mxu1 %v8327_v20  ;;  %6179 = vmatpush1.bf16.msra.mxu0 %v8198_v26  ;;  %v769_v20 = vld [vmem:[%s9716_s8 + $0xbe8] sm:$0xff]  ;;  %v8263_v23 = vcombine.high %v637_v17, %v641_v18 }
 0x192   : > { %6180 = vmatprep.subr.bf16.mxu0 %v8191_v28  ;;  %6210 = vmatprep.mubr.bf16.mxu0 %v9205_v41  ;;  %v8391_v24 = vcombine.high %v765_v19, %v769_v20  ;;  %v633_v26 = vld [vmem:[%s9716_s8 + $0x7a8] sm:$0xff]  ;;  %v8390_v30 = vcombine.low %v765_v19, %v769_v20 }
 0x193   : > { %6168 = vmatmul.mubr.bf16.vlgmr.msra.gmra.mxu1 %v9204_v34  ;;  %v761_v28 = vld [vmem:[%s9716_s8 + $0xba8] sm:$0xff]  ;;  %v8255_v31 = vcombine.high %v629_v25, %v633_v26 }
 0x194   : > { %6222 = vmatpush1.bf16.msra.mxu1 %v8326_v27  ;;  %6253 = vmatprep.mubr.bf16.mxu1 %v9206_v44  ;;  %v757_v27 = vld [vmem:[%s9716_s8 + $0xb88] sm:$0xff] }
 0x195   : > { %6223 = vmatprep.subr.bf16.mxu1 %v8319_v29  ;;  %6181 = vmatpush1.bf16.msra.mxu0 %v8190_v35  ;;  %v8262_v29 = vcombine.low %v637_v17, %v641_v18  ;;  %v8383_v32 = vcombine.high %v757_v27, %v761_v28  ;;  %v625_v34 = vld [vmem:[%s9716_s8 + $0x768] sm:$0xff] }
 0x196   : > { %6182 = vmatprep.subr.bf16.mxu0 %v8183_v37  ;;  %v749_v35 = vld [vmem:[%s9716_s8 + $0xb48] sm:$0xff]  ;;  %v8254_v37 = vcombine.low %v629_v25, %v633_v26  ;;  %v8247_v39 = vcombine.high %v621_v33, %v625_v34 }
 0x197   : > { %v613_v41 = vld [vmem:[%s9716_s8 + $0x708] sm:$0xff] }
 0x198   : > { %6224 = vmatpush1.bf16.msra.mxu1 %v8318_v36  ;;  %v753_v36 = vld [vmem:[%s9716_s8 + $0xb68] sm:$0xff] }
 0x199   : > { %6225 = vmatprep.subr.bf16.mxu1 %v8311_v38  ;;  %6183 = vmatpush1.bf16.msra.mxu0 %v8182_v45  ;;  %v8382_v38 = vcombine.low %v757_v27, %v761_v28  ;;  %v8375_v40 = vcombine.high %v749_v35, %v753_v36  ;;  %v617_v42 = vld [vmem:[%s9716_s8 + $0x728] sm:$0xff]  ;;  %v8246_v45 = vcombine.low %v621_v33, %v625_v34 }
 0x19a   : > { %6184 = vmatprep.subr.bf16.mxu0 %v8175_v47  ;;  %v741_v43 = vld [vmem:[%s9716_s8 + $0xb08] sm:$0xff]  ;;  %v8239_v47 = vcombine.high %v613_v41, %v617_v42 }
 0x19b   : > { %v745_v44 = vld [vmem:[%s9716_s8 + $0xb28] sm:$0xff] }
 0x19c   : > { %6226 = vmatpush1.bf16.msra.mxu1 %v8310_v46  ;;  %v8374_v46 = vcombine.low %v749_v35, %v753_v36  ;;  %v605_v49 = vld [vmem:[%s9716_s8 + $0x6c8] sm:$0xff] }
 0x19d   : > { %6227 = vmatprep.subr.bf16.mxu1 %v8303_v48  ;;  %6185 = vmatpush1.bf16.msra.mxu0 %v8174_v53  ;;  %v8367_v48 = vcombine.high %v741_v43, %v745_v44  ;;  %v609_v50 = vld [vmem:[%s9716_s8 + $0x6e8] sm:$0xff]  ;;  %v8238_v53 = vcombine.low %v613_v41, %v617_v42 }
 0x19e   : > { %6186 = vmatprep.subr.bf16.mxu0 %v8167_v55  ;;  %v733_v51 = vld [vmem:[%s9716_s8 + $0xac8] sm:$0xff]  ;;  %v8231_v55 = vcombine.high %v605_v49, %v609_v50 }
 0x19f   : > { %v737_v52 = vld [vmem:[%s9716_s8 + $0xae8] sm:$0xff] }
 0x1a0   : > { %6228 = vmatpush1.bf16.msra.mxu1 %v8302_v54  ;;  %v8366_v54 = vcombine.low %v741_v43, %v745_v44  ;;  %v597_v57 = vld [vmem:[%s9716_s8 + $0x688] sm:$0xff] }
 0x1a1   : > { %6229 = vmatprep.subr.bf16.mxu1 %v8295_v56  ;;  %6187 = vmatpush1.bf16.msra.mxu0 %v8166_v61  ;;  %v8359_v56 = vcombine.high %v733_v51, %v737_v52  ;;  %v601_v58 = vld [vmem:[%s9716_s8 + $0x6a8] sm:$0xff]  ;;  %v8230_v61 = vcombine.low %v605_v49, %v609_v50 }
 0x1a2   : > { %6188 = vmatprep.subr.bf16.mxu0 %v8159_v63  ;;  %v725_v59 = vld [vmem:[%s9716_s8 + $0xa88] sm:$0xff]  ;;  %v8223_v63 = vcombine.high %v597_v57, %v601_v58 }
 0x1a3   : > { %v729_v60 = vld [vmem:[%s9716_s8 + $0xaa8] sm:$0xff] }
 0x1a4   : > { %6230 = vmatpush1.bf16.msra.mxu1 %v8294_v62  ;;  %v8358_v62 = vcombine.low %v733_v51, %v737_v52  ;;  %v589_v1 = vld [vmem:[%s9716_s8 + $0x648] sm:$0xff] }
 0x1a5   : > { %6231 = vmatprep.subr.bf16.mxu1 %v8287_v0  ;;  %6189 = vmatpush1.bf16.msra.mxu0 %v8158_v5  ;;  %v8351_v0 = vcombine.high %v725_v59, %v729_v60  ;;  %v593_v2 = vld [vmem:[%s9716_s8 + $0x668] sm:$0xff]  ;;  %v8222_v5 = vcombine.low %v597_v57, %v601_v58 }
 0x1a6   : > { %6190 = vmatprep.subr.bf16.mxu0 %v8151_v7  ;;  %v717_v3 = vld [vmem:[%s9716_s8 + $0xa48] sm:$0xff]  ;;  %v8215_v7 = vcombine.high %v589_v1, %v593_v2 }
 0x1a7   : > { %v721_v4 = vld [vmem:[%s9716_s8 + $0xa68] sm:$0xff] }
 0x1a8   : > { %6232 = vmatpush1.bf16.msra.mxu1 %v8286_v6  ;;  %v8350_v6 = vcombine.low %v725_v59, %v729_v60  ;;  %v581_v9 = vld [vmem:[%s9716_s8 + $0x608] sm:$0xff] }
 0x1a9   : > { %6233 = vmatprep.subr.bf16.mxu1 %v8279_v8  ;;  %6191 = vmatpush1.bf16.msra.mxu0 %v8150_v13  ;;  %v8343_v8 = vcombine.high %v717_v3, %v721_v4  ;;  %v585_v10 = vld [vmem:[%s9716_s8 + $0x628] sm:$0xff]  ;;  %v8214_v13 = vcombine.low %v589_v1, %v593_v2 }
 0x1aa   : > { %6192 = vmatprep.subr.bf16.mxu0 %v8143_v15  ;;  %v709_v11 = vld [vmem:[%s9716_s8 + $0xa08] sm:$0xff]  ;;  %v8207_v15 = vcombine.high %v581_v9, %v585_v10 }
 0x1ab   : > { %v713_v12 = vld [vmem:[%s9716_s8 + $0xa28] sm:$0xff] }
 0x1ac   : > { %6234 = vmatpush1.bf16.msra.mxu1 %v8278_v14  ;;  %v8342_v14 = vcombine.low %v717_v3, %v721_v4  ;;  %v829_v17 = vld [vmem:[%s9716_s8 + $0xdc8] sm:$0xff] }
 0x1ad   : > { %6235 = vmatprep.subr.bf16.mxu1 %v8271_v16  ;;  %6193 = vmatpush1.bf16.msra.mxu0 %v8142_v21  ;;  %v8335_v16 = vcombine.high %v709_v11, %v713_v12  ;;  %v833_v18 = vld [vmem:[%s9716_s8 + $0xde8] sm:$0xff]  ;;  %v8206_v21 = vcombine.low %v581_v9, %v585_v10 }
 0x1ae   : > { %6194 = vmatprep.subr.bf16.mxu0 %v8263_v23  ;;  %v957_v19 = vld [vmem:[%s9716_s8 + $0x11c8] sm:$0xff]  ;;  %v8455_v23 = vcombine.high %v829_v17, %v833_v18 }
 0x1af   : > { %v961_v20 = vld [vmem:[%s9716_s8 + $0x11e8] sm:$0xff] }
 0x1b0   : > { %6236 = vmatpush1.bf16.msra.mxu1 %v8270_v22  ;;  %v8334_v22 = vcombine.low %v709_v11, %v713_v12  ;;  %v821_v25 = vld [vmem:[%s9716_s8 + $0xd88] sm:$0xff] }
 0x1b1   : > { %6237 = vmatprep.subr.bf16.mxu1 %v8391_v24  ;;  %6195 = vmatpush2.bf16.msra.mxu0 %v8262_v29  ;;  %v8583_v24 = vcombine.high %v957_v19, %v961_v20  ;;  %v825_v26 = vld [vmem:[%s9716_s8 + $0xda8] sm:$0xff]  ;;  %v8454_v29 = vcombine.low %v829_v17, %v833_v18 }
 0x1b2   : > { %6196 = vmatprep.subr.bf16.mxu0 %v8255_v31  ;;  %v949_v27 = vld [vmem:[%s9716_s8 + $0x1188] sm:$0xff]  ;;  %v8447_v31 = vcombine.high %v821_v25, %v825_v26 }
 0x1b3   : > { %v953_v28 = vld [vmem:[%s9716_s8 + $0x11a8] sm:$0xff] }
 0x1b4   : > { %6238 = vmatpush2.bf16.msra.mxu1 %v8390_v30  ;;  %v8582_v30 = vcombine.low %v957_v19, %v961_v20  ;;  %v813_v33 = vld [vmem:[%s9716_s8 + $0xd48] sm:$0xff] }
 0x1b5   : > { %6239 = vmatprep.subr.bf16.mxu1 %v8383_v32  ;;  %6197 = vmatpush2.bf16.msra.mxu0 %v8254_v37  ;;  %v8575_v32 = vcombine.high %v949_v27, %v953_v28  ;;  %v817_v34 = vld [vmem:[%s9716_s8 + $0xd68] sm:$0xff] }
 0x1b6   : > { %6198 = vmatprep.subr.bf16.mxu0 %v8247_v39  ;;  %v9207_v35 = vld [vmem:[%s9709_s29 + $0x8] ss:$56 sps:$4 sm:$0xff]   ;;  %v8446_v39 = vcombine.low %v821_v25, %v825_v26  ;;  %v8439_v41 = vcombine.high %v813_v33, %v817_v34  ;;  %v8438_v49 = vcombine.low %v813_v33, %v817_v34 }
 0x1b7   : > { %v941_v36 = vld [vmem:[%s9716_s8 + $0x1148] sm:$0xff] }
 0x1b8   : > { %6240 = vmatpush2.bf16.msra.mxu1 %v8382_v38  ;;  %v945_v37 = vld [vmem:[%s9716_s8 + $0x1168] sm:$0xff] }
 0x1b9   : > { %6241 = vmatprep.subr.bf16.mxu1 %v8375_v40  ;;  %6199 = vmatpush2.bf16.msra.mxu0 %v8246_v45  ;;  %v9208_v38 = vld [vmem:[%s9709_s29 + $0x10] ss:$56 sps:$4 sm:$0xff]   ;;  %v8574_v40 = vcombine.low %v949_v27, %v953_v28  ;;  %v8567_v42 = vcombine.high %v941_v36, %v945_v37  ;;  %v9209_v45 = vld [vmem:[%s9709_s29 + $0x1c] ss:$56 sps:$4 sm:$0xff]   ;;  %v8566_v50 = vcombine.low %v941_v36, %v945_v37 }
 0x1ba   : > { %6200 = vmatprep.subr.bf16.mxu0 %v8239_v47  ;;  %v805_v43 = vld [vmem:[%s9716_s8 + $0xd08] sm:$0xff] }
 0x1bb   : > { %v809_v44 = vld [vmem:[%s9716_s8 + $0xd28] sm:$0xff] }
 0x1bc   : > { %6242 = vmatpush2.bf16.msra.mxu1 %v8374_v46  ;;  %v933_v46 = vld [vmem:[%s9716_s8 + $0x1108] sm:$0xff]  ;;  %v8431_v51 = vcombine.high %v805_v43, %v809_v44  ;;  %v8430_v57 = vcombine.low %v805_v43, %v809_v44 }
 0x1bd   : > { %6243 = vmatprep.subr.bf16.mxu1 %v8367_v48  ;;  %6201 = vmatpush2.bf16.msra.mxu0 %v8238_v53  ;;  %v937_v47 = vld [vmem:[%s9716_s8 + $0x1128] sm:$0xff] }
 0x1be   : > { %6202 = vmatprep.subr.bf16.mxu0 %v8231_v55  ;;  %v9210_v48 = vld [vmem:[%s9709_s29 + $0x24] ss:$56 sps:$4 sm:$0xff]   ;;  %v8559_v52 = vcombine.high %v933_v46, %v937_v47  ;;  %v8558_v58 = vcombine.low %v933_v46, %v937_v47 }
 0x1bf   : > { %v797_v53 = vld [vmem:[%s9716_s8 + $0xcc8] sm:$0xff] }
 0x1c0   : > { %6244 = vmatpush2.bf16.msra.mxu1 %v8366_v54  ;;  %v801_v54 = vld [vmem:[%s9716_s8 + $0xce8] sm:$0xff] }
 0x1c1   : > { %6245 = vmatprep.subr.bf16.mxu1 %v8359_v56  ;;  %6203 = vmatpush2.bf16.msra.mxu0 %v8230_v61  ;;  %v925_v55 = vld [vmem:[%s9716_s8 + $0x10c8] sm:$0xff]  ;;  %v8423_v59 = vcombine.high %v797_v53, %v801_v54  ;;  %v8422_v1 = vcombine.low %v797_v53, %v801_v54 }
 0x1c2   : > { %6204 = vmatprep.subr.bf16.mxu0 %v8223_v63  ;;  %v929_v56 = vld [vmem:[%s9716_s8 + $0x10e8] sm:$0xff] }
 0x1c3   : > { %v8551_v60 = vcombine.high %v925_v55, %v929_v56  ;;  %v789_v61 = vld [vmem:[%s9716_s8 + $0xc88] sm:$0xff]  ;;  %v8550_v2 = vcombine.low %v925_v55, %v929_v56 }
 0x1c4   : > { %6246 = vmatpush2.bf16.msra.mxu1 %v8358_v62  ;;  %v793_v62 = vld [vmem:[%s9716_s8 + $0xca8] sm:$0xff] }
 0x1c5   : > { %6247 = vmatprep.subr.bf16.mxu1 %v8351_v0  ;;  %6205 = vmatpush2.bf16.msra.mxu0 %v8222_v5  ;;  %v917_v63 = vld [vmem:[%s9716_s8 + $0x1088] sm:$0xff]  ;;  %v8415_v3 = vcombine.high %v789_v61, %v793_v62  ;;  %v8414_v9 = vcombine.low %v789_v61, %v793_v62 }
 0x1c6   : > { %6206 = vmatprep.subr.bf16.mxu0 %v8215_v7  ;;  %v921_v0 = vld [vmem:[%s9716_s8 + $0x10a8] sm:$0xff] }
 0x1c7   : > { %v8543_v4 = vcombine.high %v917_v63, %v921_v0  ;;  %v781_v5 = vld [vmem:[%s9716_s8 + $0xc48] sm:$0xff]  ;;  %v8542_v10 = vcombine.low %v917_v63, %v921_v0 }
 0x1c8   : > { %6248 = vmatpush2.bf16.msra.mxu1 %v8350_v6  ;;  %v785_v6 = vld [vmem:[%s9716_s8 + $0xc68] sm:$0xff] }
 0x1c9   : > { %6249 = vmatprep.subr.bf16.mxu1 %v8343_v8  ;;  %6207 = vmatpush2.bf16.msra.mxu0 %v8214_v13  ;;  %v909_v7 = vld [vmem:[%s9716_s8 + $0x1048] sm:$0xff]  ;;  %v8407_v11 = vcombine.high %v781_v5, %v785_v6  ;;  %v8406_v17 = vcombine.low %v781_v5, %v785_v6 }
 0x1ca   : > { %6208 = vmatprep.subr.bf16.mxu0 %v8207_v15  ;;  %v913_v8 = vld [vmem:[%s9716_s8 + $0x1068] sm:$0xff] }
 0x1cb   : > { %v8535_v12 = vcombine.high %v909_v7, %v913_v8  ;;  %v773_v13 = vld [vmem:[%s9716_s8 + $0xc08] sm:$0xff]  ;;  %v8534_v18 = vcombine.low %v909_v7, %v913_v8 }
 0x1cc   : > { %6250 = vmatpush2.bf16.msra.mxu1 %v8342_v14  ;;  %v777_v14 = vld [vmem:[%s9716_s8 + $0xc28] sm:$0xff] }
 0x1cd   : > { %6251 = vmatprep.subr.bf16.mxu1 %v8335_v16  ;;  %6209 = vmatpush2.bf16.msra.mxu0 %v8206_v21  ;;  %v901_v15 = vld [vmem:[%s9716_s8 + $0x1008] sm:$0xff]  ;;  %v8399_v19 = vcombine.high %v773_v13, %v777_v14  ;;  %v8398_v25 = vcombine.low %v773_v13, %v777_v14 }
 0x1ce   : > { %6264 = vmatprep.subr.bf16.mxu0 %v8455_v23  ;;  %v905_v16 = vld [vmem:[%s9716_s8 + $0x1028] sm:$0xff] }
 0x1cf   : > { %v8527_v20 = vcombine.high %v901_v15, %v905_v16  ;;  %v893_v21 = vld [vmem:[%s9716_s8 + $0xfc8] sm:$0xff]  ;;  %v8526_v26 = vcombine.low %v901_v15, %v905_v16 }
 0x1d0   : > { %6252 = vmatpush2.bf16.msra.mxu1 %v8334_v22  ;;  %6211 = vmatmul.mubr.bf16.vlgmr.msra.gmra.mxu0 %v9207_v35  ;;  %v897_v22 = vld [vmem:[%s9716_s8 + $0xfe8] sm:$0xff] }
 0x1d1   : > { %6307 = vmatprep.subr.bf16.mxu1 %v8583_v24  ;;  %6265 = vmatpush1.bf16.msra.mxu0 %v8454_v29  ;;  %v1021_v23 = vld [vmem:[%s9716_s8 + $0x13c8] sm:$0xff]  ;;  %v8519_v27 = vcombine.high %v893_v21, %v897_v22  ;;  %v8518_v33 = vcombine.low %v893_v21, %v897_v22 }
 0x1d2   : > { %6266 = vmatprep.subr.bf16.mxu0 %v8447_v31  ;;  %6296 = vmatprep.mubr.bf16.mxu0 %v9209_v45  ;;  %v1025_v24 = vld [vmem:[%s9716_s8 + $0x13e8] sm:$0xff] }
 0x1d3   : > { %6254 = vmatmul.mubr.bf16.vlgmr.msra.gmra.mxu1 %v9208_v38  ;;  %v8647_v28 = vcombine.high %v1021_v23, %v1025_v24  ;;  %v885_v29 = vld [vmem:[%s9716_s8 + $0xf88] sm:$0xff]  ;;  %v8646_v34 = vcombine.low %v1021_v23, %v1025_v24 }
 0x1d4   : > { %6308 = vmatpush1.bf16.msra.mxu1 %v8582_v30  ;;  %6339 = vmatprep.mubr.bf16.mxu1 %v9210_v48  ;;  %v889_v30 = vld [vmem:[%s9716_s8 + $0xfa8] sm:$0xff] }
 0x1d5   : > { %6309 = vmatprep.subr.bf16.mxu1 %v8575_v32  ;;  %6267 = vmatpush1.bf16.msra.mxu0 %v8446_v39  ;;  %v1013_v31 = vld [vmem:[%s9716_s8 + $0x1388] sm:$0xff]  ;;  %v8511_v35 = vcombine.high %v885_v29, %v889_v30 }
 0x1d6   : > { %6268 = vmatprep.subr.bf16.mxu0 %v8439_v41  ;;  %v1017_v32 = vld [vmem:[%s9716_s8 + $0x13a8] sm:$0xff]  ;;  %v8510_v41 = vcombine.low %v885_v29, %v889_v30 }
 0x1d7   : > { %v8639_v36 = vcombine.high %v1013_v31, %v1017_v32  ;;  %v877_v37 = vld [vmem:[%s9716_s8 + $0xf48] sm:$0xff] }
 0x1d8   : > { %6310 = vmatpush1.bf16.msra.mxu1 %v8574_v40  ;;  %v881_v38 = vld [vmem:[%s9716_s8 + $0xf68] sm:$0xff] }
 0x1d9   : > { %6311 = vmatprep.subr.bf16.mxu1 %v8567_v42  ;;  %6269 = vmatpush1.bf16.msra.mxu0 %v8438_v49  ;;  %v1005_v39 = vld [vmem:[%s9716_s8 + $0x1348] sm:$0xff]  ;;  %v8638_v42 = vcombine.low %v1013_v31, %v1017_v32  ;;  %v8503_v43 = vcombine.high %v877_v37, %v881_v38  ;;  %v8502_v49 = vcombine.low %v877_v37, %v881_v38 }
 0x1da   : > { %6270 = vmatprep.subr.bf16.mxu0 %v8431_v51  ;;  %v1009_v40 = vld [vmem:[%s9716_s8 + $0x1368] sm:$0xff] }
 0x1db   : > { %v8631_v44 = vcombine.high %v1005_v39, %v1009_v40  ;;  %v869_v45 = vld [vmem:[%s9716_s8 + $0xf08] sm:$0xff] }
 0x1dc   : > { %6312 = vmatpush1.bf16.msra.mxu1 %v8566_v50  ;;  %v873_v46 = vld [vmem:[%s9716_s8 + $0xf28] sm:$0xff]  ;;  %v8630_v50 = vcombine.low %v1005_v39, %v1009_v40 }
 0x1dd   : > { %6313 = vmatprep.subr.bf16.mxu1 %v8559_v52  ;;  %6271 = vmatpush1.bf16.msra.mxu0 %v8430_v57  ;;  %v997_v47 = vld [vmem:[%s9716_s8 + $0x1308] sm:$0xff]  ;;  %v8495_v51 = vcombine.high %v869_v45, %v873_v46  ;;  %v8494_v57 = vcombine.low %v869_v45, %v873_v46 }
 0x1de   : > { %6272 = vmatprep.subr.bf16.mxu0 %v8423_v59  ;;  %v1001_v48 = vld [vmem:[%s9716_s8 + $0x1328] sm:$0xff] }
 0x1df   : > { %v8623_v52 = vcombine.high %v997_v47, %v1001_v48  ;;  %v861_v53 = vld [vmem:[%s9716_s8 + $0xec8] sm:$0xff] }
 0x1e0   : > { %6314 = vmatpush1.bf16.msra.mxu1 %v8558_v58  ;;  %v865_v54 = vld [vmem:[%s9716_s8 + $0xee8] sm:$0xff]  ;;  %v8622_v58 = vcombine.low %v997_v47, %v1001_v48 }
 0x1e1   : > { %6315 = vmatprep.subr.bf16.mxu1 %v8551_v60  ;;  %6273 = vmatpush1.bf16.msra.mxu0 %v8422_v1  ;;  %v989_v55 = vld [vmem:[%s9716_s8 + $0x12c8] sm:$0xff]  ;;  %v8487_v59 = vcombine.high %v861_v53, %v865_v54  ;;  %v8486_v1 = vcombine.low %v861_v53, %v865_v54 }
 0x1e2   : > { %6274 = vmatprep.subr.bf16.mxu0 %v8415_v3  ;;  %v993_v56 = vld [vmem:[%s9716_s8 + $0x12e8] sm:$0xff] }
 0x1e3   : > { %v8615_v60 = vcombine.high %v989_v55, %v993_v56  ;;  %v853_v61 = vld [vmem:[%s9716_s8 + $0xe88] sm:$0xff] }
 0x1e4   : > { %6316 = vmatpush1.bf16.msra.mxu1 %v8550_v2  ;;  %v857_v62 = vld [vmem:[%s9716_s8 + $0xea8] sm:$0xff]  ;;  %v8614_v2 = vcombine.low %v989_v55, %v993_v56 }
 0x1e5   : > { %6317 = vmatprep.subr.bf16.mxu1 %v8543_v4  ;;  %6275 = vmatpush1.bf16.msra.mxu0 %v8414_v9  ;;  %v981_v63 = vld [vmem:[%s9716_s8 + $0x1288] sm:$0xff]  ;;  %v8479_v3 = vcombine.high %v853_v61, %v857_v62  ;;  %v8478_v9 = vcombine.low %v853_v61, %v857_v62 }
 0x1e6   : > { %6276 = vmatprep.subr.bf16.mxu0 %v8407_v11  ;;  %v985_v0 = vld [vmem:[%s9716_s8 + $0x12a8] sm:$0xff] }
 0x1e7   : > { %v8607_v4 = vcombine.high %v981_v63, %v985_v0  ;;  %v845_v5 = vld [vmem:[%s9716_s8 + $0xe48] sm:$0xff] }
 0x1e8   : > { %6318 = vmatpush1.bf16.msra.mxu1 %v8542_v10  ;;  %v849_v6 = vld [vmem:[%s9716_s8 + $0xe68] sm:$0xff]  ;;  %v8606_v10 = vcombine.low %v981_v63, %v985_v0 }
 0x1e9   : > { %6319 = vmatprep.subr.bf16.mxu1 %v8535_v12  ;;  %6277 = vmatpush1.bf16.msra.mxu0 %v8406_v17  ;;  %v973_v7 = vld [vmem:[%s9716_s8 + $0x1248] sm:$0xff]  ;;  %v8471_v11 = vcombine.high %v845_v5, %v849_v6  ;;  %v8470_v17 = vcombine.low %v845_v5, %v849_v6 }
 0x1ea   : > { %6278 = vmatprep.subr.bf16.mxu0 %v8399_v19  ;;  %v977_v8 = vld [vmem:[%s9716_s8 + $0x1268] sm:$0xff] }
 0x1eb   : > { %v8599_v12 = vcombine.high %v973_v7, %v977_v8  ;;  %v837_v13 = vld [vmem:[%s9716_s8 + $0xe08] sm:$0xff] }
 0x1ec   : > { %6320 = vmatpush1.bf16.msra.mxu1 %v8534_v18  ;;  %v841_v14 = vld [vmem:[%s9716_s8 + $0xe28] sm:$0xff]  ;;  %v8598_v18 = vcombine.low %v973_v7, %v977_v8 }
 0x1ed   : > { %6321 = vmatprep.subr.bf16.mxu1 %v8527_v20  ;;  %6279 = vmatpush1.bf16.msra.mxu0 %v8398_v25  ;;  %v965_v15 = vld [vmem:[%s9716_s8 + $0x1208] sm:$0xff]  ;;  %v8463_v19 = vcombine.high %v837_v13, %v841_v14  ;;  %v8462_v25 = vcombine.low %v837_v13, %v841_v14 }
 0x1ee   : > { %6280 = vmatprep.subr.bf16.mxu0 %v8519_v27  ;;  %v969_v16 = vld [vmem:[%s9716_s8 + $0x1228] sm:$0xff] }
 0x1ef   : > { %v8591_v20 = vcombine.high %v965_v15, %v969_v16  ;;  %v1085_v21 = vld [vmem:[%s9716_s8 + $0x15c8] sm:$0xff] }
 0x1f0   : > { %6322 = vmatpush1.bf16.msra.mxu1 %v8526_v26  ;;  %v1089_v22 = vld [vmem:[%s9716_s8 + $0x15e8] sm:$0xff]  ;;  %v8590_v26 = vcombine.low %v965_v15, %v969_v16 }
 0x1f1   : > { %6323 = vmatprep.subr.bf16.mxu1 %v8647_v28  ;;  %6281 = vmatpush2.bf16.msra.mxu0 %v8518_v33  ;;  %v1213_v23 = vld [vmem:[%s9716_s8 + $0x19c8] sm:$0xff]  ;;  %v8711_v27 = vcombine.high %v1085_v21, %v1089_v22  ;;  %v8710_v33 = vcombine.low %v1085_v21, %v1089_v22  ;;  %v10173_v22 = vpop.f32.mrf.mxu0 }
 0x1f2   : > { %6282 = vmatprep.subr.bf16.mxu0 %v8511_v35  ;;  %v1217_v24 = vld [vmem:[%s9716_s8 + $0x19e8] sm:$0xff] }
 0x1f3   : > { %v8839_v28 = vcombine.high %v1213_v23, %v1217_v24  ;;  %v1077_v29 = vld [vmem:[%s9716_s8 + $0x1588] sm:$0xff] }
 0x1f4   : > { %6324 = vmatpush2.bf16.msra.mxu1 %v8646_v34  ;;  %v1081_v30 = vld [vmem:[%s9716_s8 + $0x15a8] sm:$0xff]  ;;  %v8838_v34 = vcombine.low %v1213_v23, %v1217_v24 }
 0x1f5   : > { %6325 = vmatprep.subr.bf16.mxu1 %v8639_v36  ;;  %6283 = vmatpush2.bf16.msra.mxu0 %v8510_v41  ;;  %v1205_v31 = vld [vmem:[%s9716_s8 + $0x1988] sm:$0xff]  ;;  %v8703_v35 = vcombine.high %v1077_v29, %v1081_v30 }
 0x1f6   : > { %6284 = vmatprep.subr.bf16.mxu0 %v8503_v43  ;;  %v1209_v32 = vld [vmem:[%s9716_s8 + $0x19a8] sm:$0xff]  ;;  %v8702_v43 = vcombine.low %v1077_v29, %v1081_v30 }
 0x1f7   : > { %v8831_v36 = vcombine.high %v1205_v31, %v1209_v32  ;;  %v1069_v37 = vld [vmem:[%s9716_s8 + $0x1548] sm:$0xff] }
 0x1f8   : > { %6326 = vmatpush2.bf16.msra.mxu1 %v8638_v42  ;;  %v1073_v38 = vld [vmem:[%s9716_s8 + $0x1568] sm:$0xff] }
 0x1f9   : > { %6327 = vmatprep.subr.bf16.mxu1 %v8631_v44  ;;  %6285 = vmatpush2.bf16.msra.mxu0 %v8502_v49  ;;  %v9211_v39 = vld [vmem:[%s9709_s29 + $0x18] ss:$56 sps:$4 sm:$0xff]   ;;  %v8830_v44 = vcombine.low %v1205_v31, %v1209_v32  ;;  %v8695_v45 = vcombine.high %v1069_v37, %v1073_v38  ;;  %v9213_v49 = vld [vmem:[%s9709_s29 + $0x2c] ss:$56 sps:$4 sm:$0xff]   ;;  %v8694_v53 = vcombine.low %v1069_v37, %v1073_v38  ;;  %v10179_v31 = vpop.f32.mrf.mxu0  ;;  %v10183_v37 = vpop.f32.mrf.mxu1 }
 0x1fa   : > { %6286 = vmatprep.subr.bf16.mxu0 %v8495_v51  ;;  %v1197_v40 = vld [vmem:[%s9716_s8 + $0x1948] sm:$0xff] }
 0x1fb   : > { %v1201_v41 = vld [vmem:[%s9716_s8 + $0x1968] sm:$0xff] }
 0x1fc   : > { %6328 = vmatpush2.bf16.msra.mxu1 %v8630_v50  ;;  %v9212_v42 = vld [vmem:[%s9709_s29 + $0x20] ss:$56 sps:$4 sm:$0xff]   ;;  %v8823_v46 = vcombine.high %v1197_v40, %v1201_v41  ;;  %v8822_v54 = vcombine.low %v1197_v40, %v1201_v41  ;;  %v10187_v41 = vpop.f32.mrf.mxu0 }
 0x1fd   : > { %6329 = vmatprep.subr.bf16.mxu1 %v8623_v52  ;;  %6287 = vmatpush2.bf16.msra.mxu0 %v8494_v57  ;;  %v1061_v47 = vld [vmem:[%s9716_s8 + $0x1508] sm:$0xff] }
 0x1fe   : > { %6288 = vmatprep.subr.bf16.mxu0 %v8487_v59  ;;  %v1065_v48 = vld [vmem:[%s9716_s8 + $0x1528] sm:$0xff] }
 0x1ff   : > { %v1189_v50 = vld [vmem:[%s9716_s8 + $0x1908] sm:$0xff]  ;;  %v8687_v55 = vcombine.high %v1061_v47, %v1065_v48  ;;  %v8686_v61 = vcombine.low %v1061_v47, %v1065_v48  ;;  %v10191_v47 = vpop.f32.mrf.mxu1 }
 0x200   : > { %6330 = vmatpush2.bf16.msra.mxu1 %v8622_v58  ;;  %v1193_v51 = vld [vmem:[%s9716_s8 + $0x1928] sm:$0xff] }
 0x201   : > { %6331 = vmatprep.subr.bf16.mxu1 %v8615_v60  ;;  %6289 = vmatpush2.bf16.msra.mxu0 %v8486_v1  ;;  %v9214_v52 = vld [vmem:[%s9709_s29 + $0x34] ss:$56 sps:$4 sm:$0xff]   ;;  %v8815_v56 = vcombine.high %v1189_v50, %v1193_v51  ;;  %v8814_v62 = vcombine.low %v1189_v50, %v1193_v51  ;;  %v10195_v51 = vpop.f32.mrf.mxu0 }
 0x202   : > { %6290 = vmatprep.subr.bf16.mxu0 %v8479_v3  ;;  %v1053_v57 = vld [vmem:[%s9716_s8 + $0x14c8] sm:$0xff] }
 0x203   : > { %v1057_v58 = vld [vmem:[%s9716_s8 + $0x14e8] sm:$0xff] }
 0x204   : > { %6332 = vmatpush2.bf16.msra.mxu1 %v8614_v2  ;;  %v1181_v59 = vld [vmem:[%s9716_s8 + $0x18c8] sm:$0xff]  ;;  %v8679_v63 = vcombine.high %v1053_v57, %v1057_v58  ;;  %v8678_v5 = vcombine.low %v1053_v57, %v1057_v58  ;;  %v10199_v57 = vpop.f32.mrf.mxu1  ;;  %v5954_v58 = vpop.f32.mrf.mxu0 }
 0x205   : > { %6333 = vmatprep.subr.bf16.mxu1 %v8607_v4  ;;  %6291 = vmatpush2.bf16.msra.mxu0 %v8478_v9  ;;  %v1185_v60 = vld [vmem:[%s9716_s8 + $0x18e8] sm:$0xff] }
 0x206   : > { %6292 = vmatprep.subr.bf16.mxu0 %v8471_v11  ;;  %v8807_v0 = vcombine.high %v1181_v59, %v1185_v60  ;;  %v1045_v1 = vld [vmem:[%s9716_s8 + $0x1488] sm:$0xff]  ;;  %v8806_v6 = vcombine.low %v1181_v59, %v1185_v60 }
 0x207   : > { %v1049_v2 = vld [vmem:[%s9716_s8 + $0x14a8] sm:$0xff] }
 0x208   : > { %6334 = vmatpush2.bf16.msra.mxu1 %v8606_v10  ;;  %v1173_v3 = vld [vmem:[%s9716_s8 + $0x1888] sm:$0xff]  ;;  %v8671_v7 = vcombine.high %v1045_v1, %v1049_v2  ;;  %v8670_v13 = vcombine.low %v1045_v1, %v1049_v2 }
 0x209   : > { %6335 = vmatprep.subr.bf16.mxu1 %v8599_v12  ;;  %6293 = vmatpush2.bf16.msra.mxu0 %v8470_v17  ;;  %v1177_v4 = vld [vmem:[%s9716_s8 + $0x18a8] sm:$0xff] }
 0x20a   : > { %6294 = vmatprep.subr.bf16.mxu0 %v8463_v19  ;;  %v8799_v8 = vcombine.high %v1173_v3, %v1177_v4  ;;  %v1037_v9 = vld [vmem:[%s9716_s8 + $0x1448] sm:$0xff]  ;;  %v8798_v14 = vcombine.low %v1173_v3, %v1177_v4  ;;  %v10205_v3 = vpop.f32.mrf.mxu1  ;;  %v5956_v4 = vpop.f32.mrf.mxu0 }
 0x20b   : > { %v1041_v10 = vld [vmem:[%s9716_s8 + $0x1468] sm:$0xff] }
 0x20c   : > { %6336 = vmatpush2.bf16.msra.mxu1 %v8598_v18  ;;  %v1165_v11 = vld [vmem:[%s9716_s8 + $0x1848] sm:$0xff]  ;;  %v8663_v15 = vcombine.high %v1037_v9, %v1041_v10  ;;  %v8662_v21 = vcombine.low %v1037_v9, %v1041_v10 }
 0x20d   : > { %6337 = vmatprep.subr.bf16.mxu1 %v8591_v20  ;;  %6295 = vmatpush2.bf16.msra.mxu0 %v8462_v25  ;;  %v1169_v12 = vld [vmem:[%s9716_s8 + $0x1868] sm:$0xff] }
 0x20e   : > { %6350 = vmatprep.subr.bf16.mxu0 %v8711_v27  ;;  %v8791_v16 = vcombine.high %v1165_v11, %v1169_v12  ;;  %v1029_v17 = vld [vmem:[%s9716_s8 + $0x1408] sm:$0xff]  ;;  %v8790_v23 = vcombine.low %v1165_v11, %v1169_v12 }
 0x20f   : > { %v1033_v18 = vld [vmem:[%s9716_s8 + $0x1428] sm:$0xff] }
 0x210   : > { %6338 = vmatpush2.bf16.msra.mxu1 %v8590_v26  ;;  %6297 = vmatmul.mubr.bf16.vlgmr.msra.gmra.mxu0 %v9211_v39  ;;  %v1157_v19 = vld [vmem:[%s9716_s8 + $0x1808] sm:$0xff]  ;;  %v8655_v24 = vcombine.high %v1029_v17, %v1033_v18  ;;  %v8654_v30 = vcombine.low %v1029_v17, %v1033_v18 }
 0x211   : > { %6393 = vmatprep.subr.bf16.mxu1 %v8839_v28  ;;  %6351 = vmatpush1.bf16.msra.mxu0 %v8710_v33  ;;  %v1161_v20 = vld [vmem:[%s9716_s8 + $0x1828] sm:$0xff] }
 0x212   : > { %6352 = vmatprep.subr.bf16.mxu0 %v8703_v35  ;;  %6382 = vmatprep.mubr.bf16.mxu0 %v9213_v49  ;;  %v8783_v25 = vcombine.high %v1157_v19, %v1161_v20  ;;  %v1149_v26 = vld [vmem:[%s9716_s8 + $0x17c8] sm:$0xff]  ;;  %v8782_v32 = vcombine.low %v1157_v19, %v1161_v20 }
 0x213   : > { %6340 = vmatmul.mubr.bf16.vlgmr.msra.gmra.mxu1 %v9212_v42  ;;  %v1153_v27 = vld [vmem:[%s9716_s8 + $0x17e8] sm:$0xff] }
 0x214   : > { %6394 = vmatpush1.bf16.msra.mxu1 %v8838_v34  ;;  %6425 = vmatprep.mubr.bf16.mxu1 %v9214_v52  ;;  %v1277_v28 = vld [vmem:[%s9716_s8 + $0x1bc8] sm:$0xff]  ;;  %v8775_v33 = vcombine.high %v1149_v26, %v1153_v27  ;;  %v8774_v40 = vcombine.low %v1149_v26, %v1153_v27 }
 0x215   : > { %6395 = vmatprep.subr.bf16.mxu1 %v8831_v36  ;;  %6353 = vmatpush1.bf16.msra.mxu0 %v8702_v43  ;;  %v1281_v29 = vld [vmem:[%s9716_s8 + $0x1be8] sm:$0xff] }
 0x216   : > { %6354 = vmatprep.subr.bf16.mxu0 %v8695_v45  ;;  %v8903_v34 = vcombine.high %v1277_v28, %v1281_v29  ;;  %v1141_v35 = vld [vmem:[%s9716_s8 + $0x1788] sm:$0xff]  ;;  %v8902_v42 = vcombine.low %v1277_v28, %v1281_v29 }
 0x217   : > { %v1145_v36 = vld [vmem:[%s9716_s8 + $0x17a8] sm:$0xff] }
 0x218   : > { %6396 = vmatpush1.bf16.msra.mxu1 %v8830_v44  ;;  %v1269_v38 = vld [vmem:[%s9716_s8 + $0x1b88] sm:$0xff]  ;;  %v8767_v43 = vcombine.high %v1141_v35, %v1145_v36  ;;  %v8766_v50 = vcombine.low %v1141_v35, %v1145_v36 }
 0x219   : > { %6397 = vmatprep.subr.bf16.mxu1 %v8823_v46  ;;  %6355 = vmatpush1.bf16.msra.mxu0 %v8694_v53  ;;  %v1273_v39 = vld [vmem:[%s9716_s8 + $0x1ba8] sm:$0xff] }
 0x21a   : > { %6356 = vmatprep.subr.bf16.mxu0 %v8687_v55  ;;  %v8895_v44 = vcombine.high %v1269_v38, %v1273_v39  ;;  %v1133_v45 = vld [vmem:[%s9716_s8 + $0x1748] sm:$0xff]  ;;  %v8894_v52 = vcombine.low %v1269_v38, %v1273_v39 }
 0x21b   : > { %v1137_v46 = vld [vmem:[%s9716_s8 + $0x1768] sm:$0xff] }
 0x21c   : > { %6398 = vmatpush1.bf16.msra.mxu1 %v8822_v54  ;;  %v1261_v48 = vld [vmem:[%s9716_s8 + $0x1b48] sm:$0xff]  ;;  %v8759_v53 = vcombine.high %v1133_v45, %v1137_v46 }
 0x21d   : > { %6399 = vmatprep.subr.bf16.mxu1 %v8815_v56  ;;  %6357 = vmatpush1.bf16.msra.mxu0 %v8686_v61  ;;  %v1265_v49 = vld [vmem:[%s9716_s8 + $0x1b68] sm:$0xff]  ;;  %v8758_v61 = vcombine.low %v1133_v45, %v1137_v46 }
 0x21e   : > { %6358 = vmatprep.subr.bf16.mxu0 %v8679_v63  ;;  %v8887_v54 = vcombine.high %v1261_v48, %v1265_v49  ;;  %v1125_v55 = vld [vmem:[%s9716_s8 + $0x1708] sm:$0xff] }
 0x21f   : > { %v1129_v56 = vld [vmem:[%s9716_s8 + $0x1728] sm:$0xff] }
 0x220   : > { %6400 = vmatpush1.bf16.msra.mxu1 %v8814_v62  ;;  %v1253_v59 = vld [vmem:[%s9716_s8 + $0x1b08] sm:$0xff]  ;;  %v8886_v62 = vcombine.low %v1261_v48, %v1265_v49  ;;  %v8751_v63 = vcombine.high %v1125_v55, %v1129_v56  ;;  %v5916_v48 = vadd.f32 %v10199_v57, %v10187_v41 }
 0x221   : > { %6401 = vmatprep.subr.bf16.mxu1 %v8807_v0  ;;  %6359 = vmatpush1.bf16.msra.mxu0 %v8678_v5  ;;  %v1257_v60 = vld [vmem:[%s9716_s8 + $0x1b28] sm:$0xff] }
 0x222   : > { %6360 = vmatprep.subr.bf16.mxu0 %v8671_v7  ;;  %v8879_v0 = vcombine.high %v1253_v59, %v1257_v60  ;;  %v1117_v1 = vld [vmem:[%s9716_s8 + $0x16c8] sm:$0xff]  ;;  %v8750_v7 = vcombine.low %v1125_v55, %v1129_v56  ;;  %v8878_v9 = vcombine.low %v1253_v59, %v1257_v60  ;;  %v5918_v55 = vadd.f32 %v10205_v3, %v10195_v51  ;;  %v442_v51 = vld [vmem:[%s9716_s8 + $0x1b0] sm:$0xff] }
 0x223   : > { %v1121_v2 = vld [vmem:[%s9716_s8 + $0x16e8] sm:$0xff]  ;;  %v566_v3 = vld [vmem:[%s9716_s8 + $0x590] sm:$0xff] }
 0x224   : > { %6402 = vmatpush1.bf16.msra.mxu1 %v8806_v6  ;;  %v1245_v5 = vld [vmem:[%s9716_s8 + $0x1ac8] sm:$0xff]  ;;  %v8743_v10 = vcombine.high %v1117_v1, %v1121_v2  ;;  %v8742_v17 = vcombine.low %v1117_v1, %v1121_v2  ;;  %v438_v1 = vld [vmem:[%s9716_s8 + $0x190] sm:$0xff] }
 0x225   : > { %6403 = vmatprep.subr.bf16.mxu1 %v8799_v8  ;;  %6361 = vmatpush1.bf16.msra.mxu0 %v8670_v13  ;;  %v1249_v6 = vld [vmem:[%s9716_s8 + $0x1ae8] sm:$0xff]  ;;  %v5997_v8 = vpop.f32.mrf.mxu1 }
 0x226   : > { %6362 = vmatprep.subr.bf16.mxu0 %v8663_v15  ;;  %v8871_v11 = vcombine.high %v1245_v5, %v1249_v6  ;;  %v1109_v12 = vld [vmem:[%s9716_s8 + $0x1688] sm:$0xff]  ;;  %v8870_v19 = vcombine.low %v1245_v5, %v1249_v6 }
 0x227   : > { %v1113_v13 = vld [vmem:[%s9716_s8 + $0x16a8] sm:$0xff]  ;;  %v5999_v18 = vpop.f32.mrf.mxu1 }
 0x228   : > { %6404 = vmatpush1.bf16.msra.mxu1 %v8798_v14  ;;  %v5958_v14 = vpop.f32.mrf.mxu0  ;;  %v1237_v15 = vld [vmem:[%s9716_s8 + $0x1a88] sm:$0xff]  ;;  %v8735_v20 = vcombine.high %v1109_v12, %v1113_v13  ;;  %v8734_v28 = vcombine.low %v1109_v12, %v1113_v13 }
 0x229   : > { %6405 = vmatprep.subr.bf16.mxu1 %v8791_v16  ;;  %6363 = vmatpush1.bf16.msra.mxu0 %v8662_v21  ;;  %v1241_v16 = vld [vmem:[%s9716_s8 + $0x1aa8] sm:$0xff]  ;;  %v6001_v29 = vpop.f32.mrf.mxu1 }
 0x22a   : > { %6364 = vmatprep.subr.bf16.mxu0 %v8655_v24  ;;  %v8863_v21 = vcombine.high %v1237_v15, %v1241_v16  ;;  %v1105_v24 = vld [vmem:[%s9716_s8 + $0x1668] sm:$0xff] }
 0x22b   : > { %v1229_v26 = vld [vmem:[%s9716_s8 + $0x1a48] sm:$0xff]  ;;  %v6003_v45 = vpop.f32.mrf.mxu1 }
 0x22c   : > { %6406 = vmatpush1.bf16.msra.mxu1 %v8790_v23  ;;  %v1101_v23 = vld [vmem:[%s9716_s8 + $0x1648] sm:$0xff] }
 0x22d   : > { %6407 = vmatprep.subr.bf16.mxu1 %v8783_v25  ;;  %6365 = vmatpush1.bf16.msra.mxu0 %v8654_v30  ;;  %v5960_v25 = vpop.f32.mrf.mxu0  ;;  %v1233_v27 = vld [vmem:[%s9716_s8 + $0x1a68] sm:$0xff] }
 0x22e   : > { %6366 = vmatprep.subr.bf16.mxu0 %v8775_v33  ;;  %v8727_v33 = vcombine.high %v1101_v23, %v1105_v24  ;;  %v8855_v35 = vcombine.high %v1229_v26, %v1233_v27  ;;  %v1093_v36 = vld [vmem:[%s9716_s8 + $0x1608] sm:$0xff] }
 0x22f   : > { %v6040_v30 = vpop.f32.mrf.mxu0  ;;  %v1097_v38 = vld [vmem:[%s9716_s8 + $0x1628] sm:$0xff] }
 0x230   : > { %6408 = vmatpush1.bf16.msra.mxu1 %v8782_v32  ;;  %v8862_v32 = vcombine.low %v1237_v15, %v1241_v16  ;;  %v1221_v39 = vld [vmem:[%s9716_s8 + $0x1a08] sm:$0xff]  ;;  %v8718_v59 = vcombine.low %v1093_v36, %v1097_v38  ;;  %v434_v16 = vld [vmem:[%s9716_s8 + $0x170] sm:$0xff] }
 0x231   : > { %6409 = vmatprep.subr.bf16.mxu1 %v8903_v34  ;;  %6367 = vmatpush2.bf16.msra.mxu0 %v8774_v40  ;;  %v5912_v34 = vadd.f32 %v10183_v37, %v10173_v22  ;;  %v1225_v40 = vld [vmem:[%s9716_s8 + $0x1a28] sm:$0xff]  ;;  %v6042_v46 = vpop.f32.mrf.mxu0  ;;  %v8854_v22 = vcombine.low %v1229_v26, %v1233_v27  ;;  %v8719_v37 = vcombine.high %v1093_v36, %v1097_v38 }
 0x232   : > { %6368 = vmatprep.subr.bf16.mxu0 %v8767_v43  ;;  %v8846_v57 = vcombine.low %v1221_v39, %v1225_v40 }
 0x233   : > { %v5955_v43 = vadd.f32 %v5954_v58, %v5912_v34  ;;  %v5959_v58 = vadd.f32 %v5958_v14, %v5916_v48  ;;  %v6044_v41 = vpop.f32.mrf.mxu0 }
 0x234   : > { %6410 = vmatpush2.bf16.msra.mxu1 %v8902_v42  ;;  %v5914_v42 = vadd.f32 %v10191_v47, %v10179_v31  ;;  %v6083_v31 = vpop.f32.mrf.mxu1  ;;  %v574_v47 = vld [vmem:[%s9716_s8 + $0x5d0] sm:$0xff] }
 0x235   : > { %6411 = vmatprep.subr.bf16.mxu1 %v8895_v44  ;;  %6369 = vmatpush2.bf16.msra.mxu0 %v8766_v50  ;;  %v8726_v44 = vcombine.low %v1101_v23, %v1105_v24  ;;  %v8847_v50 = vcombine.high %v1221_v39, %v1225_v40  ;;  %v5998_v56 = vadd.f32 %v5997_v8, %v5955_v43  ;;  %v6046_v8 = vpop.f32.mrf.mxu0  ;;  %v9215_v23 = vld [vmem:[%s9709_s29 + $0x28] ss:$56 sps:$4 sm:$0xff]  }
 0x236   : > { %6370 = vmatprep.subr.bf16.mxu0 %v8759_v53  ;;  %v5957_v49 = vadd.f32 %v5956_v4, %v5914_v42  ;;  %v450_v53 = vld [vmem:[%s9716_s8 + $0x1f0] sm:$0xff]  ;;  %v6085_v2 = vpop.f32.mrf.mxu1  ;;  %v6002_v5 = vadd.f32 %v6001_v29, %v5959_v58  ;;  %v8064_v24 = vcombine.low %v438_v1, %v442_v51  ;;  %v359_v29 = vld [vmem:[#allocation2] sm:$0xff] }
 0x237   : > { %v570_v4 = vld [vmem:[%s9716_s8 + $0x5b0] sm:$0xff] }
 0x238   : > { %6412 = vmatpush2.bf16.msra.mxu1 %v8894_v52  ;;  %v446_v52 = vld [vmem:[%s9716_s8 + $0x1d0] sm:$0xff]  ;;  %v6045_v14 = vadd.f32 %v6044_v41, %v6002_v5  ;;  %v8193_v15 = vcombine.high %v566_v3, %v570_v4 }
 0x239   : > { %6413 = vmatprep.subr.bf16.mxu1 %v8887_v54  ;;  %6371 = vmatpush2.bf16.msra.mxu0 %v8758_v61  ;;  %v578_v54 = vld [vmem:[%s9716_s8 + $0x5f0] sm:$0xff]  ;;  %v8073_v60 = vcombine.high %v446_v52, %v450_v53  ;;  %v6000_v61 = vadd.f32 %v5999_v18, %v5957_v49 }
 0x23a   : > { %6372 = vmatprep.subr.bf16.mxu0 %v8751_v63  ;;  %v6041_v63 = vadd.f32 %v6040_v30, %v5998_v56  ;;  %v562_v18 = vld [vmem:[%s9716_s8 + $0x570] sm:$0xff] }
 0x23b   : > { %v6043_v6 = vadd.f32 %v6042_v46, %v6000_v61  ;;  %v422_v39 = vld [vmem:[%s9716_s8 + $0x110] sm:$0xff] }
 0x23c   : > { %6414 = vmatpush2.bf16.msra.mxu1 %v8886_v62  ;;  %v5961_v62 = vadd.f32 %v5960_v25, %v5918_v55  ;;  %v6084_v13 = vadd.f32 %v6083_v31, %v6041_v63  ;;  %v426_v40 = vld [vmem:[%s9716_s8 + $0x130] sm:$0xff] }
 0x23d   : > { %6415 = vmatprep.subr.bf16.mxu1 %v8879_v0  ;;  %6373 = vmatpush2.bf16.msra.mxu0 %v8750_v7  ;;  %v8201_v0 = vcombine.high %v574_v47, %v578_v54  ;;  %v8072_v7 = vcombine.low %v446_v52, %v450_v53  ;;  %v6086_v25 = vadd.f32 %v6085_v2, %v6043_v6  ;;  %v9217_v42 = vld [vmem:[%s9709_s29 + $0x4] ss:$56 sps:$4 sm:$0xff]  }
 0x23e   : > { %6374 = vmatprep.subr.bf16.mxu0 %v8743_v10  ;;  %v8065_v10 = vcombine.high %v438_v1, %v442_v51  ;;  %v6004_v12 = vadd.f32 %v6003_v45, %v5961_v62  ;;  %v550_v46 = vld [vmem:[%s9716_s8 + $0x510] sm:$0xff]  ;;  %v367_v53 = vld [vmem:[#allocation2 + $0x20] sm:$0xff]  ;;  %v8048_v62 = vcombine.low %v422_v39, %v426_v40 }
 0x23f   : > { %v418_v41 = vld [vmem:[%s9716_s8 + $0xf0] sm:$0xff] }
 0x240   : > { %6416 = vmatpush2.bf16.msra.mxu1 %v8878_v9  ;;  %v8200_v9 = vcombine.low %v574_v47, %v578_v54  ;;  %v6047_v26 = vadd.f32 %v6046_v8, %v6004_v12  ;;  %v8049_v54 = vcombine.high %v422_v39, %v426_v40  ;;  %v406_v51 = vld [vmem:[%s9716_s8 + $0x90] sm:$0xff] }
 0x241   : > { %6417 = vmatprep.subr.bf16.mxu1 %v8871_v11  ;;  %6375 = vmatpush2.bf16.msra.mxu0 %v8742_v17  ;;  %v10238_v11 = vld [vmem:[%s9716_s8 + $0x150] sm:$0xff] }
 0x242   : > { %6376 = vmatprep.subr.bf16.mxu0 %v8735_v20  ;;  %v558_v17 = vld [vmem:[%s9716_s8 + $0x550] sm:$0xff]  ;;  %v8056_v52 = vcombine.low %v10238_v11, %v434_v16 }
 0x243   : > { %v358_v20 = vld [vmem:[#allocation2 + $0x30] sm:$0xff]  ;;  %v8185_v34 = vcombine.high %v558_v17, %v562_v18  ;;  %v8184_v47 = vcombine.low %v558_v17, %v562_v18 }
 0x244   : > { %6418 = vmatpush2.bf16.msra.mxu1 %v8870_v19  ;;  %v6087_v19 = vpop.f32.mrf.mxu1  ;;  %v410_v2 = vld [vmem:[%s9716_s8 + $0xb0] sm:$0xff] }
 0x245   : > { %6419 = vmatprep.subr.bf16.mxu1 %v8863_v21  ;;  %6377 = vmatpush2.bf16.msra.mxu0 %v8734_v28  ;;  %v9216_v28 = vld [vmem:[%s9709_s29 + $0x30] ss:$56 sps:$4 sm:$0xff]  }
 0x246   : > { %6378 = vmatprep.subr.bf16.mxu0 %v8727_v33  ;;  %v8057_v33 = vcombine.high %v10238_v11, %v434_v16  ;;  %v6089_v43 = vpop.f32.mrf.mxu1  ;;  %v526_v11 = vld [vmem:[%s9716_s8 + $0x450] sm:$0xff] }
 0x247   : > { %v6090_v48 = vadd.f32 %v6089_v43, %v6047_v26  ;;  %v530_v12 = vld [vmem:[%s9716_s8 + $0x470] sm:$0xff] }
 0x248   : > { %6420 = vmatpush2.bf16.msra.mxu1 %v8862_v32  ;;  %v8192_v32 = vcombine.low %v566_v3, %v570_v4  ;;  %v534_v3 = vld [vmem:[%s9716_s8 + $0x490] sm:$0xff]  ;;  %v8153_v16 = vcombine.high %v526_v11, %v530_v12 }
 0x249   : > { %6421 = vmatprep.subr.bf16.mxu1 %v8855_v35  ;;  %6379 = vmatpush2.bf16.msra.mxu0 %v8726_v44  ;;  %v6088_v35 = vadd.f32 %v6087_v19, %v6045_v14  ;;  %v366_v44 = vld [vmem:[#allocation2 + $0x40] sm:$0xff]  ;;  %v538_v4 = vld [vmem:[%s9716_s8 + $0x4b0] sm:$0xff] }
 0x24a   : > { %6380 = vmatprep.subr.bf16.mxu0 %v8719_v37  ;;  %v9218_v37 = vld [vmem:[%s9709_s29 + $0xc] ss:$56 sps:$4 sm:$0xff]   ;;  %v8161_v8 = vcombine.high %v534_v3, %v538_v4  ;;  %v8160_v14 = vcombine.low %v534_v3, %v538_v4 }
 0x24b   : > { %v390_v17 = vld [vmem:[%s9716_s8 + $0x10] sm:$0xff] }
 0x24c   : > { %6422 = vmatpush2.bf16.msra.mxu1 %v8854_v22  ;;  %v554_v22 = vld [vmem:[%s9716_s8 + $0x530] sm:$0xff] }
 0x24d   : > { %6423 = vmatprep.subr.bf16.mxu1 %v8847_v50  ;;  %6381 = vmatpush2.bf16.msra.mxu0 %v8718_v59  ;;  %v8177_v58 = vcombine.high %v550_v46, %v554_v22  ;;  %v414_v59 = vld [vmem:[%s9716_s8 + $0xd0] sm:$0xff]  ;;  %v8176_v63 = vcombine.low %v550_v46, %v554_v22 }
 0x24e   : > { %6436 = vmatprep.subr.bf16.mxu0 %v8073_v60  ;;  %v546_v60 = vld [vmem:[%s9716_s8 + $0x4f0] sm:$0xff]  ;;  %v8040_v5 = vcombine.low %v414_v59, %v418_v41 }
 0x24f   : > { %v394_v18 = vld [vmem:[%s9716_s8 + $0x30] sm:$0xff] }
 0x250   : > { %6424 = vmatpush2.bf16.msra.mxu1 %v8846_v57  ;;  %v6126_v21 = vpop.f32.mrf.mxu0  ;;  %6383 = vmatmul.mubr.bf16.vlgmr.msra.gmra.mxu0 %v9215_v23  ;;  %v542_v57 = vld [vmem:[%s9716_s8 + $0x4d0] sm:$0xff]  ;;  %v8152_v23 = vcombine.low %v526_v11, %v530_v12 }
 0x251   : > { %6479 = vmatprep.subr.bf16.mxu1 %v8201_v0  ;;  %v6127_v27 = vadd.f32 %v6126_v21, %v6084_v13  ;;  %6437 = vmatpush1.bf16.msra.mxu0 %v8072_v7  ;;  %v8041_v0 = vcombine.high %v414_v59, %v418_v41  ;;  %v8169_v1 = vcombine.high %v542_v57, %v546_v60  ;;  %v518_v19 = vld [vmem:[%s9716_s8 + $0x410] sm:$0xff] }
 0x252   : > { %v6128_v30 = vpop.f32.mrf.mxu0  ;;  %6438 = vmatprep.subr.bf16.mxu0 %v8065_v10  ;;  %6468 = vmatprep.mubr.bf16.mxu0 %v9217_v42  ;;  %v8168_v6 = vcombine.low %v542_v57, %v546_v60  ;;  %v8033_v7 = vcombine.high %v406_v51, %v410_v2  ;;  %v402_v10 = vld [vmem:[%s9716_s8 + $0x70] sm:$0xff]  ;;  %v8032_v13 = vcombine.low %v406_v51, %v410_v2 }
 0x253   : > { %6426 = vmatmul.mubr.bf16.vlgmr.msra.gmra.mxu1 %v9216_v28  ;;  %v7038_v36 = vadd.f32 %v6127_v27, %v358_v20  ;;  %v6129_v38 = vadd.f32 %v6128_v30, %v6086_v25  ;;  %v522_v20 = vld [vmem:[%s9716_s8 + $0x430] sm:$0xff]  ;;  %v8016_v30 = vcombine.low %v390_v17, %v394_v18 }
 0x254   : > { %6480 = vmatpush1.bf16.msra.mxu1 %v8200_v9  ;;  %v6130_v45 = vpop.f32.mrf.mxu0  ;;  %6511 = vmatprep.mubr.bf16.mxu1 %v9218_v37  ;;  %v398_v9 = vld [vmem:[%s9716_s8 + $0x50] sm:$0xff]  ;;  %v8145_v25 = vcombine.high %v518_v19, %v522_v20 }
 0x255   : > { %6481 = vmatprep.subr.bf16.mxu1 %v8193_v15  ;;  %7054 = vst [vmem:[#allocation2 + $0x30] sm:$0xff] %v7038_v36  ;;  %v7039_v49 = vadd.f32 %v6129_v38, %v359_v29  ;;  %v6131_v50 = vadd.f32 %v6130_v45, %v6088_v35  ;;  %6439 = vmatpush1.bf16.msra.mxu0 %v8064_v24  ;;  %v510_v26 = vld [vmem:[%s9716_s8 + $0x3d0] sm:$0xff] }
 0x256   : > { %v6132_v31 = vpop.f32.mrf.mxu0  ;;  %6440 = vmatprep.subr.bf16.mxu0 %v8057_v33  ;;  %v8025_v15 = vcombine.high %v398_v9, %v402_v10  ;;  %v8024_v21 = vcombine.low %v398_v9, %v402_v10  ;;  %v8017_v24 = vcombine.high %v390_v17, %v394_v18  ;;  %v514_v27 = vld [vmem:[%s9716_s8 + $0x3f0] sm:$0xff] }
 0x257   : > { %7055 = vst [vmem:[#allocation2] sm:$0xff] %v7039_v49  ;;  %v7046_v55 = vadd.f32 %v6131_v50, %v366_v44  ;;  %v6133_v56 = vadd.f32 %v6132_v31, %v6090_v48  ;;  %v638_v28 = vld [vmem:[%s9716_s8 + $0x7d0] sm:$0xff]  ;;  %v8137_v33 = vcombine.high %v510_v26, %v514_v27  ;;  %v8136_v40 = vcombine.low %v510_v26, %v514_v27 }
 0x258   : > { %6482 = vmatpush1.bf16.msra.mxu1 %v8192_v32  ;;  %v642_v29 = vld [vmem:[%s9716_s8 + $0x7f0] sm:$0xff]  ;;  %v8144_v32 = vcombine.low %v518_v19, %v522_v20 }
 0x259   : > { %6483 = vmatprep.subr.bf16.mxu1 %v8185_v34  ;;  %7062 = vst [vmem:[#allocation2 + $0x40] sm:$0xff] %v7046_v55  ;;  %v7047_v61 = vadd.f32 %v6133_v56, %v367_v53  ;;  %6441 = vmatpush1.bf16.msra.mxu0 %v8056_v52  ;;  %v8265_v34 = vcombine.high %v638_v28, %v642_v29  ;;  %v502_v35 = vld [vmem:[%s9716_s8 + $0x390] sm:$0xff] }
 0x25a   : > { %6442 = vmatprep.subr.bf16.mxu0 %v8049_v54  ;;  %v506_v36 = vld [vmem:[%s9716_s8 + $0x3b0] sm:$0xff]  ;;  %v8264_v42 = vcombine.low %v638_v28, %v642_v29 }
 0x25b   : > { %7063 = vst [vmem:[#allocation2 + $0x20] sm:$0xff] %v7047_v61  ;;  %v630_v38 = vld [vmem:[%s9716_s8 + $0x790] sm:$0xff]  ;;  %v8129_v43 = vcombine.high %v502_v35, %v506_v36  ;;  %v8128_v48 = vcombine.low %v502_v35, %v506_v36 }
 0x25c   : > { %6484 = vmatpush1.bf16.msra.mxu1 %v8184_v47  ;;  %v634_v39 = vld [vmem:[%s9716_s8 + $0x7b0] sm:$0xff] }
 0x25d   : > { %6485 = vmatprep.subr.bf16.mxu1 %v8177_v58  ;;  %6443 = vmatpush1.bf16.msra.mxu0 %v8048_v62  ;;  %v8257_v44 = vcombine.high %v630_v38, %v634_v39  ;;  %v494_v45 = vld [vmem:[%s9716_s8 + $0x350] sm:$0xff]  ;;  %v8256_v49 = vcombine.low %v630_v38, %v634_v39 }
 0x25e   : > { %6444 = vmatprep.subr.bf16.mxu0 %v8041_v0  ;;  %v498_v46 = vld [vmem:[%s9716_s8 + $0x370] sm:$0xff] }
 0x25f   : > { %v622_v22 = vld [vmem:[%s9716_s8 + $0x750] sm:$0xff]  ;;  %v8121_v50 = vcombine.high %v494_v45, %v498_v46  ;;  %v8120_v55 = vcombine.low %v494_v45, %v498_v46 }
 0x260   : > { %6486 = vmatpush1.bf16.msra.mxu1 %v8176_v63  ;;  %v626_v37 = vld [vmem:[%s9716_s8 + $0x770] sm:$0xff] }
 0x261   : > { %6487 = vmatprep.subr.bf16.mxu1 %v8169_v1  ;;  %6445 = vmatpush1.bf16.msra.mxu0 %v8040_v5  ;;  %v8249_v52 = vcombine.high %v622_v22, %v626_v37  ;;  %v486_v53 = vld [vmem:[%s9716_s8 + $0x310] sm:$0xff]  ;;  %v8248_v56 = vcombine.low %v622_v22, %v626_v37 }
 0x262   : > { %6446 = vmatprep.subr.bf16.mxu0 %v8033_v7  ;;  %v490_v31 = vld [vmem:[%s9716_s8 + $0x330] sm:$0xff] }
 0x263   : > { %v614_v47 = vld [vmem:[%s9716_s8 + $0x710] sm:$0xff]  ;;  %v8113_v58 = vcombine.high %v486_v53, %v490_v31  ;;  %v8112_v62 = vcombine.low %v486_v53, %v490_v31 }
 0x264   : > { %6488 = vmatpush1.bf16.msra.mxu1 %v8168_v6  ;;  %v618_v54 = vld [vmem:[%s9716_s8 + $0x730] sm:$0xff] }
 0x265   : > { %6489 = vmatprep.subr.bf16.mxu1 %v8161_v8  ;;  %6447 = vmatpush1.bf16.msra.mxu0 %v8032_v13  ;;  %v8241_v59 = vcombine.high %v614_v47, %v618_v54  ;;  %v478_v41 = vld [vmem:[%s9716_s8 + $0x2d0] sm:$0xff]  ;;  %v8240_v63 = vcombine.low %v614_v47, %v618_v54 }
 0x266   : > { %6448 = vmatprep.subr.bf16.mxu0 %v8025_v15  ;;  %v482_v57 = vld [vmem:[%s9716_s8 + $0x2f0] sm:$0xff] }
 0x267   : > { %v606_v60 = vld [vmem:[%s9716_s8 + $0x6d0] sm:$0xff]  ;;  %v8105_v0 = vcombine.high %v478_v41, %v482_v57  ;;  %v8104_v5 = vcombine.low %v478_v41, %v482_v57 }
 0x268   : > { %6490 = vmatpush1.bf16.msra.mxu1 %v8160_v14  ;;  %v610_v61 = vld [vmem:[%s9716_s8 + $0x6f0] sm:$0xff] }
 0x269   : > { %6491 = vmatprep.subr.bf16.mxu1 %v8153_v16  ;;  %6449 = vmatpush1.bf16.msra.mxu0 %v8024_v21  ;;  %v8233_v1 = vcombine.high %v606_v60, %v610_v61  ;;  %v470_v51 = vld [vmem:[%s9716_s8 + $0x290] sm:$0xff]  ;;  %v8232_v6 = vcombine.low %v606_v60, %v610_v61 }
 0x26a   : > { %6450 = vmatprep.subr.bf16.mxu0 %v8017_v24  ;;  %v474_v2 = vld [vmem:[%s9716_s8 + $0x2b0] sm:$0xff] }
 0x26b   : > { %v598_v3 = vld [vmem:[%s9716_s8 + $0x690] sm:$0xff]  ;;  %v8097_v7 = vcombine.high %v470_v51, %v474_v2  ;;  %v8096_v13 = vcombine.low %v470_v51, %v474_v2 }
 0x26c   : > { %6492 = vmatpush1.bf16.msra.mxu1 %v8152_v23  ;;  %v602_v4 = vld [vmem:[%s9716_s8 + $0x6b0] sm:$0xff] }
 0x26d   : > { %6493 = vmatprep.subr.bf16.mxu1 %v8145_v25  ;;  %6451 = vmatpush1.bf16.msra.mxu0 %v8016_v30  ;;  %v8225_v8 = vcombine.high %v598_v3, %v602_v4  ;;  %v462_v9 = vld [vmem:[%s9716_s8 + $0x250] sm:$0xff]  ;;  %v8224_v14 = vcombine.low %v598_v3, %v602_v4 }
 0x26e   : > { %6452 = vmatprep.subr.bf16.mxu0 %v8137_v33  ;;  %v466_v10 = vld [vmem:[%s9716_s8 + $0x270] sm:$0xff] }
 0x26f   : > { %v590_v11 = vld [vmem:[%s9716_s8 + $0x650] sm:$0xff]  ;;  %v8089_v15 = vcombine.high %v462_v9, %v466_v10  ;;  %v8088_v21 = vcombine.low %v462_v9, %v466_v10 }
 0x270   : > { %6494 = vmatpush1.bf16.msra.mxu1 %v8144_v32  ;;  %v594_v12 = vld [vmem:[%s9716_s8 + $0x670] sm:$0xff] }
 0x271   : > { %6495 = vmatprep.subr.bf16.mxu1 %v8265_v34  ;;  %6453 = vmatpush2.bf16.msra.mxu0 %v8136_v40  ;;  %v8217_v16 = vcombine.high %v590_v11, %v594_v12  ;;  %v454_v17 = vld [vmem:[%s9716_s8 + $0x210] sm:$0xff]  ;;  %v8216_v23 = vcombine.low %v590_v11, %v594_v12 }
 0x272   : > { %6454 = vmatprep.subr.bf16.mxu0 %v8129_v43  ;;  %v458_v18 = vld [vmem:[%s9716_s8 + $0x230] sm:$0xff] }
 0x273   : > { %v582_v19 = vld [vmem:[%s9716_s8 + $0x610] sm:$0xff]  ;;  %v8081_v24 = vcombine.high %v454_v17, %v458_v18  ;;  %v8080_v30 = vcombine.low %v454_v17, %v458_v18 }
 0x274   : > { %6496 = vmatpush2.bf16.msra.mxu1 %v8264_v42  ;;  %v586_v20 = vld [vmem:[%s9716_s8 + $0x630] sm:$0xff] }
 0x275   : > { %6497 = vmatprep.subr.bf16.mxu1 %v8257_v44  ;;  %6455 = vmatpush2.bf16.msra.mxu0 %v8128_v48  ;;  %v8209_v25 = vcombine.high %v582_v19, %v586_v20  ;;  %v702_v26 = vld [vmem:[%s9716_s8 + $0x9d0] sm:$0xff]  ;;  %v8208_v32 = vcombine.low %v582_v19, %v586_v20 }
 0x276   : > { %6456 = vmatprep.subr.bf16.mxu0 %v8121_v50  ;;  %v706_v27 = vld [vmem:[%s9716_s8 + $0x9f0] sm:$0xff] }
 0x277   : > { %v830_v28 = vld [vmem:[%s9716_s8 + $0xdd0] sm:$0xff]  ;;  %v8329_v33 = vcombine.high %v702_v26, %v706_v27  ;;  %v8328_v40 = vcombine.low %v702_v26, %v706_v27 }
 0x278   : > { %6498 = vmatpush2.bf16.msra.mxu1 %v8256_v49  ;;  %v834_v29 = vld [vmem:[%s9716_s8 + $0xdf0] sm:$0xff] }
 0x279   : > { %6499 = vmatprep.subr.bf16.mxu1 %v8249_v52  ;;  %6457 = vmatpush2.bf16.msra.mxu0 %v8120_v55  ;;  %v8457_v34 = vcombine.high %v830_v28, %v834_v29  ;;  %v694_v35 = vld [vmem:[%s9716_s8 + $0x990] sm:$0xff]  ;;  %v8456_v42 = vcombine.low %v830_v28, %v834_v29 }
 0x27a   : > { %6458 = vmatprep.subr.bf16.mxu0 %v8113_v58  ;;  %v698_v36 = vld [vmem:[%s9716_s8 + $0x9b0] sm:$0xff] }
 0x27b   : > { %v822_v38 = vld [vmem:[%s9716_s8 + $0xd90] sm:$0xff]  ;;  %v8321_v43 = vcombine.high %v694_v35, %v698_v36  ;;  %v8320_v50 = vcombine.low %v694_v35, %v698_v36 }
 0x27c   : > { %6500 = vmatpush2.bf16.msra.mxu1 %v8248_v56  ;;  %v826_v39 = vld [vmem:[%s9716_s8 + $0xdb0] sm:$0xff] }
 0x27d   : > { %6501 = vmatprep.subr.bf16.mxu1 %v8241_v59  ;;  %6459 = vmatpush2.bf16.msra.mxu0 %v8112_v62  ;;  %v8449_v44 = vcombine.high %v822_v38, %v826_v39  ;;  %v686_v45 = vld [vmem:[%s9716_s8 + $0x950] sm:$0xff]  ;;  %v8448_v52 = vcombine.low %v822_v38, %v826_v39 }
 0x27e   : > { %6460 = vmatprep.subr.bf16.mxu0 %v8105_v0  ;;  %v690_v46 = vld [vmem:[%s9716_s8 + $0x970] sm:$0xff] }
 0x27f   : > { %v9219_v22 = vld [vmem:[%s9709_s29] ss:$56 sps:$4 sm:$0xff]   ;;  %v8313_v53 = vcombine.high %v686_v45, %v690_v46  ;;  %v9221_v55 = vld [vmem:[%s9709_s29 + $0x14] ss:$56 sps:$4 sm:$0xff]   ;;  %v8312_v41 = vcombine.low %v686_v45, %v690_v46 }
 0x280   : > { %6502 = vmatpush2.bf16.msra.mxu1 %v8240_v63  ;;  %v814_v37 = vld [vmem:[%s9716_s8 + $0xd50] sm:$0xff] }
 0x281   : > { %6503 = vmatprep.subr.bf16.mxu1 %v8233_v1  ;;  %6461 = vmatpush2.bf16.msra.mxu0 %v8104_v5  ;;  %v818_v48 = vld [vmem:[%s9716_s8 + $0xd70] sm:$0xff] }
 0x282   : > { %6462 = vmatprep.subr.bf16.mxu0 %v8097_v7  ;;  %v9220_v49 = vld [vmem:[%s9709_s29 + $0x8] ss:$56 sps:$4 sm:$0xff]   ;;  %v8441_v31 = vcombine.high %v814_v37, %v818_v48  ;;  %v9222_v59 = vld [vmem:[%s9709_s29 + $0x1c] ss:$56 sps:$4 sm:$0xff]   ;;  %v8440_v57 = vcombine.low %v814_v37, %v818_v48 }
 0x283   : > { %v678_v47 = vld [vmem:[%s9716_s8 + $0x910] sm:$0xff] }
 0x284   : > { %6504 = vmatpush2.bf16.msra.mxu1 %v8232_v6  ;;  %v682_v54 = vld [vmem:[%s9716_s8 + $0x930] sm:$0xff] }
 0x285   : > { %6505 = vmatprep.subr.bf16.mxu1 %v8225_v8  ;;  %6463 = vmatpush2.bf16.msra.mxu0 %v8096_v13  ;;  %v806_v56 = vld [vmem:[%s9716_s8 + $0xd10] sm:$0xff]  ;;  %v8305_v60 = vcombine.high %v678_v47, %v682_v54  ;;  %v8304_v51 = vcombine.low %v678_v47, %v682_v54 }
 0x286   : > { %6464 = vmatprep.subr.bf16.mxu0 %v8089_v15  ;;  %v810_v58 = vld [vmem:[%s9716_s8 + $0xd30] sm:$0xff] }
 0x287   : > { %v8433_v61 = vcombine.high %v806_v56, %v810_v58  ;;  %v670_v62 = vld [vmem:[%s9716_s8 + $0x8d0] sm:$0xff]  ;;  %v8432_v2 = vcombine.low %v806_v56, %v810_v58 }
 0x288   : > { %6506 = vmatpush2.bf16.msra.mxu1 %v8224_v14  ;;  %v674_v63 = vld [vmem:[%s9716_s8 + $0x8f0] sm:$0xff] }
 0x289   : > { %6507 = vmatprep.subr.bf16.mxu1 %v8217_v16  ;;  %6465 = vmatpush2.bf16.msra.mxu0 %v8088_v21  ;;  %v798_v0 = vld [vmem:[%s9716_s8 + $0xcd0] sm:$0xff]  ;;  %v8297_v3 = vcombine.high %v670_v62, %v674_v63  ;;  %v8296_v9 = vcombine.low %v670_v62, %v674_v63 }
 0x28a   : > { %6466 = vmatprep.subr.bf16.mxu0 %v8081_v24  ;;  %v802_v1 = vld [vmem:[%s9716_s8 + $0xcf0] sm:$0xff] }
 0x28b   : > { %v8425_v4 = vcombine.high %v798_v0, %v802_v1  ;;  %v662_v5 = vld [vmem:[%s9716_s8 + $0x890] sm:$0xff]  ;;  %v8424_v10 = vcombine.low %v798_v0, %v802_v1 }
 0x28c   : > { %6508 = vmatpush2.bf16.msra.mxu1 %v8216_v23  ;;  %v666_v6 = vld [vmem:[%s9716_s8 + $0x8b0] sm:$0xff] }
 0x28d   : > { %6509 = vmatprep.subr.bf16.mxu1 %v8209_v25  ;;  %6467 = vmatpush2.bf16.msra.mxu0 %v8080_v30  ;;  %v790_v7 = vld [vmem:[%s9716_s8 + $0xc90] sm:$0xff]  ;;  %v8289_v11 = vcombine.high %v662_v5, %v666_v6  ;;  %v8288_v17 = vcombine.low %v662_v5, %v666_v6 }
 0x28e   : > { %6522 = vmatprep.subr.bf16.mxu0 %v8329_v33  ;;  %v794_v8 = vld [vmem:[%s9716_s8 + $0xcb0] sm:$0xff] }
 0x28f   : > { %v8417_v12 = vcombine.high %v790_v7, %v794_v8  ;;  %v654_v13 = vld [vmem:[%s9716_s8 + $0x850] sm:$0xff]  ;;  %v8416_v18 = vcombine.low %v790_v7, %v794_v8 }
 0x290   : > { %6510 = vmatpush2.bf16.msra.mxu1 %v8208_v32  ;;  %6469 = vmatmul.mubr.bf16.vlgmr.msra.gmra.mxu0 %v9219_v22  ;;  %v658_v14 = vld [vmem:[%s9716_s8 + $0x870] sm:$0xff] }
 0x291   : > { %6565 = vmatprep.subr.bf16.mxu1 %v8457_v34  ;;  %6523 = vmatpush1.bf16.msra.mxu0 %v8328_v40  ;;  %v782_v15 = vld [vmem:[%s9716_s8 + $0xc50] sm:$0xff]  ;;  %v8281_v19 = vcombine.high %v654_v13, %v658_v14  ;;  %v8280_v26 = vcombine.low %v654_v13, %v658_v14 }
 0x292   : > { %6524 = vmatprep.subr.bf16.mxu0 %v8321_v43  ;;  %6554 = vmatprep.mubr.bf16.mxu0 %v9221_v55  ;;  %v786_v16 = vld [vmem:[%s9716_s8 + $0xc70] sm:$0xff] }
 0x293   : > { %6512 = vmatmul.mubr.bf16.vlgmr.msra.gmra.mxu1 %v9220_v49  ;;  %v8409_v20 = vcombine.high %v782_v15, %v786_v16  ;;  %v646_v21 = vld [vmem:[%s9716_s8 + $0x810] sm:$0xff]  ;;  %v8408_v27 = vcombine.low %v782_v15, %v786_v16 }
 0x294   : > { %6566 = vmatpush1.bf16.msra.mxu1 %v8456_v42  ;;  %6597 = vmatprep.mubr.bf16.mxu1 %v9222_v59  ;;  %v650_v23 = vld [vmem:[%s9716_s8 + $0x830] sm:$0xff] }
 0x295   : > { %6567 = vmatprep.subr.bf16.mxu1 %v8449_v44  ;;  %6525 = vmatpush1.bf16.msra.mxu0 %v8320_v50  ;;  %v774_v24 = vld [vmem:[%s9716_s8 + $0xc10] sm:$0xff]  ;;  %v8273_v28 = vcombine.high %v646_v21, %v650_v23  ;;  %v8272_v35 = vcombine.low %v646_v21, %v650_v23 }
 0x296   : > { %6526 = vmatprep.subr.bf16.mxu0 %v8313_v53  ;;  %v778_v25 = vld [vmem:[%s9716_s8 + $0xc30] sm:$0xff] }
 0x297   : > { %v8401_v29 = vcombine.high %v774_v24, %v778_v25  ;;  %v766_v30 = vld [vmem:[%s9716_s8 + $0xbd0] sm:$0xff]  ;;  %v8400_v36 = vcombine.low %v774_v24, %v778_v25 }
 0x298   : > { %6568 = vmatpush1.bf16.msra.mxu1 %v8448_v52  ;;  %v770_v32 = vld [vmem:[%s9716_s8 + $0xbf0] sm:$0xff] }
 0x299   : > { %6569 = vmatprep.subr.bf16.mxu1 %v8441_v31  ;;  %6527 = vmatpush1.bf16.msra.mxu0 %v8312_v41  ;;  %v894_v33 = vld [vmem:[%s9716_s8 + $0xfd0] sm:$0xff]  ;;  %v8393_v38 = vcombine.high %v766_v30, %v770_v32  ;;  %v8392_v45 = vcombine.low %v766_v30, %v770_v32 }
 0x29a   : > { %6528 = vmatprep.subr.bf16.mxu0 %v8305_v60  ;;  %v898_v34 = vld [vmem:[%s9716_s8 + $0xff0] sm:$0xff] }
 0x29b   : > { %v8521_v39 = vcombine.high %v894_v33, %v898_v34  ;;  %v758_v40 = vld [vmem:[%s9716_s8 + $0xb90] sm:$0xff]  ;;  %v8520_v46 = vcombine.low %v894_v33, %v898_v34 }
 0x29c   : > { %6570 = vmatpush1.bf16.msra.mxu1 %v8440_v57  ;;  %v762_v42 = vld [vmem:[%s9716_s8 + $0xbb0] sm:$0xff] }
 0x29d   : > { %6571 = vmatprep.subr.bf16.mxu1 %v8433_v61  ;;  %6529 = vmatpush1.bf16.msra.mxu0 %v8304_v51  ;;  %v886_v43 = vld [vmem:[%s9716_s8 + $0xf90] sm:$0xff]  ;;  %v8385_v22 = vcombine.high %v758_v40, %v762_v42  ;;  %v8384_v53 = vcombine.low %v758_v40, %v762_v42 }
 0x29e   : > { %6530 = vmatprep.subr.bf16.mxu0 %v8297_v3  ;;  %v890_v44 = vld [vmem:[%s9716_s8 + $0xfb0] sm:$0xff] }
 0x29f   : > { %v8513_v37 = vcombine.high %v886_v43, %v890_v44  ;;  %v750_v48 = vld [vmem:[%s9716_s8 + $0xb50] sm:$0xff]  ;;  %v8512_v31 = vcombine.low %v886_v43, %v890_v44 }
 0x2a0   : > { %6572 = vmatpush1.bf16.msra.mxu1 %v8432_v2  ;;  %v754_v49 = vld [vmem:[%s9716_s8 + $0xb70] sm:$0xff] }
 0x2a1   : > { %6573 = vmatprep.subr.bf16.mxu1 %v8425_v4  ;;  %6531 = vmatpush1.bf16.msra.mxu0 %v8296_v9  ;;  %v878_v50 = vld [vmem:[%s9716_s8 + $0xf50] sm:$0xff]  ;;  %v8377_v47 = vcombine.high %v750_v48, %v754_v49  ;;  %v8376_v41 = vcombine.low %v750_v48, %v754_v49 }
 0x2a2   : > { %6532 = vmatprep.subr.bf16.mxu0 %v8289_v11  ;;  %v882_v52 = vld [vmem:[%s9716_s8 + $0xf70] sm:$0xff] }
 0x2a3   : > { %v8505_v54 = vcombine.high %v878_v50, %v882_v52  ;;  %v742_v55 = vld [vmem:[%s9716_s8 + $0xb10] sm:$0xff]  ;;  %v8504_v57 = vcombine.low %v878_v50, %v882_v52 }
 0x2a4   : > { %6574 = vmatpush1.bf16.msra.mxu1 %v8424_v10  ;;  %v746_v56 = vld [vmem:[%s9716_s8 + $0xb30] sm:$0xff] }
 0x2a5   : > { %6575 = vmatprep.subr.bf16.mxu1 %v8417_v12  ;;  %6533 = vmatpush1.bf16.msra.mxu0 %v8288_v17  ;;  %v870_v58 = vld [vmem:[%s9716_s8 + $0xf10] sm:$0xff]  ;;  %v8369_v60 = vcombine.high %v742_v55, %v746_v56  ;;  %v8368_v51 = vcombine.low %v742_v55, %v746_v56 }
 0x2a6   : > { %6534 = vmatprep.subr.bf16.mxu0 %v8281_v19  ;;  %v874_v59 = vld [vmem:[%s9716_s8 + $0xf30] sm:$0xff] }
 0x2a7   : > { %v8497_v61 = vcombine.high %v870_v58, %v874_v59  ;;  %v734_v62 = vld [vmem:[%s9716_s8 + $0xad0] sm:$0xff]  ;;  %v8496_v2 = vcombine.low %v870_v58, %v874_v59 }
 0x2a8   : > { %6576 = vmatpush1.bf16.msra.mxu1 %v8416_v18  ;;  %v738_v63 = vld [vmem:[%s9716_s8 + $0xaf0] sm:$0xff] }
 0x2a9   : > { %6577 = vmatprep.subr.bf16.mxu1 %v8409_v20  ;;  %6535 = vmatpush1.bf16.msra.mxu0 %v8280_v26  ;;  %v862_v0 = vld [vmem:[%s9716_s8 + $0xed0] sm:$0xff]  ;;  %v8361_v3 = vcombine.high %v734_v62, %v738_v63  ;;  %v8360_v9 = vcombine.low %v734_v62, %v738_v63 }
 0x2aa   : > { %6536 = vmatprep.subr.bf16.mxu0 %v8273_v28  ;;  %v866_v1 = vld [vmem:[%s9716_s8 + $0xef0] sm:$0xff] }
 0x2ab   : > { %v8489_v4 = vcombine.high %v862_v0, %v866_v1  ;;  %v726_v5 = vld [vmem:[%s9716_s8 + $0xa90] sm:$0xff]  ;;  %v8488_v10 = vcombine.low %v862_v0, %v866_v1 }
 0x2ac   : > { %6578 = vmatpush1.bf16.msra.mxu1 %v8408_v27  ;;  %v730_v6 = vld [vmem:[%s9716_s8 + $0xab0] sm:$0xff] }
 0x2ad   : > { %6579 = vmatprep.subr.bf16.mxu1 %v8401_v29  ;;  %6537 = vmatpush1.bf16.msra.mxu0 %v8272_v35  ;;  %v854_v7 = vld [vmem:[%s9716_s8 + $0xe90] sm:$0xff]  ;;  %v8353_v11 = vcombine.high %v726_v5, %v730_v6  ;;  %v8352_v17 = vcombine.low %v726_v5, %v730_v6 }
 0x2ae   : > { %6538 = vmatprep.subr.bf16.mxu0 %v8393_v38  ;;  %v858_v8 = vld [vmem:[%s9716_s8 + $0xeb0] sm:$0xff] }
 0x2af   : > { %v8481_v12 = vcombine.high %v854_v7, %v858_v8  ;;  %v718_v13 = vld [vmem:[%s9716_s8 + $0xa50] sm:$0xff]  ;;  %v8480_v18 = vcombine.low %v854_v7, %v858_v8 }
 0x2b0   : > { %6580 = vmatpush1.bf16.msra.mxu1 %v8400_v36  ;;  %v722_v14 = vld [vmem:[%s9716_s8 + $0xa70] sm:$0xff] }
 0x2b1   : > { %6581 = vmatprep.subr.bf16.mxu1 %v8521_v39  ;;  %6539 = vmatpush2.bf16.msra.mxu0 %v8392_v45  ;;  %v846_v15 = vld [vmem:[%s9716_s8 + $0xe50] sm:$0xff]  ;;  %v8345_v19 = vcombine.high %v718_v13, %v722_v14  ;;  %v8344_v26 = vcombine.low %v718_v13, %v722_v14 }
 0x2b2   : > { %6540 = vmatprep.subr.bf16.mxu0 %v8385_v22  ;;  %v850_v16 = vld [vmem:[%s9716_s8 + $0xe70] sm:$0xff] }
 0x2b3   : > { %v8473_v20 = vcombine.high %v846_v15, %v850_v16  ;;  %v710_v21 = vld [vmem:[%s9716_s8 + $0xa10] sm:$0xff]  ;;  %v8472_v27 = vcombine.low %v846_v15, %v850_v16 }
 0x2b4   : > { %6582 = vmatpush2.bf16.msra.mxu1 %v8520_v46  ;;  %v714_v23 = vld [vmem:[%s9716_s8 + $0xa30] sm:$0xff] }
 0x2b5   : > { %6583 = vmatprep.subr.bf16.mxu1 %v8513_v37  ;;  %6541 = vmatpush2.bf16.msra.mxu0 %v8384_v53  ;;  %v838_v24 = vld [vmem:[%s9716_s8 + $0xe10] sm:$0xff]  ;;  %v8337_v28 = vcombine.high %v710_v21, %v714_v23  ;;  %v8336_v35 = vcombine.low %v710_v21, %v714_v23 }
 0x2b6   : > { %6542 = vmatprep.subr.bf16.mxu0 %v8377_v47  ;;  %v842_v25 = vld [vmem:[%s9716_s8 + $0xe30] sm:$0xff] }
 0x2b7   : > { %v8465_v29 = vcombine.high %v838_v24, %v842_v25  ;;  %v958_v30 = vld [vmem:[%s9716_s8 + $0x11d0] sm:$0xff]  ;;  %v8464_v36 = vcombine.low %v838_v24, %v842_v25 }
 0x2b8   : > { %6584 = vmatpush2.bf16.msra.mxu1 %v8512_v31  ;;  %v962_v32 = vld [vmem:[%s9716_s8 + $0x11f0] sm:$0xff] }
 0x2b9   : > { %6585 = vmatprep.subr.bf16.mxu1 %v8505_v54  ;;  %6543 = vmatpush2.bf16.msra.mxu0 %v8376_v41  ;;  %v1086_v33 = vld [vmem:[%s9716_s8 + $0x15d0] sm:$0xff]  ;;  %v8585_v38 = vcombine.high %v958_v30, %v962_v32  ;;  %v8584_v45 = vcombine.low %v958_v30, %v962_v32 }
 0x2ba   : > { %6544 = vmatprep.subr.bf16.mxu0 %v8369_v60  ;;  %v1090_v34 = vld [vmem:[%s9716_s8 + $0x15f0] sm:$0xff] }
 0x2bb   : > { %v8713_v39 = vcombine.high %v1086_v33, %v1090_v34  ;;  %v950_v40 = vld [vmem:[%s9716_s8 + $0x1190] sm:$0xff]  ;;  %v8712_v46 = vcombine.low %v1086_v33, %v1090_v34  ;;  %v10405_v34 = vpop.f32.mrf.mxu1 }
 0x2bc   : > { %6586 = vmatpush2.bf16.msra.mxu1 %v8504_v57  ;;  %v954_v42 = vld [vmem:[%s9716_s8 + $0x11b0] sm:$0xff] }
 0x2bd   : > { %6587 = vmatprep.subr.bf16.mxu1 %v8497_v61  ;;  %6545 = vmatpush2.bf16.msra.mxu0 %v8368_v51  ;;  %v1078_v43 = vld [vmem:[%s9716_s8 + $0x1590] sm:$0xff]  ;;  %v8577_v22 = vcombine.high %v950_v40, %v954_v42  ;;  %v8576_v47 = vcombine.low %v950_v40, %v954_v42 }
 0x2be   : > { %6546 = vmatprep.subr.bf16.mxu0 %v8361_v3  ;;  %v1082_v44 = vld [vmem:[%s9716_s8 + $0x15b0] sm:$0xff] }
 0x2bf   : > { %v8705_v37 = vcombine.high %v1078_v43, %v1082_v44  ;;  %v942_v48 = vld [vmem:[%s9716_s8 + $0x1150] sm:$0xff]  ;;  %v8704_v54 = vcombine.low %v1078_v43, %v1082_v44 }
 0x2c0   : > { %6588 = vmatpush2.bf16.msra.mxu1 %v8496_v2  ;;  %v946_v49 = vld [vmem:[%s9716_s8 + $0x1170] sm:$0xff] }
 0x2c1   : > { %6589 = vmatprep.subr.bf16.mxu1 %v8489_v4  ;;  %6547 = vmatpush2.bf16.msra.mxu0 %v8360_v9  ;;  %v9223_v50 = vld [vmem:[%s9709_s29 + $0x10] ss:$56 sps:$4 sm:$0xff]   ;;  %v8569_v55 = vcombine.high %v942_v48, %v946_v49  ;;  %v9225_v41 = vld [vmem:[%s9709_s29 + $0x24] ss:$56 sps:$4 sm:$0xff]   ;;  %v8568_v62 = vcombine.low %v942_v48, %v946_v49 }
 0x2c2   : > { %6548 = vmatprep.subr.bf16.mxu0 %v8353_v11  ;;  %v1070_v52 = vld [vmem:[%s9716_s8 + $0x1550] sm:$0xff] }
 0x2c3   : > { %v1074_v53 = vld [vmem:[%s9716_s8 + $0x1570] sm:$0xff] }
 0x2c4   : > { %6590 = vmatpush2.bf16.msra.mxu1 %v8488_v10  ;;  %v9224_v31 = vld [vmem:[%s9709_s29 + $0x18] ss:$56 sps:$4 sm:$0xff]   ;;  %v8697_v56 = vcombine.high %v1070_v52, %v1074_v53  ;;  %v9226_v61 = vld [vmem:[%s9709_s29 + $0x2c] ss:$56 sps:$4 sm:$0xff]   ;;  %v8696_v63 = vcombine.low %v1070_v52, %v1074_v53 }
 0x2c5   : > { %6591 = vmatprep.subr.bf16.mxu1 %v8481_v12  ;;  %6549 = vmatpush2.bf16.msra.mxu0 %v8352_v17  ;;  %v934_v58 = vld [vmem:[%s9716_s8 + $0x1110] sm:$0xff] }
 0x2c6   : > { %6550 = vmatprep.subr.bf16.mxu0 %v8345_v19  ;;  %v938_v59 = vld [vmem:[%s9716_s8 + $0x1130] sm:$0xff] }
 0x2c7   : > { %v1062_v57 = vld [vmem:[%s9716_s8 + $0x1510] sm:$0xff]  ;;  %v8561_v0 = vcombine.high %v934_v58, %v938_v59  ;;  %v8560_v5 = vcombine.low %v934_v58, %v938_v59 }
 0x2c8   : > { %6592 = vmatpush2.bf16.msra.mxu1 %v8480_v18  ;;  %v1066_v60 = vld [vmem:[%s9716_s8 + $0x1530] sm:$0xff] }
 0x2c9   : > { %6593 = vmatprep.subr.bf16.mxu1 %v8473_v20  ;;  %6551 = vmatpush2.bf16.msra.mxu0 %v8344_v26  ;;  %v8689_v1 = vcombine.high %v1062_v57, %v1066_v60  ;;  %v926_v51 = vld [vmem:[%s9716_s8 + $0x10d0] sm:$0xff]  ;;  %v8688_v6 = vcombine.low %v1062_v57, %v1066_v60 }
 0x2ca   : > { %6552 = vmatprep.subr.bf16.mxu0 %v8337_v28  ;;  %v930_v2 = vld [vmem:[%s9716_s8 + $0x10f0] sm:$0xff] }
 0x2cb   : > { %v1054_v3 = vld [vmem:[%s9716_s8 + $0x14d0] sm:$0xff]  ;;  %v8553_v7 = vcombine.high %v926_v51, %v930_v2  ;;  %v8552_v13 = vcombine.low %v926_v51, %v930_v2 }
 0x2cc   : > { %6594 = vmatpush2.bf16.msra.mxu1 %v8472_v27  ;;  %v1058_v4 = vld [vmem:[%s9716_s8 + $0x14f0] sm:$0xff] }
 0x2cd   : > { %6595 = vmatprep.subr.bf16.mxu1 %v8465_v29  ;;  %6553 = vmatpush2.bf16.msra.mxu0 %v8336_v35  ;;  %v8681_v8 = vcombine.high %v1054_v3, %v1058_v4  ;;  %v918_v9 = vld [vmem:[%s9716_s8 + $0x1090] sm:$0xff]  ;;  %v8680_v14 = vcombine.low %v1054_v3, %v1058_v4 }
 0x2ce   : > { %6608 = vmatprep.subr.bf16.mxu0 %v8585_v38  ;;  %v922_v10 = vld [vmem:[%s9716_s8 + $0x10b0] sm:$0xff] }
 0x2cf   : > { %v1046_v11 = vld [vmem:[%s9716_s8 + $0x1490] sm:$0xff]  ;;  %v8545_v15 = vcombine.high %v918_v9, %v922_v10  ;;  %v8544_v21 = vcombine.low %v918_v9, %v922_v10 }
 0x2d0   : > { %6596 = vmatpush2.bf16.msra.mxu1 %v8464_v36  ;;  %6555 = vmatmul.mubr.bf16.vlgmr.msra.gmra.mxu0 %v9223_v50  ;;  %v1050_v12 = vld [vmem:[%s9716_s8 + $0x14b0] sm:$0xff] }
 0x2d1   : > { %6651 = vmatprep.subr.bf16.mxu1 %v8713_v39  ;;  %6609 = vmatpush1.bf16.msra.mxu0 %v8584_v45  ;;  %v8673_v16 = vcombine.high %v1046_v11, %v1050_v12  ;;  %v910_v17 = vld [vmem:[%s9716_s8 + $0x1050] sm:$0xff]  ;;  %v8672_v23 = vcombine.low %v1046_v11, %v1050_v12  ;;  %v10411_v45 = vpop.f32.mrf.mxu1 }
 0x2d2   : > { %6610 = vmatprep.subr.bf16.mxu0 %v8577_v22  ;;  %6640 = vmatprep.mubr.bf16.mxu0 %v9225_v41  ;;  %v914_v18 = vld [vmem:[%s9716_s8 + $0x1070] sm:$0xff] }
 0x2d3   : > { %6598 = vmatmul.mubr.bf16.vlgmr.msra.gmra.mxu1 %v9224_v31  ;;  %v1038_v19 = vld [vmem:[%s9716_s8 + $0x1450] sm:$0xff]  ;;  %v8537_v24 = vcombine.high %v910_v17, %v914_v18  ;;  %v8536_v30 = vcombine.low %v910_v17, %v914_v18  ;;  %v10417_v31 = vpop.f32.mrf.mxu1 }
 0x2d4   : > { %6652 = vmatpush1.bf16.msra.mxu1 %v8712_v46  ;;  %6683 = vmatprep.mubr.bf16.mxu1 %v9226_v61  ;;  %v1042_v20 = vld [vmem:[%s9716_s8 + $0x1470] sm:$0xff] }
 0x2d5   : > { %6653 = vmatprep.subr.bf16.mxu1 %v8705_v37  ;;  %6611 = vmatpush1.bf16.msra.mxu0 %v8576_v47  ;;  %v8665_v25 = vcombine.high %v1038_v19, %v1042_v20  ;;  %v902_v26 = vld [vmem:[%s9716_s8 + $0x1010] sm:$0xff]  ;;  %v8664_v32 = vcombine.low %v1038_v19, %v1042_v20  ;;  %v10423_v60 = vpop.f32.mrf.mxu1 }
 0x2d6   : > { %6612 = vmatprep.subr.bf16.mxu0 %v8569_v55  ;;  %v906_v27 = vld [vmem:[%s9716_s8 + $0x1030] sm:$0xff] }
 0x2d7   : > { %v1030_v28 = vld [vmem:[%s9716_s8 + $0x1410] sm:$0xff]  ;;  %v8529_v33 = vcombine.high %v902_v26, %v906_v27  ;;  %v8528_v42 = vcombine.low %v902_v26, %v906_v27  ;;  %v10429_v2 = vpop.f32.mrf.mxu1 }
 0x2d8   : > { %6654 = vmatpush1.bf16.msra.mxu1 %v8704_v54  ;;  %v1034_v29 = vld [vmem:[%s9716_s8 + $0x1430] sm:$0xff] }
 0x2d9   : > { %6655 = vmatprep.subr.bf16.mxu1 %v8697_v56  ;;  %6613 = vmatpush1.bf16.msra.mxu0 %v8568_v62  ;;  %v8657_v35 = vcombine.high %v1030_v28, %v1034_v29  ;;  %v1022_v36 = vld [vmem:[%s9716_s8 + $0x13d0] sm:$0xff]  ;;  %v8656_v43 = vcombine.low %v1030_v28, %v1034_v29  ;;  %v10435_v12 = vpop.f32.mrf.mxu1 }
 0x2da   : > { %6614 = vmatprep.subr.bf16.mxu0 %v8561_v0  ;;  %v1026_v38 = vld [vmem:[%s9716_s8 + $0x13f0] sm:$0xff]  ;;  %v6212_v0 = vpop.f32.mrf.mxu0 }
 0x2db   : > { %v1150_v39 = vld [vmem:[%s9716_s8 + $0x17d0] sm:$0xff]  ;;  %v8649_v44 = vcombine.high %v1022_v36, %v1026_v38  ;;  %v8648_v50 = vcombine.low %v1022_v36, %v1026_v38 }
 0x2dc   : > { %6656 = vmatpush1.bf16.msra.mxu1 %v8696_v63  ;;  %v1154_v40 = vld [vmem:[%s9716_s8 + $0x17f0] sm:$0xff]  ;;  %v6214_v9 = vpop.f32.mrf.mxu0 }
 0x2dd   : > { %6657 = vmatprep.subr.bf16.mxu1 %v8689_v1  ;;  %6615 = vmatpush1.bf16.msra.mxu0 %v8560_v5  ;;  %v8777_v46 = vcombine.high %v1150_v39, %v1154_v40  ;;  %v1014_v22 = vld [vmem:[%s9716_s8 + $0x1390] sm:$0xff]  ;;  %v8776_v52 = vcombine.low %v1150_v39, %v1154_v40 }
 0x2de   : > { %6616 = vmatprep.subr.bf16.mxu0 %v8553_v7  ;;  %v1018_v37 = vld [vmem:[%s9716_s8 + $0x13b0] sm:$0xff]  ;;  %v6216_v19 = vpop.f32.mrf.mxu0 }
 0x2df   : > { %v1142_v48 = vld [vmem:[%s9716_s8 + $0x1790] sm:$0xff]  ;;  %v8641_v53 = vcombine.high %v1014_v22, %v1018_v37  ;;  %v8640_v59 = vcombine.low %v1014_v22, %v1018_v37 }
 0x2e0   : > { %6658 = vmatpush1.bf16.msra.mxu1 %v8688_v6  ;;  %v1146_v49 = vld [vmem:[%s9716_s8 + $0x17b0] sm:$0xff] }
 0x2e1   : > { %6659 = vmatprep.subr.bf16.mxu1 %v8681_v8  ;;  %6617 = vmatpush1.bf16.msra.mxu0 %v8552_v13  ;;  %v8769_v47 = vcombine.high %v1142_v48, %v1146_v49  ;;  %v1006_v54 = vld [vmem:[%s9716_s8 + $0x1350] sm:$0xff]  ;;  %v8768_v41 = vcombine.low %v1142_v48, %v1146_v49  ;;  %v6213_v48 = vadd.f32 %v6212_v0, %v10405_v34 }
 0x2e2   : > { %6618 = vmatprep.subr.bf16.mxu0 %v8545_v15  ;;  %v1010_v55 = vld [vmem:[%s9716_s8 + $0x1370] sm:$0xff]  ;;  %v6217_v34 = vadd.f32 %v6216_v19, %v10417_v31  ;;  %v10473_v19 = vld [vmem:[%s9716_s8 + $0x158] sm:$0xff] }
 0x2e3   : > { %v1134_v56 = vld [vmem:[%s9716_s8 + $0x1750] sm:$0xff]  ;;  %v8633_v57 = vcombine.high %v1006_v54, %v1010_v55  ;;  %v8632_v3 = vcombine.low %v1006_v54, %v1010_v55 }
 0x2e4   : > { %6660 = vmatpush1.bf16.msra.mxu1 %v8680_v14  ;;  %v1138_v58 = vld [vmem:[%s9716_s8 + $0x1770] sm:$0xff] }
 0x2e5   : > { %6661 = vmatprep.subr.bf16.mxu1 %v8673_v16  ;;  %6619 = vmatpush1.bf16.msra.mxu0 %v8544_v21  ;;  %v8761_v61 = vcombine.high %v1134_v56, %v1138_v58  ;;  %v998_v62 = vld [vmem:[%s9716_s8 + $0x1310] sm:$0xff]  ;;  %v8760_v4 = vcombine.low %v1134_v56, %v1138_v58 }
 0x2e6   : > { %6620 = vmatprep.subr.bf16.mxu0 %v8537_v24  ;;  %v1002_v63 = vld [vmem:[%s9716_s8 + $0x1330] sm:$0xff] }
 0x2e7   : > { %v1126_v1 = vld [vmem:[%s9716_s8 + $0x1710] sm:$0xff]  ;;  %v8625_v5 = vcombine.high %v998_v62, %v1002_v63  ;;  %v8624_v13 = vcombine.low %v998_v62, %v1002_v63 }
 0x2e8   : > { %6662 = vmatpush1.bf16.msra.mxu1 %v8672_v23  ;;  %v1130_v51 = vld [vmem:[%s9716_s8 + $0x1730] sm:$0xff]  ;;  %v10441_v23 = vpop.f32.mrf.mxu1 }
 0x2e9   : > { %6663 = vmatprep.subr.bf16.mxu1 %v8665_v25  ;;  %6621 = vmatpush1.bf16.msra.mxu0 %v8536_v30  ;;  %v8753_v6 = vcombine.high %v1126_v1, %v1130_v51  ;;  %v990_v7 = vld [vmem:[%s9716_s8 + $0x12d0] sm:$0xff]  ;;  %v8752_v14 = vcombine.low %v1126_v1, %v1130_v51  ;;  %v6218_v30 = vpop.f32.mrf.mxu0 }
 0x2ea   : > { %6622 = vmatprep.subr.bf16.mxu0 %v8529_v33  ;;  %v994_v8 = vld [vmem:[%s9716_s8 + $0x12f0] sm:$0xff]  ;;  %v6219_v1 = vadd.f32 %v6218_v30, %v10423_v60  ;;  %v360_v30 = vld [vmem:[#allocation2 + $0x58] sm:$0xff] }
 0x2eb   : > { %v1118_v10 = vld [vmem:[%s9716_s8 + $0x16d0] sm:$0xff]  ;;  %v8617_v15 = vcombine.high %v990_v7, %v994_v8  ;;  %v8616_v24 = vcombine.low %v990_v7, %v994_v8  ;;  %v6298_v38 = vpop.f32.mrf.mxu0  ;;  %v6260_v7 = vadd.f32 %v10441_v23, %v6217_v34 }
 0x2ec   : > { %6664 = vmatpush1.bf16.msra.mxu1 %v8664_v32  ;;  %v1122_v11 = vld [vmem:[%s9716_s8 + $0x16f0] sm:$0xff] }
 0x2ed   : > { %6665 = vmatprep.subr.bf16.mxu1 %v8657_v35  ;;  %6623 = vmatpush1.bf16.msra.mxu0 %v8528_v42  ;;  %v8745_v16 = vcombine.high %v1118_v10, %v1122_v11  ;;  %v982_v17 = vld [vmem:[%s9716_s8 + $0x1290] sm:$0xff]  ;;  %v8744_v25 = vcombine.low %v1118_v10, %v1122_v11  ;;  %v6261_v35 = vpop.f32.mrf.mxu1 }
 0x2ee   : > { %6624 = vmatprep.subr.bf16.mxu0 %v8649_v44  ;;  %v986_v18 = vld [vmem:[%s9716_s8 + $0x12b0] sm:$0xff] }
 0x2ef   : > { %v1110_v20 = vld [vmem:[%s9716_s8 + $0x1690] sm:$0xff]  ;;  %v8609_v26 = vcombine.high %v982_v17, %v986_v18  ;;  %v8608_v36 = vcombine.low %v982_v17, %v986_v18  ;;  %v6341_v42 = vpop.f32.mrf.mxu1 }
 0x2f0   : > { %6666 = vmatpush1.bf16.msra.mxu1 %v8656_v43  ;;  %v1114_v21 = vld [vmem:[%s9716_s8 + $0x16b0] sm:$0xff] }
 0x2f1   : > { %6667 = vmatprep.subr.bf16.mxu1 %v8777_v46  ;;  %6625 = vmatpush2.bf16.msra.mxu0 %v8648_v50  ;;  %v8737_v27 = vcombine.high %v1110_v20, %v1114_v21  ;;  %v974_v28 = vld [vmem:[%s9716_s8 + $0x1250] sm:$0xff]  ;;  %v8736_v39 = vcombine.low %v1110_v20, %v1114_v21  ;;  %v6300_v50 = vpop.f32.mrf.mxu0  ;;  %v6343_v54 = vpop.f32.mrf.mxu1  ;;  %v10476_v20 = vld [vmem:[%s9716_s8 + $0x178] sm:$0xff] }
 0x2f2   : > { %6626 = vmatprep.subr.bf16.mxu0 %v8641_v53  ;;  %v978_v29 = vld [vmem:[%s9716_s8 + $0x1270] sm:$0xff] }
 0x2f3   : > { %v1102_v32 = vld [vmem:[%s9716_s8 + $0x1650] sm:$0xff]  ;;  %v8601_v40 = vcombine.high %v974_v28, %v978_v29  ;;  %v8600_v49 = vcombine.low %v974_v28, %v978_v29  ;;  %v6302_v62 = vpop.f32.mrf.mxu0 }
 0x2f4   : > { %6668 = vmatpush2.bf16.msra.mxu1 %v8776_v52  ;;  %v1106_v33 = vld [vmem:[%s9716_s8 + $0x1670] sm:$0xff] }
 0x2f5   : > { %6669 = vmatprep.subr.bf16.mxu1 %v8769_v47  ;;  %6627 = vmatpush2.bf16.msra.mxu0 %v8640_v59  ;;  %v8729_v43 = vcombine.high %v1102_v32, %v1106_v33  ;;  %v966_v44 = vld [vmem:[%s9716_s8 + $0x1210] sm:$0xff]  ;;  %v8728_v52 = vcombine.low %v1102_v32, %v1106_v33  ;;  %v6215_v47 = vadd.f32 %v6214_v9, %v10411_v45  ;;  %v447_v59 = vld [vmem:[%s9716_s8 + $0x1d8] sm:$0xff]  ;;  %v6304_v10 = vpop.f32.mrf.mxu0 }
 0x2f6   : > { %6628 = vmatprep.subr.bf16.mxu0 %v8633_v57  ;;  %v970_v46 = vld [vmem:[%s9716_s8 + $0x1230] sm:$0xff]  ;;  %v6256_v57 = vadd.f32 %v10429_v2, %v6213_v48 }
 0x2f7   : > { %v1094_v22 = vld [vmem:[%s9716_s8 + $0x1610] sm:$0xff]  ;;  %v8593_v53 = vcombine.high %v966_v44, %v970_v46  ;;  %v6258_v0 = vadd.f32 %v10435_v12, %v6215_v47 }
 0x2f8   : > { %6670 = vmatpush2.bf16.msra.mxu1 %v8768_v41  ;;  %v1098_v37 = vld [vmem:[%s9716_s8 + $0x1630] sm:$0xff]  ;;  %v451_v41 = vld [vmem:[%s9716_s8 + $0x1f8] sm:$0xff]  ;;  %v6299_v51 = vadd.f32 %v6298_v38, %v6256_v57 }
 0x2f9   : > { %6671 = vmatprep.subr.bf16.mxu1 %v8761_v61  ;;  %6629 = vmatpush2.bf16.msra.mxu0 %v8632_v3  ;;  %v8721_v55 = vcombine.high %v1094_v22, %v1098_v37  ;;  %v1214_v56 = vld [vmem:[%s9716_s8 + $0x19d0] sm:$0xff]  ;;  %v8592_v61 = vcombine.low %v966_v44, %v970_v46  ;;  %v8720_v45 = vcombine.low %v1094_v22, %v1098_v37  ;;  %v6345_v3 = vpop.f32.mrf.mxu1  ;;  %v361_v22 = vld [vmem:[#allocation2 + $0x18] sm:$0xff] }
 0x2fa   : > { %6630 = vmatprep.subr.bf16.mxu0 %v8625_v5  ;;  %v1218_v58 = vld [vmem:[%s9716_s8 + $0x19f0] sm:$0xff]  ;;  %v8075_v2 = vcombine.high %v447_v59, %v451_v41  ;;  %v439_v5 = vld [vmem:[%s9716_s8 + $0x198] sm:$0xff]  ;;  %v6301_v8 = vadd.f32 %v6300_v50, %v6258_v0  ;;  %v8074_v60 = vcombine.low %v447_v59, %v451_v41  ;;  %v8058_v41 = vcombine.low %v10473_v19, %v10476_v20 }
 0x2fb   : > { %v8841_v63 = vcombine.high %v1214_v56, %v1218_v58  ;;  %v1210_v31 = vld [vmem:[%s9716_s8 + $0x19b0] sm:$0xff]  ;;  %v8840_v9 = vcombine.low %v1214_v56, %v1218_v58  ;;  %v427_v50 = vld [vmem:[%s9716_s8 + $0x138] sm:$0xff] }
 0x2fc   : > { %6672 = vmatpush2.bf16.msra.mxu1 %v8760_v4  ;;  %v1206_v4 = vld [vmem:[%s9716_s8 + $0x1990] sm:$0xff] }
 0x2fd   : > { %6673 = vmatprep.subr.bf16.mxu1 %v8753_v6  ;;  %6631 = vmatpush2.bf16.msra.mxu0 %v8624_v13  ;;  %v443_v6 = vld [vmem:[%s9716_s8 + $0x1b8] sm:$0xff]  ;;  %v8833_v11 = vcombine.high %v1206_v4, %v1210_v31  ;;  %v10467_v12 = vld [vmem:[%s9716_s8 + $0x1950] sm:$0xff]  ;;  %v6262_v13 = vadd.f32 %v6261_v35, %v6219_v1 }
 0x2fe   : > { %6632 = vmatprep.subr.bf16.mxu0 %v8617_v15  ;;  %v6303_v15 = vadd.f32 %v6302_v62, %v6260_v7  ;;  %v8067_v17 = vcombine.high %v439_v5, %v443_v6  ;;  %v10470_v18 = vld [vmem:[%s9716_s8 + $0x1970] sm:$0xff]  ;;  %v8066_v33 = vcombine.low %v439_v5, %v443_v6  ;;  %v369_v1 = vld [vmem:[#allocation2 + $0x38] sm:$0xff] }
 0x2ff   : > { %v9227_v23 = vld [vmem:[%s9709_s29 + $0x20] ss:$56 sps:$4 sm:$0xff]   ;;  %v8825_v35 = vcombine.high %v10467_v12, %v10470_v18  ;;  %v9229_v46 = vld [vmem:[%s9709_s29 + $0x34] ss:$56 sps:$4 sm:$0xff]   ;;  %v8824_v48 = vcombine.low %v10467_v12, %v10470_v18 }
 0x300   : > { %6674 = vmatpush2.bf16.msra.mxu1 %v8752_v14  ;;  %v6342_v14 = vadd.f32 %v6341_v42, %v6299_v51  ;;  %v9228_v29 = vld [vmem:[%s9709_s29 + $0x28] ss:$56 sps:$4 sm:$0xff]   ;;  %v6346_v38 = vadd.f32 %v6345_v3, %v6303_v15 }
 0x301   : > { %6675 = vmatprep.subr.bf16.mxu1 %v8745_v16  ;;  %6633 = vmatpush2.bf16.msra.mxu0 %v8616_v24  ;;  %v6347_v16 = vpop.f32.mrf.mxu1  ;;  %v8832_v24 = vcombine.low %v1206_v4, %v1210_v31  ;;  %v1194_v44 = vld [vmem:[%s9716_s8 + $0x1930] sm:$0xff]  ;;  %v415_v3 = vld [vmem:[%s9716_s8 + $0xd8] sm:$0xff] }
 0x302   : > { %6634 = vmatprep.subr.bf16.mxu0 %v8609_v26  ;;  %v6305_v26 = vadd.f32 %v6304_v10, %v6262_v13  ;;  %v368_v58 = vld [vmem:[#allocation2 + $0x10] sm:$0xff]  ;;  %v411_v12 = vld [vmem:[%s9716_s8 + $0xb8] sm:$0xff] }
 0x303   : > { %v1186_v0 = vld [vmem:[%s9716_s8 + $0x18f0] sm:$0xff] }
 0x304   : > { %6676 = vmatpush2.bf16.msra.mxu1 %v8744_v25  ;;  %v6344_v25 = vadd.f32 %v6343_v54, %v6301_v8  ;;  %v1174_v10 = vld [vmem:[%s9716_s8 + $0x1890] sm:$0xff] }
 0x305   : > { %6677 = vmatprep.subr.bf16.mxu1 %v8737_v27  ;;  %6635 = vmatpush2.bf16.msra.mxu0 %v8608_v36  ;;  %v8059_v36 = vcombine.high %v10473_v19, %v10476_v20  ;;  %v1170_v18 = vld [vmem:[%s9716_s8 + $0x1870] sm:$0xff]  ;;  %v399_v19 = vld [vmem:[%s9716_s8 + $0x58] sm:$0xff] }
 0x306   : > { %6636 = vmatprep.subr.bf16.mxu0 %v8601_v40  ;;  %v403_v20 = vld [vmem:[%s9716_s8 + $0x78] sm:$0xff] }
 0x308   : > { %6678 = vmatpush2.bf16.msra.mxu1 %v8736_v39 }
 0x309   : > { %6679 = vmatprep.subr.bf16.mxu1 %v8729_v43  ;;  %6637 = vmatpush2.bf16.msra.mxu0 %v8600_v49  ;;  %v1190_v43 = vld [vmem:[%s9716_s8 + $0x1910] sm:$0xff]  ;;  %v423_v49 = vld [vmem:[%s9716_s8 + $0x118] sm:$0xff] }
 0x30a   : > { %6638 = vmatprep.subr.bf16.mxu0 %v8593_v53  ;;  %v6348_v53 = vadd.f32 %v6347_v16, %v6305_v26  ;;  %v8817_v57 = vcombine.high %v1190_v43, %v1194_v44  ;;  %v8816_v5 = vcombine.low %v1190_v43, %v1194_v44  ;;  %v8050_v6 = vcombine.low %v423_v49, %v427_v50  ;;  %v1158_v26 = vld [vmem:[%s9716_s8 + $0x1810] sm:$0xff] }
 0x30c   : > { %6680 = vmatpush2.bf16.msra.mxu1 %v8728_v52  ;;  %v9230_v52 = vld [vmem:[%s9709_s29 + $0x4] ss:$56 sps:$4 sm:$0xff]  }
 0x30d   : > { %6681 = vmatprep.subr.bf16.mxu1 %v8721_v55  ;;  %6639 = vmatpush2.bf16.msra.mxu0 %v8592_v61 }
 0x30e   : > { %6694 = vmatprep.subr.bf16.mxu0 %v8841_v63  ;;  %v1182_v63 = vld [vmem:[%s9716_s8 + $0x18d0] sm:$0xff] }
 0x30f   : > { %v8809_v7 = vcombine.high %v1182_v63, %v1186_v0  ;;  %v8808_v13 = vcombine.low %v1182_v63, %v1186_v0  ;;  %v491_v63 = vld [vmem:[%s9716_s8 + $0x338] sm:$0xff] }
 0x310   : > { %6682 = vmatpush2.bf16.msra.mxu1 %v8720_v45  ;;  %v6384_v21 = vpop.f32.mrf.mxu0  ;;  %6641 = vmatmul.mubr.bf16.vlgmr.msra.gmra.mxu0 %v9227_v23  ;;  %v8051_v45 = vcombine.high %v423_v49, %v427_v50  ;;  %v507_v49 = vld [vmem:[%s9716_s8 + $0x3b8] sm:$0xff] }
 0x311   : > { %6737 = vmatprep.subr.bf16.mxu1 %v8075_v2  ;;  %v6385_v27 = vadd.f32 %v6384_v21, %v6342_v14  ;;  %6695 = vmatpush1.bf16.msra.mxu0 %v8840_v9  ;;  %v419_v2 = vld [vmem:[%s9716_s8 + $0xf8] sm:$0xff] }
 0x312   : > { %v6386_v32 = vpop.f32.mrf.mxu0  ;;  %6696 = vmatprep.subr.bf16.mxu0 %v8833_v11  ;;  %6726 = vmatprep.mubr.bf16.mxu0 %v9229_v46  ;;  %v8043_v9 = vcombine.high %v415_v3, %v419_v2  ;;  %v407_v11 = vld [vmem:[%s9716_s8 + $0x98] sm:$0xff]  ;;  %v8042_v14 = vcombine.low %v415_v3, %v419_v2  ;;  %v1246_v2 = vld [vmem:[%s9716_s8 + $0x1ad0] sm:$0xff] }
 0x313   : > { %v6427_v28 = vpop.f32.mrf.mxu1  ;;  %6684 = vmatmul.mubr.bf16.vlgmr.msra.gmra.mxu1 %v9228_v29  ;;  %v6387_v40 = vadd.f32 %v6386_v32, %v6344_v25  ;;  %v8035_v16 = vcombine.high %v407_v11, %v411_v12  ;;  %v8034_v23 = vcombine.low %v407_v11, %v411_v12  ;;  %v8027_v25 = vcombine.high %v399_v19, %v403_v20  ;;  %v395_v29 = vld [vmem:[%s9716_s8 + $0x38] sm:$0xff] }
 0x314   : > { %6738 = vmatpush1.bf16.msra.mxu1 %v8074_v60  ;;  %v6428_v39 = vadd.f32 %v6427_v28, %v6385_v27  ;;  %v6388_v37 = vpop.f32.mrf.mxu0  ;;  %6769 = vmatprep.mubr.bf16.mxu1 %v9230_v52  ;;  %v1178_v60 = vld [vmem:[%s9716_s8 + $0x18b0] sm:$0xff]  ;;  %v391_v28 = vld [vmem:[%s9716_s8 + $0x18] sm:$0xff]  ;;  %v8026_v32 = vcombine.low %v399_v19, %v403_v20 }
 0x315   : > { %v6429_v42 = vpop.f32.mrf.mxu1  ;;  %6739 = vmatprep.subr.bf16.mxu1 %v8067_v17  ;;  %v6389_v55 = vadd.f32 %v6388_v37, %v6346_v38  ;;  %6697 = vmatpush1.bf16.msra.mxu0 %v8832_v24  ;;  %v8801_v15 = vcombine.high %v1174_v10, %v1178_v60  ;;  %v1166_v17 = vld [vmem:[%s9716_s8 + $0x1850] sm:$0xff]  ;;  %v8800_v21 = vcombine.low %v1174_v10, %v1178_v60  ;;  %v471_v11 = vld [vmem:[%s9716_s8 + $0x298] sm:$0xff] }
 0x316   : > { %v7040_v47 = vadd.f32 %v6428_v39, %v360_v30  ;;  %v6430_v54 = vadd.f32 %v6429_v42, %v6387_v40  ;;  %v6390_v59 = vpop.f32.mrf.mxu0  ;;  %6698 = vmatprep.subr.bf16.mxu0 %v8825_v35  ;;  %v8793_v24 = vcombine.high %v1166_v17, %v1170_v18  ;;  %v1162_v27 = vld [vmem:[%s9716_s8 + $0x1830] sm:$0xff]  ;;  %v8792_v30 = vcombine.low %v1166_v17, %v1170_v18  ;;  %v511_v39 = vld [vmem:[%s9716_s8 + $0x3d8] sm:$0xff] }
 0x317   : > { %v6431_v56 = vpop.f32.mrf.mxu1  ;;  %v6391_v62 = vadd.f32 %v6390_v59, %v6348_v53  ;;  %v8019_v35 = vcombine.high %v391_v28, %v395_v29  ;;  %v1282_v38 = vld [vmem:[%s9716_s8 + $0x1bf0] sm:$0xff]  ;;  %v515_v40 = vld [vmem:[%s9716_s8 + $0x3f8] sm:$0xff]  ;;  %v8784_v42 = vcombine.low %v1158_v26, %v1162_v27  ;;  %v8018_v43 = vcombine.low %v391_v28, %v395_v29 }
 0x318   : > { %6740 = vmatpush1.bf16.msra.mxu1 %v8066_v33  ;;  %7056 = vst [vmem:[#allocation2 + $0x58] sm:$0xff] %v7040_v47  ;;  %v7041_v34 = vadd.f32 %v6430_v54, %v361_v22  ;;  %v6432_v61 = vadd.f32 %v6431_v56, %v6389_v55  ;;  %v8785_v33 = vcombine.high %v1158_v26, %v1162_v27  ;;  %v1270_v22 = vld [vmem:[%s9716_s8 + $0x1b90] sm:$0xff]  ;;  %v495_v56 = vld [vmem:[%s9716_s8 + $0x358] sm:$0xff] }
 0x319   : > { %6741 = vmatprep.subr.bf16.mxu1 %v8059_v36  ;;  %v6433_v51 = vpop.f32.mrf.mxu1  ;;  %6699 = vmatpush1.bf16.msra.mxu0 %v8824_v48  ;;  %v1278_v36 = vld [vmem:[%s9716_s8 + $0x1bd0] sm:$0xff]  ;;  %v8139_v46 = vcombine.high %v511_v39, %v515_v40  ;;  %v503_v48 = vld [vmem:[%s9716_s8 + $0x398] sm:$0xff]  ;;  %v8138_v52 = vcombine.low %v511_v39, %v515_v40 }
 0x31a   : > { %7057 = vst [vmem:[#allocation2 + $0x18] sm:$0xff] %v7041_v34  ;;  %v7048_v4 = vadd.f32 %v6432_v61, %v368_v58  ;;  %v6434_v31 = vadd.f32 %v6433_v51, %v6391_v62  ;;  %6700 = vmatprep.subr.bf16.mxu0 %v8817_v57  ;;  %v8905_v44 = vcombine.high %v1278_v36, %v1282_v38  ;;  %v1274_v37 = vld [vmem:[%s9716_s8 + $0x1bb0] sm:$0xff]  ;;  %v499_v58 = vld [vmem:[%s9716_s8 + $0x378] sm:$0xff] }
 0x31b   : > { %v8904_v50 = vcombine.low %v1278_v36, %v1282_v38  ;;  %v8897_v53 = vcombine.high %v1270_v22, %v1274_v37  ;;  %v8131_v47 = vcombine.high %v503_v48, %v507_v49  ;;  %v1262_v54 = vld [vmem:[%s9716_s8 + $0x1b50] sm:$0xff]  ;;  %v8896_v59 = vcombine.low %v1270_v22, %v1274_v37  ;;  %v475_v12 = vld [vmem:[%s9716_s8 + $0x2b8] sm:$0xff] }
 0x31c   : > { %6742 = vmatpush1.bf16.msra.mxu1 %v8058_v41  ;;  %7064 = vst [vmem:[#allocation2 + $0x10] sm:$0xff] %v7048_v4  ;;  %v7049_v8 = vadd.f32 %v6434_v31, %v369_v1  ;;  %v1266_v55 = vld [vmem:[%s9716_s8 + $0x1b70] sm:$0xff]  ;;  %v8130_v41 = vcombine.low %v503_v48, %v507_v49  ;;  %v8123_v34 = vcombine.high %v495_v56, %v499_v58  ;;  %v479_v31 = vld [vmem:[%s9716_s8 + $0x2d8] sm:$0xff] }
 0x31d   : > { %6743 = vmatprep.subr.bf16.mxu1 %v8051_v45  ;;  %6701 = vmatpush1.bf16.msra.mxu0 %v8816_v5  ;;  %v8889_v57 = vcombine.high %v1262_v54, %v1266_v55  ;;  %v1254_v61 = vld [vmem:[%s9716_s8 + $0x1b10] sm:$0xff]  ;;  %v487_v45 = vld [vmem:[%s9716_s8 + $0x318] sm:$0xff]  ;;  %v8888_v0 = vcombine.low %v1262_v54, %v1266_v55  ;;  %v8122_v1 = vcombine.low %v495_v56, %v499_v58 }
 0x31e   : > { %7065 = vst [vmem:[#allocation2 + $0x38] sm:$0xff] %v7049_v8  ;;  %6702 = vmatprep.subr.bf16.mxu0 %v8809_v7  ;;  %v1258_v62 = vld [vmem:[%s9716_s8 + $0x1b30] sm:$0xff]  ;;  %v8115_v3 = vcombine.high %v487_v45, %v491_v63  ;;  %v483_v5 = vld [vmem:[%s9716_s8 + $0x2f8] sm:$0xff]  ;;  %v8114_v7 = vcombine.low %v487_v45, %v491_v63 }
 0x31f   : > { %v8881_v51 = vcombine.high %v1254_v61, %v1258_v62  ;;  %v1250_v4 = vld [vmem:[%s9716_s8 + $0x1af0] sm:$0xff]  ;;  %v463_v19 = vld [vmem:[%s9716_s8 + $0x258] sm:$0xff] }
 0x320   : > { %6744 = vmatpush1.bf16.msra.mxu1 %v8050_v6  ;;  %v8880_v6 = vcombine.low %v1254_v61, %v1258_v62  ;;  %v8873_v8 = vcombine.high %v1246_v2, %v1250_v4  ;;  %v1238_v10 = vld [vmem:[%s9716_s8 + $0x1a90] sm:$0xff]  ;;  %v467_v20 = vld [vmem:[%s9716_s8 + $0x278] sm:$0xff] }
 0x321   : > { %6745 = vmatprep.subr.bf16.mxu1 %v8043_v9  ;;  %6703 = vmatpush1.bf16.msra.mxu0 %v8808_v13  ;;  %v8107_v9 = vcombine.high %v479_v31, %v483_v5  ;;  %v1242_v60 = vld [vmem:[%s9716_s8 + $0x1ab0] sm:$0xff]  ;;  %v8872_v13 = vcombine.low %v1246_v2, %v1250_v4  ;;  %v455_v28 = vld [vmem:[%s9716_s8 + $0x218] sm:$0xff] }
 0x322   : > { %6704 = vmatprep.subr.bf16.mxu0 %v8801_v15  ;;  %v8865_v15 = vcombine.high %v1238_v10, %v1242_v60  ;;  %v1230_v17 = vld [vmem:[%s9716_s8 + $0x1a50] sm:$0xff]  ;;  %v459_v29 = vld [vmem:[%s9716_s8 + $0x238] sm:$0xff] }
 0x323   : > { %v1234_v18 = vld [vmem:[%s9716_s8 + $0x1a70] sm:$0xff]  ;;  %v575_v36 = vld [vmem:[%s9716_s8 + $0x5d8] sm:$0xff] }
 0x324   : > { %6746 = vmatpush1.bf16.msra.mxu1 %v8042_v14  ;;  %v8106_v14 = vcombine.low %v479_v31, %v483_v5  ;;  %v1222_v26 = vld [vmem:[%s9716_s8 + $0x1a10] sm:$0xff]  ;;  %v579_v38 = vld [vmem:[%s9716_s8 + $0x5f8] sm:$0xff] }
 0x325   : > { %6747 = vmatprep.subr.bf16.mxu1 %v8035_v16  ;;  %6705 = vmatpush1.bf16.msra.mxu0 %v8800_v21  ;;  %v8099_v16 = vcombine.high %v471_v11, %v475_v12  ;;  %v8864_v21 = vcombine.low %v1238_v10, %v1242_v60  ;;  %v1226_v27 = vld [vmem:[%s9716_s8 + $0x1a30] sm:$0xff]  ;;  %v703_v39 = vld [vmem:[%s9716_s8 + $0x9d8] sm:$0xff] }
 0x326   : > { %6706 = vmatprep.subr.bf16.mxu0 %v8793_v24  ;;  %v8857_v24 = vcombine.high %v1230_v17, %v1234_v18  ;;  %v707_v40 = vld [vmem:[%s9716_s8 + $0x9f8] sm:$0xff] }
 0x327   : > { %v567_v22 = vld [vmem:[%s9716_s8 + $0x598] sm:$0xff] }
 0x328   : > { %6748 = vmatpush1.bf16.msra.mxu1 %v8034_v23  ;;  %v8098_v23 = vcombine.low %v471_v11, %v475_v12  ;;  %v571_v37 = vld [vmem:[%s9716_s8 + $0x5b8] sm:$0xff] }
 0x329   : > { %6749 = vmatprep.subr.bf16.mxu1 %v8027_v25  ;;  %6707 = vmatpush1.bf16.msra.mxu0 %v8792_v30  ;;  %v8091_v25 = vcombine.high %v463_v19, %v467_v20  ;;  %v8856_v30 = vcombine.low %v1230_v17, %v1234_v18  ;;  %v695_v48 = vld [vmem:[%s9716_s8 + $0x998] sm:$0xff] }
 0x32a   : > { %6708 = vmatprep.subr.bf16.mxu0 %v8785_v33  ;;  %v8849_v33 = vcombine.high %v1222_v26, %v1226_v27  ;;  %v699_v49 = vld [vmem:[%s9716_s8 + $0x9b8] sm:$0xff] }
 0x32b   : > { %v559_v54 = vld [vmem:[%s9716_s8 + $0x558] sm:$0xff] }
 0x32c   : > { %6750 = vmatpush1.bf16.msra.mxu1 %v8026_v32  ;;  %v8090_v32 = vcombine.low %v463_v19, %v467_v20  ;;  %v563_v55 = vld [vmem:[%s9716_s8 + $0x578] sm:$0xff] }
 0x32d   : > { %6751 = vmatprep.subr.bf16.mxu1 %v8019_v35  ;;  %6709 = vmatpush1.bf16.msra.mxu0 %v8784_v42  ;;  %v8083_v35 = vcombine.high %v455_v28, %v459_v29  ;;  %v8848_v42 = vcombine.low %v1222_v26, %v1226_v27  ;;  %v9231_v56 = vld [vmem:[%s9709_s29 + $0x30] ss:$56 sps:$4 sm:$0xff]   ;;  %v8187_v61 = vcombine.high %v559_v54, %v563_v55 }
 0x32e   : > { %6710 = vmatprep.subr.bf16.mxu0 %v8905_v44  ;;  %v8203_v44 = vcombine.high %v575_v36, %v579_v38  ;;  %v687_v58 = vld [vmem:[%s9716_s8 + $0x958] sm:$0xff]  ;;  %v8186_v2 = vcombine.low %v559_v54, %v563_v55 }
 0x32f   : > { %v551_v45 = vld [vmem:[%s9716_s8 + $0x518] sm:$0xff] }
 0x330   : > { %6752 = vmatpush1.bf16.msra.mxu1 %v8018_v43  ;;  %v8082_v43 = vcombine.low %v455_v28, %v459_v29  ;;  %v555_v63 = vld [vmem:[%s9716_s8 + $0x538] sm:$0xff] }
 0x331   : > { %6753 = vmatprep.subr.bf16.mxu1 %v8139_v46  ;;  %6711 = vmatpush2.bf16.msra.mxu0 %v8904_v50  ;;  %v8331_v46 = vcombine.high %v703_v39, %v707_v40  ;;  %v8202_v50 = vcombine.low %v575_v36, %v579_v38  ;;  %v8179_v31 = vcombine.high %v551_v45, %v555_v63 }
 0x332   : > { %6712 = vmatprep.subr.bf16.mxu0 %v8897_v53  ;;  %v8195_v53 = vcombine.high %v567_v22, %v571_v37  ;;  %v8178_v10 = vcombine.low %v551_v45, %v555_v63 }
 0x334   : > { %6754 = vmatpush2.bf16.msra.mxu1 %v8138_v52  ;;  %v8330_v52 = vcombine.low %v703_v39, %v707_v40 }
 0x335   : > { %6755 = vmatprep.subr.bf16.mxu1 %v8131_v47  ;;  %6713 = vmatpush2.bf16.msra.mxu0 %v8896_v59  ;;  %v8323_v47 = vcombine.high %v695_v48, %v699_v49  ;;  %v691_v59 = vld [vmem:[%s9716_s8 + $0x978] sm:$0xff] }
 0x336   : > { %6714 = vmatprep.subr.bf16.mxu0 %v8889_v57  ;;  %v8194_v57 = vcombine.low %v567_v22, %v571_v37  ;;  %v8315_v62 = vcombine.high %v687_v58, %v691_v59  ;;  %v8314_v4 = vcombine.low %v687_v58, %v691_v59  ;;  %v623_v59 = vld [vmem:[%s9716_s8 + $0x758] sm:$0xff] }
 0x338   : > { %6756 = vmatpush2.bf16.msra.mxu1 %v8130_v41  ;;  %v9232_v41 = vld [vmem:[%s9709_s29] ss:$56 sps:$4 sm:$0xff]  }
 0x339   : > { %6757 = vmatprep.subr.bf16.mxu1 %v8123_v34  ;;  %6715 = vmatpush2.bf16.msra.mxu0 %v8888_v0  ;;  %v8322_v34 = vcombine.low %v695_v48, %v699_v49  ;;  %v9233_v0 = vld [vmem:[%s9709_s29 + $0xc] ss:$56 sps:$4 sm:$0xff]  }
 0x33a   : > { %6716 = vmatprep.subr.bf16.mxu0 %v8881_v51  ;;  %v683_v51 = vld [vmem:[%s9716_s8 + $0x938] sm:$0xff] }
 0x33c   : > { %6758 = vmatpush2.bf16.msra.mxu1 %v8122_v1  ;;  %v679_v1 = vld [vmem:[%s9716_s8 + $0x918] sm:$0xff] }
 0x33d   : > { %6759 = vmatprep.subr.bf16.mxu1 %v8115_v3  ;;  %6717 = vmatpush2.bf16.msra.mxu0 %v8880_v6  ;;  %v9234_v3 = vld [vmem:[%s9709_s29 + $0x14] ss:$56 sps:$4 sm:$0xff]   ;;  %v8307_v5 = vcombine.high %v679_v1, %v683_v51  ;;  %v8306_v60 = vcombine.low %v679_v1, %v683_v51 }
 0x33e   : > { %6718 = vmatprep.subr.bf16.mxu0 %v8873_v8  ;;  %v543_v6 = vld [vmem:[%s9716_s8 + $0x4d8] sm:$0xff] }
 0x33f   : > { %v671_v8 = vld [vmem:[%s9716_s8 + $0x8d8] sm:$0xff] }
 0x340   : > { %6760 = vmatpush2.bf16.msra.mxu1 %v8114_v7  ;;  %v547_v7 = vld [vmem:[%s9716_s8 + $0x4f8] sm:$0xff] }
 0x341   : > { %6761 = vmatprep.subr.bf16.mxu1 %v8107_v9  ;;  %6719 = vmatpush2.bf16.msra.mxu0 %v8872_v13  ;;  %v675_v9 = vld [vmem:[%s9716_s8 + $0x8f8] sm:$0xff]  ;;  %v8171_v11 = vcombine.high %v543_v6, %v547_v7  ;;  %v8170_v17 = vcombine.low %v543_v6, %v547_v7 }
 0x342   : > { %6720 = vmatprep.subr.bf16.mxu0 %v8865_v15  ;;  %v8299_v12 = vcombine.high %v671_v8, %v675_v9  ;;  %v535_v13 = vld [vmem:[%s9716_s8 + $0x498] sm:$0xff]  ;;  %v8298_v18 = vcombine.low %v671_v8, %v675_v9 }
 0x343   : > { %v663_v15 = vld [vmem:[%s9716_s8 + $0x898] sm:$0xff] }
 0x344   : > { %6762 = vmatpush2.bf16.msra.mxu1 %v8106_v14  ;;  %v539_v14 = vld [vmem:[%s9716_s8 + $0x4b8] sm:$0xff] }
 0x345   : > { %6763 = vmatprep.subr.bf16.mxu1 %v8099_v16  ;;  %6721 = vmatpush2.bf16.msra.mxu0 %v8864_v21  ;;  %v667_v16 = vld [vmem:[%s9716_s8 + $0x8b8] sm:$0xff]  ;;  %v8163_v19 = vcombine.high %v535_v13, %v539_v14  ;;  %v8162_v26 = vcombine.low %v535_v13, %v539_v14 }
 0x346   : > { %6722 = vmatprep.subr.bf16.mxu0 %v8857_v24  ;;  %v8291_v20 = vcombine.high %v663_v15, %v667_v16  ;;  %v527_v21 = vld [vmem:[%s9716_s8 + $0x458] sm:$0xff]  ;;  %v8290_v27 = vcombine.low %v663_v15, %v667_v16 }
 0x347   : > { %v655_v24 = vld [vmem:[%s9716_s8 + $0x858] sm:$0xff] }
 0x348   : > { %6764 = vmatpush2.bf16.msra.mxu1 %v8098_v23  ;;  %v531_v23 = vld [vmem:[%s9716_s8 + $0x478] sm:$0xff] }
 0x349   : > { %6765 = vmatprep.subr.bf16.mxu1 %v8091_v25  ;;  %6723 = vmatpush2.bf16.msra.mxu0 %v8856_v30  ;;  %v659_v25 = vld [vmem:[%s9716_s8 + $0x878] sm:$0xff]  ;;  %v8155_v28 = vcombine.high %v527_v21, %v531_v23  ;;  %v8154_v36 = vcombine.low %v527_v21, %v531_v23 }
 0x34a   : > { %6724 = vmatprep.subr.bf16.mxu0 %v8849_v33  ;;  %v8283_v29 = vcombine.high %v655_v24, %v659_v25  ;;  %v519_v30 = vld [vmem:[%s9716_s8 + $0x418] sm:$0xff]  ;;  %v8282_v38 = vcombine.low %v655_v24, %v659_v25 }
 0x34b   : > { %v647_v33 = vld [vmem:[%s9716_s8 + $0x818] sm:$0xff] }
 0x34c   : > { %6766 = vmatpush2.bf16.msra.mxu1 %v8090_v32  ;;  %v523_v32 = vld [vmem:[%s9716_s8 + $0x438] sm:$0xff] }
 0x34d   : > { %6767 = vmatprep.subr.bf16.mxu1 %v8083_v35  ;;  %6725 = vmatpush2.bf16.msra.mxu0 %v8848_v42  ;;  %v651_v35 = vld [vmem:[%s9716_s8 + $0x838] sm:$0xff]  ;;  %v8147_v39 = vcombine.high %v519_v30, %v523_v32  ;;  %v8146_v22 = vcombine.low %v519_v30, %v523_v32 }
 0x34e   : > { %6780 = vmatprep.subr.bf16.mxu0 %v8203_v44  ;;  %v8275_v40 = vcombine.high %v647_v33, %v651_v35  ;;  %v639_v42 = vld [vmem:[%s9716_s8 + $0x7d8] sm:$0xff]  ;;  %v8274_v37 = vcombine.low %v647_v33, %v651_v35 }
 0x34f   : > { %v767_v44 = vld [vmem:[%s9716_s8 + $0xbd8] sm:$0xff] }
 0x350   : > { %6768 = vmatpush2.bf16.msra.mxu1 %v8082_v43  ;;  %6727 = vmatmul.mubr.bf16.vlgmr.msra.gmra.mxu0 %v9231_v56  ;;  %v643_v43 = vld [vmem:[%s9716_s8 + $0x7f8] sm:$0xff] }
 0x351   : > { %6823 = vmatprep.subr.bf16.mxu1 %v8331_v46  ;;  %6781 = vmatpush1.bf16.msra.mxu0 %v8202_v50  ;;  %v771_v46 = vld [vmem:[%s9716_s8 + $0xbf8] sm:$0xff]  ;;  %v8267_v48 = vcombine.high %v639_v42, %v643_v43  ;;  %v8266_v54 = vcombine.low %v639_v42, %v643_v43 }
 0x352   : > { %6782 = vmatprep.subr.bf16.mxu0 %v8195_v53  ;;  %6812 = vmatprep.mubr.bf16.mxu0 %v9233_v0  ;;  %v8395_v49 = vcombine.high %v767_v44, %v771_v46  ;;  %v631_v50 = vld [vmem:[%s9716_s8 + $0x798] sm:$0xff]  ;;  %v8394_v55 = vcombine.low %v767_v44, %v771_v46 }
 0x353   : > { %6770 = vmatmul.mubr.bf16.vlgmr.msra.gmra.mxu1 %v9232_v41  ;;  %v759_v53 = vld [vmem:[%s9716_s8 + $0xb98] sm:$0xff] }
 0x354   : > { %6824 = vmatpush1.bf16.msra.mxu1 %v8330_v52  ;;  %6855 = vmatprep.mubr.bf16.mxu1 %v9234_v3  ;;  %v635_v52 = vld [vmem:[%s9716_s8 + $0x7b8] sm:$0xff] }
 0x355   : > { %6825 = vmatprep.subr.bf16.mxu1 %v8323_v47  ;;  %6783 = vmatpush1.bf16.msra.mxu0 %v8194_v57  ;;  %v763_v47 = vld [vmem:[%s9716_s8 + $0xbb8] sm:$0xff]  ;;  %v8259_v56 = vcombine.high %v631_v50, %v635_v52 }
 0x356   : > { %6784 = vmatprep.subr.bf16.mxu0 %v8187_v61  ;;  %v8387_v58 = vcombine.high %v759_v53, %v763_v47  ;;  %v627_v41 = vld [vmem:[%s9716_s8 + $0x778] sm:$0xff]  ;;  %v8258_v61 = vcombine.low %v631_v50, %v635_v52 }
 0x357   : > { %v751_v57 = vld [vmem:[%s9716_s8 + $0xb58] sm:$0xff]  ;;  %v8251_v45 = vcombine.high %v623_v59, %v627_v41 }
 0x358   : > { %6826 = vmatpush1.bf16.msra.mxu1 %v8322_v34  ;;  %v755_v34 = vld [vmem:[%s9716_s8 + $0xb78] sm:$0xff] }
 0x359   : > { %6827 = vmatprep.subr.bf16.mxu1 %v8315_v62  ;;  %6785 = vmatpush1.bf16.msra.mxu0 %v8186_v2  ;;  %v8386_v62 = vcombine.low %v759_v53, %v763_v47  ;;  %v8379_v63 = vcombine.high %v751_v57, %v755_v34  ;;  %v615_v0 = vld [vmem:[%s9716_s8 + $0x718] sm:$0xff]  ;;  %v8250_v2 = vcombine.low %v623_v59, %v627_v41 }
 0x35a   : > { %6786 = vmatprep.subr.bf16.mxu0 %v8179_v31  ;;  %v619_v1 = vld [vmem:[%s9716_s8 + $0x738] sm:$0xff] }
 0x35b   : > { %v743_v51 = vld [vmem:[%s9716_s8 + $0xb18] sm:$0xff]  ;;  %v8243_v31 = vcombine.high %v615_v0, %v619_v1 }
 0x35c   : > { %6828 = vmatpush1.bf16.msra.mxu1 %v8314_v4  ;;  %v747_v3 = vld [vmem:[%s9716_s8 + $0xb38] sm:$0xff]  ;;  %v8378_v4 = vcombine.low %v751_v57, %v755_v34 }
 0x35d   : > { %6829 = vmatprep.subr.bf16.mxu1 %v8307_v5  ;;  %6787 = vmatpush1.bf16.msra.mxu0 %v8178_v10  ;;  %v8371_v5 = vcombine.high %v743_v51, %v747_v3  ;;  %v607_v6 = vld [vmem:[%s9716_s8 + $0x6d8] sm:$0xff]  ;;  %v8242_v10 = vcombine.low %v615_v0, %v619_v1 }
 0x35e   : > { %6788 = vmatprep.subr.bf16.mxu0 %v8171_v11  ;;  %v611_v7 = vld [vmem:[%s9716_s8 + $0x6f8] sm:$0xff] }
 0x35f   : > { %v735_v8 = vld [vmem:[%s9716_s8 + $0xad8] sm:$0xff]  ;;  %v8235_v11 = vcombine.high %v607_v6, %v611_v7 }
 0x360   : > { %6830 = vmatpush1.bf16.msra.mxu1 %v8306_v60  ;;  %v739_v9 = vld [vmem:[%s9716_s8 + $0xaf8] sm:$0xff]  ;;  %v8370_v60 = vcombine.low %v743_v51, %v747_v3 }
 0x361   : > { %6831 = vmatprep.subr.bf16.mxu1 %v8299_v12  ;;  %6789 = vmatpush1.bf16.msra.mxu0 %v8170_v17  ;;  %v8363_v12 = vcombine.high %v735_v8, %v739_v9  ;;  %v599_v13 = vld [vmem:[%s9716_s8 + $0x698] sm:$0xff]  ;;  %v8234_v17 = vcombine.low %v607_v6, %v611_v7 }
 0x362   : > { %6790 = vmatprep.subr.bf16.mxu0 %v8163_v19  ;;  %v603_v14 = vld [vmem:[%s9716_s8 + $0x6b8] sm:$0xff] }
 0x363   : > { %v727_v15 = vld [vmem:[%s9716_s8 + $0xa98] sm:$0xff]  ;;  %v8227_v19 = vcombine.high %v599_v13, %v603_v14 }
 0x364   : > { %6832 = vmatpush1.bf16.msra.mxu1 %v8298_v18  ;;  %v731_v16 = vld [vmem:[%s9716_s8 + $0xab8] sm:$0xff]  ;;  %v8362_v18 = vcombine.low %v735_v8, %v739_v9 }
 0x365   : > { %6833 = vmatprep.subr.bf16.mxu1 %v8291_v20  ;;  %6791 = vmatpush1.bf16.msra.mxu0 %v8162_v26  ;;  %v8355_v20 = vcombine.high %v727_v15, %v731_v16  ;;  %v591_v21 = vld [vmem:[%s9716_s8 + $0x658] sm:$0xff]  ;;  %v8226_v26 = vcombine.low %v599_v13, %v603_v14 }
 0x366   : > { %6792 = vmatprep.subr.bf16.mxu0 %v8155_v28  ;;  %v595_v23 = vld [vmem:[%s9716_s8 + $0x678] sm:$0xff] }
 0x367   : > { %v719_v24 = vld [vmem:[%s9716_s8 + $0xa58] sm:$0xff]  ;;  %v8219_v28 = vcombine.high %v591_v21, %v595_v23 }
 0x368   : > { %6834 = vmatpush1.bf16.msra.mxu1 %v8290_v27  ;;  %v723_v25 = vld [vmem:[%s9716_s8 + $0xa78] sm:$0xff]  ;;  %v8354_v27 = vcombine.low %v727_v15, %v731_v16 }
 0x369   : > { %6835 = vmatprep.subr.bf16.mxu1 %v8283_v29  ;;  %6793 = vmatpush1.bf16.msra.mxu0 %v8154_v36  ;;  %v8347_v29 = vcombine.high %v719_v24, %v723_v25  ;;  %v583_v30 = vld [vmem:[%s9716_s8 + $0x618] sm:$0xff]  ;;  %v8218_v36 = vcombine.low %v591_v21, %v595_v23 }
 0x36a   : > { %6794 = vmatprep.subr.bf16.mxu0 %v8147_v39  ;;  %v587_v32 = vld [vmem:[%s9716_s8 + $0x638] sm:$0xff] }
 0x36b   : > { %v711_v33 = vld [vmem:[%s9716_s8 + $0xa18] sm:$0xff]  ;;  %v8211_v39 = vcombine.high %v583_v30, %v587_v32 }
 0x36c   : > { %6836 = vmatpush1.bf16.msra.mxu1 %v8282_v38  ;;  %v715_v35 = vld [vmem:[%s9716_s8 + $0xa38] sm:$0xff]  ;;  %v8346_v38 = vcombine.low %v719_v24, %v723_v25 }
 0x36d   : > { %6837 = vmatprep.subr.bf16.mxu1 %v8275_v40  ;;  %6795 = vmatpush1.bf16.msra.mxu0 %v8146_v22  ;;  %v8339_v40 = vcombine.high %v711_v33, %v715_v35  ;;  %v831_v42 = vld [vmem:[%s9716_s8 + $0xdd8] sm:$0xff]  ;;  %v8210_v22 = vcombine.low %v583_v30, %v587_v32 }
 0x36e   : > { %6796 = vmatprep.subr.bf16.mxu0 %v8267_v48  ;;  %v835_v43 = vld [vmem:[%s9716_s8 + $0xdf8] sm:$0xff] }
 0x36f   : > { %v959_v44 = vld [vmem:[%s9716_s8 + $0x11d8] sm:$0xff]  ;;  %v8459_v48 = vcombine.high %v831_v42, %v835_v43 }
 0x370   : > { %6838 = vmatpush1.bf16.msra.mxu1 %v8274_v37  ;;  %v963_v46 = vld [vmem:[%s9716_s8 + $0x11f8] sm:$0xff]  ;;  %v8338_v37 = vcombine.low %v711_v33, %v715_v35 }
 0x371   : > { %6839 = vmatprep.subr.bf16.mxu1 %v8395_v49  ;;  %6797 = vmatpush2.bf16.msra.mxu0 %v8266_v54  ;;  %v8587_v49 = vcombine.high %v959_v44, %v963_v46  ;;  %v823_v50 = vld [vmem:[%s9716_s8 + $0xd98] sm:$0xff]  ;;  %v8458_v54 = vcombine.low %v831_v42, %v835_v43 }
 0x372   : > { %6798 = vmatprep.subr.bf16.mxu0 %v8259_v56  ;;  %v827_v52 = vld [vmem:[%s9716_s8 + $0xdb8] sm:$0xff] }
 0x373   : > { %v951_v53 = vld [vmem:[%s9716_s8 + $0x1198] sm:$0xff]  ;;  %v8451_v56 = vcombine.high %v823_v50, %v827_v52 }
 0x374   : > { %6840 = vmatpush2.bf16.msra.mxu1 %v8394_v55  ;;  %v955_v47 = vld [vmem:[%s9716_s8 + $0x11b8] sm:$0xff]  ;;  %v8586_v55 = vcombine.low %v959_v44, %v963_v46 }
 0x375   : > { %6841 = vmatprep.subr.bf16.mxu1 %v8387_v58  ;;  %6799 = vmatpush2.bf16.msra.mxu0 %v8258_v61  ;;  %v8579_v58 = vcombine.high %v951_v53, %v955_v47  ;;  %v815_v59 = vld [vmem:[%s9716_s8 + $0xd58] sm:$0xff] }
 0x376   : > { %6800 = vmatprep.subr.bf16.mxu0 %v8251_v45  ;;  %v819_v41 = vld [vmem:[%s9716_s8 + $0xd78] sm:$0xff]  ;;  %v8450_v45 = vcombine.low %v823_v50, %v827_v52 }
 0x377   : > { %v9235_v57 = vld [vmem:[%s9709_s29 + $0x8] ss:$56 sps:$4 sm:$0xff]   ;;  %v8443_v0 = vcombine.high %v815_v59, %v819_v41  ;;  %v8442_v6 = vcombine.low %v815_v59, %v819_v41 }
 0x378   : > { %6842 = vmatpush2.bf16.msra.mxu1 %v8386_v62  ;;  %v943_v34 = vld [vmem:[%s9716_s8 + $0x1158] sm:$0xff] }
 0x379   : > { %6843 = vmatprep.subr.bf16.mxu1 %v8379_v63  ;;  %6801 = vmatpush2.bf16.msra.mxu0 %v8250_v2  ;;  %v947_v61 = vld [vmem:[%s9716_s8 + $0x1178] sm:$0xff]  ;;  %v8578_v63 = vcombine.low %v951_v53, %v955_v47 }
 0x37a   : > { %6802 = vmatprep.subr.bf16.mxu0 %v8243_v31  ;;  %v9236_v62 = vld [vmem:[%s9709_s29 + $0x10] ss:$56 sps:$4 sm:$0xff]   ;;  %v8571_v1 = vcombine.high %v943_v34, %v947_v61  ;;  %v9237_v2 = vld [vmem:[%s9709_s29 + $0x1c] ss:$56 sps:$4 sm:$0xff]   ;;  %v8570_v7 = vcombine.low %v943_v34, %v947_v61 }
 0x37b   : > { %v807_v51 = vld [vmem:[%s9716_s8 + $0xd18] sm:$0xff] }
 0x37c   : > { %6844 = vmatpush2.bf16.msra.mxu1 %v8378_v4  ;;  %v811_v3 = vld [vmem:[%s9716_s8 + $0xd38] sm:$0xff] }
 0x37d   : > { %6845 = vmatprep.subr.bf16.mxu1 %v8371_v5  ;;  %6803 = vmatpush2.bf16.msra.mxu0 %v8242_v10  ;;  %v935_v4 = vld [vmem:[%s9716_s8 + $0x1118] sm:$0xff]  ;;  %v8435_v8 = vcombine.high %v807_v51, %v811_v3  ;;  %v8434_v13 = vcombine.low %v807_v51, %v811_v3 }
 0x37e   : > { %6804 = vmatprep.subr.bf16.mxu0 %v8235_v11  ;;  %v939_v31 = vld [vmem:[%s9716_s8 + $0x1138] sm:$0xff] }
 0x37f   : > { %v9238_v5 = vld [vmem:[%s9709_s29 + $0x24] ss:$56 sps:$4 sm:$0xff]   ;;  %v8563_v9 = vcombine.high %v935_v4, %v939_v31  ;;  %v8562_v14 = vcombine.low %v935_v4, %v939_v31 }
 0x380   : > { %6846 = vmatpush2.bf16.msra.mxu1 %v8370_v60  ;;  %v799_v10 = vld [vmem:[%s9716_s8 + $0xcd8] sm:$0xff] }
 0x381   : > { %6847 = vmatprep.subr.bf16.mxu1 %v8363_v12  ;;  %6805 = vmatpush2.bf16.msra.mxu0 %v8234_v17  ;;  %v803_v60 = vld [vmem:[%s9716_s8 + $0xcf8] sm:$0xff] }
 0x382   : > { %6806 = vmatprep.subr.bf16.mxu0 %v8227_v19  ;;  %v927_v11 = vld [vmem:[%s9716_s8 + $0x10d8] sm:$0xff]  ;;  %v8427_v15 = vcombine.high %v799_v10, %v803_v60  ;;  %v8426_v21 = vcombine.low %v799_v10, %v803_v60 }
 0x383   : > { %v931_v12 = vld [vmem:[%s9716_s8 + $0x10f8] sm:$0xff] }
 0x384   : > { %6848 = vmatpush2.bf16.msra.mxu1 %v8362_v18  ;;  %v8555_v16 = vcombine.high %v927_v11, %v931_v12  ;;  %v791_v17 = vld [vmem:[%s9716_s8 + $0xc98] sm:$0xff]  ;;  %v8554_v23 = vcombine.low %v927_v11, %v931_v12 }
 0x385   : > { %6849 = vmatprep.subr.bf16.mxu1 %v8355_v20  ;;  %6807 = vmatpush2.bf16.msra.mxu0 %v8226_v26  ;;  %v795_v18 = vld [vmem:[%s9716_s8 + $0xcb8] sm:$0xff] }
 0x386   : > { %6808 = vmatprep.subr.bf16.mxu0 %v8219_v28  ;;  %v919_v19 = vld [vmem:[%s9716_s8 + $0x1098] sm:$0xff]  ;;  %v8419_v24 = vcombine.high %v791_v17, %v795_v18  ;;  %v8418_v30 = vcombine.low %v791_v17, %v795_v18 }
 0x387   : > { %v923_v20 = vld [vmem:[%s9716_s8 + $0x10b8] sm:$0xff] }
 0x388   : > { %6850 = vmatpush2.bf16.msra.mxu1 %v8354_v27  ;;  %v8547_v25 = vcombine.high %v919_v19, %v923_v20  ;;  %v783_v26 = vld [vmem:[%s9716_s8 + $0xc58] sm:$0xff]  ;;  %v8546_v32 = vcombine.low %v919_v19, %v923_v20 }
 0x389   : > { %6851 = vmatprep.subr.bf16.mxu1 %v8347_v29  ;;  %6809 = vmatpush2.bf16.msra.mxu0 %v8218_v36  ;;  %v787_v27 = vld [vmem:[%s9716_s8 + $0xc78] sm:$0xff] }
 0x38a   : > { %6810 = vmatprep.subr.bf16.mxu0 %v8211_v39  ;;  %v911_v28 = vld [vmem:[%s9716_s8 + $0x1058] sm:$0xff]  ;;  %v8411_v33 = vcombine.high %v783_v26, %v787_v27  ;;  %v8410_v42 = vcombine.low %v783_v26, %v787_v27 }
 0x38b   : > { %v915_v29 = vld [vmem:[%s9716_s8 + $0x1078] sm:$0xff] }
 0x38c   : > { %6852 = vmatpush2.bf16.msra.mxu1 %v8346_v38  ;;  %v8539_v35 = vcombine.high %v911_v28, %v915_v29  ;;  %v775_v36 = vld [vmem:[%s9716_s8 + $0xc18] sm:$0xff]  ;;  %v8538_v43 = vcombine.low %v911_v28, %v915_v29 }
 0x38d   : > { %6853 = vmatprep.subr.bf16.mxu1 %v8339_v40  ;;  %6811 = vmatpush2.bf16.msra.mxu0 %v8210_v22  ;;  %v779_v38 = vld [vmem:[%s9716_s8 + $0xc38] sm:$0xff] }
 0x38e   : > { %6866 = vmatprep.subr.bf16.mxu0 %v8459_v48  ;;  %v903_v39 = vld [vmem:[%s9716_s8 + $0x1018] sm:$0xff]  ;;  %v8403_v44 = vcombine.high %v775_v36, %v779_v38  ;;  %v8402_v50 = vcombine.low %v775_v36, %v779_v38 }
 0x38f   : > { %v907_v40 = vld [vmem:[%s9716_s8 + $0x1038] sm:$0xff] }
 0x390   : > { %6854 = vmatpush2.bf16.msra.mxu1 %v8338_v37  ;;  %6813 = vmatmul.mubr.bf16.vlgmr.msra.gmra.mxu0 %v9235_v57  ;;  %v8531_v46 = vcombine.high %v903_v39, %v907_v40  ;;  %v895_v22 = vld [vmem:[%s9716_s8 + $0xfd8] sm:$0xff]  ;;  %v8530_v52 = vcombine.low %v903_v39, %v907_v40 }
 0x391   : > { %6909 = vmatprep.subr.bf16.mxu1 %v8587_v49  ;;  %6867 = vmatpush1.bf16.msra.mxu0 %v8458_v54  ;;  %v899_v37 = vld [vmem:[%s9716_s8 + $0xff8] sm:$0xff] }
 0x392   : > { %6868 = vmatprep.subr.bf16.mxu0 %v8451_v56  ;;  %6898 = vmatprep.mubr.bf16.mxu0 %v9237_v2  ;;  %v1023_v48 = vld [vmem:[%s9716_s8 + $0x13d8] sm:$0xff]  ;;  %v8523_v53 = vcombine.high %v895_v22, %v899_v37  ;;  %v8522_v59 = vcombine.low %v895_v22, %v899_v37 }
 0x393   : > { %6856 = vmatmul.mubr.bf16.vlgmr.msra.gmra.mxu1 %v9236_v62  ;;  %v1027_v49 = vld [vmem:[%s9716_s8 + $0x13f8] sm:$0xff] }
 0x394   : > { %6910 = vmatpush1.bf16.msra.mxu1 %v8586_v55  ;;  %6941 = vmatprep.mubr.bf16.mxu1 %v9238_v5  ;;  %v8651_v47 = vcombine.high %v1023_v48, %v1027_v49  ;;  %v887_v54 = vld [vmem:[%s9716_s8 + $0xf98] sm:$0xff]  ;;  %v8650_v41 = vcombine.low %v1023_v48, %v1027_v49 }
 0x395   : > { %6911 = vmatprep.subr.bf16.mxu1 %v8579_v58  ;;  %6869 = vmatpush1.bf16.msra.mxu0 %v8450_v45  ;;  %v891_v55 = vld [vmem:[%s9716_s8 + $0xfb8] sm:$0xff] }
 0x396   : > { %6870 = vmatprep.subr.bf16.mxu0 %v8443_v0  ;;  %v1015_v56 = vld [vmem:[%s9716_s8 + $0x1398] sm:$0xff]  ;;  %v8515_v57 = vcombine.high %v887_v54, %v891_v55  ;;  %v8514_v0 = vcombine.low %v887_v54, %v891_v55 }
 0x397   : > { %v1019_v58 = vld [vmem:[%s9716_s8 + $0x13b8] sm:$0xff] }
 0x398   : > { %6912 = vmatpush1.bf16.msra.mxu1 %v8578_v63  ;;  %v8643_v34 = vcombine.high %v1015_v56, %v1019_v58  ;;  %v879_v61 = vld [vmem:[%s9716_s8 + $0xf58] sm:$0xff] }
 0x399   : > { %6913 = vmatprep.subr.bf16.mxu1 %v8571_v1  ;;  %6871 = vmatpush1.bf16.msra.mxu0 %v8442_v6  ;;  %v883_v62 = vld [vmem:[%s9716_s8 + $0xf78] sm:$0xff]  ;;  %v8642_v1 = vcombine.low %v1015_v56, %v1019_v58 }
 0x39a   : > { %6872 = vmatprep.subr.bf16.mxu0 %v8435_v8  ;;  %v1007_v45 = vld [vmem:[%s9716_s8 + $0x1358] sm:$0xff]  ;;  %v8507_v51 = vcombine.high %v879_v61, %v883_v62  ;;  %v8506_v6 = vcombine.low %v879_v61, %v883_v62 }
 0x39b   : > { %v1011_v63 = vld [vmem:[%s9716_s8 + $0x1378] sm:$0xff] }
 0x39c   : > { %6914 = vmatpush1.bf16.msra.mxu1 %v8570_v7  ;;  %v8635_v3 = vcombine.high %v1007_v45, %v1011_v63  ;;  %v871_v2 = vld [vmem:[%s9716_s8 + $0xf18] sm:$0xff]  ;;  %v8634_v7 = vcombine.low %v1007_v45, %v1011_v63 }
 0x39d   : > { %6915 = vmatprep.subr.bf16.mxu1 %v8563_v9  ;;  %6873 = vmatpush1.bf16.msra.mxu0 %v8434_v13  ;;  %v875_v4 = vld [vmem:[%s9716_s8 + $0xf38] sm:$0xff] }
 0x39e   : > { %6874 = vmatprep.subr.bf16.mxu0 %v8427_v15  ;;  %v999_v31 = vld [vmem:[%s9716_s8 + $0x1318] sm:$0xff]  ;;  %v8499_v8 = vcombine.high %v871_v2, %v875_v4  ;;  %v8498_v13 = vcombine.low %v871_v2, %v875_v4 }
 0x39f   : > { %v1003_v5 = vld [vmem:[%s9716_s8 + $0x1338] sm:$0xff] }
 0x3a0   : > { %6916 = vmatpush1.bf16.msra.mxu1 %v8562_v14  ;;  %v8627_v9 = vcombine.high %v999_v31, %v1003_v5  ;;  %v863_v10 = vld [vmem:[%s9716_s8 + $0xed8] sm:$0xff]  ;;  %v8626_v14 = vcombine.low %v999_v31, %v1003_v5 }
 0x3a1   : > { %6917 = vmatprep.subr.bf16.mxu1 %v8555_v16  ;;  %6875 = vmatpush1.bf16.msra.mxu0 %v8426_v21  ;;  %v867_v60 = vld [vmem:[%s9716_s8 + $0xef8] sm:$0xff] }
 0x3a2   : > { %6876 = vmatprep.subr.bf16.mxu0 %v8419_v24  ;;  %v991_v11 = vld [vmem:[%s9716_s8 + $0x12d8] sm:$0xff]  ;;  %v8491_v15 = vcombine.high %v863_v10, %v867_v60  ;;  %v8490_v21 = vcombine.low %v863_v10, %v867_v60 }
 0x3a3   : > { %v995_v12 = vld [vmem:[%s9716_s8 + $0x12f8] sm:$0xff] }
 0x3a4   : > { %6918 = vmatpush1.bf16.msra.mxu1 %v8554_v23  ;;  %v8619_v16 = vcombine.high %v991_v11, %v995_v12  ;;  %v855_v17 = vld [vmem:[%s9716_s8 + $0xe98] sm:$0xff]  ;;  %v8618_v23 = vcombine.low %v991_v11, %v995_v12 }
 0x3a5   : > { %6919 = vmatprep.subr.bf16.mxu1 %v8547_v25  ;;  %6877 = vmatpush1.bf16.msra.mxu0 %v8418_v30  ;;  %v859_v18 = vld [vmem:[%s9716_s8 + $0xeb8] sm:$0xff] }
 0x3a6   : > { %6878 = vmatprep.subr.bf16.mxu0 %v8411_v33  ;;  %v983_v19 = vld [vmem:[%s9716_s8 + $0x1298] sm:$0xff]  ;;  %v8483_v24 = vcombine.high %v855_v17, %v859_v18  ;;  %v8482_v30 = vcombine.low %v855_v17, %v859_v18 }
 0x3a7   : > { %v987_v20 = vld [vmem:[%s9716_s8 + $0x12b8] sm:$0xff] }
 0x3a8   : > { %6920 = vmatpush1.bf16.msra.mxu1 %v8546_v32  ;;  %v8611_v25 = vcombine.high %v983_v19, %v987_v20  ;;  %v847_v26 = vld [vmem:[%s9716_s8 + $0xe58] sm:$0xff]  ;;  %v8610_v32 = vcombine.low %v983_v19, %v987_v20 }
 0x3a9   : > { %6921 = vmatprep.subr.bf16.mxu1 %v8539_v35  ;;  %6879 = vmatpush1.bf16.msra.mxu0 %v8410_v42  ;;  %v851_v27 = vld [vmem:[%s9716_s8 + $0xe78] sm:$0xff] }
 0x3aa   : > { %6880 = vmatprep.subr.bf16.mxu0 %v8403_v44  ;;  %v975_v28 = vld [vmem:[%s9716_s8 + $0x1258] sm:$0xff]  ;;  %v8475_v33 = vcombine.high %v847_v26, %v851_v27  ;;  %v8474_v42 = vcombine.low %v847_v26, %v851_v27 }
 0x3ab   : > { %v979_v29 = vld [vmem:[%s9716_s8 + $0x1278] sm:$0xff] }
 0x3ac   : > { %6922 = vmatpush1.bf16.msra.mxu1 %v8538_v43  ;;  %v8603_v35 = vcombine.high %v975_v28, %v979_v29  ;;  %v839_v36 = vld [vmem:[%s9716_s8 + $0xe18] sm:$0xff]  ;;  %v8602_v43 = vcombine.low %v975_v28, %v979_v29 }
 0x3ad   : > { %6923 = vmatprep.subr.bf16.mxu1 %v8531_v46  ;;  %6881 = vmatpush1.bf16.msra.mxu0 %v8402_v50  ;;  %v843_v38 = vld [vmem:[%s9716_s8 + $0xe38] sm:$0xff] }
 0x3ae   : > { %6882 = vmatprep.subr.bf16.mxu0 %v8523_v53  ;;  %v967_v39 = vld [vmem:[%s9716_s8 + $0x1218] sm:$0xff]  ;;  %v8467_v44 = vcombine.high %v839_v36, %v843_v38  ;;  %v8466_v50 = vcombine.low %v839_v36, %v843_v38 }
 0x3af   : > { %v971_v40 = vld [vmem:[%s9716_s8 + $0x1238] sm:$0xff] }
 0x3b0   : > { %6924 = vmatpush1.bf16.msra.mxu1 %v8530_v52  ;;  %v8595_v46 = vcombine.high %v967_v39, %v971_v40  ;;  %v1087_v22 = vld [vmem:[%s9716_s8 + $0x15d8] sm:$0xff]  ;;  %v8594_v52 = vcombine.low %v967_v39, %v971_v40 }
 0x3b1   : > { %6925 = vmatprep.subr.bf16.mxu1 %v8651_v47  ;;  %6883 = vmatpush2.bf16.msra.mxu0 %v8522_v59  ;;  %v1091_v37 = vld [vmem:[%s9716_s8 + $0x15f8] sm:$0xff] }
 0x3b2   : > { %6884 = vmatprep.subr.bf16.mxu0 %v8515_v57  ;;  %v1215_v48 = vld [vmem:[%s9716_s8 + $0x19d8] sm:$0xff]  ;;  %v8715_v53 = vcombine.high %v1087_v22, %v1091_v37  ;;  %v8714_v59 = vcombine.low %v1087_v22, %v1091_v37  ;;  %v10714_v37 = vpop.f32.mrf.mxu0 }
 0x3b3   : > { %v1219_v49 = vld [vmem:[%s9716_s8 + $0x19f8] sm:$0xff] }
 0x3b4   : > { %6926 = vmatpush2.bf16.msra.mxu1 %v8650_v41  ;;  %v8843_v47 = vcombine.high %v1215_v48, %v1219_v49  ;;  %v1079_v54 = vld [vmem:[%s9716_s8 + $0x1598] sm:$0xff]  ;;  %v8842_v41 = vcombine.low %v1215_v48, %v1219_v49 }
 0x3b5   : > { %6927 = vmatprep.subr.bf16.mxu1 %v8643_v34  ;;  %6885 = vmatpush2.bf16.msra.mxu0 %v8514_v0  ;;  %v1083_v55 = vld [vmem:[%s9716_s8 + $0x15b8] sm:$0xff] }
 0x3b6   : > { %6886 = vmatprep.subr.bf16.mxu0 %v8507_v51  ;;  %v1207_v56 = vld [vmem:[%s9716_s8 + $0x1998] sm:$0xff]  ;;  %v8707_v57 = vcombine.high %v1079_v54, %v1083_v55  ;;  %v8706_v51 = vcombine.low %v1079_v54, %v1083_v55 }
 0x3b7   : > { %v1211_v58 = vld [vmem:[%s9716_s8 + $0x19b8] sm:$0xff] }
 0x3b8   : > { %6928 = vmatpush2.bf16.msra.mxu1 %v8642_v1  ;;  %v8835_v34 = vcombine.high %v1207_v56, %v1211_v58  ;;  %v1071_v61 = vld [vmem:[%s9716_s8 + $0x1558] sm:$0xff] }
 0x3b9   : > { %6929 = vmatprep.subr.bf16.mxu1 %v8635_v3  ;;  %6887 = vmatpush2.bf16.msra.mxu0 %v8506_v6  ;;  %v1075_v62 = vld [vmem:[%s9716_s8 + $0x1578] sm:$0xff]  ;;  %v8834_v3 = vcombine.low %v1207_v56, %v1211_v58  ;;  %v10720_v56 = vpop.f32.mrf.mxu0 }
 0x3ba   : > { %6888 = vmatprep.subr.bf16.mxu0 %v8499_v8  ;;  %v9239_v45 = vld [vmem:[%s9709_s29 + $0x18] ss:$56 sps:$4 sm:$0xff]   ;;  %v8699_v2 = vcombine.high %v1071_v61, %v1075_v62  ;;  %v9241_v6 = vld [vmem:[%s9709_s29 + $0x2c] ss:$56 sps:$4 sm:$0xff]   ;;  %v8698_v10 = vcombine.low %v1071_v61, %v1075_v62  ;;  %v10724_v61 = vpop.f32.mrf.mxu1 }
 0x3bb   : > { %v1199_v63 = vld [vmem:[%s9716_s8 + $0x1958] sm:$0xff] }
 0x3bc   : > { %6930 = vmatpush2.bf16.msra.mxu1 %v8634_v7  ;;  %v1203_v0 = vld [vmem:[%s9716_s8 + $0x1978] sm:$0xff] }
 0x3bd   : > { %6931 = vmatprep.subr.bf16.mxu1 %v8627_v9  ;;  %6889 = vmatpush2.bf16.msra.mxu0 %v8498_v13  ;;  %v9240_v1 = vld [vmem:[%s9709_s29 + $0x20] ss:$56 sps:$4 sm:$0xff]   ;;  %v8827_v4 = vcombine.high %v1199_v63, %v1203_v0  ;;  %v9242_v9 = vld [vmem:[%s9709_s29 + $0x34] ss:$56 sps:$4 sm:$0xff]   ;;  %v8826_v60 = vcombine.low %v1199_v63, %v1203_v0  ;;  %v10728_v0 = vpop.f32.mrf.mxu0 }
 0x3be   : > { %6890 = vmatprep.subr.bf16.mxu0 %v8491_v15  ;;  %v1063_v31 = vld [vmem:[%s9716_s8 + $0x1518] sm:$0xff] }
 0x3bf   : > { %v1067_v5 = vld [vmem:[%s9716_s8 + $0x1538] sm:$0xff] }
 0x3c0   : > { %6932 = vmatpush2.bf16.msra.mxu1 %v8626_v14  ;;  %v1191_v7 = vld [vmem:[%s9716_s8 + $0x1918] sm:$0xff]  ;;  %v8691_v11 = vcombine.high %v1063_v31, %v1067_v5  ;;  %v8690_v17 = vcombine.low %v1063_v31, %v1067_v5  ;;  %v10732_v31 = vpop.f32.mrf.mxu1 }
 0x3c1   : > { %6933 = vmatprep.subr.bf16.mxu1 %v8619_v16  ;;  %6891 = vmatpush2.bf16.msra.mxu0 %v8490_v21  ;;  %v1195_v8 = vld [vmem:[%s9716_s8 + $0x1938] sm:$0xff] }
 0x3c2   : > { %6892 = vmatprep.subr.bf16.mxu0 %v8483_v24  ;;  %v8819_v12 = vcombine.high %v1191_v7, %v1195_v8  ;;  %v1055_v13 = vld [vmem:[%s9716_s8 + $0x14d8] sm:$0xff]  ;;  %v8818_v18 = vcombine.low %v1191_v7, %v1195_v8  ;;  %v10736_v8 = vpop.f32.mrf.mxu0 }
 0x3c3   : > { %v1059_v14 = vld [vmem:[%s9716_s8 + $0x14f8] sm:$0xff] }
 0x3c4   : > { %6934 = vmatpush2.bf16.msra.mxu1 %v8618_v23  ;;  %v1183_v15 = vld [vmem:[%s9716_s8 + $0x18d8] sm:$0xff]  ;;  %v8683_v19 = vcombine.high %v1055_v13, %v1059_v14  ;;  %v8682_v26 = vcombine.low %v1055_v13, %v1059_v14  ;;  %v10740_v13 = vpop.f32.mrf.mxu1  ;;  %v6556_v14 = vpop.f32.mrf.mxu0 }
 0x3c5   : > { %6935 = vmatprep.subr.bf16.mxu1 %v8611_v25  ;;  %6893 = vmatpush2.bf16.msra.mxu0 %v8482_v30  ;;  %v1187_v16 = vld [vmem:[%s9716_s8 + $0x18f8] sm:$0xff] }
 0x3c6   : > { %6894 = vmatprep.subr.bf16.mxu0 %v8475_v33  ;;  %v8811_v20 = vcombine.high %v1183_v15, %v1187_v16  ;;  %v1047_v21 = vld [vmem:[%s9716_s8 + $0x1498] sm:$0xff]  ;;  %v8810_v27 = vcombine.low %v1183_v15, %v1187_v16 }
 0x3c7   : > { %v1051_v23 = vld [vmem:[%s9716_s8 + $0x14b8] sm:$0xff] }
 0x3c8   : > { %6936 = vmatpush2.bf16.msra.mxu1 %v8610_v32  ;;  %v1175_v24 = vld [vmem:[%s9716_s8 + $0x1898] sm:$0xff]  ;;  %v8675_v28 = vcombine.high %v1047_v21, %v1051_v23  ;;  %v8674_v36 = vcombine.low %v1047_v21, %v1051_v23 }
 0x3c9   : > { %6937 = vmatprep.subr.bf16.mxu1 %v8603_v35  ;;  %6895 = vmatpush2.bf16.msra.mxu0 %v8474_v42  ;;  %v1179_v25 = vld [vmem:[%s9716_s8 + $0x18b8] sm:$0xff] }
 0x3ca   : > { %6896 = vmatprep.subr.bf16.mxu0 %v8467_v44  ;;  %v8803_v29 = vcombine.high %v1175_v24, %v1179_v25  ;;  %v1039_v30 = vld [vmem:[%s9716_s8 + $0x1458] sm:$0xff]  ;;  %v8802_v38 = vcombine.low %v1175_v24, %v1179_v25  ;;  %v6519_v24 = vpop.f32.mrf.mxu1  ;;  %v6558_v25 = vpop.f32.mrf.mxu0 }
 0x3cb   : > { %v1043_v32 = vld [vmem:[%s9716_s8 + $0x1478] sm:$0xff] }
 0x3cc   : > { %6938 = vmatpush2.bf16.msra.mxu1 %v8602_v43  ;;  %v1167_v33 = vld [vmem:[%s9716_s8 + $0x1858] sm:$0xff]  ;;  %v8667_v39 = vcombine.high %v1039_v30, %v1043_v32  ;;  %v8666_v22 = vcombine.low %v1039_v30, %v1043_v32 }
 0x3cd   : > { %6939 = vmatprep.subr.bf16.mxu1 %v8595_v46  ;;  %6897 = vmatpush2.bf16.msra.mxu0 %v8466_v50  ;;  %v1171_v35 = vld [vmem:[%s9716_s8 + $0x1878] sm:$0xff] }
 0x3ce   : > { %6952 = vmatprep.subr.bf16.mxu0 %v8715_v53  ;;  %v8795_v40 = vcombine.high %v1167_v33, %v1171_v35  ;;  %v1031_v42 = vld [vmem:[%s9716_s8 + $0x1418] sm:$0xff]  ;;  %v8794_v48 = vcombine.low %v1167_v33, %v1171_v35 }
 0x3cf   : > { %v1035_v43 = vld [vmem:[%s9716_s8 + $0x1438] sm:$0xff] }
 0x3d0   : > { %6940 = vmatpush2.bf16.msra.mxu1 %v8594_v52  ;;  %6899 = vmatmul.mubr.bf16.vlgmr.msra.gmra.mxu0 %v9239_v45  ;;  %v1159_v44 = vld [vmem:[%s9716_s8 + $0x1818] sm:$0xff]  ;;  %v8659_v49 = vcombine.high %v1031_v42, %v1035_v43  ;;  %v8658_v55 = vcombine.low %v1031_v42, %v1035_v43 }
 0x3d1   : > { %6995 = vmatprep.subr.bf16.mxu1 %v8843_v47  ;;  %6953 = vmatpush1.bf16.msra.mxu0 %v8714_v59  ;;  %v1163_v46 = vld [vmem:[%s9716_s8 + $0x1838] sm:$0xff] }
 0x3d2   : > { %6954 = vmatprep.subr.bf16.mxu0 %v8707_v57  ;;  %6984 = vmatprep.mubr.bf16.mxu0 %v9241_v6  ;;  %v8787_v50 = vcombine.high %v1159_v44, %v1163_v46  ;;  %v1151_v52 = vld [vmem:[%s9716_s8 + $0x17d8] sm:$0xff]  ;;  %v8786_v58 = vcombine.low %v1159_v44, %v1163_v46 }
 0x3d3   : > { %6942 = vmatmul.mubr.bf16.vlgmr.msra.gmra.mxu1 %v9240_v1  ;;  %v1155_v53 = vld [vmem:[%s9716_s8 + $0x17f8] sm:$0xff] }
 0x3d4   : > { %6996 = vmatpush1.bf16.msra.mxu1 %v8842_v41  ;;  %7027 = vmatprep.mubr.bf16.mxu1 %v9242_v9  ;;  %v1279_v47 = vld [vmem:[%s9716_s8 + $0x1bd8] sm:$0xff]  ;;  %v8779_v59 = vcombine.high %v1151_v52, %v1155_v53  ;;  %v8778_v63 = vcombine.low %v1151_v52, %v1155_v53 }
 0x3d5   : > { %6997 = vmatprep.subr.bf16.mxu1 %v8835_v34  ;;  %6955 = vmatpush1.bf16.msra.mxu0 %v8706_v51  ;;  %v1283_v54 = vld [vmem:[%s9716_s8 + $0x1bf8] sm:$0xff] }
 0x3d6   : > { %6956 = vmatprep.subr.bf16.mxu0 %v8699_v2  ;;  %v8907_v41 = vcombine.high %v1279_v47, %v1283_v54  ;;  %v1143_v57 = vld [vmem:[%s9716_s8 + $0x1798] sm:$0xff]  ;;  %v8906_v1 = vcombine.low %v1279_v47, %v1283_v54 }
 0x3d7   : > { %v1147_v34 = vld [vmem:[%s9716_s8 + $0x17b8] sm:$0xff] }
 0x3d8   : > { %6998 = vmatpush1.bf16.msra.mxu1 %v8834_v3  ;;  %v1271_v62 = vld [vmem:[%s9716_s8 + $0x1b98] sm:$0xff]  ;;  %v8771_v51 = vcombine.high %v1143_v57, %v1147_v34  ;;  %v8770_v7 = vcombine.low %v1143_v57, %v1147_v34 }
 0x3d9   : > { %6999 = vmatprep.subr.bf16.mxu1 %v8827_v4  ;;  %6957 = vmatpush1.bf16.msra.mxu0 %v8698_v10  ;;  %v1275_v45 = vld [vmem:[%s9716_s8 + $0x1bb8] sm:$0xff] }
 0x3da   : > { %6958 = vmatprep.subr.bf16.mxu0 %v8691_v11  ;;  %v8899_v3 = vcombine.high %v1271_v62, %v1275_v45  ;;  %v1135_v2 = vld [vmem:[%s9716_s8 + $0x1758] sm:$0xff]  ;;  %v8898_v9 = vcombine.low %v1271_v62, %v1275_v45 }
 0x3db   : > { %v1139_v4 = vld [vmem:[%s9716_s8 + $0x1778] sm:$0xff] }
 0x3dc   : > { %7000 = vmatpush1.bf16.msra.mxu1 %v8826_v60  ;;  %v1263_v5 = vld [vmem:[%s9716_s8 + $0x1b58] sm:$0xff]  ;;  %v8763_v10 = vcombine.high %v1135_v2, %v1139_v4 }
 0x3dd   : > { %7001 = vmatprep.subr.bf16.mxu1 %v8819_v12  ;;  %6959 = vmatpush1.bf16.msra.mxu0 %v8690_v17  ;;  %v1267_v6 = vld [vmem:[%s9716_s8 + $0x1b78] sm:$0xff]  ;;  %v8762_v17 = vcombine.low %v1135_v2, %v1139_v4 }
 0x3de   : > { %6960 = vmatprep.subr.bf16.mxu0 %v8683_v19  ;;  %v8891_v60 = vcombine.high %v1263_v5, %v1267_v6  ;;  %v1127_v11 = vld [vmem:[%s9716_s8 + $0x1718] sm:$0xff] }
 0x3df   : > { %v1131_v12 = vld [vmem:[%s9716_s8 + $0x1738] sm:$0xff] }
 0x3e0   : > { %7002 = vmatpush1.bf16.msra.mxu1 %v8818_v18  ;;  %v1255_v15 = vld [vmem:[%s9716_s8 + $0x1b18] sm:$0xff]  ;;  %v8890_v18 = vcombine.low %v1263_v5, %v1267_v6  ;;  %v8755_v19 = vcombine.high %v1127_v11, %v1131_v12 }
 0x3e1   : > { %7003 = vmatprep.subr.bf16.mxu1 %v8811_v20  ;;  %6961 = vmatpush1.bf16.msra.mxu0 %v8682_v26  ;;  %v1259_v16 = vld [vmem:[%s9716_s8 + $0x1b38] sm:$0xff] }
 0x3e2   : > { %6962 = vmatprep.subr.bf16.mxu0 %v8675_v28  ;;  %v8883_v20 = vcombine.high %v1255_v15, %v1259_v16  ;;  %v1119_v21 = vld [vmem:[%s9716_s8 + $0x16d8] sm:$0xff]  ;;  %v8754_v28 = vcombine.low %v1127_v11, %v1131_v12  ;;  %v8882_v30 = vcombine.low %v1255_v15, %v1259_v16 }
 0x3e3   : > { %v1123_v23 = vld [vmem:[%s9716_s8 + $0x16f8] sm:$0xff] }
 0x3e4   : > { %7004 = vmatpush1.bf16.msra.mxu1 %v8810_v27  ;;  %v1247_v26 = vld [vmem:[%s9716_s8 + $0x1ad8] sm:$0xff]  ;;  %v8747_v32 = vcombine.high %v1119_v21, %v1123_v23  ;;  %v8746_v42 = vcombine.low %v1119_v21, %v1123_v23  ;;  %v362_v23 = vld [vmem:[#allocation2 + $0x50] sm:$0xff] }
 0x3e5   : > { %7005 = vmatprep.subr.bf16.mxu1 %v8803_v29  ;;  %6963 = vmatpush1.bf16.msra.mxu0 %v8674_v36  ;;  %v1251_v27 = vld [vmem:[%s9716_s8 + $0x1af8] sm:$0xff]  ;;  %v6599_v29 = vpop.f32.mrf.mxu1 }
 0x3e6   : > { %6964 = vmatprep.subr.bf16.mxu0 %v8667_v39  ;;  %v8875_v33 = vcombine.high %v1247_v26, %v1251_v27  ;;  %v1111_v35 = vld [vmem:[%s9716_s8 + $0x1698] sm:$0xff]  ;;  %v8874_v44 = vcombine.low %v1247_v26, %v1251_v27 }
 0x3e7   : > { %v1115_v36 = vld [vmem:[%s9716_s8 + $0x16b8] sm:$0xff]  ;;  %v6601_v43 = vpop.f32.mrf.mxu1 }
 0x3e8   : > { %7006 = vmatpush1.bf16.msra.mxu1 %v8802_v38  ;;  %v6560_v38 = vpop.f32.mrf.mxu0  ;;  %v1239_v39 = vld [vmem:[%s9716_s8 + $0x1a98] sm:$0xff]  ;;  %v8739_v46 = vcombine.high %v1111_v35, %v1115_v36  ;;  %v8738_v47 = vcombine.low %v1111_v35, %v1115_v36 }
 0x3e9   : > { %7007 = vmatprep.subr.bf16.mxu1 %v8795_v40  ;;  %6965 = vmatpush1.bf16.msra.mxu0 %v8666_v22  ;;  %v1243_v40 = vld [vmem:[%s9716_s8 + $0x1ab8] sm:$0xff]  ;;  %v6603_v54 = vpop.f32.mrf.mxu1 }
 0x3ea   : > { %6966 = vmatprep.subr.bf16.mxu0 %v8659_v49  ;;  %v8867_v22 = vcombine.high %v1239_v39, %v1243_v40  ;;  %v1107_v49 = vld [vmem:[%s9716_s8 + $0x1678] sm:$0xff] }
 0x3eb   : > { %v1231_v52 = vld [vmem:[%s9716_s8 + $0x1a58] sm:$0xff]  ;;  %v6605_v2 = vpop.f32.mrf.mxu1 }
 0x3ec   : > { %7008 = vmatpush1.bf16.msra.mxu1 %v8794_v48  ;;  %v1103_v48 = vld [vmem:[%s9716_s8 + $0x1658] sm:$0xff] }
 0x3ed   : > { %7009 = vmatprep.subr.bf16.mxu1 %v8787_v50  ;;  %6967 = vmatpush1.bf16.msra.mxu0 %v8658_v55  ;;  %v6562_v50 = vpop.f32.mrf.mxu0  ;;  %v1235_v53 = vld [vmem:[%s9716_s8 + $0x1a78] sm:$0xff] }
 0x3ee   : > { %6968 = vmatprep.subr.bf16.mxu0 %v8779_v59  ;;  %v8731_v59 = vcombine.high %v1103_v48, %v1107_v49  ;;  %v8859_v57 = vcombine.high %v1231_v52, %v1235_v53  ;;  %v1095_v34 = vld [vmem:[%s9716_s8 + $0x1618] sm:$0xff]  ;;  %v8858_v5 = vcombine.low %v1231_v52, %v1235_v53 }
 0x3ef   : > { %v6642_v55 = vpop.f32.mrf.mxu0  ;;  %v1099_v62 = vld [vmem:[%s9716_s8 + $0x1638] sm:$0xff] }
 0x3f0   : > { %7010 = vmatpush1.bf16.msra.mxu1 %v8786_v58  ;;  %v8866_v58 = vcombine.low %v1239_v39, %v1243_v40  ;;  %v1223_v45 = vld [vmem:[%s9716_s8 + $0x1a18] sm:$0xff]  ;;  %v8723_v6 = vcombine.high %v1095_v34, %v1099_v62  ;;  %v370_v39 = vld [vmem:[#allocation2 + $0x60] sm:$0xff] }
 0x3f1   : > { %7011 = vmatprep.subr.bf16.mxu1 %v8907_v41  ;;  %6969 = vmatpush2.bf16.msra.mxu0 %v8778_v63  ;;  %v6514_v41 = vadd.f32 %v10724_v61, %v10714_v37  ;;  %v1227_v63 = vld [vmem:[%s9716_s8 + $0x1a38] sm:$0xff]  ;;  %v6644_v4 = vpop.f32.mrf.mxu0  ;;  %v6518_v37 = vadd.f32 %v10740_v13, %v10728_v0 }
 0x3f2   : > { %6970 = vmatprep.subr.bf16.mxu0 %v8771_v51  ;;  %v8850_v12 = vcombine.low %v1223_v45, %v1227_v63 }
 0x3f3   : > { %v6557_v51 = vadd.f32 %v6556_v14, %v6514_v41  ;;  %v6646_v11 = vpop.f32.mrf.mxu0 }
 0x3f4   : > { %7012 = vmatpush2.bf16.msra.mxu1 %v8906_v1  ;;  %v6516_v1 = vadd.f32 %v10732_v31, %v10720_v56  ;;  %v6561_v56 = vadd.f32 %v6560_v38, %v6518_v37  ;;  %v8722_v31 = vcombine.low %v1095_v34, %v1099_v62 }
 0x3f5   : > { %7013 = vmatprep.subr.bf16.mxu1 %v8899_v3  ;;  %6971 = vmatpush2.bf16.msra.mxu0 %v8770_v7  ;;  %v8730_v3 = vcombine.low %v1103_v48, %v1107_v49  ;;  %v8851_v7 = vcombine.high %v1223_v45, %v1227_v63 }
 0x3f6   : > { %6972 = vmatprep.subr.bf16.mxu0 %v8763_v10  ;;  %v6559_v61 = vadd.f32 %v6558_v25, %v6516_v1  ;;  %v6520_v10 = vadd.f32 %v6519_v24, %v10736_v8  ;;  %v6604_v13 = vadd.f32 %v6603_v54, %v6561_v56  ;;  %v9243_v25 = vld [vmem:[%s9709_s29 + $0x28] ss:$56 sps:$4 sm:$0xff]  }
 0x3f8   : > { %7014 = vmatpush2.bf16.msra.mxu1 %v8898_v9  ;;  %v6685_v9 = vpop.f32.mrf.mxu1  ;;  %v6602_v14 = vadd.f32 %v6601_v43, %v6559_v61  ;;  %v6563_v15 = vadd.f32 %v6562_v50, %v6520_v10 }
 0x3f9   : > { %7015 = vmatprep.subr.bf16.mxu1 %v8891_v60  ;;  %6973 = vmatpush2.bf16.msra.mxu0 %v8762_v17  ;;  %v6600_v60 = vadd.f32 %v6599_v29, %v6557_v51  ;;  %v9244_v29 = vld [vmem:[%s9709_s29 + $0x30] ss:$56 sps:$4 sm:$0xff]  }
 0x3fa   : > { %6974 = vmatprep.subr.bf16.mxu0 %v8755_v19  ;;  %v6687_v0 = vpop.f32.mrf.mxu1  ;;  %v6645_v17 = vadd.f32 %v6644_v4, %v6602_v14  ;;  %v6606_v8 = vadd.f32 %v6605_v2, %v6563_v15 }
 0x3fb   : > { %v6643_v16 = vadd.f32 %v6642_v55, %v6600_v60 }
 0x3fc   : > { %7016 = vmatpush2.bf16.msra.mxu1 %v8890_v18  ;;  %v6648_v18 = vpop.f32.mrf.mxu0  ;;  %v6689_v21 = vpop.f32.mrf.mxu1  ;;  %v6688_v26 = vadd.f32 %v6687_v0, %v6645_v17 }
 0x3fd   : > { %7017 = vmatprep.subr.bf16.mxu1 %v8883_v20  ;;  %6975 = vmatpush2.bf16.msra.mxu0 %v8754_v28  ;;  %v6686_v19 = vadd.f32 %v6685_v9, %v6643_v16  ;;  %v6647_v20 = vadd.f32 %v6646_v11, %v6604_v13  ;;  %v6649_v27 = vadd.f32 %v6648_v18, %v6606_v8  ;;  %v364_v8 = vld [vmem:[#allocation2 + $0x8] sm:$0xff] }
 0x3fe   : > { %6976 = vmatprep.subr.bf16.mxu0 %v8747_v32  ;;  %v6691_v38 = vpop.f32.mrf.mxu1 }
 0x400   : > { %7018 = vmatpush2.bf16.msra.mxu1 %v8882_v30  ;;  %v363_v30 = vld [vmem:[#allocation2 + $0x68] sm:$0xff] }
 0x401   : > { %7019 = vmatprep.subr.bf16.mxu1 %v8875_v33  ;;  %6977 = vmatpush2.bf16.msra.mxu0 %v8746_v42  ;;  %v6690_v33 = vadd.f32 %v6689_v21, %v6647_v20  ;;  %v6692_v42 = vadd.f32 %v6691_v38, %v6649_v27 }
 0x402   : > { %6978 = vmatprep.subr.bf16.mxu0 %v8739_v46  ;;  %v371_v46 = vld [vmem:[#allocation2 + $0x70] sm:$0xff] }
 0x404   : > { %7020 = vmatpush2.bf16.msra.mxu1 %v8874_v44 }
 0x405   : > { %7021 = vmatprep.subr.bf16.mxu1 %v8867_v22  ;;  %6979 = vmatpush2.bf16.msra.mxu0 %v8738_v47 }
 0x406   : > { %6980 = vmatprep.subr.bf16.mxu0 %v8731_v59 }
 0x408   : > { %7022 = vmatpush2.bf16.msra.mxu1 %v8866_v58 }
 0x409   : > { %7023 = vmatprep.subr.bf16.mxu1 %v8859_v57  ;;  %6981 = vmatpush2.bf16.msra.mxu0 %v8730_v3 }
 0x40a   : > { %6982 = vmatprep.subr.bf16.mxu0 %v8723_v6 }
 0x40c   : > { %7024 = vmatpush2.bf16.msra.mxu1 %v8858_v5 }
 0x40d   : > { %7025 = vmatprep.subr.bf16.mxu1 %v8851_v7  ;;  %6983 = vmatpush2.bf16.msra.mxu0 %v8722_v31 }
 0x410   : > { %7026 = vmatpush2.bf16.msra.mxu1 %v8850_v12  ;;  %v6728_v24 = vpop.f32.mrf.mxu0  ;;  %6985 = vmatmul.mubr.bf16.vlgmr.msra.gmra.mxu0 %v9243_v25  ;;  %v365_v25 = vld [vmem:[#allocation2 + $0x48] sm:$0xff] }
 0x411   : > { %v6729_v28 = vadd.f32 %v6728_v24, %v6686_v19 }
 0x412   : > { %v6730_v32 = vpop.f32.mrf.mxu0 }
 0x413   : > { %7028 = vmatmul.mubr.bf16.vlgmr.msra.gmra.mxu1 %v9244_v29  ;;  %v7042_v35 = vadd.f32 %v6729_v28, %v362_v23  ;;  %v6731_v36 = vadd.f32 %v6730_v32, %v6688_v26  ;;  %v6771_v52 = vpop.f32.mrf.mxu1 }
 0x414   : > { %v6732_v40 = vpop.f32.mrf.mxu0 }
 0x415   : > { %7058 = vst [vmem:[#allocation2 + $0x50] sm:$0xff] %v7042_v35  ;;  %v7043_v43 = vadd.f32 %v6731_v36, %v363_v30  ;;  %v6733_v44 = vadd.f32 %v6732_v40, %v6690_v33  ;;  %v6773_v53 = vpop.f32.mrf.mxu1  ;;  %v372_v33 = vld [vmem:[#allocation2 + $0x78] sm:$0xff]  ;;  %v373_v40 = vld [vmem:[#allocation2 + $0x28] sm:$0xff] }
 0x416   : > { %v6734_v22 = vpop.f32.mrf.mxu0 }
 0x417   : > { %7059 = vst [vmem:[#allocation2 + $0x68] sm:$0xff] %v7043_v43  ;;  %v7050_v48 = vadd.f32 %v6733_v44, %v370_v39  ;;  %v6735_v49 = vadd.f32 %v6734_v22, %v6692_v42  ;;  %v6775_v47 = vpop.f32.mrf.mxu1 }
 0x419   : > { %7066 = vst [vmem:[#allocation2 + $0x60] sm:$0xff] %v7050_v48  ;;  %v7051_v50 = vadd.f32 %v6735_v49, %v371_v46  ;;  %v6777_v54 = vpop.f32.mrf.mxu1 }
 0x41b   : > { %7067 = vst [vmem:[#allocation2 + $0x70] sm:$0xff] %v7051_v50 }
 0x450   : > { %v6814_v55 = vpop.f32.mrf.mxu0 }
 0x451   : > { %v6815_v51 = vadd.f32 %v6814_v55, %v6771_v52 }
 0x452   : > { %v6816_v59 = vpop.f32.mrf.mxu0 }
 0x453   : > { %v6857_v58 = vpop.f32.mrf.mxu1  ;;  %v6817_v2 = vadd.f32 %v6816_v59, %v6773_v53 }
 0x454   : > { %v6818_v57 = vpop.f32.mrf.mxu0  ;;  %v6858_v5 = vadd.f32 %v6857_v58, %v6815_v51 }
 0x455   : > { %v6859_v41 = vpop.f32.mrf.mxu1  ;;  %v6819_v6 = vadd.f32 %v6818_v57, %v6775_v47 }
 0x456   : > { %v6820_v62 = vpop.f32.mrf.mxu0  ;;  %v6860_v61 = vadd.f32 %v6859_v41, %v6817_v2 }
 0x457   : > { %v6861_v34 = vpop.f32.mrf.mxu1  ;;  %v6821_v7 = vadd.f32 %v6820_v62, %v6777_v54 }
 0x458   : > { %v6862_v60 = vadd.f32 %v6861_v34, %v6819_v6 }
 0x459   : > { %v6863_v45 = vpop.f32.mrf.mxu1 }
 0x45a   : > { %v6864_v11 = vadd.f32 %v6863_v45, %v6821_v7 }
 0x490   : > { %v6900_v63 = vpop.f32.mrf.mxu0 }
 0x491   : > { %v6901_v9 = vadd.f32 %v6900_v63, %v6858_v5 }
 0x492   : > { %v6902_v3 = vpop.f32.mrf.mxu0 }
 0x493   : > { %v6943_v1 = vpop.f32.mrf.mxu1  ;;  %v6903_v56 = vadd.f32 %v6902_v3, %v6860_v61 }
 0x494   : > { %v6904_v37 = vpop.f32.mrf.mxu0  ;;  %v6944_v12 = vadd.f32 %v6943_v1, %v6901_v9 }
 0x495   : > { %v6945_v4 = vpop.f32.mrf.mxu1  ;;  %v6905_v14 = vadd.f32 %v6904_v37, %v6862_v60 }
 0x496   : > { %v6906_v31 = vpop.f32.mrf.mxu0  ;;  %v6946_v0 = vadd.f32 %v6945_v4, %v6903_v56 }
 0x497   : > { %v6947_v10 = vpop.f32.mrf.mxu1  ;;  %v6907_v13 = vadd.f32 %v6906_v31, %v6864_v11 }
 0x498   : > { %v6948_v20 = vadd.f32 %v6947_v10, %v6905_v14 }
 0x499   : > { %v6949_v15 = vpop.f32.mrf.mxu1 }
 0x49a   : > { %v6950_v27 = vadd.f32 %v6949_v15, %v6907_v13 }
 0x4d0   : > { %v6986_v16 = vpop.f32.mrf.mxu0 }
 0x4d1   : > { %v6987_v17 = vadd.f32 %v6986_v16, %v6944_v12 }
 0x4d2   : > { %v6988_v19 = vpop.f32.mrf.mxu0 }
 0x4d3   : > { %v7029_v18 = vpop.f32.mrf.mxu1  ;;  %v6989_v23 = vadd.f32 %v6988_v19, %v6946_v0 }
 0x4d4   : > { %v7030_v21 = vadd.f32 %v7029_v18, %v6987_v17  ;;  %v6990_v26 = vpop.f32.mrf.mxu0 }
 0x4d5   : > { %v7031_v24 = vpop.f32.mrf.mxu1  ;;  %v6991_v30 = vadd.f32 %v6990_v26, %v6948_v20 }
 0x4d6   : > { %v7044_v28 = vadd.f32 %v7030_v21, %v364_v8  ;;  %v7032_v29 = vadd.f32 %v7031_v24, %v6989_v23  ;;  %v6992_v35 = vpop.f32.mrf.mxu0 }
 0x4d7   : > { %v7033_v32 = vpop.f32.mrf.mxu1  ;;  %v6993_v39 = vadd.f32 %v6992_v35, %v6950_v27 }
 0x4d8   : > { %7060 = vst [vmem:[#allocation2 + $0x8] sm:$0xff] %v7044_v28  ;;  %v7045_v36 = vadd.f32 %v7032_v29, %v365_v25  ;;  %v7034_v38 = vadd.f32 %v7033_v32, %v6991_v30 }
 0x4d9   : > { %v7035_v42 = vpop.f32.mrf.mxu1 }
 0x4da   : > { %7061 = vst [vmem:[#allocation2 + $0x48] sm:$0xff] %v7045_v36  ;;  %v7052_v43 = vadd.f32 %v7034_v38, %v372_v33  ;;  %v7036_v44 = vadd.f32 %v7035_v42, %v6993_v39  ;;  %7073 = sbr.rel (%p8908_p7) target bundleno = 1519 (0x5ef), region = 68 }
 0x4dc   : > { %7068 = vst [vmem:[#allocation2 + $0x78] sm:$0xff] %v7052_v43  ;;  %v7053_v46 = vadd.f32 %v7036_v44, %v373_v40 }
 0x4de   : > { %7069 = vst [vmem:[#allocation2 + $0x28] sm:$0xff] %v7053_v46 }
 0x4df   : > { %v9245_v22 = vld [vmem:[#allocation9 + $0x78] sm:$0xff]   ;;  %v9249_v52 = vld [vmem:[#allocation9 + $0x70] sm:$0xff]   ;;  %v9253_v55 = vld [vmem:[#allocation9 + $0x68] sm:$0xff]   ;;  %v7092_v3 = vlaneseq }
 0x4e0   : > { %v9246_v48 = vld [vmem:[#allocation9 + $0xf8] sm:$0xff]   ;;  %8982 = vmatprep.subr.bf16.mxu0 %v9245_v22  ;;  %v9250_v53 = vld [vmem:[#allocation9 + $0xf0] sm:$0xff]   ;;  %v9254_v58 = vld [vmem:[#allocation9 + $0xe8] sm:$0xff]  }
 0x4e1   : > { %v9247_v49 = vld [vmem:[#allocation9 + $0x38] sm:$0xff]   ;;  %9004 = vmatprep.subr.bf16.mxu1 %v9246_v48  ;;  %v9251_v47 = vld [vmem:[#allocation9 + $0x30] sm:$0xff]   ;;  %v9255_v59 = vld [vmem:[#allocation9 + $0x28] sm:$0xff]   ;;  %v10770_v37 = vshrl.u32 %v7092_v3, 7 }
 0x4e2   : > { %v9248_v50 = vld [vmem:[#allocation9 + $0xb8] sm:$0xff]   ;;  %8983 = vmatpush3.bf16.msra.mxu0 %v9247_v49  ;;  %v9252_v54 = vld [vmem:[#allocation9 + $0xb0] sm:$0xff]   ;;  %v9256_v41 = vld [vmem:[#allocation9 + $0xa8] sm:$0xff]  }
 0x4e3   : > { %9005 = vmatpush3.bf16.msra.mxu1 %v9248_v50  ;;  %8984 = vmatprep.subr.bf16.mxu0 %v9249_v52  ;;  %v9257_v57 = vld [vmem:[#allocation9 + $0x60] sm:$0xff]   ;;  %v9261_v63 = vld [vmem:[#allocation9 + $0x58] sm:$0xff]   ;;  %v9265_v4 = vld [vmem:[#allocation9 + $0x50] sm:$0xff]   ;;  %v7098_v60 = vsub.s32 1, %v10770_v37  ;;  %v7106_v31 = vsub.s32 3, %v10770_v37  ;;  %v7094_v12 = vsub.s32 0, %v10770_v37 }
 0x4e4   : > { %9006 = vmatprep.subr.bf16.mxu1 %v9250_v53  ;;  %v9258_v34 = vld [vmem:[#allocation9 + $0xe0] sm:$0xff]   ;;  %v9262_v1 = vld [vmem:[#allocation9 + $0xd8] sm:$0xff]   ;;  %v9266_v5 = vld [vmem:[#allocation9 + $0xd0] sm:$0xff]   ;;  %v7102_v15 = vsub.s32 2, %v10770_v37 }
 0x4e5   : > { %v9259_v62 = vld [vmem:[#allocation9 + $0x20] sm:$0xff]   ;;  %v9263_v51 = vld [vmem:[#allocation9 + $0x18] sm:$0xff]   ;;  %v9267_v6 = vld [vmem:[#allocation9 + $0x10] sm:$0xff]  }
 0x4e6   : > { %8985 = vmatpush3.bf16.msra.mxu0 %v9251_v47  ;;  %v9260_v45 = vld [vmem:[#allocation9 + $0xa0] sm:$0xff]   ;;  %v9264_v2 = vld [vmem:[#allocation9 + $0x98] sm:$0xff]   ;;  %v9268_v61 = vld [vmem:[#allocation9 + $0x90] sm:$0xff]  }
 0x4e7   : > { %9007 = vmatpush3.bf16.msra.mxu1 %v9252_v54  ;;  %8986 = vmatprep.subr.bf16.mxu0 %v9253_v55  ;;  %v9269_v7 = vld [vmem:[#allocation9 + $0x48] sm:$0xff]   ;;  %v9273_v11 = vld [vmem:[#allocation9 + $0x40] sm:$0xff]   ;;  %v7075_v13 = vld [vmem:[#allocation2] sm:$0xff] }
 0x4e8   : > { %9008 = vmatprep.subr.bf16.mxu1 %v9254_v58  ;;  %v9270_v9 = vld [vmem:[#allocation9 + $0xc8] sm:$0xff]   ;;  %v9274_v14 = vld [vmem:[#allocation9 + $0xc0] sm:$0xff]   ;;  %v7083_v17 = vld [vmem:[#allocation2 + $0x20] sm:$0xff] }
 0x4e9   : > { %v9271_v10 = vld [vmem:[#allocation9 + $0x8] sm:$0xff]   ;;  %v9275_v16 = vld [vmem:[#allocation9] sm:$0xff]   ;;  %v10776_v18 = vld [vmem:[#allocation8] sm:$0xff] }
 0x4ea   : > { %8987 = vmatpush3.bf16.msra.mxu0 %v9255_v59  ;;  %v9272_v56 = vld [vmem:[#allocation9 + $0x88] sm:$0xff]   ;;  %v9276_v0 = vld [vmem:[#allocation9 + $0x80] sm:$0xff]   ;;  %v7099_v8 = vrot.slane %v10776_v18, %v7098_v60  ;;  %v7077_v19 = vld [vmem:[#allocation2 + $0x18] sm:$0xff]  ;;  %v7107_v21 = vrot.slane %v10776_v18, %v7106_v31  ;;  %v7095_v24 = vrot.slane %v10776_v18, %v7094_v12  ;;  %v7103_v25 = vrot.slane %v10776_v18, %v7102_v15 }
 0x4eb   : > { %9009 = vmatpush3.bf16.msra.mxu1 %v9256_v41  ;;  %8988 = vmatprep.subr.bf16.mxu0 %v9257_v57  ;;  %v7085_v20 = vld [vmem:[#allocation2 + $0x38] sm:$0xff]  ;;  %v7074_v23 = vld [vmem:[#allocation2 + $0x30] sm:$0xff]  ;;  %v7082_v26 = vld [vmem:[#allocation2 + $0x40] sm:$0xff] }
 0x4ec   : > { %9010 = vmatprep.subr.bf16.mxu1 %v9258_v34  ;;  %v7076_v27 = vld [vmem:[#allocation2 + $0x58] sm:$0xff]  ;;  %v7084_v28 = vld [vmem:[#allocation2 + $0x10] sm:$0xff]  ;;  %v7133_v29 = vadd.f32 %v7099_v8, %v7075_v13  ;;  %v7141_v30 = vadd.f32 %v7099_v8, %v7083_v17  ;;  %v7135_v32 = vadd.f32 %v7107_v21, %v7077_v19  ;;  %v7143_v33 = vadd.f32 %v7107_v21, %v7085_v20  ;;  %v9277_v35 = vld [vmem:[#allocation9 + $0x178] sm:$0xff]  }
 0x4ed   : > { %v7132_v36 = vadd.f32 %v7095_v24, %v7074_v23  ;;  %v7140_v38 = vadd.f32 %v7095_v24, %v7082_v26  ;;  %v7134_v39 = vadd.f32 %v7103_v25, %v7076_v27  ;;  %v7142_v40 = vadd.f32 %v7103_v25, %v7084_v28  ;;  %v9278_v42 = vld [vmem:[#allocation9 + $0x1f8] sm:$0xff]   ;;  %v9281_v41 = vld [vmem:[#allocation9 + $0x170] sm:$0xff]   ;;  %v9289_v3 = vld [vmem:[#allocation9 + $0x160] sm:$0xff]  }
 0x4ee   : > { %8989 = vmatpush3.bf16.msra.mxu0 %v9259_v62  ;;  %v7149_v43 = vmax.f32 %v7133_v29, 0.0  ;;  %v7157_v44 = vmax.f32 %v7141_v30, 0.0  ;;  %v7151_v46 = vmax.f32 %v7135_v32, 0.0  ;;  %v7159_v22 = vmax.f32 %v7143_v33, 0.0  ;;  %v9279_v54 = vld [vmem:[#allocation9 + $0x138] sm:$0xff]   ;;  %v9282_v57 = vld [vmem:[#allocation9 + $0x1f0] sm:$0xff]  }
 0x4ef   : > { %9011 = vmatpush3.bf16.msra.mxu1 %v9260_v45  ;;  %8990 = vmatprep.subr.bf16.mxu0 %v9261_v63  ;;  %v7148_v48 = vmax.f32 %v7132_v36, 0.0  ;;  %v7156_v49 = vmax.f32 %v7140_v38, 0.0  ;;  %v7150_v50 = vmax.f32 %v7134_v39, 0.0  ;;  %v7158_v52 = vmax.f32 %v7142_v40, 0.0  ;;  %v9280_v59 = vld [vmem:[#allocation9 + $0x1b8] sm:$0xff]   ;;  %v9283_v34 = vld [vmem:[#allocation9 + $0x130] sm:$0xff]  }
 0x4f0   : > { %9012 = vmatprep.subr.bf16.mxu1 %v9262_v1  ;;  %v7165_v53 = vpack.c.bf16 %v7157_v44, %v7149_v43  ;;  %v7167_v47 = vpack.c.bf16 %v7159_v22, %v7151_v46  ;;  %v9284_v62 = vld [vmem:[#allocation9 + $0x1b0] sm:$0xff]   ;;  %v9285_v45 = vld [vmem:[#allocation9 + $0x168] sm:$0xff]   ;;  %v7118_v13 = vsub.s32 6, %v10770_v37  ;;  %v9305_v8 = vld [vmem:[#allocation9 + $0x140] sm:$0xff]  }
 0x4f1   : > { %v7164_v55 = vpack.c.bf16 %v7156_v49, %v7148_v48  ;;  %v7166_v58 = vpack.c.bf16 %v7158_v52, %v7150_v50  ;;  %v9286_v63 = vld [vmem:[#allocation9 + $0x1e8] sm:$0xff]   ;;  %v9298_v60 = vld [vmem:[#allocation9 + $0x1d0] sm:$0xff]   ;;  %v9306_v20 = vld [vmem:[#allocation9 + $0x1c0] sm:$0xff]  }
 0x4f2   : > { %8991 = vmatpush3.bf16.msra.mxu0 %v9263_v51  ;;  %7723 = vmatprep.mubr.bf16.mxu0 %v7165_v53  ;;  %v9287_v1 = vld [vmem:[#allocation9 + $0x128] sm:$0xff]   ;;  %v9300_v31 = vld [vmem:[#allocation9 + $0x190] sm:$0xff]   ;;  %v9307_v24 = vld [vmem:[#allocation9 + $0x100] sm:$0xff]   ;;  %v7119_v25 = vrot.slane %v10776_v18, %v7118_v13 }
 0x4f3   : > { %9013 = vmatpush3.bf16.msra.mxu1 %v9264_v2  ;;  %8992 = vmatprep.subr.bf16.mxu0 %v9265_v4  ;;  %v9288_v51 = vld [vmem:[#allocation9 + $0x1a8] sm:$0xff]   ;;  %v9290_v2 = vld [vmem:[#allocation9 + $0x1e0] sm:$0xff]   ;;  %v7086_v38 = vld [vmem:[#allocation2 + $0x60] sm:$0xff] }
 0x4f4   : > { %9014 = vmatprep.subr.bf16.mxu1 %v9266_v5  ;;  %7764 = vmatprep.mubr.bf16.mxu1 %v7167_v47  ;;  %v9291_v4 = vld [vmem:[#allocation9 + $0x120] sm:$0xff]   ;;  %v9301_v12 = vld [vmem:[#allocation9 + $0x148] sm:$0xff]  }
 0x4f5   : > { %v9292_v5 = vld [vmem:[#allocation9 + $0x1a0] sm:$0xff]   ;;  %v9302_v15 = vld [vmem:[#allocation9 + $0x1c8] sm:$0xff]  }
 0x4f6   : > { %8993 = vmatpush3.bf16.msra.mxu0 %v9267_v6  ;;  %v9293_v6 = vld [vmem:[#allocation9 + $0x158] sm:$0xff]   ;;  %v9304_v17 = vld [vmem:[#allocation9 + $0x188] sm:$0xff]   ;;  %v9308_v26 = vld [vmem:[#allocation9 + $0x180] sm:$0xff]  }
 0x4f7   : > { %9015 = vmatpush3.bf16.msra.mxu1 %v9268_v61  ;;  %8994 = vmatprep.subr.bf16.mxu0 %v9269_v7  ;;  %v9294_v61 = vld [vmem:[#allocation9 + $0x1d8] sm:$0xff]   ;;  %v7087_v27 = vld [vmem:[#allocation2 + $0x70] sm:$0xff]  ;;  %v7081_v30 = vld [vmem:[#allocation2 + $0x48] sm:$0xff] }
 0x4f8   : > { %9016 = vmatprep.subr.bf16.mxu1 %v9270_v9  ;;  %v9295_v7 = vld [vmem:[#allocation9 + $0x118] sm:$0xff]   ;;  %v7089_v32 = vld [vmem:[#allocation2 + $0x28] sm:$0xff]  ;;  %v7078_v33 = vld [vmem:[#allocation2 + $0x50] sm:$0xff] }
 0x4f9   : > { %v9296_v9 = vld [vmem:[#allocation9 + $0x198] sm:$0xff]   ;;  %v7080_v40 = vld [vmem:[#allocation2 + $0x8] sm:$0xff] }
 0x4fa   : > { %8995 = vmatpush3.bf16.msra.mxu0 %v9271_v10  ;;  %v9297_v10 = vld [vmem:[#allocation9 + $0x150] sm:$0xff]   ;;  %v7138_v46 = vadd.f32 %v7119_v25, %v7080_v40 }
 0x4fb   : > { %9017 = vmatpush3.bf16.msra.mxu1 %v9272_v56  ;;  %8996 = vmatprep.subr.bf16.mxu0 %v9273_v11  ;;  %v9299_v56 = vld [vmem:[#allocation9 + $0x110] sm:$0xff]   ;;  %v7114_v11 = vsub.s32 5, %v10770_v37 }
 0x4fc   : > { %9018 = vmatprep.subr.bf16.mxu1 %v9274_v14  ;;  %v7122_v14 = vsub.s32 7, %v10770_v37  ;;  %v7154_v47 = vmax.f32 %v7138_v46, 0.0 }
 0x4fd   : > { %v7115_v19 = vrot.slane %v10776_v18, %v7114_v11 }
 0x4fe   : > { %8997 = vmatpush3.bf16.msra.mxu0 %v9275_v16  ;;  %v7110_v16 = vsub.s32 4, %v10770_v37  ;;  %v7123_v21 = vrot.slane %v10776_v18, %v7122_v14  ;;  %v7079_v37 = vld [vmem:[#allocation2 + $0x68] sm:$0xff] }
 0x4ff   : > { %9019 = vmatpush3.bf16.msra.mxu1 %v9276_v0  ;;  %9026 = vmatprep.subr.bf16.mxu0 %v9277_v35  ;;  %v9303_v0 = vld [vmem:[#allocation9 + $0x108] sm:$0xff]   ;;  %v7137_v28 = vadd.f32 %v7115_v19, %v7079_v37  ;;  %v7145_v29 = vadd.f32 %v7115_v19, %v7087_v27 }
 0x500   : > { %9048 = vmatprep.subr.bf16.mxu1 %v9278_v42  ;;  %v7111_v23 = vrot.slane %v10776_v18, %v7110_v16  ;;  %v7139_v35 = vadd.f32 %v7123_v21, %v7081_v30  ;;  %v7147_v36 = vadd.f32 %v7123_v21, %v7089_v32  ;;  %v7088_v42 = vld [vmem:[#allocation2 + $0x78] sm:$0xff] }
 0x501   : > { %7724 = vmatmul.mubr.bf16.vlgmr.msra.gmra.mxu0 %v7164_v55  ;;  %v7153_v43 = vmax.f32 %v7137_v28, 0.0  ;;  %v7161_v18 = vmax.f32 %v7145_v29, 0.0  ;;  %v7146_v50 = vadd.f32 %v7119_v25, %v7088_v42 }
 0x502   : > { %7765 = vmatmul.mubr.bf16.vlgmr.msra.gmra.mxu1 %v7166_v58  ;;  %9027 = vmatpush3.bf16.msra.mxu0 %v9279_v54  ;;  %v7136_v39 = vadd.f32 %v7111_v23, %v7078_v33  ;;  %v7144_v44 = vadd.f32 %v7111_v23, %v7086_v38  ;;  %v7155_v22 = vmax.f32 %v7139_v35, 0.0  ;;  %v7163_v48 = vmax.f32 %v7147_v36, 0.0 }
 0x503   : > { %9049 = vmatpush3.bf16.msra.mxu1 %v9280_v59  ;;  %9028 = vmatprep.subr.bf16.mxu0 %v9281_v41  ;;  %v7169_v52 = vpack.c.bf16 %v7161_v18, %v7153_v43  ;;  %v7162_v55 = vmax.f32 %v7146_v50, 0.0 }
 0x504   : > { %9050 = vmatprep.subr.bf16.mxu1 %v9282_v57  ;;  %v7152_v49 = vmax.f32 %v7136_v39, 0.0  ;;  %v7160_v53 = vmax.f32 %v7144_v44, 0.0  ;;  %v7171_v54 = vpack.c.bf16 %v7163_v48, %v7155_v22 }
 0x505   : > { %7805 = vmatprep.mubr.bf16.mxu0 %v7169_v52  ;;  %v7170_v59 = vpack.c.bf16 %v7162_v55, %v7154_v47 }
 0x506   : > { %9029 = vmatpush3.bf16.msra.mxu0 %v9283_v34  ;;  %v7168_v58 = vpack.c.bf16 %v7160_v53, %v7152_v49  ;;  %7846 = vmatprep.mubr.bf16.mxu1 %v7171_v54 }
 0x507   : > { %9051 = vmatpush3.bf16.msra.mxu1 %v9284_v62  ;;  %9030 = vmatprep.subr.bf16.mxu0 %v9285_v45 }
 0x508   : > { %9052 = vmatprep.subr.bf16.mxu1 %v9286_v63 }
 0x50a   : > { %9031 = vmatpush3.bf16.msra.mxu0 %v9287_v1 }
 0x50b   : > { %9053 = vmatpush3.bf16.msra.mxu1 %v9288_v51  ;;  %9032 = vmatprep.subr.bf16.mxu0 %v9289_v3  ;;  %v8909_v51 = vld [vmem:[#allocation11] ss:$0 sm:$0xff] }
 0x50c   : > { %9054 = vmatprep.subr.bf16.mxu1 %v9290_v2 }
 0x50e   : > { %9033 = vmatpush3.bf16.msra.mxu0 %v9291_v4 }
 0x50f   : > { %9055 = vmatpush3.bf16.msra.mxu1 %v9292_v5  ;;  %9034 = vmatprep.subr.bf16.mxu0 %v9293_v6 }
 0x510   : > { %9056 = vmatprep.subr.bf16.mxu1 %v9294_v61 }
 0x512   : > { %9035 = vmatpush3.bf16.msra.mxu0 %v9295_v7 }
 0x513   : > { %9057 = vmatpush3.bf16.msra.mxu1 %v9296_v9  ;;  %9036 = vmatprep.subr.bf16.mxu0 %v9297_v10 }
 0x514   : > { %9058 = vmatprep.subr.bf16.mxu1 %v9298_v60 }
 0x516   : > { %9037 = vmatpush3.bf16.msra.mxu0 %v9299_v56 }
 0x517   : > { %9059 = vmatpush3.bf16.msra.mxu1 %v9300_v31  ;;  %9038 = vmatprep.subr.bf16.mxu0 %v9301_v12 }
 0x518   : > { %9060 = vmatprep.subr.bf16.mxu1 %v9302_v15 }
 0x51a   : > { %9039 = vmatpush3.bf16.msra.mxu0 %v9303_v0 }
 0x51b   : > { %9061 = vmatpush3.bf16.msra.mxu1 %v9304_v17  ;;  %9040 = vmatprep.subr.bf16.mxu0 %v9305_v8 }
 0x51c   : > { %9062 = vmatprep.subr.bf16.mxu1 %v9306_v20 }
 0x51e   : > { %9041 = vmatpush3.bf16.msra.mxu0 %v9307_v24 }
 0x51f   : > { %9063 = vmatpush3.bf16.msra.mxu1 %v9308_v26 }
 0x521   : > { %7806 = vmatmul.mubr.bf16.vlgmr.msra.gmra.mxu0 %v7168_v58 }
 0x522   : > { %7847 = vmatmul.mubr.bf16.vlgmr.msra.gmra.mxu1 %v7170_v59 }
 0x5c1   : > { %v8998_v41 = vpop.f32.mrf.mxu0 }
 0x5c2   : > { %v9020_v57 = vpop.f32.mrf.mxu1 }
 0x5c3   : > { %v8999_v34 = vpop.f32.mrf.mxu0 }
 0x5c4   : > { %v9021_v62 = vpop.f32.mrf.mxu1  ;;  %v9000_v63 = vadd.f32 %v8999_v34, %v8998_v41 }
 0x5c5   : > { %v9001_v45 = vpop.f32.mrf.mxu0  ;;  %v9022_v4 = vadd.f32 %v9021_v62, %v9020_v57 }
 0x5c6   : > { %v9023_v1 = vpop.f32.mrf.mxu1  ;;  %v7726_v2 = vadd.f32 %v9000_v63, %v8909_v51 }
 0x5c7   : > { %v9002_v3 = vpop.f32.mrf.mxu0 }
 0x5c8   : > { %v9003_v5 = vadd.f32 %v9002_v3, %v9001_v45  ;;  %v9024_v6 = vpop.f32.mrf.mxu1  ;;  %v7767_v10 = vadd.f32 %v9022_v4, %v7726_v2 }
 0x5c9   : > { %v9025_v12 = vadd.f32 %v9024_v6, %v9023_v1 }
 0x5ca   : > { %v7729_v60 = vadd.f32 %v9003_v5, %v8909_v51 }
 0x5cc   : > { %v7770_v13 = vadd.f32 %v9025_v12, %v7729_v60 }
 0x5e1   : > { %v9042_v61 = vpop.f32.mrf.mxu0 }
 0x5e2   : > { %v9064_v7 = vpop.f32.mrf.mxu1 }
 0x5e3   : > { %v9043_v9 = vpop.f32.mrf.mxu0 }
 0x5e4   : > { %v9044_v56 = vadd.f32 %v9043_v9, %v9042_v61  ;;  %v9065_v31 = vpop.f32.mrf.mxu1 }
 0x5e5   : > { %v9045_v11 = vpop.f32.mrf.mxu0  ;;  %v9066_v15 = vadd.f32 %v9065_v31, %v9064_v7 }
 0x5e6   : > { %v7808_v14 = vadd.f32 %v9044_v56, %v7767_v10  ;;  %v9067_v16 = vpop.f32.mrf.mxu1 }
 0x5e7   : > { %v9046_v0 = vpop.f32.mrf.mxu0 }
 0x5e8   : > { %v7849_v17 = vadd.f32 %v9066_v15, %v7808_v14  ;;  %v9047_v8 = vadd.f32 %v9046_v0, %v9045_v11  ;;  %v9068_v19 = vpop.f32.mrf.mxu1 }
 0x5e9   : > { %v9069_v21 = vadd.f32 %v9068_v19, %v9067_v16 }
 0x5ea   : > { %7855 = vst [vmem:[#allocation12] sm:$0xff] %v7849_v17  ;;  %v7811_v20 = vadd.f32 %v9047_v8, %v7770_v13 }
 0x5ec   : > { %v7852_v23 = vadd.f32 %v9069_v21, %v7811_v20 }
 0x5ee   : > { %7856 = vst [vmem:[#allocation12 + $0x8] sm:$0xff] %v7852_v23 }
 0x5ef PF: > { %p9118_p9 = scmp.eq.s32.totalorder %s9610_s24, 6  ;;  %s9548_s21 = smov [#allocation12]  }
 0x5f0   : > { %s7866_s26 = sshll.u32 %s9548_s21, 4  ;;  %s7867_s26 = int_to_ptr.vmem [resolvable:$true] %s7866_s26 }
 0x5f1   : > { %s9443_s27 = scalar_lea.vmem %s7867_s26, 256  ;;  %p9450_p0 = scmp.lt.s32.totalorder %s7867_s26, %s7867_s26 }
 0x5f2   : > { %p9444_p4 = scmp.ne.s32.totalorder %s7867_s26, %s9443_s27  ;;  %p9451_p1 = scmp.lt.s32.totalorder %s9443_s27, %s9443_s27 }
 0x5f4   : > { %p9445_p13 = pnand %p9444_p4, %p9118_p9  ;;  %p9452_p5 = por %p9451_p1, %p9450_p0 }
 0x5f6   : > { %p9446_p10 = pneg %p9445_p13 }
 0x5f8   : > { %p9453_p11 = pnand %p9452_p5, %p9446_p10 }
 0x5fa   : > { %9456 = shalt.err (!%p9453_p11)
}
 0x5fb   : > { %s9549_s25 = smov 128   ;;  %s9550_s11 = smov 8  }
 0x5fc   : > { %9091 = dma.vmem_to_hbm [thread:$0]  (%p9118_p9), %s7867_s26, 256, %s10825_s5, [#allocation5], %s9549_s25, %s9549_s25, %s9550_s11  }
 0x5fd   : > { %9508 = dma.done.wait (%p9118_p9), [#allocation5], 256  }
 0x5fe   : > { %9510 = vsyncadd (%p9118_p9), [#allocation5], 4294967040 }
 0x5ff PF: > { %s23_s23 = sadd.s32 1, %s9533_s23   ;;  %s10849_s16 = smov %s9685_s18 }
 0x600   : > { %p20_p12 = scmp.ge.s32.totalorder %s23_s23, 9   ;;  %s10850_s9 = sld [smem:[#allocation18_spill]] }
 0x601   : > { %s10851_s18 = smov %s9517_s19  ;;  %s10852_s19 = smov %s9521_s20 }
 0x602   : > { %s10853_s20 = smov %s10849_s16  ;;  %s10854_s21 = smov %s9529_s22 }
 0x603   :  { %22 = sbr.rel (!%p20_p12) target bundleno = 13 (0xd), region = 111 }
 0x606   : > { %s10855_s22 = smov %s10850_s9 }
 0x608   :  { %7882 = vsyncpa [#allocation4], 1 }
 0x609   :  { %7884 = vsyncpa [#allocation4 + $0x1], 1 }
 0x60a   :  { %7885 = vsyncpa [#allocation7], 1 }
 0x60b   :  { %7887 = vsyncpa [#allocation7 + $0x1], 1 }
 0x60c   :  { %7888 = vsyncpa [#allocation10], 1 }
 0x60d   :  { %7889 = vsyncpa [#allocation5], 1 }
 0x60e   :  { %7891 = vsyncpa [#allocation5 + $0x1], 1 }

// kernel: tpu_custom_call.1
= control target key start
LH: loop header
LB: loop body
LE: loop exit
PB: predicated region body
PF: predicated region fallthrough
CT: control target
= control target key end

     0   :  { %s10820_s0 = inlined_call_operand.hbm [shape: bf16[16,12544], index: 0, kind: input, shape index: {}]   ;;  %s10821_s1 = inlined_call_operand.hbm [shape: bf16[12544,1024], index: 1, kind: input, shape index: {}]   ;;  %s10822_s2 = inlined_call_operand.hbm [shape: f32[1,1024], index: 2, kind: input, shape index: {}]   ;;  %s10823_s3 = inlined_call_operand.hbm [shape: bf16[1024,128], index: 3, kind: input, shape index: {}]   ;;  %s10824_s4 = inlined_call_operand.hbm [shape: f32[1,128], index: 4, kind: input, shape index: {}]   ;;  %s10825_s5 = inlined_call_operand.hbm [shape: f32[16,128], index: 5, kind: output, shape index: {}]  }
   0x1   :  { %10830 = sst [smem:[#allocation19_spill]] %s10820_s0 }
   0x2   :  { %10831 = sst [smem:[#allocation20_spill]] %s10822_s2 }
   0x3   :  { %10832 = sst [smem:[#allocation21_spill]] %s10823_s3 }
   0x4   :  { %10833 = sst [smem:[#allocation22_spill]] %s10824_s4 }
   0x5   :  { %10 = vsyncpa [#allocation4], 0 }
   0x6   :  { %12 = vsyncpa [#allocation4 + $0x1], 0 }
   0x7   :  { %13 = vsyncpa [#allocation7], 0 }
   0x8   :  { %15 = vsyncpa [#allocation7 + $0x1], 0 }
   0x9   :  { %16 = vsyncpa [#allocation10], 0 }
   0xa   :  { %17 = vsyncpa [#allocation5], 0  ;;  %s9581_s18 = smov 0   ;;  %s9583_s19 = smov 0  }
   0xb   :  { %s9585_s20 = smov 0   ;;  %s9587_s21 = smov 0  }
   0xc   :  { %s9589_s22 = smov 0   ;;  %s9591_s23 = smov 0  }
   0xd LB: > { %s9610_s24 = sadd.s32 4294967295, %s9533_s23   ;;  %s44_s25 = sadd.s32 1, %s9521_s20  ;;  %s9533_s23 = sphi %s9591_s23, %s23_s23   ;;  %s9529_s22 = sphi %s9589_s22, %s10855_s22   ;;  %s9525_s21 = sphi %s9587_s21, %s10854_s21   ;;  %s9521_s20 = sphi %s9585_s20, %s10853_s20   ;;  %s9517_s19 = sphi %s9583_s19, %s10852_s19   ;;  %s9513_s18 = sphi %s9581_s18, %s10851_s18  }
   0xe   : > { %p51_p0 = scmp.ne.s32.totalorder %s9521_s20, %s9517_s19  ;;  %p52_p1 = scmp.eq.s32.totalorder %s9533_s23, 0 }
   0xf   : > { %p57_p2 = scmp.ne.s32.totalorder %s9517_s19, %s9513_s18  ;;  %p10826_p3 = scmp.eq.s32.totalorder %s9610_s24, 0 }
  0x10   : > { %p53_p4 = por %p52_p1, %p51_p0  ;;  %p7985_p5 = scmp.ge.s32.totalorder %s9533_s23, 1 }
  0x11   : > { %p9621_p6 = por %p10826_p3, %p57_p2  ;;  %p183_p7 = scmp.lt.s32.totalorder %s9533_s23, 8 }
  0x12   : > { %s9535_s28 = smov [#allocation8]   ;;  %p9114_p10 = scmp.lt.s32.totalorder %s9533_s23, 7 }
  0x13   : > { %s10834_s26 = scalar_select %p9621_p6, 1, 0 }
  0x14   : > { %p9626_p8 = pnand %p7985_p5, %p183_p7  ;;  %s196_s29 = sshll.u32 %s9535_s28, 4  ;;  %s197_s29 = int_to_ptr.vmem [resolvable:$true] %s196_s29 }
  0x15   : > { %p9639_p12 = pnand %p9114_p10, %p53_p4  ;;  %s9536_s7 = smov [#allocation9]  }
  0x16   : > { %s10835_s27 = scalar_select %p9626_p8, 1, 0 }
  0x17   : > { %p9094_p9 = pneg %p9626_p8  ;;  %s206_s8 = sshll.u32 %s9536_s7, 4  ;;  %s207_s8 = int_to_ptr.vmem [resolvable:$true] %s206_s8 }
  0x18   : > { %s9320_s9 = scalar_lea.vmem %s197_s29, 128  ;;  %p9328_p5 = scmp.lt.s32.totalorder %s197_s29, %s197_s29 }
  0x19   : > { %p9635_p11 = pnand %p9094_p9, %p10826_p3  ;;  %p9321_p0 = scmp.ne.s32.totalorder %s197_s29, %s9320_s9 }
  0x1a   : > { %p9329_p7 = scmp.lt.s32.totalorder %s9320_s9, %s9320_s9 }
  0x1b   : > { %p9311_p13 = pneg %p9635_p11 }
  0x1c   : > { %p9330_p9 = por %p9329_p7, %p9328_p5 }
  0x1d   : > { %p9323_p1 = pnand %p9321_p0, %p9311_p13 }
  0x1f   : > { %p9324_p2 = pneg %p9323_p1 }
  0x21   : > { %p9331_p3 = pnand %p9330_p9, %p9324_p2 }
  0x23   : > { %9334 = shalt.err (!%p9331_p3)
}
  0x24   : > { %s10838_s2 = sld [smem:[#allocation20_spill]]  ;;  %s9346_s12 = scalar_lea.vmem %s207_s8, 8192 }
  0x25   : > { %p9347_p4 = scmp.ne.s32.totalorder %s207_s8, %s9346_s12  ;;  %p9354_p1 = scmp.lt.s32.totalorder %s207_s8, %s207_s8 }
  0x26   : > { %p9355_p6 = scmp.lt.s32.totalorder %s9346_s12, %s9346_s12 }
  0x27   : > { %p9349_p10 = pnand %p9347_p4, %p9311_p13 }
  0x28   : > { %p9356_p8 = por %p9355_p6, %p9354_p1 }
  0x29   : > { %p9350_p0 = pneg %p9349_p10 }
  0x2a   : > { %9097 = dma.hbm_to_vmem [thread:$0]  (!%p9635_p11), %s10838_s2, 128, %s197_s29, [#allocation7]  }
  0x2b   : > { %p9357_p5 = pnand %p9356_p8, %p9350_p0 }
  0x2d   : > { %9360 = shalt.err (!%p9357_p5)
}
  0x2e   : > { %s9537_s13 = smov 64   ;;  %s9538_s14 = smov 4  }
  0x2f   : > { %s10839_s3 = sld [smem:[#allocation21_spill]]  ;;  %s9539_s17 = smov [#allocation11]  }
  0x30   : > { %s220_s18 = sshll.u32 %s9539_s17, 4  ;;  %s221_s18 = int_to_ptr.vmem [resolvable:$true] %s220_s18 }
  0x31   : > { %s9372_s28 = scalar_lea.vmem %s221_s18, 16  ;;  %s9379_s29 = scalar_lea.vmem %s221_s18, 32 }
  0x32   : > { %p9373_p3 = scmp.ne.s32.totalorder %s221_s18, %s9372_s28  ;;  %p9380_p8 = scmp.lt.s32.totalorder %s221_s18, %s221_s18 }
  0x33   : > { %p9381_p7 = scmp.lt.s32.totalorder %s9379_s29, %s9372_s28 }
  0x34   : > { %p9375_p2 = pnand %p9373_p3, %p9311_p13 }
  0x35   : > { %9100 = dma.hbm_to_vmem [thread:$0]  (!%p9635_p11), %s10839_s3, 8192, %s207_s8, [#allocation10], %s9537_s13, %s9537_s13, %s9538_s14  }
  0x36   : > { %p9376_p6 = pneg %p9375_p2  ;;  %p9382_p9 = por %p9381_p7, %p9380_p8 }
  0x38   : > { %p9383_p4 = pnand %p9382_p9, %p9376_p6 }
  0x3a   : > { %9386 = shalt.err (!%p9383_p4)
}
  0x3b   : > { %s10840_s4 = sld [smem:[#allocation22_spill]]  ;;  %s32_s8 = sadd.s32 1, %s9529_s22 }
  0x3c   : > { %s9671_s10 = sand.u32 1, %s9521_s20   ;;  %p33_p13 = scmp.ge.s32.totalorder %s32_s8, 7 }
  0x3d   : > { %s9070_s30 = smul.u32 112, %s9671_s10  ;;  %s10842_s0 = sld [smem:[#allocation19_spill]] }
  0x3e   : > { %s10857_s8 = smov (%p33_p13, %s32_s8), 0  ;;  %s8978_s11 = smul.u32 896, %s9529_s22 }
  0x3f   : > { %10841 = sst [smem:[#allocation18_spill]] %s10857_s8  ;;  %s40_s12 = ssub.s32 %s9529_s22, %s10857_s8 }
  0x40   : > { %s235_s13 = scalar_lea.vmem [#allocation3], %s9070_s30  ;;  %p42_p10 = scmp.eq.s32.totalorder %s40_s12, 0 }
  0x41   : > { %9103 = dma.hbm_to_vmem [thread:$0]  (!%p9635_p11), %s10840_s4, 16, %s221_s18, [#allocation10]  }
  0x42   : > { %s245_s14 = sshll.u32 %s235_s13, 4  ;;  %s255_s28 = sand.u32 1, %s9533_s23   ;;  %s246_s14 = int_to_ptr.vmem [resolvable:$true] %s245_s14 }
  0x43   : > { %s244_s17 = scalar_lea.hbm %s10842_s0, %s8978_s11  ;;  %s232_s29 = scalar_lea.sflag [#allocation4], %s9671_s10 }
  0x44   : > { %s9685_s18 = scalar_select %p42_p10, %s9521_s20, %s44_s25  }
  0x45   : > { %p9389_p11 = pneg %p9639_p12  ;;  %s9400_s7 = scalar_lea.vmem %s246_s14, 1792 }
  0x46   : > { %p9401_p0 = scmp.ne.s32.totalorder %s246_s14, %s9400_s7  ;;  %s9540_s9 = smov [#allocation3]  }
  0x47   : > { %s9405_s30 = sshll.u32 %s9540_s9, 4  ;;  %s9406_s30 = int_to_ptr.vmem [resolvable:$false] %s9405_s30 }
  0x48   : > { %p9403_p1 = pnand %p9401_p0, %p9389_p11  ;;  %s9407_s12 = scalar_lea.vmem %s9406_s30, 3584 }
  0x49   : > { %p9408_p3 = scmp.lt.s32.totalorder %s246_s14, %s9406_s30  ;;  %p9409_p2 = scmp.lt.s32.totalorder %s9407_s12, %s9400_s7 }
  0x4a   : > { %p9404_p5 = pneg %p9403_p1 }
  0x4b   : > { %p9410_p6 = por %p9409_p2, %p9408_p3 }
  0x4d   : > { %p9411_p8 = pnand %p9410_p6, %p9404_p5 }
  0x4f   : > { %9414 = shalt.err (!%p9411_p8)
}
  0x50   : > { %s9541_s25 = smov 6272   ;;  %s9542_s11 = smov 896  }
  0x51   : > { %s9543_s13 = smov 56   ;;  %s9071_s15 = smul.u32 7168, %s9671_s10 }
  0x52   : > { %9107 = dma.hbm_to_vmem [thread:$0]  (!%p9639_p12), %s244_s17, 1792, %s246_s14, %s232_s29, %s9541_s25, %s9542_s11, %s9543_s13  }
  0x53   : > { %s8981_s16 = smul.u32 114688, %s9529_s22  ;;  %s259_s30 = scalar_lea.vmem [#allocation6], %s9071_s15 }
  0x54   : > { %s267_s7 = sshll.u32 %s259_s30, 4  ;;  %s256_s12 = scalar_lea.sflag [#allocation7], %s255_s28  ;;  %s268_s7 = int_to_ptr.vmem [resolvable:$true] %s267_s7 }
  0x55   : > { %s266_s2 = scalar_lea.hbm %s10821_s1, %s8981_s16  ;;  %s9428_s3 = scalar_lea.vmem %s268_s7, 114688 }
  0x56   : > { %p9429_p7 = scmp.ne.s32.totalorder %s268_s7, %s9428_s3  ;;  %s9544_s4 = smov [#allocation6]  }
  0x57   : > { %s9433_s8 = sshll.u32 %s9544_s4, 4  ;;  %s9434_s8 = int_to_ptr.vmem [resolvable:$false] %s9433_s8 }
  0x58   : > { %p9431_p9 = pnand %p9429_p7, %p9389_p11  ;;  %s9435_s14 = scalar_lea.vmem %s9434_s8, 229376 }
  0x59   : > { %p9436_p13 = scmp.lt.s32.totalorder %s268_s7, %s9434_s8  ;;  %p9437_p10 = scmp.lt.s32.totalorder %s9435_s14, %s9428_s3 }
  0x5a   : > { %p9432_p4 = pneg %p9431_p9 }
  0x5b   : > { %p9438_p0 = por %p9437_p10, %p9436_p13 }
  0x5d   : > { %p9439_p1 = pnand %p9438_p0, %p9432_p4 }
  0x5f   : > { %9442 = shalt.err (!%p9439_p1)
}
  0x60   : > { %s9545_s0 = smov 512   ;;  %s9546_s10 = smov 32  }
  0x61   : > { %9110 = dma.hbm_to_vmem [thread:$0]  (!%p9639_p12), %s266_s2, 114688, %s268_s7, %s256_s12, %s9545_s0, %s9545_s0, %s9546_s10  }
  0x62   : > { %p10843_p5 = scmp.ne.s32.totalorder %s10835_s27, 0 }
  0x63   : > { %s281_s17 = sand.u32 (!%p10843_p5), 1, %s9517_s19   ;;  %p10844_p11 = scmp.ne.s32.totalorder (!%p10843_p5), %s10834_s26, 0 }
  0x64   : > { %279 = sbr.rel (%p10843_p5) target bundleno = 1535 (0x5ff), region = 40  ;;  %s282_s4 = scalar_lea.sflag (!%p10843_p5), [#allocation4], %s281_s17 }
  0x65   : > { %s9072_s28 = smul.u32 (!%p10843_p5), 112, %s281_s17 }
  0x67   : > { %s9709_s29 = scalar_lea.vmem (!%p10843_p5), [#allocation3], %s9072_s28 }
  0x69   : > { %9492 = dma.done.wait (%p10844_p11), %s282_s4, 1792  }
  0x6a   : > { %9494 = vsyncadd (%p10844_p11), %s282_s4, 4294965504  ;;  %s290_s3 = sand.u32 1, %s9610_s24   ;;  %s9073_s6 = smul.u32 7168, %s281_s17 }
  0x6b   : > { %s291_s2 = scalar_lea.sflag [#allocation7], %s290_s3 }
  0x6c   : > { %s9716_s8 = scalar_lea.vmem [#allocation6], %s9073_s6 }
  0x6d   : > { %9496 = dma.done.wait (%p10844_p11), %s291_s2, 114688  }
  0x6e   : > { %9498 = vsyncadd (%p10844_p11), %s291_s2, 4294852608  ;;  %p10845_p12 = scmp.eq.s32.totalorder %s9610_s24, 0 }
  0x70   : > { %9500 = dma.done.wait (%p10845_p12), [#allocation7], 128   ;;  %p10846_p3 = pmov %p10845_p12 }
  0x72   : > { %9502 = vsyncadd (%p10846_p3), [#allocation7], 4294967168  ;;  %p10847_p2 = pmov %p10846_p3 }
  0x74   : > { %9504 = dma.done.wait (%p10847_p2), [#allocation10], 8208   ;;  %p10848_p6 = pmov %p10847_p2 }
  0x75   : > { %p7997_p8 = scmp.ne.s32.totalorder %s9525_s21, 0 }
  0x76   : > { %9506 = vsyncadd (%p10848_p6), [#allocation10], 4294959088 }
  0x77   : > { %341 = sbr.rel (%p7997_p8) target bundleno = 133 (0x85), region = 64 }
  0x7c   : > { %v9547_v0 = vmov 0.0  }
  0x7d   : > { %342 = vst [vmem:[#allocation2 + $0x30] sm:$0xff] %v9547_v0  ;;  %343 = vst [vmem:[#allocation2] sm:$0xff] %v9547_v0 }
  0x7e   : > { %344 = vst [vmem:[#allocation2 + $0x58] sm:$0xff] %v9547_v0  ;;  %345 = vst [vmem:[#allocation2 + $0x18] sm:$0xff] %v9547_v0 }
  0x7f   : > { %346 = vst [vmem:[#allocation2 + $0x50] sm:$0xff] %v9547_v0  ;;  %347 = vst [vmem:[#allocation2 + $0x68] sm:$0xff] %v9547_v0 }
  0x80   : > { %348 = vst [vmem:[#allocation2 + $0x8] sm:$0xff] %v9547_v0  ;;  %349 = vst [vmem:[#allocation2 + $0x48] sm:$0xff] %v9547_v0 }
  0x81   : > { %350 = vst [vmem:[#allocation2 + $0x40] sm:$0xff] %v9547_v0  ;;  %351 = vst [vmem:[#allocation2 + $0x20] sm:$0xff] %v9547_v0 }
  0x82   : > { %352 = vst [vmem:[#allocation2 + $0x10] sm:$0xff] %v9547_v0  ;;  %353 = vst [vmem:[#allocation2 + $0x38] sm:$0xff] %v9547_v0 }
  0x83   : > { %354 = vst [vmem:[#allocation2 + $0x60] sm:$0xff] %v9547_v0  ;;  %355 = vst [vmem:[#allocation2 + $0x70] sm:$0xff] %v9547_v0 }
  0x84   : > { %356 = vst [vmem:[#allocation2 + $0x78] sm:$0xff] %v9547_v0  ;;  %357 = vst [vmem:[#allocation2 + $0x28] sm:$0xff] %v9547_v0 }
  0x85 PF: > { %v444_v1 = vld [vmem:[%s9716_s8 + $0x1c0] sm:$0xff]  ;;  %p8908_p7 = scmp.ne.s32.totalorder %s9525_s21, 6 }
  0x86   : > { %v448_v2 = vld [vmem:[%s9716_s8 + $0x1e0] sm:$0xff] }
  0x87   : > { %v572_v3 = vld [vmem:[%s9716_s8 + $0x5c0] sm:$0xff]  ;;  %v8069_v4 = vcombine.high %v444_v1, %v448_v2  ;;  %v8068_v6 = vcombine.low %v444_v1, %v448_v2 }
  0x88   : > { %v576_v5 = vld [vmem:[%s9716_s8 + $0x5e0] sm:$0xff] }
  0x89   : > { %v436_v7 = vld [vmem:[%s9716_s8 + $0x180] sm:$0xff]  ;;  %v8197_v9 = vcombine.high %v572_v3, %v576_v5  ;;  %v8196_v10 = vcombine.low %v572_v3, %v576_v5  ;;  %5834 = vmatprep.subr.bf16.mxu0 %v8069_v4 }
  0x8a   : > { %v440_v8 = vld [vmem:[%s9716_s8 + $0x1a0] sm:$0xff]  ;;  %5835 = vmatpush1.bf16.msra.mxu0 %v8068_v6 }
  0x8b   : > { %v8061_v11 = vcombine.high %v436_v7, %v440_v8  ;;  %v564_v12 = vld [vmem:[%s9716_s8 + $0x580] sm:$0xff]  ;;  %5877 = vmatprep.subr.bf16.mxu1 %v8197_v9  ;;  %v8060_v19 = vcombine.low %v436_v7, %v440_v8 }
  0x8c   : > { %v568_v13 = vld [vmem:[%s9716_s8 + $0x5a0] sm:$0xff]  ;;  %5878 = vmatpush1.bf16.msra.mxu1 %v8196_v10 }
  0x8d   : > { %v428_v14 = vld [vmem:[%s9716_s8 + $0x140] sm:$0xff]  ;;  %v8189_v15 = vcombine.high %v564_v12, %v568_v13  ;;  %5836 = vmatprep.subr.bf16.mxu0 %v8061_v11  ;;  %v8188_v20 = vcombine.low %v564_v12, %v568_v13 }
  0x8e   : > { %v432_v16 = vld [vmem:[%s9716_s8 + $0x160] sm:$0xff]  ;;  %5837 = vmatpush1.bf16.msra.mxu0 %v8060_v19 }
  0x8f   : > { %v556_v17 = vld [vmem:[%s9716_s8 + $0x540] sm:$0xff]  ;;  %v8053_v21 = vcombine.high %v428_v14, %v432_v16  ;;  %5879 = vmatprep.subr.bf16.mxu1 %v8189_v15  ;;  %v8052_v27 = vcombine.low %v428_v14, %v432_v16 }
  0x90   : > { %v560_v18 = vld [vmem:[%s9716_s8 + $0x560] sm:$0xff]  ;;  %5880 = vmatpush1.bf16.msra.mxu1 %v8188_v20 }
  0x91   : > { %v8181_v22 = vcombine.high %v556_v17, %v560_v18  ;;  %v420_v23 = vld [vmem:[%s9716_s8 + $0x100] sm:$0xff]  ;;  %5838 = vmatprep.subr.bf16.mxu0 %v8053_v21  ;;  %v8180_v28 = vcombine.low %v556_v17, %v560_v18 }
  0x92   : > { %v424_v24 = vld [vmem:[%s9716_s8 + $0x120] sm:$0xff]  ;;  %5839 = vmatpush1.bf16.msra.mxu0 %v8052_v27 }
  0x93   : > { %v548_v25 = vld [vmem:[%s9716_s8 + $0x500] sm:$0xff]  ;;  %v8045_v29 = vcombine.high %v420_v23, %v424_v24  ;;  %5881 = vmatprep.subr.bf16.mxu1 %v8181_v22  ;;  %v8044_v35 = vcombine.low %v420_v23, %v424_v24 }
  0x94   : > { %v552_v26 = vld [vmem:[%s9716_s8 + $0x520] sm:$0xff]  ;;  %5882 = vmatpush1.bf16.msra.mxu1 %v8180_v28 }
  0x95   : > { %v8173_v30 = vcombine.high %v548_v25, %v552_v26  ;;  %v412_v31 = vld [vmem:[%s9716_s8 + $0xc0] sm:$0xff]  ;;  %5840 = vmatprep.subr.bf16.mxu0 %v8045_v29  ;;  %v8172_v36 = vcombine.low %v548_v25, %v552_v26 }
  0x96   : > { %v416_v32 = vld [vmem:[%s9716_s8 + $0xe0] sm:$0xff]  ;;  %5841 = vmatpush1.bf16.msra.mxu0 %v8044_v35 }
  0x97   : > { %v540_v33 = vld [vmem:[%s9716_s8 + $0x4c0] sm:$0xff]  ;;  %v8037_v37 = vcombine.high %v412_v31, %v416_v32  ;;  %5883 = vmatprep.subr.bf16.mxu1 %v8173_v30  ;;  %v8036_v43 = vcombine.low %v412_v31, %v416_v32 }
  0x98   : > { %v544_v34 = vld [vmem:[%s9716_s8 + $0x4e0] sm:$0xff]  ;;  %5884 = vmatpush1.bf16.msra.mxu1 %v8172_v36 }
  0x99   : > { %v8165_v38 = vcombine.high %v540_v33, %v544_v34  ;;  %v404_v39 = vld [vmem:[%s9716_s8 + $0x80] sm:$0xff]  ;;  %5842 = vmatprep.subr.bf16.mxu0 %v8037_v37  ;;  %v8164_v44 = vcombine.low %v540_v33, %v544_v34 }
  0x9a   : > { %v408_v40 = vld [vmem:[%s9716_s8 + $0xa0] sm:$0xff]  ;;  %5843 = vmatpush1.bf16.msra.mxu0 %v8036_v43 }
  0x9b   : > { %v532_v41 = vld [vmem:[%s9716_s8 + $0x480] sm:$0xff]  ;;  %v8029_v45 = vcombine.high %v404_v39, %v408_v40  ;;  %5885 = vmatprep.subr.bf16.mxu1 %v8165_v38  ;;  %v8028_v51 = vcombine.low %v404_v39, %v408_v40 }
  0x9c   : > { %v536_v42 = vld [vmem:[%s9716_s8 + $0x4a0] sm:$0xff]  ;;  %5886 = vmatpush1.bf16.msra.mxu1 %v8164_v44 }
  0x9d   : > { %v8157_v46 = vcombine.high %v532_v41, %v536_v42  ;;  %v396_v47 = vld [vmem:[%s9716_s8 + $0x40] sm:$0xff]  ;;  %5844 = vmatprep.subr.bf16.mxu0 %v8029_v45  ;;  %v8156_v53 = vcombine.low %v532_v41, %v536_v42 }
  0x9e   : > { %v400_v48 = vld [vmem:[%s9716_s8 + $0x60] sm:$0xff]  ;;  %5845 = vmatpush1.bf16.msra.mxu0 %v8028_v51 }
  0x9f   : > { %v524_v49 = vld [vmem:[%s9716_s8 + $0x440] sm:$0xff]  ;;  %v8021_v54 = vcombine.high %v396_v47, %v400_v48  ;;  %5887 = vmatprep.subr.bf16.mxu1 %v8157_v46  ;;  %v8020_v61 = vcombine.low %v396_v47, %v400_v48 }
  0xa0   : > { %v528_v50 = vld [vmem:[%s9716_s8 + $0x460] sm:$0xff]  ;;  %5888 = vmatpush1.bf16.msra.mxu1 %v8156_v53 }
  0xa1   : > { %v388_v52 = vld [vmem:[%s9716_s8] sm:$0xff]  ;;  %v8149_v56 = vcombine.high %v524_v49, %v528_v50  ;;  %5846 = vmatprep.subr.bf16.mxu0 %v8021_v54  ;;  %v8148_v62 = vcombine.low %v524_v49, %v528_v50 }
  0xa2   : > { %v392_v55 = vld [vmem:[%s9716_s8 + $0x20] sm:$0xff]  ;;  %5847 = vmatpush1.bf16.msra.mxu0 %v8020_v61 }
  0xa3   : > { %v9182_v57 = vld [vmem:[%s9709_s29 + $0x4] ss:$56 sps:$4 sm:$0xff]   ;;  %v8013_v63 = vcombine.high %v388_v52, %v392_v55  ;;  %5889 = vmatprep.subr.bf16.mxu1 %v8149_v56  ;;  %v8012_v5 = vcombine.low %v388_v52, %v392_v55 }
  0xa4   : > { %v516_v58 = vld [vmem:[%s9716_s8 + $0x400] sm:$0xff]  ;;  %5866 = vmatprep.mubr.bf16.mxu0 %v9182_v57  ;;  %5890 = vmatpush1.bf16.msra.mxu1 %v8148_v62 }
  0xa5   : > { %v520_v59 = vld [vmem:[%s9716_s8 + $0x420] sm:$0xff]  ;;  %5848 = vmatprep.subr.bf16.mxu0 %v8013_v63 }
  0xa6   : > { %v9184_v60 = vld [vmem:[%s9709_s29 + $0xc] ss:$56 sps:$4 sm:$0xff]   ;;  %v8141_v0 = vcombine.high %v516_v58, %v520_v59  ;;  %v8140_v6 = vcombine.low %v516_v58, %v520_v59  ;;  %5849 = vmatpush1.bf16.msra.mxu0 %v8012_v5 }
  0xa7   : > { %v508_v1 = vld [vmem:[%s9716_s8 + $0x3c0] sm:$0xff]  ;;  %5909 = vmatprep.mubr.bf16.mxu1 %v9184_v60 }
  0xa8   : > { %v512_v2 = vld [vmem:[%s9716_s8 + $0x3e0] sm:$0xff]  ;;  %5891 = vmatprep.subr.bf16.mxu1 %v8141_v0 }
  0xa9   : > { %v636_v3 = vld [vmem:[%s9716_s8 + $0x7c0] sm:$0xff]  ;;  %v8133_v7 = vcombine.high %v508_v1, %v512_v2  ;;  %v8132_v13 = vcombine.low %v508_v1, %v512_v2  ;;  %5892 = vmatpush1.bf16.msra.mxu1 %v8140_v6 }
  0xaa   : > { %v640_v4 = vld [vmem:[%s9716_s8 + $0x7e0] sm:$0xff] }
  0xab   : > { %v8261_v8 = vcombine.high %v636_v3, %v640_v4  ;;  %v500_v9 = vld [vmem:[%s9716_s8 + $0x380] sm:$0xff]  ;;  %5850 = vmatprep.subr.bf16.mxu0 %v8133_v7  ;;  %v8260_v14 = vcombine.low %v636_v3, %v640_v4 }
  0xac   : > { %v504_v10 = vld [vmem:[%s9716_s8 + $0x3a0] sm:$0xff]  ;;  %5851 = vmatpush2.bf16.msra.mxu0 %v8132_v13 }
  0xad   : > { %v628_v11 = vld [vmem:[%s9716_s8 + $0x780] sm:$0xff]  ;;  %v8125_v15 = vcombine.high %v500_v9, %v504_v10  ;;  %5893 = vmatprep.subr.bf16.mxu1 %v8261_v8  ;;  %v8124_v21 = vcombine.low %v500_v9, %v504_v10 }
  0xae   : > { %v632_v12 = vld [vmem:[%s9716_s8 + $0x7a0] sm:$0xff]  ;;  %5894 = vmatpush2.bf16.msra.mxu1 %v8260_v14 }
  0xaf   : > { %v8253_v16 = vcombine.high %v628_v11, %v632_v12  ;;  %v492_v17 = vld [vmem:[%s9716_s8 + $0x340] sm:$0xff]  ;;  %5852 = vmatprep.subr.bf16.mxu0 %v8125_v15  ;;  %v8252_v22 = vcombine.low %v628_v11, %v632_v12 }
  0xb0   : > { %v496_v18 = vld [vmem:[%s9716_s8 + $0x360] sm:$0xff]  ;;  %5853 = vmatpush2.bf16.msra.mxu0 %v8124_v21 }
  0xb1   : > { %v620_v19 = vld [vmem:[%s9716_s8 + $0x740] sm:$0xff]  ;;  %v8117_v23 = vcombine.high %v492_v17, %v496_v18  ;;  %5895 = vmatprep.subr.bf16.mxu1 %v8253_v16  ;;  %v8116_v29 = vcombine.low %v492_v17, %v496_v18 }
  0xb2   : > { %v624_v20 = vld [vmem:[%s9716_s8 + $0x760] sm:$0xff]  ;;  %5896 = vmatpush2.bf16.msra.mxu1 %v8252_v22 }
  0xb3   : > { %v8245_v24 = vcombine.high %v620_v19, %v624_v20  ;;  %v484_v25 = vld [vmem:[%s9716_s8 + $0x300] sm:$0xff]  ;;  %5854 = vmatprep.subr.bf16.mxu0 %v8117_v23  ;;  %v8244_v30 = vcombine.low %v620_v19, %v624_v20 }
  0xb4   : > { %v488_v26 = vld [vmem:[%s9716_s8 + $0x320] sm:$0xff]  ;;  %5855 = vmatpush2.bf16.msra.mxu0 %v8116_v29 }
  0xb5   : > { %v612_v27 = vld [vmem:[%s9716_s8 + $0x700] sm:$0xff]  ;;  %v8109_v31 = vcombine.high %v484_v25, %v488_v26  ;;  %5897 = vmatprep.subr.bf16.mxu1 %v8245_v24  ;;  %v8108_v37 = vcombine.low %v484_v25, %v488_v26 }
  0xb6   : > { %v616_v28 = vld [vmem:[%s9716_s8 + $0x720] sm:$0xff]  ;;  %5898 = vmatpush2.bf16.msra.mxu1 %v8244_v30 }
  0xb7   : > { %v8237_v32 = vcombine.high %v612_v27, %v616_v28  ;;  %v476_v33 = vld [vmem:[%s9716_s8 + $0x2c0] sm:$0xff]  ;;  %5856 = vmatprep.subr.bf16.mxu0 %v8109_v31  ;;  %v8236_v38 = vcombine.low %v612_v27, %v616_v28 }
  0xb8   : > { %v480_v34 = vld [vmem:[%s9716_s8 + $0x2e0] sm:$0xff]  ;;  %5857 = vmatpush2.bf16.msra.mxu0 %v8108_v37 }
  0xb9   : > { %v604_v35 = vld [vmem:[%s9716_s8 + $0x6c0] sm:$0xff]  ;;  %v8101_v39 = vcombine.high %v476_v33, %v480_v34  ;;  %5899 = vmatprep.subr.bf16.mxu1 %v8237_v32  ;;  %v8100_v45 = vcombine.low %v476_v33, %v480_v34 }
  0xba   : > { %v608_v36 = vld [vmem:[%s9716_s8 + $0x6e0] sm:$0xff]  ;;  %5900 = vmatpush2.bf16.msra.mxu1 %v8236_v38 }
  0xbb   : > { %v468_v40 = vld [vmem:[%s9716_s8 + $0x280] sm:$0xff]  ;;  %v8229_v41 = vcombine.high %v604_v35, %v608_v36  ;;  %5858 = vmatprep.subr.bf16.mxu0 %v8101_v39  ;;  %v8228_v46 = vcombine.low %v604_v35, %v608_v36 }
  0xbc   : > { %v472_v42 = vld [vmem:[%s9716_s8 + $0x2a0] sm:$0xff]  ;;  %5859 = vmatpush2.bf16.msra.mxu0 %v8100_v45 }
  0xbd   : > { %v596_v43 = vld [vmem:[%s9716_s8 + $0x680] sm:$0xff]  ;;  %v8093_v47 = vcombine.high %v468_v40, %v472_v42  ;;  %5901 = vmatprep.subr.bf16.mxu1 %v8229_v41  ;;  %v8092_v53 = vcombine.low %v468_v40, %v472_v42 }
  0xbe   : > { %v600_v44 = vld [vmem:[%s9716_s8 + $0x6a0] sm:$0xff]  ;;  %5902 = vmatpush2.bf16.msra.mxu1 %v8228_v46 }
  0xbf   : > { %v8221_v48 = vcombine.high %v596_v43, %v600_v44  ;;  %v460_v49 = vld [vmem:[%s9716_s8 + $0x240] sm:$0xff]  ;;  %5860 = vmatprep.subr.bf16.mxu0 %v8093_v47  ;;  %v8220_v54 = vcombine.low %v596_v43, %v600_v44 }
  0xc0   : > { %v464_v50 = vld [vmem:[%s9716_s8 + $0x260] sm:$0xff]  ;;  %5861 = vmatpush2.bf16.msra.mxu0 %v8092_v53 }
  0xc1   : > { %v588_v51 = vld [vmem:[%s9716_s8 + $0x640] sm:$0xff]  ;;  %v8085_v55 = vcombine.high %v460_v49, %v464_v50  ;;  %5903 = vmatprep.subr.bf16.mxu1 %v8221_v48  ;;  %v8084_v61 = vcombine.low %v460_v49, %v464_v50 }
  0xc2   : > { %v592_v52 = vld [vmem:[%s9716_s8 + $0x660] sm:$0xff]  ;;  %5904 = vmatpush2.bf16.msra.mxu1 %v8220_v54 }
  0xc3   : > { %v8213_v56 = vcombine.high %v588_v51, %v592_v52  ;;  %v452_v57 = vld [vmem:[%s9716_s8 + $0x200] sm:$0xff]  ;;  %5862 = vmatprep.subr.bf16.mxu0 %v8085_v55  ;;  %v8212_v62 = vcombine.low %v588_v51, %v592_v52 }
  0xc4   : > { %v456_v58 = vld [vmem:[%s9716_s8 + $0x220] sm:$0xff]  ;;  %5863 = vmatpush2.bf16.msra.mxu0 %v8084_v61 }
  0xc5   : > { %v580_v59 = vld [vmem:[%s9716_s8 + $0x600] sm:$0xff]  ;;  %v8077_v63 = vcombine.high %v452_v57, %v456_v58  ;;  %5905 = vmatprep.subr.bf16.mxu1 %v8213_v56  ;;  %v8076_v5 = vcombine.low %v452_v57, %v456_v58 }
  0xc6   : > { %v584_v60 = vld [vmem:[%s9716_s8 + $0x620] sm:$0xff]  ;;  %5906 = vmatpush2.bf16.msra.mxu1 %v8212_v62 }
  0xc7   : > { %v8205_v0 = vcombine.high %v580_v59, %v584_v60  ;;  %v700_v1 = vld [vmem:[%s9716_s8 + $0x9c0] sm:$0xff]  ;;  %5864 = vmatprep.subr.bf16.mxu0 %v8077_v63  ;;  %v8204_v6 = vcombine.low %v580_v59, %v584_v60 }
  0xc8   : > { %v704_v2 = vld [vmem:[%s9716_s8 + $0x9e0] sm:$0xff]  ;;  %5865 = vmatpush2.bf16.msra.mxu0 %v8076_v5 }
  0xc9   : > { %v828_v3 = vld [vmem:[%s9716_s8 + $0xdc0] sm:$0xff]  ;;  %v8325_v7 = vcombine.high %v700_v1, %v704_v2  ;;  %5907 = vmatprep.subr.bf16.mxu1 %v8205_v0  ;;  %v8324_v15 = vcombine.low %v700_v1, %v704_v2 }
  0xca   : > { %v832_v4 = vld [vmem:[%s9716_s8 + $0xde0] sm:$0xff]  ;;  %5908 = vmatpush2.bf16.msra.mxu1 %v8204_v6 }
  0xcb   : > { %v8453_v8 = vcombine.high %v828_v3, %v832_v4  ;;  %v692_v9 = vld [vmem:[%s9716_s8 + $0x980] sm:$0xff]  ;;  %5920 = vmatprep.subr.bf16.mxu0 %v8325_v7  ;;  %v8452_v16 = vcombine.low %v828_v3, %v832_v4 }
  0xcc   : > { %v696_v10 = vld [vmem:[%s9716_s8 + $0x9a0] sm:$0xff] }
  0xcd   : > { %v9186_v11 = vld [vmem:[%s9709_s29] ss:$56 sps:$4 sm:$0xff]   ;;  %v8317_v17 = vcombine.high %v692_v9, %v696_v10  ;;  %5963 = vmatprep.subr.bf16.mxu1 %v8453_v8  ;;  %v9188_v21 = vld [vmem:[%s9709_s29 + $0x14] ss:$56 sps:$4 sm:$0xff]   ;;  %v8316_v25 = vcombine.low %v692_v9, %v696_v10 }
  0xce   : > { %v820_v12 = vld [vmem:[%s9716_s8 + $0xd80] sm:$0xff]  ;;  %5867 = vmatmul.mubr.bf16.vlgmr.msra.gmra.mxu0 %v9186_v11 }
  0xcf   : > { %v824_v13 = vld [vmem:[%s9716_s8 + $0xda0] sm:$0xff]  ;;  %5921 = vmatpush1.bf16.msra.mxu0 %v8324_v15  ;;  %5952 = vmatprep.mubr.bf16.mxu0 %v9188_v21 }
  0xd0   : > { %v9187_v14 = vld [vmem:[%s9709_s29 + $0x8] ss:$56 sps:$4 sm:$0xff]   ;;  %v8445_v18 = vcombine.high %v820_v12, %v824_v13  ;;  %v9190_v24 = vld [vmem:[%s9709_s29 + $0x1c] ss:$56 sps:$4 sm:$0xff]   ;;  %5922 = vmatprep.subr.bf16.mxu0 %v8317_v17  ;;  %v8444_v26 = vcombine.low %v820_v12, %v824_v13 }
  0xd1   : > { %v684_v19 = vld [vmem:[%s9716_s8 + $0x940] sm:$0xff]  ;;  %5910 = vmatmul.mubr.bf16.vlgmr.msra.gmra.mxu1 %v9187_v14 }
  0xd2   : > { %v688_v20 = vld [vmem:[%s9716_s8 + $0x960] sm:$0xff]  ;;  %5964 = vmatpush1.bf16.msra.mxu1 %v8452_v16  ;;  %5995 = vmatprep.mubr.bf16.mxu1 %v9190_v24 }
  0xd3   : > { %v812_v22 = vld [vmem:[%s9716_s8 + $0xd40] sm:$0xff]  ;;  %v8309_v27 = vcombine.high %v684_v19, %v688_v20  ;;  %5965 = vmatprep.subr.bf16.mxu1 %v8445_v18  ;;  %5923 = vmatpush1.bf16.msra.mxu0 %v8316_v25  ;;  %v8308_v33 = vcombine.low %v684_v19, %v688_v20 }
  0xd4   : > { %v816_v23 = vld [vmem:[%s9716_s8 + $0xd60] sm:$0xff] }
  0xd5   : > { %v676_v28 = vld [vmem:[%s9716_s8 + $0x900] sm:$0xff]  ;;  %v8437_v29 = vcombine.high %v812_v22, %v816_v23  ;;  %5924 = vmatprep.subr.bf16.mxu0 %v8309_v27  ;;  %v8436_v34 = vcombine.low %v812_v22, %v816_v23 }
  0xd6   : > { %v680_v30 = vld [vmem:[%s9716_s8 + $0x920] sm:$0xff]  ;;  %5966 = vmatpush1.bf16.msra.mxu1 %v8444_v26 }
  0xd7   : > { %v804_v31 = vld [vmem:[%s9716_s8 + $0xd00] sm:$0xff]  ;;  %v8301_v35 = vcombine.high %v676_v28, %v680_v30  ;;  %5967 = vmatprep.subr.bf16.mxu1 %v8437_v29  ;;  %5925 = vmatpush1.bf16.msra.mxu0 %v8308_v33  ;;  %v8300_v41 = vcombine.low %v676_v28, %v680_v30 }
  0xd8   : > { %v808_v32 = vld [vmem:[%s9716_s8 + $0xd20] sm:$0xff] }
  0xd9   : > { %v8429_v36 = vcombine.high %v804_v31, %v808_v32  ;;  %v668_v37 = vld [vmem:[%s9716_s8 + $0x8c0] sm:$0xff]  ;;  %5926 = vmatprep.subr.bf16.mxu0 %v8301_v35  ;;  %v8428_v42 = vcombine.low %v804_v31, %v808_v32 }
  0xda   : > { %v672_v38 = vld [vmem:[%s9716_s8 + $0x8e0] sm:$0xff]  ;;  %5968 = vmatpush1.bf16.msra.mxu1 %v8436_v34 }
  0xdb   : > { %v796_v39 = vld [vmem:[%s9716_s8 + $0xcc0] sm:$0xff]  ;;  %v8293_v43 = vcombine.high %v668_v37, %v672_v38  ;;  %5969 = vmatprep.subr.bf16.mxu1 %v8429_v36  ;;  %5927 = vmatpush1.bf16.msra.mxu0 %v8300_v41  ;;  %v8292_v49 = vcombine.low %v668_v37, %v672_v38 }
  0xdc   : > { %v800_v40 = vld [vmem:[%s9716_s8 + $0xce0] sm:$0xff] }
  0xdd   : > { %v8421_v44 = vcombine.high %v796_v39, %v800_v40  ;;  %v660_v45 = vld [vmem:[%s9716_s8 + $0x880] sm:$0xff]  ;;  %5928 = vmatprep.subr.bf16.mxu0 %v8293_v43  ;;  %v8420_v50 = vcombine.low %v796_v39, %v800_v40 }
  0xde   : > { %v664_v46 = vld [vmem:[%s9716_s8 + $0x8a0] sm:$0xff]  ;;  %5970 = vmatpush1.bf16.msra.mxu1 %v8428_v42 }
  0xdf   : > { %v788_v47 = vld [vmem:[%s9716_s8 + $0xc80] sm:$0xff]  ;;  %v8285_v51 = vcombine.high %v660_v45, %v664_v46  ;;  %5971 = vmatprep.subr.bf16.mxu1 %v8421_v44  ;;  %5929 = vmatpush1.bf16.msra.mxu0 %v8292_v49  ;;  %v8284_v57 = vcombine.low %v660_v45, %v664_v46 }
  0xe0   : > { %v792_v48 = vld [vmem:[%s9716_s8 + $0xca0] sm:$0xff] }
  0xe1   : > { %v8413_v52 = vcombine.high %v788_v47, %v792_v48  ;;  %v652_v53 = vld [vmem:[%s9716_s8 + $0x840] sm:$0xff]  ;;  %5930 = vmatprep.subr.bf16.mxu0 %v8285_v51  ;;  %v8412_v58 = vcombine.low %v788_v47, %v792_v48 }
  0xe2   : > { %v656_v54 = vld [vmem:[%s9716_s8 + $0x860] sm:$0xff]  ;;  %5972 = vmatpush1.bf16.msra.mxu1 %v8420_v50 }
  0xe3   : > { %v780_v55 = vld [vmem:[%s9716_s8 + $0xc40] sm:$0xff]  ;;  %v8277_v59 = vcombine.high %v652_v53, %v656_v54  ;;  %5973 = vmatprep.subr.bf16.mxu1 %v8413_v52  ;;  %5931 = vmatpush1.bf16.msra.mxu0 %v8284_v57  ;;  %v8276_v1 = vcombine.low %v652_v53, %v656_v54 }
  0xe4   : > { %v784_v56 = vld [vmem:[%s9716_s8 + $0xc60] sm:$0xff] }
  0xe5   : > { %v8405_v60 = vcombine.high %v780_v55, %v784_v56  ;;  %v644_v61 = vld [vmem:[%s9716_s8 + $0x800] sm:$0xff]  ;;  %5932 = vmatprep.subr.bf16.mxu0 %v8277_v59  ;;  %v8404_v2 = vcombine.low %v780_v55, %v784_v56 }
  0xe6   : > { %v648_v62 = vld [vmem:[%s9716_s8 + $0x820] sm:$0xff]  ;;  %5974 = vmatpush1.bf16.msra.mxu1 %v8412_v58 }
  0xe7   : > { %v772_v63 = vld [vmem:[%s9716_s8 + $0xc00] sm:$0xff]  ;;  %v8269_v3 = vcombine.high %v644_v61, %v648_v62  ;;  %5975 = vmatprep.subr.bf16.mxu1 %v8405_v60  ;;  %5933 = vmatpush1.bf16.msra.mxu0 %v8276_v1  ;;  %v8268_v9 = vcombine.low %v644_v61, %v648_v62 }
  0xe8   : > { %v776_v0 = vld [vmem:[%s9716_s8 + $0xc20] sm:$0xff] }
  0xe9   : > { %v8397_v4 = vcombine.high %v772_v63, %v776_v0  ;;  %v764_v5 = vld [vmem:[%s9716_s8 + $0xbc0] sm:$0xff]  ;;  %5934 = vmatprep.subr.bf16.mxu0 %v8269_v3  ;;  %v8396_v10 = vcombine.low %v772_v63, %v776_v0 }
  0xea   : > { %v768_v6 = vld [vmem:[%s9716_s8 + $0xbe0] sm:$0xff]  ;;  %5976 = vmatpush1.bf16.msra.mxu1 %v8404_v2 }
  0xeb   : > { %v892_v7 = vld [vmem:[%s9716_s8 + $0xfc0] sm:$0xff]  ;;  %v8389_v11 = vcombine.high %v764_v5, %v768_v6  ;;  %5977 = vmatprep.subr.bf16.mxu1 %v8397_v4  ;;  %5935 = vmatpush1.bf16.msra.mxu0 %v8268_v9  ;;  %v8388_v17 = vcombine.low %v764_v5, %v768_v6 }
  0xec   : > { %v896_v8 = vld [vmem:[%s9716_s8 + $0xfe0] sm:$0xff] }
  0xed   : > { %v8517_v12 = vcombine.high %v892_v7, %v896_v8  ;;  %v756_v13 = vld [vmem:[%s9716_s8 + $0xb80] sm:$0xff]  ;;  %5936 = vmatprep.subr.bf16.mxu0 %v8389_v11  ;;  %v8516_v18 = vcombine.low %v892_v7, %v896_v8 }
  0xee   : > { %v760_v14 = vld [vmem:[%s9716_s8 + $0xba0] sm:$0xff]  ;;  %5978 = vmatpush1.bf16.msra.mxu1 %v8396_v10 }
  0xef   : > { %v884_v15 = vld [vmem:[%s9716_s8 + $0xf80] sm:$0xff]  ;;  %v8381_v19 = vcombine.high %v756_v13, %v760_v14  ;;  %5979 = vmatprep.subr.bf16.mxu1 %v8517_v12  ;;  %5937 = vmatpush2.bf16.msra.mxu0 %v8388_v17  ;;  %v8380_v25 = vcombine.low %v756_v13, %v760_v14 }
  0xf0   : > { %v888_v16 = vld [vmem:[%s9716_s8 + $0xfa0] sm:$0xff] }
  0xf1   : > { %v8509_v20 = vcombine.high %v884_v15, %v888_v16  ;;  %v748_v21 = vld [vmem:[%s9716_s8 + $0xb40] sm:$0xff]  ;;  %5938 = vmatprep.subr.bf16.mxu0 %v8381_v19  ;;  %v8508_v26 = vcombine.low %v884_v15, %v888_v16 }
  0xf2   : > { %v752_v22 = vld [vmem:[%s9716_s8 + $0xb60] sm:$0xff]  ;;  %5980 = vmatpush2.bf16.msra.mxu1 %v8516_v18 }
  0xf3   : > { %v876_v23 = vld [vmem:[%s9716_s8 + $0xf40] sm:$0xff]  ;;  %v8373_v27 = vcombine.high %v748_v21, %v752_v22  ;;  %5981 = vmatprep.subr.bf16.mxu1 %v8509_v20  ;;  %5939 = vmatpush2.bf16.msra.mxu0 %v8380_v25  ;;  %v8372_v33 = vcombine.low %v748_v21, %v752_v22 }
  0xf4   : > { %v880_v24 = vld [vmem:[%s9716_s8 + $0xf60] sm:$0xff] }
  0xf5   : > { %v8501_v28 = vcombine.high %v876_v23, %v880_v24  ;;  %v740_v29 = vld [vmem:[%s9716_s8 + $0xb00] sm:$0xff]  ;;  %5940 = vmatprep.subr.bf16.mxu0 %v8373_v27  ;;  %v8500_v34 = vcombine.low %v876_v23, %v880_v24 }
  0xf6   : > { %v744_v30 = vld [vmem:[%s9716_s8 + $0xb20] sm:$0xff]  ;;  %5982 = vmatpush2.bf16.msra.mxu1 %v8508_v26 }
  0xf7   : > { %v868_v31 = vld [vmem:[%s9716_s8 + $0xf00] sm:$0xff]  ;;  %v8365_v35 = vcombine.high %v740_v29, %v744_v30  ;;  %5983 = vmatprep.subr.bf16.mxu1 %v8501_v28  ;;  %5941 = vmatpush2.bf16.msra.mxu0 %v8372_v33  ;;  %v8364_v41 = vcombine.low %v740_v29, %v744_v30 }
  0xf8   : > { %v872_v32 = vld [vmem:[%s9716_s8 + $0xf20] sm:$0xff] }
  0xf9   : > { %v8493_v36 = vcombine.high %v868_v31, %v872_v32  ;;  %v732_v37 = vld [vmem:[%s9716_s8 + $0xac0] sm:$0xff]  ;;  %5942 = vmatprep.subr.bf16.mxu0 %v8365_v35  ;;  %v8492_v42 = vcombine.low %v868_v31, %v872_v32 }
  0xfa   : > { %v736_v38 = vld [vmem:[%s9716_s8 + $0xae0] sm:$0xff]  ;;  %5984 = vmatpush2.bf16.msra.mxu1 %v8500_v34 }
  0xfb   : > { %v860_v39 = vld [vmem:[%s9716_s8 + $0xec0] sm:$0xff]  ;;  %v8357_v43 = vcombine.high %v732_v37, %v736_v38  ;;  %5985 = vmatprep.subr.bf16.mxu1 %v8493_v36  ;;  %5943 = vmatpush2.bf16.msra.mxu0 %v8364_v41  ;;  %v8356_v49 = vcombine.low %v732_v37, %v736_v38 }
  0xfc   : > { %v864_v40 = vld [vmem:[%s9716_s8 + $0xee0] sm:$0xff] }
  0xfd   : > { %v8485_v44 = vcombine.high %v860_v39, %v864_v40  ;;  %v724_v45 = vld [vmem:[%s9716_s8 + $0xa80] sm:$0xff]  ;;  %5944 = vmatprep.subr.bf16.mxu0 %v8357_v43  ;;  %v8484_v50 = vcombine.low %v860_v39, %v864_v40 }
  0xfe   : > { %v728_v46 = vld [vmem:[%s9716_s8 + $0xaa0] sm:$0xff]  ;;  %5986 = vmatpush2.bf16.msra.mxu1 %v8492_v42 }
  0xff   : > { %v852_v47 = vld [vmem:[%s9716_s8 + $0xe80] sm:$0xff]  ;;  %v8349_v51 = vcombine.high %v724_v45, %v728_v46  ;;  %5987 = vmatprep.subr.bf16.mxu1 %v8485_v44  ;;  %5945 = vmatpush2.bf16.msra.mxu0 %v8356_v49  ;;  %v8348_v57 = vcombine.low %v724_v45, %v728_v46 }
 0x100   : > { %v856_v48 = vld [vmem:[%s9716_s8 + $0xea0] sm:$0xff] }
 0x101   : > { %v8477_v52 = vcombine.high %v852_v47, %v856_v48  ;;  %v716_v53 = vld [vmem:[%s9716_s8 + $0xa40] sm:$0xff]  ;;  %5946 = vmatprep.subr.bf16.mxu0 %v8349_v51  ;;  %v8476_v58 = vcombine.low %v852_v47, %v856_v48 }
 0x102   : > { %v720_v54 = vld [vmem:[%s9716_s8 + $0xa60] sm:$0xff]  ;;  %5988 = vmatpush2.bf16.msra.mxu1 %v8484_v50 }
 0x103   : > { %v844_v55 = vld [vmem:[%s9716_s8 + $0xe40] sm:$0xff]  ;;  %v8341_v59 = vcombine.high %v716_v53, %v720_v54  ;;  %5989 = vmatprep.subr.bf16.mxu1 %v8477_v52  ;;  %5947 = vmatpush2.bf16.msra.mxu0 %v8348_v57  ;;  %v8340_v1 = vcombine.low %v716_v53, %v720_v54 }
 0x104   : > { %v848_v56 = vld [vmem:[%s9716_s8 + $0xe60] sm:$0xff] }
 0x105   : > { %v8469_v60 = vcombine.high %v844_v55, %v848_v56  ;;  %v708_v61 = vld [vmem:[%s9716_s8 + $0xa00] sm:$0xff]  ;;  %5948 = vmatprep.subr.bf16.mxu0 %v8341_v59  ;;  %v8468_v2 = vcombine.low %v844_v55, %v848_v56 }
 0x106   : > { %v712_v62 = vld [vmem:[%s9716_s8 + $0xa20] sm:$0xff]  ;;  %5990 = vmatpush2.bf16.msra.mxu1 %v8476_v58 }
 0x107   : > { %v836_v63 = vld [vmem:[%s9716_s8 + $0xe00] sm:$0xff]  ;;  %v8333_v3 = vcombine.high %v708_v61, %v712_v62  ;;  %5991 = vmatprep.subr.bf16.mxu1 %v8469_v60  ;;  %5949 = vmatpush2.bf16.msra.mxu0 %v8340_v1  ;;  %v8332_v9 = vcombine.low %v708_v61, %v712_v62 }
 0x108   : > { %v840_v0 = vld [vmem:[%s9716_s8 + $0xe20] sm:$0xff] }
 0x109   : > { %v8461_v4 = vcombine.high %v836_v63, %v840_v0  ;;  %v956_v5 = vld [vmem:[%s9716_s8 + $0x11c0] sm:$0xff]  ;;  %5950 = vmatprep.subr.bf16.mxu0 %v8333_v3  ;;  %v8460_v10 = vcombine.low %v836_v63, %v840_v0 }
 0x10a   : > { %v960_v6 = vld [vmem:[%s9716_s8 + $0x11e0] sm:$0xff]  ;;  %5992 = vmatpush2.bf16.msra.mxu1 %v8468_v2 }
 0x10b   : > { %v1084_v7 = vld [vmem:[%s9716_s8 + $0x15c0] sm:$0xff]  ;;  %v8581_v11 = vcombine.high %v956_v5, %v960_v6  ;;  %5993 = vmatprep.subr.bf16.mxu1 %v8461_v4  ;;  %5951 = vmatpush2.bf16.msra.mxu0 %v8332_v9  ;;  %v8580_v19 = vcombine.low %v956_v5, %v960_v6 }
 0x10c   : > { %v1088_v8 = vld [vmem:[%s9716_s8 + $0x15e0] sm:$0xff] }
 0x10d   : > { %v8709_v12 = vcombine.high %v1084_v7, %v1088_v8  ;;  %v948_v13 = vld [vmem:[%s9716_s8 + $0x1180] sm:$0xff]  ;;  %6006 = vmatprep.subr.bf16.mxu0 %v8581_v11  ;;  %v8708_v20 = vcombine.low %v1084_v7, %v1088_v8 }
 0x10e   : > { %v952_v14 = vld [vmem:[%s9716_s8 + $0x11a0] sm:$0xff]  ;;  %5994 = vmatpush2.bf16.msra.mxu1 %v8460_v10 }
 0x10f   : > { %v9192_v15 = vld [vmem:[%s9709_s29 + $0x10] ss:$56 sps:$4 sm:$0xff]   ;;  %v8573_v21 = vcombine.high %v948_v13, %v952_v14  ;;  %6049 = vmatprep.subr.bf16.mxu1 %v8709_v12  ;;  %v9194_v25 = vld [vmem:[%s9709_s29 + $0x24] ss:$56 sps:$4 sm:$0xff]   ;;  %v8572_v29 = vcombine.low %v948_v13, %v952_v14 }
 0x110   : > { %v1076_v16 = vld [vmem:[%s9716_s8 + $0x1580] sm:$0xff]  ;;  %5953 = vmatmul.mubr.bf16.vlgmr.msra.gmra.mxu0 %v9192_v15 }
 0x111   : > { %v1080_v17 = vld [vmem:[%s9716_s8 + $0x15a0] sm:$0xff]  ;;  %6007 = vmatpush1.bf16.msra.mxu0 %v8580_v19  ;;  %6038 = vmatprep.mubr.bf16.mxu0 %v9194_v25 }
 0x112   : > { %v9193_v18 = vld [vmem:[%s9709_s29 + $0x18] ss:$56 sps:$4 sm:$0xff]   ;;  %v8701_v22 = vcombine.high %v1076_v16, %v1080_v17  ;;  %v9196_v28 = vld [vmem:[%s9709_s29 + $0x2c] ss:$56 sps:$4 sm:$0xff]   ;;  %6008 = vmatprep.subr.bf16.mxu0 %v8573_v21  ;;  %v8700_v30 = vcombine.low %v1076_v16, %v1080_v17 }
 0x113   : > { %v940_v23 = vld [vmem:[%s9716_s8 + $0x1140] sm:$0xff]  ;;  %5996 = vmatmul.mubr.bf16.vlgmr.msra.gmra.mxu1 %v9193_v18 }
 0x114   : > { %v944_v24 = vld [vmem:[%s9716_s8 + $0x1160] sm:$0xff]  ;;  %6050 = vmatpush1.bf16.msra.mxu1 %v8708_v20  ;;  %6081 = vmatprep.mubr.bf16.mxu1 %v9196_v28 }
 0x115   : > { %v1068_v26 = vld [vmem:[%s9716_s8 + $0x1540] sm:$0xff]  ;;  %v8565_v31 = vcombine.high %v940_v23, %v944_v24  ;;  %6051 = vmatprep.subr.bf16.mxu1 %v8701_v22  ;;  %6009 = vmatpush1.bf16.msra.mxu0 %v8572_v29  ;;  %v8564_v37 = vcombine.low %v940_v23, %v944_v24 }
 0x116   : > { %v1072_v27 = vld [vmem:[%s9716_s8 + $0x1560] sm:$0xff] }
 0x117   : > { %v8693_v32 = vcombine.high %v1068_v26, %v1072_v27  ;;  %v932_v33 = vld [vmem:[%s9716_s8 + $0x1100] sm:$0xff]  ;;  %6010 = vmatprep.subr.bf16.mxu0 %v8565_v31  ;;  %v8692_v38 = vcombine.low %v1068_v26, %v1072_v27 }
 0x118   : > { %v936_v34 = vld [vmem:[%s9716_s8 + $0x1120] sm:$0xff]  ;;  %6052 = vmatpush1.bf16.msra.mxu1 %v8700_v30 }
 0x119   : > { %v1060_v35 = vld [vmem:[%s9716_s8 + $0x1500] sm:$0xff]  ;;  %v8557_v39 = vcombine.high %v932_v33, %v936_v34  ;;  %6053 = vmatprep.subr.bf16.mxu1 %v8693_v32  ;;  %6011 = vmatpush1.bf16.msra.mxu0 %v8564_v37  ;;  %v8556_v45 = vcombine.low %v932_v33, %v936_v34 }
 0x11a   : > { %v1064_v36 = vld [vmem:[%s9716_s8 + $0x1520] sm:$0xff] }
 0x11b   : > { %v8685_v40 = vcombine.high %v1060_v35, %v1064_v36  ;;  %v924_v41 = vld [vmem:[%s9716_s8 + $0x10c0] sm:$0xff]  ;;  %6012 = vmatprep.subr.bf16.mxu0 %v8557_v39  ;;  %v8684_v46 = vcombine.low %v1060_v35, %v1064_v36 }
 0x11c   : > { %v928_v42 = vld [vmem:[%s9716_s8 + $0x10e0] sm:$0xff]  ;;  %6054 = vmatpush1.bf16.msra.mxu1 %v8692_v38 }
 0x11d   : > { %v1052_v43 = vld [vmem:[%s9716_s8 + $0x14c0] sm:$0xff]  ;;  %v8549_v47 = vcombine.high %v924_v41, %v928_v42  ;;  %6055 = vmatprep.subr.bf16.mxu1 %v8685_v40  ;;  %6013 = vmatpush1.bf16.msra.mxu0 %v8556_v45  ;;  %v8548_v53 = vcombine.low %v924_v41, %v928_v42 }
 0x11e   : > { %v1056_v44 = vld [vmem:[%s9716_s8 + $0x14e0] sm:$0xff] }
 0x11f   : > { %v8677_v48 = vcombine.high %v1052_v43, %v1056_v44  ;;  %v916_v49 = vld [vmem:[%s9716_s8 + $0x1080] sm:$0xff]  ;;  %6014 = vmatprep.subr.bf16.mxu0 %v8549_v47  ;;  %v8676_v54 = vcombine.low %v1052_v43, %v1056_v44 }
 0x120   : > { %v920_v50 = vld [vmem:[%s9716_s8 + $0x10a0] sm:$0xff]  ;;  %6056 = vmatpush1.bf16.msra.mxu1 %v8684_v46 }
 0x121   : > { %v1044_v51 = vld [vmem:[%s9716_s8 + $0x1480] sm:$0xff]  ;;  %v8541_v55 = vcombine.high %v916_v49, %v920_v50  ;;  %6057 = vmatprep.subr.bf16.mxu1 %v8677_v48  ;;  %6015 = vmatpush1.bf16.msra.mxu0 %v8548_v53  ;;  %v8540_v61 = vcombine.low %v916_v49, %v920_v50 }
 0x122   : > { %v1048_v52 = vld [vmem:[%s9716_s8 + $0x14a0] sm:$0xff] }
 0x123   : > { %v8669_v56 = vcombine.high %v1044_v51, %v1048_v52  ;;  %v908_v57 = vld [vmem:[%s9716_s8 + $0x1040] sm:$0xff]  ;;  %6016 = vmatprep.subr.bf16.mxu0 %v8541_v55  ;;  %v8668_v62 = vcombine.low %v1044_v51, %v1048_v52 }
 0x124   : > { %v912_v58 = vld [vmem:[%s9716_s8 + $0x1060] sm:$0xff]  ;;  %6058 = vmatpush1.bf16.msra.mxu1 %v8676_v54 }
 0x125   : > { %v1036_v59 = vld [vmem:[%s9716_s8 + $0x1440] sm:$0xff]  ;;  %v8533_v63 = vcombine.high %v908_v57, %v912_v58  ;;  %6059 = vmatprep.subr.bf16.mxu1 %v8669_v56  ;;  %6017 = vmatpush1.bf16.msra.mxu0 %v8540_v61  ;;  %v8532_v5 = vcombine.low %v908_v57, %v912_v58 }
 0x126   : > { %v1040_v60 = vld [vmem:[%s9716_s8 + $0x1460] sm:$0xff] }
 0x127   : > { %v8661_v0 = vcombine.high %v1036_v59, %v1040_v60  ;;  %v900_v1 = vld [vmem:[%s9716_s8 + $0x1000] sm:$0xff]  ;;  %6018 = vmatprep.subr.bf16.mxu0 %v8533_v63  ;;  %v8660_v6 = vcombine.low %v1036_v59, %v1040_v60 }
 0x128   : > { %v904_v2 = vld [vmem:[%s9716_s8 + $0x1020] sm:$0xff]  ;;  %6060 = vmatpush1.bf16.msra.mxu1 %v8668_v62 }
 0x129   : > { %v1028_v3 = vld [vmem:[%s9716_s8 + $0x1400] sm:$0xff]  ;;  %v8525_v7 = vcombine.high %v900_v1, %v904_v2  ;;  %6061 = vmatprep.subr.bf16.mxu1 %v8661_v0  ;;  %6019 = vmatpush1.bf16.msra.mxu0 %v8532_v5  ;;  %v8524_v13 = vcombine.low %v900_v1, %v904_v2 }
 0x12a   : > { %v1032_v4 = vld [vmem:[%s9716_s8 + $0x1420] sm:$0xff] }
 0x12b   : > { %v8653_v8 = vcombine.high %v1028_v3, %v1032_v4  ;;  %v1020_v9 = vld [vmem:[%s9716_s8 + $0x13c0] sm:$0xff]  ;;  %6020 = vmatprep.subr.bf16.mxu0 %v8525_v7  ;;  %v8652_v14 = vcombine.low %v1028_v3, %v1032_v4 }
 0x12c   : > { %v1024_v10 = vld [vmem:[%s9716_s8 + $0x13e0] sm:$0xff]  ;;  %6062 = vmatpush1.bf16.msra.mxu1 %v8660_v6 }
 0x12d   : > { %v1148_v11 = vld [vmem:[%s9716_s8 + $0x17c0] sm:$0xff]  ;;  %v8645_v15 = vcombine.high %v1020_v9, %v1024_v10  ;;  %6063 = vmatprep.subr.bf16.mxu1 %v8653_v8  ;;  %6021 = vmatpush1.bf16.msra.mxu0 %v8524_v13  ;;  %v8644_v21 = vcombine.low %v1020_v9, %v1024_v10 }
 0x12e   : > { %v1152_v12 = vld [vmem:[%s9716_s8 + $0x17e0] sm:$0xff] }
 0x12f   : > { %v8773_v16 = vcombine.high %v1148_v11, %v1152_v12  ;;  %v1012_v17 = vld [vmem:[%s9716_s8 + $0x1380] sm:$0xff]  ;;  %6022 = vmatprep.subr.bf16.mxu0 %v8645_v15  ;;  %v8772_v22 = vcombine.low %v1148_v11, %v1152_v12  ;;  %v445_v11 = vld [vmem:[%s9716_s8 + $0x1c8] sm:$0xff] }
 0x130   : > { %v1016_v18 = vld [vmem:[%s9716_s8 + $0x13a0] sm:$0xff]  ;;  %6064 = vmatpush1.bf16.msra.mxu1 %v8652_v14  ;;  %v449_v12 = vld [vmem:[%s9716_s8 + $0x1e8] sm:$0xff] }
 0x131   : > { %v1140_v19 = vld [vmem:[%s9716_s8 + $0x1780] sm:$0xff]  ;;  %v8637_v23 = vcombine.high %v1012_v17, %v1016_v18  ;;  %6065 = vmatprep.subr.bf16.mxu1 %v8773_v16  ;;  %6023 = vmatpush2.bf16.msra.mxu0 %v8644_v21  ;;  %v8636_v29 = vcombine.low %v1012_v17, %v1016_v18  ;;  %v8071_v16 = vcombine.high %v445_v11, %v449_v12  ;;  %v441_v21 = vld [vmem:[%s9716_s8 + $0x1a8] sm:$0xff] }
 0x132   : > { %v1144_v20 = vld [vmem:[%s9716_s8 + $0x17a0] sm:$0xff] }
 0x133   : > { %v8765_v24 = vcombine.high %v1140_v19, %v1144_v20  ;;  %v1004_v25 = vld [vmem:[%s9716_s8 + $0x1340] sm:$0xff]  ;;  %6024 = vmatprep.subr.bf16.mxu0 %v8637_v23  ;;  %v8764_v30 = vcombine.low %v1140_v19, %v1144_v20  ;;  %v437_v20 = vld [vmem:[%s9716_s8 + $0x188] sm:$0xff] }
 0x134   : > { %v1008_v26 = vld [vmem:[%s9716_s8 + $0x1360] sm:$0xff]  ;;  %6066 = vmatpush2.bf16.msra.mxu1 %v8772_v22 }
 0x135   : > { %v1132_v27 = vld [vmem:[%s9716_s8 + $0x1740] sm:$0xff]  ;;  %v8629_v31 = vcombine.high %v1004_v25, %v1008_v26  ;;  %6067 = vmatprep.subr.bf16.mxu1 %v8765_v24  ;;  %6025 = vmatpush2.bf16.msra.mxu0 %v8636_v29  ;;  %v8628_v37 = vcombine.low %v1004_v25, %v1008_v26  ;;  %v8070_v24 = vcombine.low %v445_v11, %v449_v12 }
 0x136   : > { %v1136_v28 = vld [vmem:[%s9716_s8 + $0x1760] sm:$0xff]  ;;  %v8063_v26 = vcombine.high %v437_v20, %v441_v21 }
 0x137   : > { %v8757_v32 = vcombine.high %v1132_v27, %v1136_v28  ;;  %v996_v33 = vld [vmem:[%s9716_s8 + $0x1300] sm:$0xff]  ;;  %6026 = vmatprep.subr.bf16.mxu0 %v8629_v31  ;;  %v8756_v38 = vcombine.low %v1132_v27, %v1136_v28  ;;  %v433_v31 = vld [vmem:[%s9716_s8 + $0x168] sm:$0xff] }
 0x138   : > { %v1000_v34 = vld [vmem:[%s9716_s8 + $0x1320] sm:$0xff]  ;;  %6068 = vmatpush2.bf16.msra.mxu1 %v8764_v30  ;;  %v429_v30 = vld [vmem:[%s9716_s8 + $0x148] sm:$0xff] }
 0x139   : > { %v1124_v35 = vld [vmem:[%s9716_s8 + $0x1700] sm:$0xff]  ;;  %v8621_v39 = vcombine.high %v996_v33, %v1000_v34  ;;  %6069 = vmatprep.subr.bf16.mxu1 %v8757_v32  ;;  %6027 = vmatpush2.bf16.msra.mxu0 %v8628_v37  ;;  %v8620_v45 = vcombine.low %v996_v33, %v1000_v34  ;;  %v8062_v33 = vcombine.low %v437_v20, %v441_v21 }
 0x13a   : > { %v1128_v36 = vld [vmem:[%s9716_s8 + $0x1720] sm:$0xff] }
 0x13b   : > { %v8749_v40 = vcombine.high %v1124_v35, %v1128_v36  ;;  %v988_v41 = vld [vmem:[%s9716_s8 + $0x12c0] sm:$0xff]  ;;  %6028 = vmatprep.subr.bf16.mxu0 %v8621_v39  ;;  %v8748_v46 = vcombine.low %v1124_v35, %v1128_v36  ;;  %v8055_v35 = vcombine.high %v429_v30, %v433_v31  ;;  %v425_v39 = vld [vmem:[%s9716_s8 + $0x128] sm:$0xff] }
 0x13c   : > { %v992_v42 = vld [vmem:[%s9716_s8 + $0x12e0] sm:$0xff]  ;;  %6070 = vmatpush2.bf16.msra.mxu1 %v8756_v38  ;;  %v421_v38 = vld [vmem:[%s9716_s8 + $0x108] sm:$0xff] }
 0x13d   : > { %v1116_v43 = vld [vmem:[%s9716_s8 + $0x16c0] sm:$0xff]  ;;  %v8613_v47 = vcombine.high %v988_v41, %v992_v42  ;;  %6071 = vmatprep.subr.bf16.mxu1 %v8749_v40  ;;  %6029 = vmatpush2.bf16.msra.mxu0 %v8620_v45  ;;  %v8612_v53 = vcombine.low %v988_v41, %v992_v42  ;;  %v8054_v42 = vcombine.low %v429_v30, %v433_v31  ;;  %v493_v31 = vld [vmem:[%s9716_s8 + $0x348] sm:$0xff] }
 0x13e   : > { %v1120_v44 = vld [vmem:[%s9716_s8 + $0x16e0] sm:$0xff] }
 0x13f   : > { %v8741_v48 = vcombine.high %v1116_v43, %v1120_v44  ;;  %v980_v49 = vld [vmem:[%s9716_s8 + $0x1280] sm:$0xff]  ;;  %6030 = vmatprep.subr.bf16.mxu0 %v8613_v47  ;;  %v8740_v54 = vcombine.low %v1116_v43, %v1120_v44  ;;  %v8047_v44 = vcombine.high %v421_v38, %v425_v39  ;;  %v413_v47 = vld [vmem:[%s9716_s8 + $0xc8] sm:$0xff] }
 0x140   : > { %v984_v50 = vld [vmem:[%s9716_s8 + $0x12a0] sm:$0xff]  ;;  %6072 = vmatpush2.bf16.msra.mxu1 %v8748_v46 }
 0x141   : > { %v1108_v51 = vld [vmem:[%s9716_s8 + $0x1680] sm:$0xff]  ;;  %v8605_v55 = vcombine.high %v980_v49, %v984_v50  ;;  %6073 = vmatprep.subr.bf16.mxu1 %v8741_v48  ;;  %6031 = vmatpush2.bf16.msra.mxu0 %v8612_v53  ;;  %v8604_v61 = vcombine.low %v980_v49, %v984_v50  ;;  %v417_v48 = vld [vmem:[%s9716_s8 + $0xe8] sm:$0xff]  ;;  %v8046_v50 = vcombine.low %v421_v38, %v425_v39 }
 0x142   : > { %v1112_v52 = vld [vmem:[%s9716_s8 + $0x16a0] sm:$0xff]  ;;  %v485_v39 = vld [vmem:[%s9716_s8 + $0x308] sm:$0xff] }
 0x143   : > { %v8733_v56 = vcombine.high %v1108_v51, %v1112_v52  ;;  %v972_v57 = vld [vmem:[%s9716_s8 + $0x1240] sm:$0xff]  ;;  %6032 = vmatprep.subr.bf16.mxu0 %v8605_v55  ;;  %v8732_v62 = vcombine.low %v1108_v51, %v1112_v52  ;;  %v8039_v52 = vcombine.high %v413_v47, %v417_v48  ;;  %v405_v55 = vld [vmem:[%s9716_s8 + $0x88] sm:$0xff] }
 0x144   : > { %v976_v58 = vld [vmem:[%s9716_s8 + $0x1260] sm:$0xff]  ;;  %6074 = vmatpush2.bf16.msra.mxu1 %v8740_v54 }
 0x145   : > { %v1100_v59 = vld [vmem:[%s9716_s8 + $0x1640] sm:$0xff]  ;;  %v8597_v63 = vcombine.high %v972_v57, %v976_v58  ;;  %6075 = vmatprep.subr.bf16.mxu1 %v8733_v56  ;;  %6033 = vmatpush2.bf16.msra.mxu0 %v8604_v61  ;;  %v8596_v5 = vcombine.low %v972_v57, %v976_v58  ;;  %v409_v56 = vld [vmem:[%s9716_s8 + $0xa8] sm:$0xff]  ;;  %v8038_v58 = vcombine.low %v413_v47, %v417_v48 }
 0x146   : > { %v1104_v60 = vld [vmem:[%s9716_s8 + $0x1660] sm:$0xff]  ;;  %v477_v47 = vld [vmem:[%s9716_s8 + $0x2c8] sm:$0xff] }
 0x147   : > { %v8725_v0 = vcombine.high %v1100_v59, %v1104_v60  ;;  %v964_v1 = vld [vmem:[%s9716_s8 + $0x1200] sm:$0xff]  ;;  %6034 = vmatprep.subr.bf16.mxu0 %v8597_v63  ;;  %v8724_v6 = vcombine.low %v1100_v59, %v1104_v60  ;;  %v8031_v60 = vcombine.high %v405_v55, %v409_v56  ;;  %v397_v63 = vld [vmem:[%s9716_s8 + $0x48] sm:$0xff] }
 0x148   : > { %v968_v2 = vld [vmem:[%s9716_s8 + $0x1220] sm:$0xff]  ;;  %6076 = vmatpush2.bf16.msra.mxu1 %v8732_v62  ;;  %v481_v48 = vld [vmem:[%s9716_s8 + $0x2e8] sm:$0xff] }
 0x149   : > { %v1092_v3 = vld [vmem:[%s9716_s8 + $0x1600] sm:$0xff]  ;;  %v8589_v7 = vcombine.high %v964_v1, %v968_v2  ;;  %6077 = vmatprep.subr.bf16.mxu1 %v8725_v0  ;;  %6035 = vmatpush2.bf16.msra.mxu0 %v8596_v5  ;;  %v8588_v13 = vcombine.low %v964_v1, %v968_v2  ;;  %v401_v0 = vld [vmem:[%s9716_s8 + $0x68] sm:$0xff]  ;;  %v8030_v2 = vcombine.low %v405_v55, %v409_v56 }
 0x14a   : > { %v1096_v4 = vld [vmem:[%s9716_s8 + $0x1620] sm:$0xff]  ;;  %v469_v55 = vld [vmem:[%s9716_s8 + $0x288] sm:$0xff] }
 0x14b   : > { %v8717_v8 = vcombine.high %v1092_v3, %v1096_v4  ;;  %v1212_v9 = vld [vmem:[%s9716_s8 + $0x19c0] sm:$0xff]  ;;  %6036 = vmatprep.subr.bf16.mxu0 %v8589_v7  ;;  %v8716_v14 = vcombine.low %v1092_v3, %v1096_v4  ;;  %v8023_v4 = vcombine.high %v397_v63, %v401_v0  ;;  %v389_v7 = vld [vmem:[%s9716_s8 + $0x8] sm:$0xff] }
 0x14c   : > { %v1216_v10 = vld [vmem:[%s9716_s8 + $0x19e0] sm:$0xff]  ;;  %6078 = vmatpush2.bf16.msra.mxu1 %v8724_v6  ;;  %v473_v56 = vld [vmem:[%s9716_s8 + $0x2a8] sm:$0xff] }
 0x14d   : > { %v8837_v15 = vcombine.high %v1212_v9, %v1216_v10  ;;  %6079 = vmatprep.subr.bf16.mxu1 %v8717_v8  ;;  %v1204_v17 = vld [vmem:[%s9716_s8 + $0x1980] sm:$0xff]  ;;  %6037 = vmatpush2.bf16.msra.mxu0 %v8588_v13  ;;  %v8836_v23 = vcombine.low %v1212_v9, %v1216_v10  ;;  %v393_v8 = vld [vmem:[%s9716_s8 + $0x28] sm:$0xff]  ;;  %v8022_v10 = vcombine.low %v397_v63, %v401_v0 }
 0x14e   : > { %v1208_v18 = vld [vmem:[%s9716_s8 + $0x19a0] sm:$0xff]  ;;  %v8015_v12 = vcombine.high %v389_v7, %v393_v8  ;;  %v461_v63 = vld [vmem:[%s9716_s8 + $0x248] sm:$0xff] }
 0x14f   : > { %v9198_v19 = vld [vmem:[%s9709_s29 + $0x20] ss:$56 sps:$4 sm:$0xff]   ;;  %6092 = vmatprep.subr.bf16.mxu0 %v8837_v15  ;;  %v8829_v25 = vcombine.high %v1204_v17, %v1208_v18  ;;  %v9200_v29 = vld [vmem:[%s9709_s29 + $0x34] ss:$56 sps:$4 sm:$0xff]   ;;  %v8828_v32 = vcombine.low %v1204_v17, %v1208_v18  ;;  %v9203_v40 = vld [vmem:[%s9709_s29 + $0x4] ss:$56 sps:$4 sm:$0xff]   ;;  %v8014_v18 = vcombine.low %v389_v7, %v393_v8 }
 0x150   : > { %v9199_v22 = vld [vmem:[%s9709_s29 + $0x28] ss:$56 sps:$4 sm:$0xff]   ;;  %6080 = vmatpush2.bf16.msra.mxu1 %v8716_v14  ;;  %6039 = vmatmul.mubr.bf16.vlgmr.msra.gmra.mxu0 %v9198_v19 }
 0x151   : > { %6135 = vmatprep.subr.bf16.mxu1 %v8071_v16  ;;  %v1196_v27 = vld [vmem:[%s9716_s8 + $0x1940] sm:$0xff]  ;;  %6093 = vmatpush1.bf16.msra.mxu0 %v8836_v23  ;;  %v509_v15 = vld [vmem:[%s9716_s8 + $0x3c8] sm:$0xff] }
 0x152   : > { %v1200_v28 = vld [vmem:[%s9716_s8 + $0x1960] sm:$0xff]  ;;  %6094 = vmatprep.subr.bf16.mxu0 %v8829_v25  ;;  %6124 = vmatprep.mubr.bf16.mxu0 %v9200_v29  ;;  %v513_v16 = vld [vmem:[%s9716_s8 + $0x3e8] sm:$0xff] }
 0x153   : > { %6082 = vmatmul.mubr.bf16.vlgmr.msra.gmra.mxu1 %v9199_v22  ;;  %v8821_v34 = vcombine.high %v1196_v27, %v1200_v28  ;;  %v1188_v36 = vld [vmem:[%s9716_s8 + $0x1900] sm:$0xff]  ;;  %v8820_v41 = vcombine.low %v1196_v27, %v1200_v28  ;;  %v8135_v20 = vcombine.high %v509_v15, %v513_v16  ;;  %v501_v23 = vld [vmem:[%s9716_s8 + $0x388] sm:$0xff] }
 0x154   : > { %6136 = vmatpush1.bf16.msra.mxu1 %v8070_v24  ;;  %v1192_v37 = vld [vmem:[%s9716_s8 + $0x1920] sm:$0xff]  ;;  %6167 = vmatprep.mubr.bf16.mxu1 %v9203_v40  ;;  %v505_v24 = vld [vmem:[%s9716_s8 + $0x3a8] sm:$0xff] }
 0x155   : > { %6137 = vmatprep.subr.bf16.mxu1 %v8063_v26  ;;  %6095 = vmatpush1.bf16.msra.mxu0 %v8828_v32  ;;  %v8813_v43 = vcombine.high %v1188_v36, %v1192_v37  ;;  %v1180_v45 = vld [vmem:[%s9716_s8 + $0x18c0] sm:$0xff]  ;;  %v8812_v49 = vcombine.low %v1188_v36, %v1192_v37  ;;  %v8134_v26 = vcombine.low %v509_v15, %v513_v16  ;;  %v497_v32 = vld [vmem:[%s9716_s8 + $0x368] sm:$0xff] }
 0x156   : > { %6096 = vmatprep.subr.bf16.mxu0 %v8821_v34  ;;  %v1184_v46 = vld [vmem:[%s9716_s8 + $0x18e0] sm:$0xff]  ;;  %v8127_v28 = vcombine.high %v501_v23, %v505_v24  ;;  %v8126_v34 = vcombine.low %v501_v23, %v505_v24  ;;  %v8119_v36 = vcombine.high %v493_v31, %v497_v32  ;;  %v489_v40 = vld [vmem:[%s9716_s8 + $0x328] sm:$0xff] }
 0x157   : > { %v8805_v51 = vcombine.high %v1180_v45, %v1184_v46  ;;  %v1172_v53 = vld [vmem:[%s9716_s8 + $0x1880] sm:$0xff]  ;;  %v8804_v57 = vcombine.low %v1180_v45, %v1184_v46  ;;  %v465_v0 = vld [vmem:[%s9716_s8 + $0x268] sm:$0xff] }
 0x158   : > { %6138 = vmatpush1.bf16.msra.mxu1 %v8062_v33  ;;  %v1176_v54 = vld [vmem:[%s9716_s8 + $0x18a0] sm:$0xff]  ;;  %v453_v7 = vld [vmem:[%s9716_s8 + $0x208] sm:$0xff] }
 0x159   : > { %6139 = vmatprep.subr.bf16.mxu1 %v8055_v35  ;;  %6097 = vmatpush1.bf16.msra.mxu0 %v8820_v41  ;;  %v8797_v59 = vcombine.high %v1172_v53, %v1176_v54  ;;  %v1164_v61 = vld [vmem:[%s9716_s8 + $0x1840] sm:$0xff]  ;;  %v8796_v1 = vcombine.low %v1172_v53, %v1176_v54  ;;  %v457_v8 = vld [vmem:[%s9716_s8 + $0x228] sm:$0xff] }
 0x15a   : > { %6098 = vmatprep.subr.bf16.mxu0 %v8813_v43  ;;  %v1168_v62 = vld [vmem:[%s9716_s8 + $0x1860] sm:$0xff]  ;;  %v701_v15 = vld [vmem:[%s9716_s8 + $0x9c8] sm:$0xff] }
 0x15b   : > { %v8789_v3 = vcombine.high %v1164_v61, %v1168_v62  ;;  %v1156_v5 = vld [vmem:[%s9716_s8 + $0x1800] sm:$0xff]  ;;  %v8788_v9 = vcombine.low %v1164_v61, %v1168_v62  ;;  %v705_v16 = vld [vmem:[%s9716_s8 + $0x9e8] sm:$0xff] }
 0x15c   : > { %6140 = vmatpush1.bf16.msra.mxu1 %v8054_v42  ;;  %v1160_v6 = vld [vmem:[%s9716_s8 + $0x1820] sm:$0xff]  ;;  %v8118_v42 = vcombine.low %v493_v31, %v497_v32  ;;  %v693_v24 = vld [vmem:[%s9716_s8 + $0x988] sm:$0xff] }
 0x15d   : > { %6141 = vmatprep.subr.bf16.mxu1 %v8047_v44  ;;  %6099 = vmatpush1.bf16.msra.mxu0 %v8812_v49  ;;  %v8781_v11 = vcombine.high %v1156_v5, %v1160_v6  ;;  %v1276_v13 = vld [vmem:[%s9716_s8 + $0x1bc0] sm:$0xff]  ;;  %v8780_v17 = vcombine.low %v1156_v5, %v1160_v6  ;;  %v8111_v44 = vcombine.high %v485_v39, %v489_v40  ;;  %v561_v31 = vld [vmem:[%s9716_s8 + $0x568] sm:$0xff] }
 0x15e   : > { %6100 = vmatprep.subr.bf16.mxu0 %v8805_v51  ;;  %v1280_v14 = vld [vmem:[%s9716_s8 + $0x1be0] sm:$0xff]  ;;  %v685_v32 = vld [vmem:[%s9716_s8 + $0x948] sm:$0xff] }
 0x15f   : > { %v8901_v19 = vcombine.high %v1276_v13, %v1280_v14  ;;  %v1268_v21 = vld [vmem:[%s9716_s8 + $0x1b80] sm:$0xff]  ;;  %v8900_v25 = vcombine.low %v1276_v13, %v1280_v14  ;;  %v573_v13 = vld [vmem:[%s9716_s8 + $0x5c8] sm:$0xff] }
 0x160   : > { %6142 = vmatpush1.bf16.msra.mxu1 %v8046_v50  ;;  %v1272_v22 = vld [vmem:[%s9716_s8 + $0x1ba0] sm:$0xff]  ;;  %v8110_v50 = vcombine.low %v485_v39, %v489_v40  ;;  %v577_v14 = vld [vmem:[%s9716_s8 + $0x5e8] sm:$0xff] }
 0x161   : > { %6143 = vmatprep.subr.bf16.mxu1 %v8039_v52  ;;  %6101 = vmatpush1.bf16.msra.mxu0 %v8804_v57  ;;  %v8893_v27 = vcombine.high %v1268_v21, %v1272_v22  ;;  %v1260_v29 = vld [vmem:[%s9716_s8 + $0x1b40] sm:$0xff]  ;;  %v8892_v33 = vcombine.low %v1268_v21, %v1272_v22  ;;  %v8103_v52 = vcombine.high %v477_v47, %v481_v48  ;;  %v565_v21 = vld [vmem:[%s9716_s8 + $0x588] sm:$0xff] }
 0x162   : > { %6102 = vmatprep.subr.bf16.mxu0 %v8797_v59  ;;  %v1264_v30 = vld [vmem:[%s9716_s8 + $0x1b60] sm:$0xff]  ;;  %v569_v22 = vld [vmem:[%s9716_s8 + $0x5a8] sm:$0xff] }
 0x163   : > { %v8885_v35 = vcombine.high %v1260_v29, %v1264_v30  ;;  %v1252_v37 = vld [vmem:[%s9716_s8 + $0x1b00] sm:$0xff]  ;;  %v8884_v41 = vcombine.low %v1260_v29, %v1264_v30  ;;  %v557_v30 = vld [vmem:[%s9716_s8 + $0x548] sm:$0xff] }
 0x164   : > { %6144 = vmatpush1.bf16.msra.mxu1 %v8038_v58  ;;  %v1256_v38 = vld [vmem:[%s9716_s8 + $0x1b20] sm:$0xff]  ;;  %v8102_v58 = vcombine.low %v477_v47, %v481_v48  ;;  %v549_v39 = vld [vmem:[%s9716_s8 + $0x508] sm:$0xff] }
 0x165   : > { %6145 = vmatprep.subr.bf16.mxu1 %v8031_v60  ;;  %6103 = vmatpush1.bf16.msra.mxu0 %v8796_v1  ;;  %v8877_v43 = vcombine.high %v1252_v37, %v1256_v38  ;;  %v1244_v45 = vld [vmem:[%s9716_s8 + $0x1ac0] sm:$0xff]  ;;  %v8876_v49 = vcombine.low %v1252_v37, %v1256_v38  ;;  %v8095_v60 = vcombine.high %v469_v55, %v473_v56  ;;  %v553_v40 = vld [vmem:[%s9716_s8 + $0x528] sm:$0xff] }
 0x166   : > { %6104 = vmatprep.subr.bf16.mxu0 %v8789_v3  ;;  %v1248_v46 = vld [vmem:[%s9716_s8 + $0x1ae0] sm:$0xff]  ;;  %v8183_v37 = vcombine.high %v557_v30, %v561_v31  ;;  %v8175_v47 = vcombine.high %v549_v39, %v553_v40 }
 0x167   : > { %v8869_v51 = vcombine.high %v1244_v45, %v1248_v46  ;;  %v1236_v53 = vld [vmem:[%s9716_s8 + $0x1a80] sm:$0xff]  ;;  %v8868_v57 = vcombine.low %v1244_v45, %v1248_v46  ;;  %v8182_v45 = vcombine.low %v557_v30, %v561_v31 }
 0x168   : > { %6146 = vmatpush1.bf16.msra.mxu1 %v8030_v2  ;;  %v1240_v54 = vld [vmem:[%s9716_s8 + $0x1aa0] sm:$0xff]  ;;  %v8094_v2 = vcombine.low %v469_v55, %v473_v56 }
 0x169   : > { %6147 = vmatprep.subr.bf16.mxu1 %v8023_v4  ;;  %6105 = vmatpush1.bf16.msra.mxu0 %v8788_v9  ;;  %v8861_v59 = vcombine.high %v1236_v53, %v1240_v54  ;;  %v1228_v61 = vld [vmem:[%s9716_s8 + $0x1a40] sm:$0xff]  ;;  %v8860_v1 = vcombine.low %v1236_v53, %v1240_v54  ;;  %v8087_v4 = vcombine.high %v461_v63, %v465_v0 }
 0x16a   : > { %6106 = vmatprep.subr.bf16.mxu0 %v8781_v11  ;;  %v1232_v62 = vld [vmem:[%s9716_s8 + $0x1a60] sm:$0xff]  ;;  %v8174_v53 = vcombine.low %v549_v39, %v553_v40 }
 0x16b   : > { %v8853_v3 = vcombine.high %v1228_v61, %v1232_v62  ;;  %v1220_v5 = vld [vmem:[%s9716_s8 + $0x1a00] sm:$0xff]  ;;  %v8852_v9 = vcombine.low %v1228_v61, %v1232_v62 }
 0x16c   : > { %6148 = vmatpush1.bf16.msra.mxu1 %v8022_v10  ;;  %v1224_v6 = vld [vmem:[%s9716_s8 + $0x1a20] sm:$0xff]  ;;  %v8086_v10 = vcombine.low %v461_v63, %v465_v0 }
 0x16d   : > { %6149 = vmatprep.subr.bf16.mxu1 %v8015_v12  ;;  %6107 = vmatpush1.bf16.msra.mxu0 %v8780_v17  ;;  %v8845_v11 = vcombine.high %v1220_v5, %v1224_v6  ;;  %v8079_v12 = vcombine.high %v453_v7, %v457_v8  ;;  %v8844_v17 = vcombine.low %v1220_v5, %v1224_v6  ;;  %v9202_v23 = vld [vmem:[%s9709_s29 + $0x30] ss:$56 sps:$4 sm:$0xff]  }
 0x16e   : > { %6108 = vmatprep.subr.bf16.mxu0 %v8901_v19  ;;  %v8199_v19 = vcombine.high %v573_v13, %v577_v14 }
 0x170   : > { %6150 = vmatpush1.bf16.msra.mxu1 %v8014_v18  ;;  %v8078_v18 = vcombine.low %v453_v7, %v457_v8 }
 0x171   : > { %6151 = vmatprep.subr.bf16.mxu1 %v8135_v20  ;;  %6109 = vmatpush2.bf16.msra.mxu0 %v8900_v25  ;;  %v8327_v20 = vcombine.high %v701_v15, %v705_v16  ;;  %v697_v25 = vld [vmem:[%s9716_s8 + $0x9a8] sm:$0xff] }
 0x172   : > { %6110 = vmatprep.subr.bf16.mxu0 %v8893_v27  ;;  %v8326_v27 = vcombine.low %v701_v15, %v705_v16  ;;  %v8319_v29 = vcombine.high %v693_v24, %v697_v25 }
 0x174   : > { %6152 = vmatpush2.bf16.msra.mxu1 %v8134_v26  ;;  %v8198_v26 = vcombine.low %v573_v13, %v577_v14 }
 0x175   : > { %6153 = vmatprep.subr.bf16.mxu1 %v8127_v28  ;;  %6111 = vmatpush2.bf16.msra.mxu0 %v8892_v33  ;;  %v8191_v28 = vcombine.high %v565_v21, %v569_v22  ;;  %v689_v33 = vld [vmem:[%s9716_s8 + $0x968] sm:$0xff] }
 0x176   : > { %6112 = vmatprep.subr.bf16.mxu0 %v8885_v35  ;;  %v8190_v35 = vcombine.low %v565_v21, %v569_v22  ;;  %v8311_v38 = vcombine.high %v685_v32, %v689_v33  ;;  %v8310_v46 = vcombine.low %v685_v32, %v689_v33  ;;  %v621_v33 = vld [vmem:[%s9716_s8 + $0x748] sm:$0xff] }
 0x178   : > { %6154 = vmatpush2.bf16.msra.mxu1 %v8126_v34  ;;  %v9204_v34 = vld [vmem:[%s9709_s29] ss:$56 sps:$4 sm:$0xff]  }
 0x179   : > { %6155 = vmatprep.subr.bf16.mxu1 %v8119_v36  ;;  %6113 = vmatpush2.bf16.msra.mxu0 %v8884_v41  ;;  %v8318_v36 = vcombine.low %v693_v24, %v697_v25  ;;  %v9205_v41 = vld [vmem:[%s9709_s29 + $0xc] ss:$56 sps:$4 sm:$0xff]  }
 0x17a   : > { %6114 = vmatprep.subr.bf16.mxu0 %v8877_v43  ;;  %v681_v43 = vld [vmem:[%s9716_s8 + $0x928] sm:$0xff] }
 0x17b   : > { %v629_v25 = vld [vmem:[%s9716_s8 + $0x788] sm:$0xff] }
 0x17c   : > { %6156 = vmatpush2.bf16.msra.mxu1 %v8118_v42  ;;  %v677_v42 = vld [vmem:[%s9716_s8 + $0x908] sm:$0xff] }
 0x17d   : > { %6157 = vmatprep.subr.bf16.mxu1 %v8111_v44  ;;  %6115 = vmatpush2.bf16.msra.mxu0 %v8876_v49  ;;  %v9206_v44 = vld [vmem:[%s9709_s29 + $0x14] ss:$56 sps:$4 sm:$0xff]   ;;  %v8303_v48 = vcombine.high %v677_v42, %v681_v43  ;;  %v8302_v54 = vcombine.low %v677_v42, %v681_v43 }
 0x17e   : > { %6116 = vmatprep.subr.bf16.mxu0 %v8869_v51  ;;  %v541_v49 = vld [vmem:[%s9716_s8 + $0x4c8] sm:$0xff] }
 0x17f   : > { %v669_v51 = vld [vmem:[%s9716_s8 + $0x8c8] sm:$0xff] }
 0x180   : > { %6158 = vmatpush2.bf16.msra.mxu1 %v8110_v50  ;;  %v545_v50 = vld [vmem:[%s9716_s8 + $0x4e8] sm:$0xff] }
 0x181   : > { %6159 = vmatprep.subr.bf16.mxu1 %v8103_v52  ;;  %6117 = vmatpush2.bf16.msra.mxu0 %v8868_v57  ;;  %v673_v52 = vld [vmem:[%s9716_s8 + $0x8e8] sm:$0xff]  ;;  %v8167_v55 = vcombine.high %v541_v49, %v545_v50  ;;  %v8166_v61 = vcombine.low %v541_v49, %v545_v50 }
 0x182   : > { %6118 = vmatprep.subr.bf16.mxu0 %v8861_v59  ;;  %v8295_v56 = vcombine.high %v669_v51, %v673_v52  ;;  %v533_v57 = vld [vmem:[%s9716_s8 + $0x488] sm:$0xff]  ;;  %v8294_v62 = vcombine.low %v669_v51, %v673_v52 }
 0x183   : > { %v661_v59 = vld [vmem:[%s9716_s8 + $0x888] sm:$0xff] }
 0x184   : > { %6160 = vmatpush2.bf16.msra.mxu1 %v8102_v58  ;;  %v537_v58 = vld [vmem:[%s9716_s8 + $0x4a8] sm:$0xff] }
 0x185   : > { %6161 = vmatprep.subr.bf16.mxu1 %v8095_v60  ;;  %6119 = vmatpush2.bf16.msra.mxu0 %v8860_v1  ;;  %v665_v60 = vld [vmem:[%s9716_s8 + $0x8a8] sm:$0xff]  ;;  %v8159_v63 = vcombine.high %v533_v57, %v537_v58  ;;  %v8158_v5 = vcombine.low %v533_v57, %v537_v58 }
 0x186   : > { %6120 = vmatprep.subr.bf16.mxu0 %v8853_v3  ;;  %v8287_v0 = vcombine.high %v661_v59, %v665_v60  ;;  %v525_v1 = vld [vmem:[%s9716_s8 + $0x448] sm:$0xff]  ;;  %v8286_v6 = vcombine.low %v661_v59, %v665_v60 }
 0x187   : > { %v653_v3 = vld [vmem:[%s9716_s8 + $0x848] sm:$0xff] }
 0x188   : > { %6162 = vmatpush2.bf16.msra.mxu1 %v8094_v2  ;;  %v529_v2 = vld [vmem:[%s9716_s8 + $0x468] sm:$0xff] }
 0x189   : > { %6163 = vmatprep.subr.bf16.mxu1 %v8087_v4  ;;  %6121 = vmatpush2.bf16.msra.mxu0 %v8852_v9  ;;  %v657_v4 = vld [vmem:[%s9716_s8 + $0x868] sm:$0xff]  ;;  %v8151_v7 = vcombine.high %v525_v1, %v529_v2  ;;  %v8150_v13 = vcombine.low %v525_v1, %v529_v2 }
 0x18a   : > { %6122 = vmatprep.subr.bf16.mxu0 %v8845_v11  ;;  %v8279_v8 = vcombine.high %v653_v3, %v657_v4  ;;  %v517_v9 = vld [vmem:[%s9716_s8 + $0x408] sm:$0xff]  ;;  %v8278_v14 = vcombine.low %v653_v3, %v657_v4 }
 0x18b   : > { %v645_v11 = vld [vmem:[%s9716_s8 + $0x808] sm:$0xff] }
 0x18c   : > { %6164 = vmatpush2.bf16.msra.mxu1 %v8086_v10  ;;  %v521_v10 = vld [vmem:[%s9716_s8 + $0x428] sm:$0xff] }
 0x18d   : > { %6165 = vmatprep.subr.bf16.mxu1 %v8079_v12  ;;  %6123 = vmatpush2.bf16.msra.mxu0 %v8844_v17  ;;  %v649_v12 = vld [vmem:[%s9716_s8 + $0x828] sm:$0xff]  ;;  %v8143_v15 = vcombine.high %v517_v9, %v521_v10  ;;  %v8142_v21 = vcombine.low %v517_v9, %v521_v10 }
 0x18e   : > { %6178 = vmatprep.subr.bf16.mxu0 %v8199_v19  ;;  %v8271_v16 = vcombine.high %v645_v11, %v649_v12  ;;  %v637_v17 = vld [vmem:[%s9716_s8 + $0x7c8] sm:$0xff]  ;;  %v8270_v22 = vcombine.low %v645_v11, %v649_v12 }
 0x18f   : > { %v765_v19 = vld [vmem:[%s9716_s8 + $0xbc8] sm:$0xff] }
 0x190   : > { %6166 = vmatpush2.bf16.msra.mxu1 %v8078_v18  ;;  %6125 = vmatmul.mubr.bf16.vlgmr.msra.gmra.mxu0 %v9202_v23  ;;  %v641_v18 = vld [vmem:[%s9716_s8 + $0x7e8] sm:$0xff] }
 0x191   : > { %6221 = vmatprep.subr.bf16.mxu1 %v8327_v20  ;;  %6179 = vmatpush1.bf16.msra.mxu0 %v8198_v26  ;;  %v769_v20 = vld [vmem:[%s9716_s8 + $0xbe8] sm:$0xff]  ;;  %v8263_v23 = vcombine.high %v637_v17, %v641_v18 }
 0x192   : > { %6180 = vmatprep.subr.bf16.mxu0 %v8191_v28  ;;  %6210 = vmatprep.mubr.bf16.mxu0 %v9205_v41  ;;  %v8391_v24 = vcombine.high %v765_v19, %v769_v20  ;;  %v633_v26 = vld [vmem:[%s9716_s8 + $0x7a8] sm:$0xff]  ;;  %v8390_v30 = vcombine.low %v765_v19, %v769_v20 }
 0x193   : > { %6168 = vmatmul.mubr.bf16.vlgmr.msra.gmra.mxu1 %v9204_v34  ;;  %v761_v28 = vld [vmem:[%s9716_s8 + $0xba8] sm:$0xff]  ;;  %v8255_v31 = vcombine.high %v629_v25, %v633_v26 }
 0x194   : > { %6222 = vmatpush1.bf16.msra.mxu1 %v8326_v27  ;;  %6253 = vmatprep.mubr.bf16.mxu1 %v9206_v44  ;;  %v757_v27 = vld [vmem:[%s9716_s8 + $0xb88] sm:$0xff] }
 0x195   : > { %6223 = vmatprep.subr.bf16.mxu1 %v8319_v29  ;;  %6181 = vmatpush1.bf16.msra.mxu0 %v8190_v35  ;;  %v8262_v29 = vcombine.low %v637_v17, %v641_v18  ;;  %v8383_v32 = vcombine.high %v757_v27, %v761_v28  ;;  %v625_v34 = vld [vmem:[%s9716_s8 + $0x768] sm:$0xff] }
 0x196   : > { %6182 = vmatprep.subr.bf16.mxu0 %v8183_v37  ;;  %v749_v35 = vld [vmem:[%s9716_s8 + $0xb48] sm:$0xff]  ;;  %v8254_v37 = vcombine.low %v629_v25, %v633_v26  ;;  %v8247_v39 = vcombine.high %v621_v33, %v625_v34 }
 0x197   : > { %v613_v41 = vld [vmem:[%s9716_s8 + $0x708] sm:$0xff] }
 0x198   : > { %6224 = vmatpush1.bf16.msra.mxu1 %v8318_v36  ;;  %v753_v36 = vld [vmem:[%s9716_s8 + $0xb68] sm:$0xff] }
 0x199   : > { %6225 = vmatprep.subr.bf16.mxu1 %v8311_v38  ;;  %6183 = vmatpush1.bf16.msra.mxu0 %v8182_v45  ;;  %v8382_v38 = vcombine.low %v757_v27, %v761_v28  ;;  %v8375_v40 = vcombine.high %v749_v35, %v753_v36  ;;  %v617_v42 = vld [vmem:[%s9716_s8 + $0x728] sm:$0xff]  ;;  %v8246_v45 = vcombine.low %v621_v33, %v625_v34 }
 0x19a   : > { %6184 = vmatprep.subr.bf16.mxu0 %v8175_v47  ;;  %v741_v43 = vld [vmem:[%s9716_s8 + $0xb08] sm:$0xff]  ;;  %v8239_v47 = vcombine.high %v613_v41, %v617_v42 }
 0x19b   : > { %v745_v44 = vld [vmem:[%s9716_s8 + $0xb28] sm:$0xff] }
 0x19c   : > { %6226 = vmatpush1.bf16.msra.mxu1 %v8310_v46  ;;  %v8374_v46 = vcombine.low %v749_v35, %v753_v36  ;;  %v605_v49 = vld [vmem:[%s9716_s8 + $0x6c8] sm:$0xff] }
 0x19d   : > { %6227 = vmatprep.subr.bf16.mxu1 %v8303_v48  ;;  %6185 = vmatpush1.bf16.msra.mxu0 %v8174_v53  ;;  %v8367_v48 = vcombine.high %v741_v43, %v745_v44  ;;  %v609_v50 = vld [vmem:[%s9716_s8 + $0x6e8] sm:$0xff]  ;;  %v8238_v53 = vcombine.low %v613_v41, %v617_v42 }
 0x19e   : > { %6186 = vmatprep.subr.bf16.mxu0 %v8167_v55  ;;  %v733_v51 = vld [vmem:[%s9716_s8 + $0xac8] sm:$0xff]  ;;  %v8231_v55 = vcombine.high %v605_v49, %v609_v50 }
 0x19f   : > { %v737_v52 = vld [vmem:[%s9716_s8 + $0xae8] sm:$0xff] }
 0x1a0   : > { %6228 = vmatpush1.bf16.msra.mxu1 %v8302_v54  ;;  %v8366_v54 = vcombine.low %v741_v43, %v745_v44  ;;  %v597_v57 = vld [vmem:[%s9716_s8 + $0x688] sm:$0xff] }
 0x1a1   : > { %6229 = vmatprep.subr.bf16.mxu1 %v8295_v56  ;;  %6187 = vmatpush1.bf16.msra.mxu0 %v8166_v61  ;;  %v8359_v56 = vcombine.high %v733_v51, %v737_v52  ;;  %v601_v58 = vld [vmem:[%s9716_s8 + $0x6a8] sm:$0xff]  ;;  %v8230_v61 = vcombine.low %v605_v49, %v609_v50 }
 0x1a2   : > { %6188 = vmatprep.subr.bf16.mxu0 %v8159_v63  ;;  %v725_v59 = vld [vmem:[%s9716_s8 + $0xa88] sm:$0xff]  ;;  %v8223_v63 = vcombine.high %v597_v57, %v601_v58 }
 0x1a3   : > { %v729_v60 = vld [vmem:[%s9716_s8 + $0xaa8] sm:$0xff] }
 0x1a4   : > { %6230 = vmatpush1.bf16.msra.mxu1 %v8294_v62  ;;  %v8358_v62 = vcombine.low %v733_v51, %v737_v52  ;;  %v589_v1 = vld [vmem:[%s9716_s8 + $0x648] sm:$0xff] }
 0x1a5   : > { %6231 = vmatprep.subr.bf16.mxu1 %v8287_v0  ;;  %6189 = vmatpush1.bf16.msra.mxu0 %v8158_v5  ;;  %v8351_v0 = vcombine.high %v725_v59, %v729_v60  ;;  %v593_v2 = vld [vmem:[%s9716_s8 + $0x668] sm:$0xff]  ;;  %v8222_v5 = vcombine.low %v597_v57, %v601_v58 }
 0x1a6   : > { %6190 = vmatprep.subr.bf16.mxu0 %v8151_v7  ;;  %v717_v3 = vld [vmem:[%s9716_s8 + $0xa48] sm:$0xff]  ;;  %v8215_v7 = vcombine.high %v589_v1, %v593_v2 }
 0x1a7   : > { %v721_v4 = vld [vmem:[%s9716_s8 + $0xa68] sm:$0xff] }
 0x1a8   : > { %6232 = vmatpush1.bf16.msra.mxu1 %v8286_v6  ;;  %v8350_v6 = vcombine.low %v725_v59, %v729_v60  ;;  %v581_v9 = vld [vmem:[%s9716_s8 + $0x608] sm:$0xff] }
 0x1a9   : > { %6233 = vmatprep.subr.bf16.mxu1 %v8279_v8  ;;  %6191 = vmatpush1.bf16.msra.mxu0 %v8150_v13  ;;  %v8343_v8 = vcombine.high %v717_v3, %v721_v4  ;;  %v585_v10 = vld [vmem:[%s9716_s8 + $0x628] sm:$0xff]  ;;  %v8214_v13 = vcombine.low %v589_v1, %v593_v2 }
 0x1aa   : > { %6192 = vmatprep.subr.bf16.mxu0 %v8143_v15  ;;  %v709_v11 = vld [vmem:[%s9716_s8 + $0xa08] sm:$0xff]  ;;  %v8207_v15 = vcombine.high %v581_v9, %v585_v10 }
 0x1ab   : > { %v713_v12 = vld [vmem:[%s9716_s8 + $0xa28] sm:$0xff] }
 0x1ac   : > { %6234 = vmatpush1.bf16.msra.mxu1 %v8278_v14  ;;  %v8342_v14 = vcombine.low %v717_v3, %v721_v4  ;;  %v829_v17 = vld [vmem:[%s9716_s8 + $0xdc8] sm:$0xff] }
 0x1ad   : > { %6235 = vmatprep.subr.bf16.mxu1 %v8271_v16  ;;  %6193 = vmatpush1.bf16.msra.mxu0 %v8142_v21  ;;  %v8335_v16 = vcombine.high %v709_v11, %v713_v12  ;;  %v833_v18 = vld [vmem:[%s9716_s8 + $0xde8] sm:$0xff]  ;;  %v8206_v21 = vcombine.low %v581_v9, %v585_v10 }
 0x1ae   : > { %6194 = vmatprep.subr.bf16.mxu0 %v8263_v23  ;;  %v957_v19 = vld [vmem:[%s9716_s8 + $0x11c8] sm:$0xff]  ;;  %v8455_v23 = vcombine.high %v829_v17, %v833_v18 }
 0x1af   : > { %v961_v20 = vld [vmem:[%s9716_s8 + $0x11e8] sm:$0xff] }
 0x1b0   : > { %6236 = vmatpush1.bf16.msra.mxu1 %v8270_v22  ;;  %v8334_v22 = vcombine.low %v709_v11, %v713_v12  ;;  %v821_v25 = vld [vmem:[%s9716_s8 + $0xd88] sm:$0xff] }
 0x1b1   : > { %6237 = vmatprep.subr.bf16.mxu1 %v8391_v24  ;;  %6195 = vmatpush2.bf16.msra.mxu0 %v8262_v29  ;;  %v8583_v24 = vcombine.high %v957_v19, %v961_v20  ;;  %v825_v26 = vld [vmem:[%s9716_s8 + $0xda8] sm:$0xff]  ;;  %v8454_v29 = vcombine.low %v829_v17, %v833_v18 }
 0x1b2   : > { %6196 = vmatprep.subr.bf16.mxu0 %v8255_v31  ;;  %v949_v27 = vld [vmem:[%s9716_s8 + $0x1188] sm:$0xff]  ;;  %v8447_v31 = vcombine.high %v821_v25, %v825_v26 }
 0x1b3   : > { %v953_v28 = vld [vmem:[%s9716_s8 + $0x11a8] sm:$0xff] }
 0x1b4   : > { %6238 = vmatpush2.bf16.msra.mxu1 %v8390_v30  ;;  %v8582_v30 = vcombine.low %v957_v19, %v961_v20  ;;  %v813_v33 = vld [vmem:[%s9716_s8 + $0xd48] sm:$0xff] }
 0x1b5   : > { %6239 = vmatprep.subr.bf16.mxu1 %v8383_v32  ;;  %6197 = vmatpush2.bf16.msra.mxu0 %v8254_v37  ;;  %v8575_v32 = vcombine.high %v949_v27, %v953_v28  ;;  %v817_v34 = vld [vmem:[%s9716_s8 + $0xd68] sm:$0xff] }
 0x1b6   : > { %6198 = vmatprep.subr.bf16.mxu0 %v8247_v39  ;;  %v9207_v35 = vld [vmem:[%s9709_s29 + $0x8] ss:$56 sps:$4 sm:$0xff]   ;;  %v8446_v39 = vcombine.low %v821_v25, %v825_v26  ;;  %v8439_v41 = vcombine.high %v813_v33, %v817_v34  ;;  %v8438_v49 = vcombine.low %v813_v33, %v817_v34 }
 0x1b7   : > { %v941_v36 = vld [vmem:[%s9716_s8 + $0x1148] sm:$0xff] }
 0x1b8   : > { %6240 = vmatpush2.bf16.msra.mxu1 %v8382_v38  ;;  %v945_v37 = vld [vmem:[%s9716_s8 + $0x1168] sm:$0xff] }
 0x1b9   : > { %6241 = vmatprep.subr.bf16.mxu1 %v8375_v40  ;;  %6199 = vmatpush2.bf16.msra.mxu0 %v8246_v45  ;;  %v9208_v38 = vld [vmem:[%s9709_s29 + $0x10] ss:$56 sps:$4 sm:$0xff]   ;;  %v8574_v40 = vcombine.low %v949_v27, %v953_v28  ;;  %v8567_v42 = vcombine.high %v941_v36, %v945_v37  ;;  %v9209_v45 = vld [vmem:[%s9709_s29 + $0x1c] ss:$56 sps:$4 sm:$0xff]   ;;  %v8566_v50 = vcombine.low %v941_v36, %v945_v37 }
 0x1ba   : > { %6200 = vmatprep.subr.bf16.mxu0 %v8239_v47  ;;  %v805_v43 = vld [vmem:[%s9716_s8 + $0xd08] sm:$0xff] }
 0x1bb   : > { %v809_v44 = vld [vmem:[%s9716_s8 + $0xd28] sm:$0xff] }
 0x1bc   : > { %6242 = vmatpush2.bf16.msra.mxu1 %v8374_v46  ;;  %v933_v46 = vld [vmem:[%s9716_s8 + $0x1108] sm:$0xff]  ;;  %v8431_v51 = vcombine.high %v805_v43, %v809_v44  ;;  %v8430_v57 = vcombine.low %v805_v43, %v809_v44 }
 0x1bd   : > { %6243 = vmatprep.subr.bf16.mxu1 %v8367_v48  ;;  %6201 = vmatpush2.bf16.msra.mxu0 %v8238_v53  ;;  %v937_v47 = vld [vmem:[%s9716_s8 + $0x1128] sm:$0xff] }
 0x1be   : > { %6202 = vmatprep.subr.bf16.mxu0 %v8231_v55  ;;  %v9210_v48 = vld [vmem:[%s9709_s29 + $0x24] ss:$56 sps:$4 sm:$0xff]   ;;  %v8559_v52 = vcombine.high %v933_v46, %v937_v47  ;;  %v8558_v58 = vcombine.low %v933_v46, %v937_v47 }
 0x1bf   : > { %v797_v53 = vld [vmem:[%s9716_s8 + $0xcc8] sm:$0xff] }
 0x1c0   : > { %6244 = vmatpush2.bf16.msra.mxu1 %v8366_v54  ;;  %v801_v54 = vld [vmem:[%s9716_s8 + $0xce8] sm:$0xff] }
 0x1c1   : > { %6245 = vmatprep.subr.bf16.mxu1 %v8359_v56  ;;  %6203 = vmatpush2.bf16.msra.mxu0 %v8230_v61  ;;  %v925_v55 = vld [vmem:[%s9716_s8 + $0x10c8] sm:$0xff]  ;;  %v8423_v59 = vcombine.high %v797_v53, %v801_v54  ;;  %v8422_v1 = vcombine.low %v797_v53, %v801_v54 }
 0x1c2   : > { %6204 = vmatprep.subr.bf16.mxu0 %v8223_v63  ;;  %v929_v56 = vld [vmem:[%s9716_s8 + $0x10e8] sm:$0xff] }
 0x1c3   : > { %v8551_v60 = vcombine.high %v925_v55, %v929_v56  ;;  %v789_v61 = vld [vmem:[%s9716_s8 + $0xc88] sm:$0xff]  ;;  %v8550_v2 = vcombine.low %v925_v55, %v929_v56 }
 0x1c4   : > { %6246 = vmatpush2.bf16.msra.mxu1 %v8358_v62  ;;  %v793_v62 = vld [vmem:[%s9716_s8 + $0xca8] sm:$0xff] }
 0x1c5   : > { %6247 = vmatprep.subr.bf16.mxu1 %v8351_v0  ;;  %6205 = vmatpush2.bf16.msra.mxu0 %v8222_v5  ;;  %v917_v63 = vld [vmem:[%s9716_s8 + $0x1088] sm:$0xff]  ;;  %v8415_v3 = vcombine.high %v789_v61, %v793_v62  ;;  %v8414_v9 = vcombine.low %v789_v61, %v793_v62 }
 0x1c6   : > { %6206 = vmatprep.subr.bf16.mxu0 %v8215_v7  ;;  %v921_v0 = vld [vmem:[%s9716_s8 + $0x10a8] sm:$0xff] }
 0x1c7   : > { %v8543_v4 = vcombine.high %v917_v63, %v921_v0  ;;  %v781_v5 = vld [vmem:[%s9716_s8 + $0xc48] sm:$0xff]  ;;  %v8542_v10 = vcombine.low %v917_v63, %v921_v0 }
 0x1c8   : > { %6248 = vmatpush2.bf16.msra.mxu1 %v8350_v6  ;;  %v785_v6 = vld [vmem:[%s9716_s8 + $0xc68] sm:$0xff] }
 0x1c9   : > { %6249 = vmatprep.subr.bf16.mxu1 %v8343_v8  ;;  %6207 = vmatpush2.bf16.msra.mxu0 %v8214_v13  ;;  %v909_v7 = vld [vmem:[%s9716_s8 + $0x1048] sm:$0xff]  ;;  %v8407_v11 = vcombine.high %v781_v5, %v785_v6  ;;  %v8406_v17 = vcombine.low %v781_v5, %v785_v6 }
 0x1ca   : > { %6208 = vmatprep.subr.bf16.mxu0 %v8207_v15  ;;  %v913_v8 = vld [vmem:[%s9716_s8 + $0x1068] sm:$0xff] }
 0x1cb   : > { %v8535_v12 = vcombine.high %v909_v7, %v913_v8  ;;  %v773_v13 = vld [vmem:[%s9716_s8 + $0xc08] sm:$0xff]  ;;  %v8534_v18 = vcombine.low %v909_v7, %v913_v8 }
 0x1cc   : > { %6250 = vmatpush2.bf16.msra.mxu1 %v8342_v14  ;;  %v777_v14 = vld [vmem:[%s9716_s8 + $0xc28] sm:$0xff] }
 0x1cd   : > { %6251 = vmatprep.subr.bf16.mxu1 %v8335_v16  ;;  %6209 = vmatpush2.bf16.msra.mxu0 %v8206_v21  ;;  %v901_v15 = vld [vmem:[%s9716_s8 + $0x1008] sm:$0xff]  ;;  %v8399_v19 = vcombine.high %v773_v13, %v777_v14  ;;  %v8398_v25 = vcombine.low %v773_v13, %v777_v14 }
 0x1ce   : > { %6264 = vmatprep.subr.bf16.mxu0 %v8455_v23  ;;  %v905_v16 = vld [vmem:[%s9716_s8 + $0x1028] sm:$0xff] }
 0x1cf   : > { %v8527_v20 = vcombine.high %v901_v15, %v905_v16  ;;  %v893_v21 = vld [vmem:[%s9716_s8 + $0xfc8] sm:$0xff]  ;;  %v8526_v26 = vcombine.low %v901_v15, %v905_v16 }
 0x1d0   : > { %6252 = vmatpush2.bf16.msra.mxu1 %v8334_v22  ;;  %6211 = vmatmul.mubr.bf16.vlgmr.msra.gmra.mxu0 %v9207_v35  ;;  %v897_v22 = vld [vmem:[%s9716_s8 + $0xfe8] sm:$0xff] }
 0x1d1   : > { %6307 = vmatprep.subr.bf16.mxu1 %v8583_v24  ;;  %6265 = vmatpush1.bf16.msra.mxu0 %v8454_v29  ;;  %v1021_v23 = vld [vmem:[%s9716_s8 + $0x13c8] sm:$0xff]  ;;  %v8519_v27 = vcombine.high %v893_v21, %v897_v22  ;;  %v8518_v33 = vcombine.low %v893_v21, %v897_v22 }
 0x1d2   : > { %6266 = vmatprep.subr.bf16.mxu0 %v8447_v31  ;;  %6296 = vmatprep.mubr.bf16.mxu0 %v9209_v45  ;;  %v1025_v24 = vld [vmem:[%s9716_s8 + $0x13e8] sm:$0xff] }
 0x1d3   : > { %6254 = vmatmul.mubr.bf16.vlgmr.msra.gmra.mxu1 %v9208_v38  ;;  %v8647_v28 = vcombine.high %v1021_v23, %v1025_v24  ;;  %v885_v29 = vld [vmem:[%s9716_s8 + $0xf88] sm:$0xff]  ;;  %v8646_v34 = vcombine.low %v1021_v23, %v1025_v24 }
 0x1d4   : > { %6308 = vmatpush1.bf16.msra.mxu1 %v8582_v30  ;;  %6339 = vmatprep.mubr.bf16.mxu1 %v9210_v48  ;;  %v889_v30 = vld [vmem:[%s9716_s8 + $0xfa8] sm:$0xff] }
 0x1d5   : > { %6309 = vmatprep.subr.bf16.mxu1 %v8575_v32  ;;  %6267 = vmatpush1.bf16.msra.mxu0 %v8446_v39  ;;  %v1013_v31 = vld [vmem:[%s9716_s8 + $0x1388] sm:$0xff]  ;;  %v8511_v35 = vcombine.high %v885_v29, %v889_v30 }
 0x1d6   : > { %6268 = vmatprep.subr.bf16.mxu0 %v8439_v41  ;;  %v1017_v32 = vld [vmem:[%s9716_s8 + $0x13a8] sm:$0xff]  ;;  %v8510_v41 = vcombine.low %v885_v29, %v889_v30 }
 0x1d7   : > { %v8639_v36 = vcombine.high %v1013_v31, %v1017_v32  ;;  %v877_v37 = vld [vmem:[%s9716_s8 + $0xf48] sm:$0xff] }
 0x1d8   : > { %6310 = vmatpush1.bf16.msra.mxu1 %v8574_v40  ;;  %v881_v38 = vld [vmem:[%s9716_s8 + $0xf68] sm:$0xff] }
 0x1d9   : > { %6311 = vmatprep.subr.bf16.mxu1 %v8567_v42  ;;  %6269 = vmatpush1.bf16.msra.mxu0 %v8438_v49  ;;  %v1005_v39 = vld [vmem:[%s9716_s8 + $0x1348] sm:$0xff]  ;;  %v8638_v42 = vcombine.low %v1013_v31, %v1017_v32  ;;  %v8503_v43 = vcombine.high %v877_v37, %v881_v38  ;;  %v8502_v49 = vcombine.low %v877_v37, %v881_v38 }
 0x1da   : > { %6270 = vmatprep.subr.bf16.mxu0 %v8431_v51  ;;  %v1009_v40 = vld [vmem:[%s9716_s8 + $0x1368] sm:$0xff] }
 0x1db   : > { %v8631_v44 = vcombine.high %v1005_v39, %v1009_v40  ;;  %v869_v45 = vld [vmem:[%s9716_s8 + $0xf08] sm:$0xff] }
 0x1dc   : > { %6312 = vmatpush1.bf16.msra.mxu1 %v8566_v50  ;;  %v873_v46 = vld [vmem:[%s9716_s8 + $0xf28] sm:$0xff]  ;;  %v8630_v50 = vcombine.low %v1005_v39, %v1009_v40 }
 0x1dd   : > { %6313 = vmatprep.subr.bf16.mxu1 %v8559_v52  ;;  %6271 = vmatpush1.bf16.msra.mxu0 %v8430_v57  ;;  %v997_v47 = vld [vmem:[%s9716_s8 + $0x1308] sm:$0xff]  ;;  %v8495_v51 = vcombine.high %v869_v45, %v873_v46  ;;  %v8494_v57 = vcombine.low %v869_v45, %v873_v46 }
 0x1de   : > { %6272 = vmatprep.subr.bf16.mxu0 %v8423_v59  ;;  %v1001_v48 = vld [vmem:[%s9716_s8 + $0x1328] sm:$0xff] }
 0x1df   : > { %v8623_v52 = vcombine.high %v997_v47, %v1001_v48  ;;  %v861_v53 = vld [vmem:[%s9716_s8 + $0xec8] sm:$0xff] }
 0x1e0   : > { %6314 = vmatpush1.bf16.msra.mxu1 %v8558_v58  ;;  %v865_v54 = vld [vmem:[%s9716_s8 + $0xee8] sm:$0xff]  ;;  %v8622_v58 = vcombine.low %v997_v47, %v1001_v48 }
 0x1e1   : > { %6315 = vmatprep.subr.bf16.mxu1 %v8551_v60  ;;  %6273 = vmatpush1.bf16.msra.mxu0 %v8422_v1  ;;  %v989_v55 = vld [vmem:[%s9716_s8 + $0x12c8] sm:$0xff]  ;;  %v8487_v59 = vcombine.high %v861_v53, %v865_v54  ;;  %v8486_v1 = vcombine.low %v861_v53, %v865_v54 }
 0x1e2   : > { %6274 = vmatprep.subr.bf16.mxu0 %v8415_v3  ;;  %v993_v56 = vld [vmem:[%s9716_s8 + $0x12e8] sm:$0xff] }
 0x1e3   : > { %v8615_v60 = vcombine.high %v989_v55, %v993_v56  ;;  %v853_v61 = vld [vmem:[%s9716_s8 + $0xe88] sm:$0xff] }
 0x1e4   : > { %6316 = vmatpush1.bf16.msra.mxu1 %v8550_v2  ;;  %v857_v62 = vld [vmem:[%s9716_s8 + $0xea8] sm:$0xff]  ;;  %v8614_v2 = vcombine.low %v989_v55, %v993_v56 }
 0x1e5   : > { %6317 = vmatprep.subr.bf16.mxu1 %v8543_v4  ;;  %6275 = vmatpush1.bf16.msra.mxu0 %v8414_v9  ;;  %v981_v63 = vld [vmem:[%s9716_s8 + $0x1288] sm:$0xff]  ;;  %v8479_v3 = vcombine.high %v853_v61, %v857_v62  ;;  %v8478_v9 = vcombine.low %v853_v61, %v857_v62 }
 0x1e6   : > { %6276 = vmatprep.subr.bf16.mxu0 %v8407_v11  ;;  %v985_v0 = vld [vmem:[%s9716_s8 + $0x12a8] sm:$0xff] }
 0x1e7   : > { %v8607_v4 = vcombine.high %v981_v63, %v985_v0  ;;  %v845_v5 = vld [vmem:[%s9716_s8 + $0xe48] sm:$0xff] }
 0x1e8   : > { %6318 = vmatpush1.bf16.msra.mxu1 %v8542_v10  ;;  %v849_v6 = vld [vmem:[%s9716_s8 + $0xe68] sm:$0xff]  ;;  %v8606_v10 = vcombine.low %v981_v63, %v985_v0 }
 0x1e9   : > { %6319 = vmatprep.subr.bf16.mxu1 %v8535_v12  ;;  %6277 = vmatpush1.bf16.msra.mxu0 %v8406_v17  ;;  %v973_v7 = vld [vmem:[%s9716_s8 + $0x1248] sm:$0xff]  ;;  %v8471_v11 = vcombine.high %v845_v5, %v849_v6  ;;  %v8470_v17 = vcombine.low %v845_v5, %v849_v6 }
 0x1ea   : > { %6278 = vmatprep.subr.bf16.mxu0 %v8399_v19  ;;  %v977_v8 = vld [vmem:[%s9716_s8 + $0x1268] sm:$0xff] }
 0x1eb   : > { %v8599_v12 = vcombine.high %v973_v7, %v977_v8  ;;  %v837_v13 = vld [vmem:[%s9716_s8 + $0xe08] sm:$0xff] }
 0x1ec   : > { %6320 = vmatpush1.bf16.msra.mxu1 %v8534_v18  ;;  %v841_v14 = vld [vmem:[%s9716_s8 + $0xe28] sm:$0xff]  ;;  %v8598_v18 = vcombine.low %v973_v7, %v977_v8 }
 0x1ed   : > { %6321 = vmatprep.subr.bf16.mxu1 %v8527_v20  ;;  %6279 = vmatpush1.bf16.msra.mxu0 %v8398_v25  ;;  %v965_v15 = vld [vmem:[%s9716_s8 + $0x1208] sm:$0xff]  ;;  %v8463_v19 = vcombine.high %v837_v13, %v841_v14  ;;  %v8462_v25 = vcombine.low %v837_v13, %v841_v14 }
 0x1ee   : > { %6280 = vmatprep.subr.bf16.mxu0 %v8519_v27  ;;  %v969_v16 = vld [vmem:[%s9716_s8 + $0x1228] sm:$0xff] }
 0x1ef   : > { %v8591_v20 = vcombine.high %v965_v15, %v969_v16  ;;  %v1085_v21 = vld [vmem:[%s9716_s8 + $0x15c8] sm:$0xff] }
 0x1f0   : > { %6322 = vmatpush1.bf16.msra.mxu1 %v8526_v26  ;;  %v1089_v22 = vld [vmem:[%s9716_s8 + $0x15e8] sm:$0xff]  ;;  %v8590_v26 = vcombine.low %v965_v15, %v969_v16 }
 0x1f1   : > { %6323 = vmatprep.subr.bf16.mxu1 %v8647_v28  ;;  %6281 = vmatpush2.bf16.msra.mxu0 %v8518_v33  ;;  %v1213_v23 = vld [vmem:[%s9716_s8 + $0x19c8] sm:$0xff]  ;;  %v8711_v27 = vcombine.high %v1085_v21, %v1089_v22  ;;  %v8710_v33 = vcombine.low %v1085_v21, %v1089_v22  ;;  %v10173_v22 = vpop.f32.mrf.mxu0 }
 0x1f2   : > { %6282 = vmatprep.subr.bf16.mxu0 %v8511_v35  ;;  %v1217_v24 = vld [vmem:[%s9716_s8 + $0x19e8] sm:$0xff] }
 0x1f3   : > { %v8839_v28 = vcombine.high %v1213_v23, %v1217_v24  ;;  %v1077_v29 = vld [vmem:[%s9716_s8 + $0x1588] sm:$0xff] }
 0x1f4   : > { %6324 = vmatpush2.bf16.msra.mxu1 %v8646_v34  ;;  %v1081_v30 = vld [vmem:[%s9716_s8 + $0x15a8] sm:$0xff]  ;;  %v8838_v34 = vcombine.low %v1213_v23, %v1217_v24 }
 0x1f5   : > { %6325 = vmatprep.subr.bf16.mxu1 %v8639_v36  ;;  %6283 = vmatpush2.bf16.msra.mxu0 %v8510_v41  ;;  %v1205_v31 = vld [vmem:[%s9716_s8 + $0x1988] sm:$0xff]  ;;  %v8703_v35 = vcombine.high %v1077_v29, %v1081_v30 }
 0x1f6   : > { %6284 = vmatprep.subr.bf16.mxu0 %v8503_v43  ;;  %v1209_v32 = vld [vmem:[%s9716_s8 + $0x19a8] sm:$0xff]  ;;  %v8702_v43 = vcombine.low %v1077_v29, %v1081_v30 }
 0x1f7   : > { %v8831_v36 = vcombine.high %v1205_v31, %v1209_v32  ;;  %v1069_v37 = vld [vmem:[%s9716_s8 + $0x1548] sm:$0xff] }
 0x1f8   : > { %6326 = vmatpush2.bf16.msra.mxu1 %v8638_v42  ;;  %v1073_v38 = vld [vmem:[%s9716_s8 + $0x1568] sm:$0xff] }
 0x1f9   : > { %6327 = vmatprep.subr.bf16.mxu1 %v8631_v44  ;;  %6285 = vmatpush2.bf16.msra.mxu0 %v8502_v49  ;;  %v9211_v39 = vld [vmem:[%s9709_s29 + $0x18] ss:$56 sps:$4 sm:$0xff]   ;;  %v8830_v44 = vcombine.low %v1205_v31, %v1209_v32  ;;  %v8695_v45 = vcombine.high %v1069_v37, %v1073_v38  ;;  %v9213_v49 = vld [vmem:[%s9709_s29 + $0x2c] ss:$56 sps:$4 sm:$0xff]   ;;  %v8694_v53 = vcombine.low %v1069_v37, %v1073_v38  ;;  %v10179_v31 = vpop.f32.mrf.mxu0  ;;  %v10183_v37 = vpop.f32.mrf.mxu1 }
 0x1fa   : > { %6286 = vmatprep.subr.bf16.mxu0 %v8495_v51  ;;  %v1197_v40 = vld [vmem:[%s9716_s8 + $0x1948] sm:$0xff] }
 0x1fb   : > { %v1201_v41 = vld [vmem:[%s9716_s8 + $0x1968] sm:$0xff] }
 0x1fc   : > { %6328 = vmatpush2.bf16.msra.mxu1 %v8630_v50  ;;  %v9212_v42 = vld [vmem:[%s9709_s29 + $0x20] ss:$56 sps:$4 sm:$0xff]   ;;  %v8823_v46 = vcombine.high %v1197_v40, %v1201_v41  ;;  %v8822_v54 = vcombine.low %v1197_v40, %v1201_v41  ;;  %v10187_v41 = vpop.f32.mrf.mxu0 }
 0x1fd   : > { %6329 = vmatprep.subr.bf16.mxu1 %v8623_v52  ;;  %6287 = vmatpush2.bf16.msra.mxu0 %v8494_v57  ;;  %v1061_v47 = vld [vmem:[%s9716_s8 + $0x1508] sm:$0xff] }
 0x1fe   : > { %6288 = vmatprep.subr.bf16.mxu0 %v8487_v59  ;;  %v1065_v48 = vld [vmem:[%s9716_s8 + $0x1528] sm:$0xff] }
 0x1ff   : > { %v1189_v50 = vld [vmem:[%s9716_s8 + $0x1908] sm:$0xff]  ;;  %v8687_v55 = vcombine.high %v1061_v47, %v1065_v48  ;;  %v8686_v61 = vcombine.low %v1061_v47, %v1065_v48  ;;  %v10191_v47 = vpop.f32.mrf.mxu1 }
 0x200   : > { %6330 = vmatpush2.bf16.msra.mxu1 %v8622_v58  ;;  %v1193_v51 = vld [vmem:[%s9716_s8 + $0x1928] sm:$0xff] }
 0x201   : > { %6331 = vmatprep.subr.bf16.mxu1 %v8615_v60  ;;  %6289 = vmatpush2.bf16.msra.mxu0 %v8486_v1  ;;  %v9214_v52 = vld [vmem:[%s9709_s29 + $0x34] ss:$56 sps:$4 sm:$0xff]   ;;  %v8815_v56 = vcombine.high %v1189_v50, %v1193_v51  ;;  %v8814_v62 = vcombine.low %v1189_v50, %v1193_v51  ;;  %v10195_v51 = vpop.f32.mrf.mxu0 }
 0x202   : > { %6290 = vmatprep.subr.bf16.mxu0 %v8479_v3  ;;  %v1053_v57 = vld [vmem:[%s9716_s8 + $0x14c8] sm:$0xff] }
 0x203   : > { %v1057_v58 = vld [vmem:[%s9716_s8 + $0x14e8] sm:$0xff] }
 0x204   : > { %6332 = vmatpush2.bf16.msra.mxu1 %v8614_v2  ;;  %v1181_v59 = vld [vmem:[%s9716_s8 + $0x18c8] sm:$0xff]  ;;  %v8679_v63 = vcombine.high %v1053_v57, %v1057_v58  ;;  %v8678_v5 = vcombine.low %v1053_v57, %v1057_v58  ;;  %v10199_v57 = vpop.f32.mrf.mxu1  ;;  %v5954_v58 = vpop.f32.mrf.mxu0 }
 0x205   : > { %6333 = vmatprep.subr.bf16.mxu1 %v8607_v4  ;;  %6291 = vmatpush2.bf16.msra.mxu0 %v8478_v9  ;;  %v1185_v60 = vld [vmem:[%s9716_s8 + $0x18e8] sm:$0xff] }
 0x206   : > { %6292 = vmatprep.subr.bf16.mxu0 %v8471_v11  ;;  %v8807_v0 = vcombine.high %v1181_v59, %v1185_v60  ;;  %v1045_v1 = vld [vmem:[%s9716_s8 + $0x1488] sm:$0xff]  ;;  %v8806_v6 = vcombine.low %v1181_v59, %v1185_v60 }
 0x207   : > { %v1049_v2 = vld [vmem:[%s9716_s8 + $0x14a8] sm:$0xff] }
 0x208   : > { %6334 = vmatpush2.bf16.msra.mxu1 %v8606_v10  ;;  %v1173_v3 = vld [vmem:[%s9716_s8 + $0x1888] sm:$0xff]  ;;  %v8671_v7 = vcombine.high %v1045_v1, %v1049_v2  ;;  %v8670_v13 = vcombine.low %v1045_v1, %v1049_v2 }
 0x209   : > { %6335 = vmatprep.subr.bf16.mxu1 %v8599_v12  ;;  %6293 = vmatpush2.bf16.msra.mxu0 %v8470_v17  ;;  %v1177_v4 = vld [vmem:[%s9716_s8 + $0x18a8] sm:$0xff] }
 0x20a   : > { %6294 = vmatprep.subr.bf16.mxu0 %v8463_v19  ;;  %v8799_v8 = vcombine.high %v1173_v3, %v1177_v4  ;;  %v1037_v9 = vld [vmem:[%s9716_s8 + $0x1448] sm:$0xff]  ;;  %v8798_v14 = vcombine.low %v1173_v3, %v1177_v4  ;;  %v10205_v3 = vpop.f32.mrf.mxu1  ;;  %v5956_v4 = vpop.f32.mrf.mxu0 }
 0x20b   : > { %v1041_v10 = vld [vmem:[%s9716_s8 + $0x1468] sm:$0xff] }
 0x20c   : > { %6336 = vmatpush2.bf16.msra.mxu1 %v8598_v18  ;;  %v1165_v11 = vld [vmem:[%s9716_s8 + $0x1848] sm:$0xff]  ;;  %v8663_v15 = vcombine.high %v1037_v9, %v1041_v10  ;;  %v8662_v21 = vcombine.low %v1037_v9, %v1041_v10 }
 0x20d   : > { %6337 = vmatprep.subr.bf16.mxu1 %v8591_v20  ;;  %6295 = vmatpush2.bf16.msra.mxu0 %v8462_v25  ;;  %v1169_v12 = vld [vmem:[%s9716_s8 + $0x1868] sm:$0xff] }
 0x20e   : > { %6350 = vmatprep.subr.bf16.mxu0 %v8711_v27  ;;  %v8791_v16 = vcombine.high %v1165_v11, %v1169_v12  ;;  %v1029_v17 = vld [vmem:[%s9716_s8 + $0x1408] sm:$0xff]  ;;  %v8790_v23 = vcombine.low %v1165_v11, %v1169_v12 }
 0x20f   : > { %v1033_v18 = vld [vmem:[%s9716_s8 + $0x1428] sm:$0xff] }
 0x210   : > { %6338 = vmatpush2.bf16.msra.mxu1 %v8590_v26  ;;  %6297 = vmatmul.mubr.bf16.vlgmr.msra.gmra.mxu0 %v9211_v39  ;;  %v1157_v19 = vld [vmem:[%s9716_s8 + $0x1808] sm:$0xff]  ;;  %v8655_v24 = vcombine.high %v1029_v17, %v1033_v18  ;;  %v8654_v30 = vcombine.low %v1029_v17, %v1033_v18 }
 0x211   : > { %6393 = vmatprep.subr.bf16.mxu1 %v8839_v28  ;;  %6351 = vmatpush1.bf16.msra.mxu0 %v8710_v33  ;;  %v1161_v20 = vld [vmem:[%s9716_s8 + $0x1828] sm:$0xff] }
 0x212   : > { %6352 = vmatprep.subr.bf16.mxu0 %v8703_v35  ;;  %6382 = vmatprep.mubr.bf16.mxu0 %v9213_v49  ;;  %v8783_v25 = vcombine.high %v1157_v19, %v1161_v20  ;;  %v1149_v26 = vld [vmem:[%s9716_s8 + $0x17c8] sm:$0xff]  ;;  %v8782_v32 = vcombine.low %v1157_v19, %v1161_v20 }
 0x213   : > { %6340 = vmatmul.mubr.bf16.vlgmr.msra.gmra.mxu1 %v9212_v42  ;;  %v1153_v27 = vld [vmem:[%s9716_s8 + $0x17e8] sm:$0xff] }
 0x214   : > { %6394 = vmatpush1.bf16.msra.mxu1 %v8838_v34  ;;  %6425 = vmatprep.mubr.bf16.mxu1 %v9214_v52  ;;  %v1277_v28 = vld [vmem:[%s9716_s8 + $0x1bc8] sm:$0xff]  ;;  %v8775_v33 = vcombine.high %v1149_v26, %v1153_v27  ;;  %v8774_v40 = vcombine.low %v1149_v26, %v1153_v27 }
 0x215   : > { %6395 = vmatprep.subr.bf16.mxu1 %v8831_v36  ;;  %6353 = vmatpush1.bf16.msra.mxu0 %v8702_v43  ;;  %v1281_v29 = vld [vmem:[%s9716_s8 + $0x1be8] sm:$0xff] }
 0x216   : > { %6354 = vmatprep.subr.bf16.mxu0 %v8695_v45  ;;  %v8903_v34 = vcombine.high %v1277_v28, %v1281_v29  ;;  %v1141_v35 = vld [vmem:[%s9716_s8 + $0x1788] sm:$0xff]  ;;  %v8902_v42 = vcombine.low %v1277_v28, %v1281_v29 }
 0x217   : > { %v1145_v36 = vld [vmem:[%s9716_s8 + $0x17a8] sm:$0xff] }
 0x218   : > { %6396 = vmatpush1.bf16.msra.mxu1 %v8830_v44  ;;  %v1269_v38 = vld [vmem:[%s9716_s8 + $0x1b88] sm:$0xff]  ;;  %v8767_v43 = vcombine.high %v1141_v35, %v1145_v36  ;;  %v8766_v50 = vcombine.low %v1141_v35, %v1145_v36 }
 0x219   : > { %6397 = vmatprep.subr.bf16.mxu1 %v8823_v46  ;;  %6355 = vmatpush1.bf16.msra.mxu0 %v8694_v53  ;;  %v1273_v39 = vld [vmem:[%s9716_s8 + $0x1ba8] sm:$0xff] }
 0x21a   : > { %6356 = vmatprep.subr.bf16.mxu0 %v8687_v55  ;;  %v8895_v44 = vcombine.high %v1269_v38, %v1273_v39  ;;  %v1133_v45 = vld [vmem:[%s9716_s8 + $0x1748] sm:$0xff]  ;;  %v8894_v52 = vcombine.low %v1269_v38, %v1273_v39 }
 0x21b   : > { %v1137_v46 = vld [vmem:[%s9716_s8 + $0x1768] sm:$0xff] }
 0x21c   : > { %6398 = vmatpush1.bf16.msra.mxu1 %v8822_v54  ;;  %v1261_v48 = vld [vmem:[%s9716_s8 + $0x1b48] sm:$0xff]  ;;  %v8759_v53 = vcombine.high %v1133_v45, %v1137_v46 }
 0x21d   : > { %6399 = vmatprep.subr.bf16.mxu1 %v8815_v56  ;;  %6357 = vmatpush1.bf16.msra.mxu0 %v8686_v61  ;;  %v1265_v49 = vld [vmem:[%s9716_s8 + $0x1b68] sm:$0xff]  ;;  %v8758_v61 = vcombine.low %v1133_v45, %v1137_v46 }
 0x21e   : > { %6358 = vmatprep.subr.bf16.mxu0 %v8679_v63  ;;  %v8887_v54 = vcombine.high %v1261_v48, %v1265_v49  ;;  %v1125_v55 = vld [vmem:[%s9716_s8 + $0x1708] sm:$0xff] }
 0x21f   : > { %v1129_v56 = vld [vmem:[%s9716_s8 + $0x1728] sm:$0xff] }
 0x220   : > { %6400 = vmatpush1.bf16.msra.mxu1 %v8814_v62  ;;  %v1253_v59 = vld [vmem:[%s9716_s8 + $0x1b08] sm:$0xff]  ;;  %v8886_v62 = vcombine.low %v1261_v48, %v1265_v49  ;;  %v8751_v63 = vcombine.high %v1125_v55, %v1129_v56  ;;  %v5916_v48 = vadd.f32 %v10199_v57, %v10187_v41 }
 0x221   : > { %6401 = vmatprep.subr.bf16.mxu1 %v8807_v0  ;;  %6359 = vmatpush1.bf16.msra.mxu0 %v8678_v5  ;;  %v1257_v60 = vld [vmem:[%s9716_s8 + $0x1b28] sm:$0xff] }
 0x222   : > { %6360 = vmatprep.subr.bf16.mxu0 %v8671_v7  ;;  %v8879_v0 = vcombine.high %v1253_v59, %v1257_v60  ;;  %v1117_v1 = vld [vmem:[%s9716_s8 + $0x16c8] sm:$0xff]  ;;  %v8750_v7 = vcombine.low %v1125_v55, %v1129_v56  ;;  %v8878_v9 = vcombine.low %v1253_v59, %v1257_v60  ;;  %v5918_v55 = vadd.f32 %v10205_v3, %v10195_v51  ;;  %v442_v51 = vld [vmem:[%s9716_s8 + $0x1b0] sm:$0xff] }
 0x223   : > { %v1121_v2 = vld [vmem:[%s9716_s8 + $0x16e8] sm:$0xff]  ;;  %v566_v3 = vld [vmem:[%s9716_s8 + $0x590] sm:$0xff] }
 0x224   : > { %6402 = vmatpush1.bf16.msra.mxu1 %v8806_v6  ;;  %v1245_v5 = vld [vmem:[%s9716_s8 + $0x1ac8] sm:$0xff]  ;;  %v8743_v10 = vcombine.high %v1117_v1, %v1121_v2  ;;  %v8742_v17 = vcombine.low %v1117_v1, %v1121_v2  ;;  %v438_v1 = vld [vmem:[%s9716_s8 + $0x190] sm:$0xff] }
 0x225   : > { %6403 = vmatprep.subr.bf16.mxu1 %v8799_v8  ;;  %6361 = vmatpush1.bf16.msra.mxu0 %v8670_v13  ;;  %v1249_v6 = vld [vmem:[%s9716_s8 + $0x1ae8] sm:$0xff]  ;;  %v5997_v8 = vpop.f32.mrf.mxu1 }
 0x226   : > { %6362 = vmatprep.subr.bf16.mxu0 %v8663_v15  ;;  %v8871_v11 = vcombine.high %v1245_v5, %v1249_v6  ;;  %v1109_v12 = vld [vmem:[%s9716_s8 + $0x1688] sm:$0xff]  ;;  %v8870_v19 = vcombine.low %v1245_v5, %v1249_v6 }
 0x227   : > { %v1113_v13 = vld [vmem:[%s9716_s8 + $0x16a8] sm:$0xff]  ;;  %v5999_v18 = vpop.f32.mrf.mxu1 }
 0x228   : > { %6404 = vmatpush1.bf16.msra.mxu1 %v8798_v14  ;;  %v5958_v14 = vpop.f32.mrf.mxu0  ;;  %v1237_v15 = vld [vmem:[%s9716_s8 + $0x1a88] sm:$0xff]  ;;  %v8735_v20 = vcombine.high %v1109_v12, %v1113_v13  ;;  %v8734_v28 = vcombine.low %v1109_v12, %v1113_v13 }
 0x229   : > { %6405 = vmatprep.subr.bf16.mxu1 %v8791_v16  ;;  %6363 = vmatpush1.bf16.msra.mxu0 %v8662_v21  ;;  %v1241_v16 = vld [vmem:[%s9716_s8 + $0x1aa8] sm:$0xff]  ;;  %v6001_v29 = vpop.f32.mrf.mxu1 }
 0x22a   : > { %6364 = vmatprep.subr.bf16.mxu0 %v8655_v24  ;;  %v8863_v21 = vcombine.high %v1237_v15, %v1241_v16  ;;  %v1105_v24 = vld [vmem:[%s9716_s8 + $0x1668] sm:$0xff] }
 0x22b   : > { %v1229_v26 = vld [vmem:[%s9716_s8 + $0x1a48] sm:$0xff]  ;;  %v6003_v45 = vpop.f32.mrf.mxu1 }
 0x22c   : > { %6406 = vmatpush1.bf16.msra.mxu1 %v8790_v23  ;;  %v1101_v23 = vld [vmem:[%s9716_s8 + $0x1648] sm:$0xff] }
 0x22d   : > { %6407 = vmatprep.subr.bf16.mxu1 %v8783_v25  ;;  %6365 = vmatpush1.bf16.msra.mxu0 %v8654_v30  ;;  %v5960_v25 = vpop.f32.mrf.mxu0  ;;  %v1233_v27 = vld [vmem:[%s9716_s8 + $0x1a68] sm:$0xff] }
 0x22e   : > { %6366 = vmatprep.subr.bf16.mxu0 %v8775_v33  ;;  %v8727_v33 = vcombine.high %v1101_v23, %v1105_v24  ;;  %v8855_v35 = vcombine.high %v1229_v26, %v1233_v27  ;;  %v1093_v36 = vld [vmem:[%s9716_s8 + $0x1608] sm:$0xff] }
 0x22f   : > { %v6040_v30 = vpop.f32.mrf.mxu0  ;;  %v1097_v38 = vld [vmem:[%s9716_s8 + $0x1628] sm:$0xff] }
 0x230   : > { %6408 = vmatpush1.bf16.msra.mxu1 %v8782_v32  ;;  %v8862_v32 = vcombine.low %v1237_v15, %v1241_v16  ;;  %v1221_v39 = vld [vmem:[%s9716_s8 + $0x1a08] sm:$0xff]  ;;  %v8718_v59 = vcombine.low %v1093_v36, %v1097_v38  ;;  %v434_v16 = vld [vmem:[%s9716_s8 + $0x170] sm:$0xff] }
 0x231   : > { %6409 = vmatprep.subr.bf16.mxu1 %v8903_v34  ;;  %6367 = vmatpush2.bf16.msra.mxu0 %v8774_v40  ;;  %v5912_v34 = vadd.f32 %v10183_v37, %v10173_v22  ;;  %v1225_v40 = vld [vmem:[%s9716_s8 + $0x1a28] sm:$0xff]  ;;  %v6042_v46 = vpop.f32.mrf.mxu0  ;;  %v8854_v22 = vcombine.low %v1229_v26, %v1233_v27  ;;  %v8719_v37 = vcombine.high %v1093_v36, %v1097_v38 }
 0x232   : > { %6368 = vmatprep.subr.bf16.mxu0 %v8767_v43  ;;  %v8846_v57 = vcombine.low %v1221_v39, %v1225_v40 }
 0x233   : > { %v5955_v43 = vadd.f32 %v5954_v58, %v5912_v34  ;;  %v5959_v58 = vadd.f32 %v5958_v14, %v5916_v48  ;;  %v6044_v41 = vpop.f32.mrf.mxu0 }
 0x234   : > { %6410 = vmatpush2.bf16.msra.mxu1 %v8902_v42  ;;  %v5914_v42 = vadd.f32 %v10191_v47, %v10179_v31  ;;  %v6083_v31 = vpop.f32.mrf.mxu1  ;;  %v574_v47 = vld [vmem:[%s9716_s8 + $0x5d0] sm:$0xff] }
 0x235   : > { %6411 = vmatprep.subr.bf16.mxu1 %v8895_v44  ;;  %6369 = vmatpush2.bf16.msra.mxu0 %v8766_v50  ;;  %v8726_v44 = vcombine.low %v1101_v23, %v1105_v24  ;;  %v8847_v50 = vcombine.high %v1221_v39, %v1225_v40  ;;  %v5998_v56 = vadd.f32 %v5997_v8, %v5955_v43  ;;  %v6046_v8 = vpop.f32.mrf.mxu0  ;;  %v9215_v23 = vld [vmem:[%s9709_s29 + $0x28] ss:$56 sps:$4 sm:$0xff]  }
 0x236   : > { %6370 = vmatprep.subr.bf16.mxu0 %v8759_v53  ;;  %v5957_v49 = vadd.f32 %v5956_v4, %v5914_v42  ;;  %v450_v53 = vld [vmem:[%s9716_s8 + $0x1f0] sm:$0xff]  ;;  %v6085_v2 = vpop.f32.mrf.mxu1  ;;  %v6002_v5 = vadd.f32 %v6001_v29, %v5959_v58  ;;  %v8064_v24 = vcombine.low %v438_v1, %v442_v51  ;;  %v359_v29 = vld [vmem:[#allocation2] sm:$0xff] }
 0x237   : > { %v570_v4 = vld [vmem:[%s9716_s8 + $0x5b0] sm:$0xff] }
 0x238   : > { %6412 = vmatpush2.bf16.msra.mxu1 %v8894_v52  ;;  %v446_v52 = vld [vmem:[%s9716_s8 + $0x1d0] sm:$0xff]  ;;  %v6045_v14 = vadd.f32 %v6044_v41, %v6002_v5  ;;  %v8193_v15 = vcombine.high %v566_v3, %v570_v4 }
 0x239   : > { %6413 = vmatprep.subr.bf16.mxu1 %v8887_v54  ;;  %6371 = vmatpush2.bf16.msra.mxu0 %v8758_v61  ;;  %v578_v54 = vld [vmem:[%s9716_s8 + $0x5f0] sm:$0xff]  ;;  %v8073_v60 = vcombine.high %v446_v52, %v450_v53  ;;  %v6000_v61 = vadd.f32 %v5999_v18, %v5957_v49 }
 0x23a   : > { %6372 = vmatprep.subr.bf16.mxu0 %v8751_v63  ;;  %v6041_v63 = vadd.f32 %v6040_v30, %v5998_v56  ;;  %v562_v18 = vld [vmem:[%s9716_s8 + $0x570] sm:$0xff] }
 0x23b   : > { %v6043_v6 = vadd.f32 %v6042_v46, %v6000_v61  ;;  %v422_v39 = vld [vmem:[%s9716_s8 + $0x110] sm:$0xff] }
 0x23c   : > { %6414 = vmatpush2.bf16.msra.mxu1 %v8886_v62  ;;  %v5961_v62 = vadd.f32 %v5960_v25, %v5918_v55  ;;  %v6084_v13 = vadd.f32 %v6083_v31, %v6041_v63  ;;  %v426_v40 = vld [vmem:[%s9716_s8 + $0x130] sm:$0xff] }
 0x23d   : > { %6415 = vmatprep.subr.bf16.mxu1 %v8879_v0  ;;  %6373 = vmatpush2.bf16.msra.mxu0 %v8750_v7  ;;  %v8201_v0 = vcombine.high %v574_v47, %v578_v54  ;;  %v8072_v7 = vcombine.low %v446_v52, %v450_v53  ;;  %v6086_v25 = vadd.f32 %v6085_v2, %v6043_v6  ;;  %v9217_v42 = vld [vmem:[%s9709_s29 + $0x4] ss:$56 sps:$4 sm:$0xff]  }
 0x23e   : > { %6374 = vmatprep.subr.bf16.mxu0 %v8743_v10  ;;  %v8065_v10 = vcombine.high %v438_v1, %v442_v51  ;;  %v6004_v12 = vadd.f32 %v6003_v45, %v5961_v62  ;;  %v550_v46 = vld [vmem:[%s9716_s8 + $0x510] sm:$0xff]  ;;  %v367_v53 = vld [vmem:[#allocation2 + $0x20] sm:$0xff]  ;;  %v8048_v62 = vcombine.low %v422_v39, %v426_v40 }
 0x23f   : > { %v418_v41 = vld [vmem:[%s9716_s8 + $0xf0] sm:$0xff] }
 0x240   : > { %6416 = vmatpush2.bf16.msra.mxu1 %v8878_v9  ;;  %v8200_v9 = vcombine.low %v574_v47, %v578_v54  ;;  %v6047_v26 = vadd.f32 %v6046_v8, %v6004_v12  ;;  %v8049_v54 = vcombine.high %v422_v39, %v426_v40  ;;  %v406_v51 = vld [vmem:[%s9716_s8 + $0x90] sm:$0xff] }
 0x241   : > { %6417 = vmatprep.subr.bf16.mxu1 %v8871_v11  ;;  %6375 = vmatpush2.bf16.msra.mxu0 %v8742_v17  ;;  %v10238_v11 = vld [vmem:[%s9716_s8 + $0x150] sm:$0xff] }
 0x242   : > { %6376 = vmatprep.subr.bf16.mxu0 %v8735_v20  ;;  %v558_v17 = vld [vmem:[%s9716_s8 + $0x550] sm:$0xff]  ;;  %v8056_v52 = vcombine.low %v10238_v11, %v434_v16 }
 0x243   : > { %v358_v20 = vld [vmem:[#allocation2 + $0x30] sm:$0xff]  ;;  %v8185_v34 = vcombine.high %v558_v17, %v562_v18  ;;  %v8184_v47 = vcombine.low %v558_v17, %v562_v18 }
 0x244   : > { %6418 = vmatpush2.bf16.msra.mxu1 %v8870_v19  ;;  %v6087_v19 = vpop.f32.mrf.mxu1  ;;  %v410_v2 = vld [vmem:[%s9716_s8 + $0xb0] sm:$0xff] }
 0x245   : > { %6419 = vmatprep.subr.bf16.mxu1 %v8863_v21  ;;  %6377 = vmatpush2.bf16.msra.mxu0 %v8734_v28  ;;  %v9216_v28 = vld [vmem:[%s9709_s29 + $0x30] ss:$56 sps:$4 sm:$0xff]  }
 0x246   : > { %6378 = vmatprep.subr.bf16.mxu0 %v8727_v33  ;;  %v8057_v33 = vcombine.high %v10238_v11, %v434_v16  ;;  %v6089_v43 = vpop.f32.mrf.mxu1  ;;  %v526_v11 = vld [vmem:[%s9716_s8 + $0x450] sm:$0xff] }
 0x247   : > { %v6090_v48 = vadd.f32 %v6089_v43, %v6047_v26  ;;  %v530_v12 = vld [vmem:[%s9716_s8 + $0x470] sm:$0xff] }
 0x248   : > { %6420 = vmatpush2.bf16.msra.mxu1 %v8862_v32  ;;  %v8192_v32 = vcombine.low %v566_v3, %v570_v4  ;;  %v534_v3 = vld [vmem:[%s9716_s8 + $0x490] sm:$0xff]  ;;  %v8153_v16 = vcombine.high %v526_v11, %v530_v12 }
 0x249   : > { %6421 = vmatprep.subr.bf16.mxu1 %v8855_v35  ;;  %6379 = vmatpush2.bf16.msra.mxu0 %v8726_v44  ;;  %v6088_v35 = vadd.f32 %v6087_v19, %v6045_v14  ;;  %v366_v44 = vld [vmem:[#allocation2 + $0x40] sm:$0xff]  ;;  %v538_v4 = vld [vmem:[%s9716_s8 + $0x4b0] sm:$0xff] }
 0x24a   : > { %6380 = vmatprep.subr.bf16.mxu0 %v8719_v37  ;;  %v9218_v37 = vld [vmem:[%s9709_s29 + $0xc] ss:$56 sps:$4 sm:$0xff]   ;;  %v8161_v8 = vcombine.high %v534_v3, %v538_v4  ;;  %v8160_v14 = vcombine.low %v534_v3, %v538_v4 }
 0x24b   : > { %v390_v17 = vld [vmem:[%s9716_s8 + $0x10] sm:$0xff] }
 0x24c   : > { %6422 = vmatpush2.bf16.msra.mxu1 %v8854_v22  ;;  %v554_v22 = vld [vmem:[%s9716_s8 + $0x530] sm:$0xff] }
 0x24d   : > { %6423 = vmatprep.subr.bf16.mxu1 %v8847_v50  ;;  %6381 = vmatpush2.bf16.msra.mxu0 %v8718_v59  ;;  %v8177_v58 = vcombine.high %v550_v46, %v554_v22  ;;  %v414_v59 = vld [vmem:[%s9716_s8 + $0xd0] sm:$0xff]  ;;  %v8176_v63 = vcombine.low %v550_v46, %v554_v22 }
 0x24e   : > { %6436 = vmatprep.subr.bf16.mxu0 %v8073_v60  ;;  %v546_v60 = vld [vmem:[%s9716_s8 + $0x4f0] sm:$0xff]  ;;  %v8040_v5 = vcombine.low %v414_v59, %v418_v41 }
 0x24f   : > { %v394_v18 = vld [vmem:[%s9716_s8 + $0x30] sm:$0xff] }
 0x250   : > { %6424 = vmatpush2.bf16.msra.mxu1 %v8846_v57  ;;  %v6126_v21 = vpop.f32.mrf.mxu0  ;;  %6383 = vmatmul.mubr.bf16.vlgmr.msra.gmra.mxu0 %v9215_v23  ;;  %v542_v57 = vld [vmem:[%s9716_s8 + $0x4d0] sm:$0xff]  ;;  %v8152_v23 = vcombine.low %v526_v11, %v530_v12 }
 0x251   : > { %6479 = vmatprep.subr.bf16.mxu1 %v8201_v0  ;;  %v6127_v27 = vadd.f32 %v6126_v21, %v6084_v13  ;;  %6437 = vmatpush1.bf16.msra.mxu0 %v8072_v7  ;;  %v8041_v0 = vcombine.high %v414_v59, %v418_v41  ;;  %v8169_v1 = vcombine.high %v542_v57, %v546_v60  ;;  %v518_v19 = vld [vmem:[%s9716_s8 + $0x410] sm:$0xff] }
 0x252   : > { %v6128_v30 = vpop.f32.mrf.mxu0  ;;  %6438 = vmatprep.subr.bf16.mxu0 %v8065_v10  ;;  %6468 = vmatprep.mubr.bf16.mxu0 %v9217_v42  ;;  %v8168_v6 = vcombine.low %v542_v57, %v546_v60  ;;  %v8033_v7 = vcombine.high %v406_v51, %v410_v2  ;;  %v402_v10 = vld [vmem:[%s9716_s8 + $0x70] sm:$0xff]  ;;  %v8032_v13 = vcombine.low %v406_v51, %v410_v2 }
 0x253   : > { %6426 = vmatmul.mubr.bf16.vlgmr.msra.gmra.mxu1 %v9216_v28  ;;  %v7038_v36 = vadd.f32 %v6127_v27, %v358_v20  ;;  %v6129_v38 = vadd.f32 %v6128_v30, %v6086_v25  ;;  %v522_v20 = vld [vmem:[%s9716_s8 + $0x430] sm:$0xff]  ;;  %v8016_v30 = vcombine.low %v390_v17, %v394_v18 }
 0x254   : > { %6480 = vmatpush1.bf16.msra.mxu1 %v8200_v9  ;;  %v6130_v45 = vpop.f32.mrf.mxu0  ;;  %6511 = vmatprep.mubr.bf16.mxu1 %v9218_v37  ;;  %v398_v9 = vld [vmem:[%s9716_s8 + $0x50] sm:$0xff]  ;;  %v8145_v25 = vcombine.high %v518_v19, %v522_v20 }
 0x255   : > { %6481 = vmatprep.subr.bf16.mxu1 %v8193_v15  ;;  %7054 = vst [vmem:[#allocation2 + $0x30] sm:$0xff] %v7038_v36  ;;  %v7039_v49 = vadd.f32 %v6129_v38, %v359_v29  ;;  %v6131_v50 = vadd.f32 %v6130_v45, %v6088_v35  ;;  %6439 = vmatpush1.bf16.msra.mxu0 %v8064_v24  ;;  %v510_v26 = vld [vmem:[%s9716_s8 + $0x3d0] sm:$0xff] }
 0x256   : > { %v6132_v31 = vpop.f32.mrf.mxu0  ;;  %6440 = vmatprep.subr.bf16.mxu0 %v8057_v33  ;;  %v8025_v15 = vcombine.high %v398_v9, %v402_v10  ;;  %v8024_v21 = vcombine.low %v398_v9, %v402_v10  ;;  %v8017_v24 = vcombine.high %v390_v17, %v394_v18  ;;  %v514_v27 = vld [vmem:[%s9716_s8 + $0x3f0] sm:$0xff] }
 0x257   : > { %7055 = vst [vmem:[#allocation2] sm:$0xff] %v7039_v49  ;;  %v7046_v55 = vadd.f32 %v6131_v50, %v366_v44  ;;  %v6133_v56 = vadd.f32 %v6132_v31, %v6090_v48  ;;  %v638_v28 = vld [vmem:[%s9716_s8 + $0x7d0] sm:$0xff]  ;;  %v8137_v33 = vcombine.high %v510_v26, %v514_v27  ;;  %v8136_v40 = vcombine.low %v510_v26, %v514_v27 }
 0x258   : > { %6482 = vmatpush1.bf16.msra.mxu1 %v8192_v32  ;;  %v642_v29 = vld [vmem:[%s9716_s8 + $0x7f0] sm:$0xff]  ;;  %v8144_v32 = vcombine.low %v518_v19, %v522_v20 }
 0x259   : > { %6483 = vmatprep.subr.bf16.mxu1 %v8185_v34  ;;  %7062 = vst [vmem:[#allocation2 + $0x40] sm:$0xff] %v7046_v55  ;;  %v7047_v61 = vadd.f32 %v6133_v56, %v367_v53  ;;  %6441 = vmatpush1.bf16.msra.mxu0 %v8056_v52  ;;  %v8265_v34 = vcombine.high %v638_v28, %v642_v29  ;;  %v502_v35 = vld [vmem:[%s9716_s8 + $0x390] sm:$0xff] }
 0x25a   : > { %6442 = vmatprep.subr.bf16.mxu0 %v8049_v54  ;;  %v506_v36 = vld [vmem:[%s9716_s8 + $0x3b0] sm:$0xff]  ;;  %v8264_v42 = vcombine.low %v638_v28, %v642_v29 }
 0x25b   : > { %7063 = vst [vmem:[#allocation2 + $0x20] sm:$0xff] %v7047_v61  ;;  %v630_v38 = vld [vmem:[%s9716_s8 + $0x790] sm:$0xff]  ;;  %v8129_v43 = vcombine.high %v502_v35, %v506_v36  ;;  %v8128_v48 = vcombine.low %v502_v35, %v506_v36 }
 0x25c   : > { %6484 = vmatpush1.bf16.msra.mxu1 %v8184_v47  ;;  %v634_v39 = vld [vmem:[%s9716_s8 + $0x7b0] sm:$0xff] }
 0x25d   : > { %6485 = vmatprep.subr.bf16.mxu1 %v8177_v58  ;;  %6443 = vmatpush1.bf16.msra.mxu0 %v8048_v62  ;;  %v8257_v44 = vcombine.high %v630_v38, %v634_v39  ;;  %v494_v45 = vld [vmem:[%s9716_s8 + $0x350] sm:$0xff]  ;;  %v8256_v49 = vcombine.low %v630_v38, %v634_v39 }
 0x25e   : > { %6444 = vmatprep.subr.bf16.mxu0 %v8041_v0  ;;  %v498_v46 = vld [vmem:[%s9716_s8 + $0x370] sm:$0xff] }
 0x25f   : > { %v622_v22 = vld [vmem:[%s9716_s8 + $0x750] sm:$0xff]  ;;  %v8121_v50 = vcombine.high %v494_v45, %v498_v46  ;;  %v8120_v55 = vcombine.low %v494_v45, %v498_v46 }
 0x260   : > { %6486 = vmatpush1.bf16.msra.mxu1 %v8176_v63  ;;  %v626_v37 = vld [vmem:[%s9716_s8 + $0x770] sm:$0xff] }
 0x261   : > { %6487 = vmatprep.subr.bf16.mxu1 %v8169_v1  ;;  %6445 = vmatpush1.bf16.msra.mxu0 %v8040_v5  ;;  %v8249_v52 = vcombine.high %v622_v22, %v626_v37  ;;  %v486_v53 = vld [vmem:[%s9716_s8 + $0x310] sm:$0xff]  ;;  %v8248_v56 = vcombine.low %v622_v22, %v626_v37 }
 0x262   : > { %6446 = vmatprep.subr.bf16.mxu0 %v8033_v7  ;;  %v490_v31 = vld [vmem:[%s9716_s8 + $0x330] sm:$0xff] }
 0x263   : > { %v614_v47 = vld [vmem:[%s9716_s8 + $0x710] sm:$0xff]  ;;  %v8113_v58 = vcombine.high %v486_v53, %v490_v31  ;;  %v8112_v62 = vcombine.low %v486_v53, %v490_v31 }
 0x264   : > { %6488 = vmatpush1.bf16.msra.mxu1 %v8168_v6  ;;  %v618_v54 = vld [vmem:[%s9716_s8 + $0x730] sm:$0xff] }
 0x265   : > { %6489 = vmatprep.subr.bf16.mxu1 %v8161_v8  ;;  %6447 = vmatpush1.bf16.msra.mxu0 %v8032_v13  ;;  %v8241_v59 = vcombine.high %v614_v47, %v618_v54  ;;  %v478_v41 = vld [vmem:[%s9716_s8 + $0x2d0] sm:$0xff]  ;;  %v8240_v63 = vcombine.low %v614_v47, %v618_v54 }
 0x266   : > { %6448 = vmatprep.subr.bf16.mxu0 %v8025_v15  ;;  %v482_v57 = vld [vmem:[%s9716_s8 + $0x2f0] sm:$0xff] }
 0x267   : > { %v606_v60 = vld [vmem:[%s9716_s8 + $0x6d0] sm:$0xff]  ;;  %v8105_v0 = vcombine.high %v478_v41, %v482_v57  ;;  %v8104_v5 = vcombine.low %v478_v41, %v482_v57 }
 0x268   : > { %6490 = vmatpush1.bf16.msra.mxu1 %v8160_v14  ;;  %v610_v61 = vld [vmem:[%s9716_s8 + $0x6f0] sm:$0xff] }
 0x269   : > { %6491 = vmatprep.subr.bf16.mxu1 %v8153_v16  ;;  %6449 = vmatpush1.bf16.msra.mxu0 %v8024_v21  ;;  %v8233_v1 = vcombine.high %v606_v60, %v610_v61  ;;  %v470_v51 = vld [vmem:[%s9716_s8 + $0x290] sm:$0xff]  ;;  %v8232_v6 = vcombine.low %v606_v60, %v610_v61 }
 0x26a   : > { %6450 = vmatprep.subr.bf16.mxu0 %v8017_v24  ;;  %v474_v2 = vld [vmem:[%s9716_s8 + $0x2b0] sm:$0xff] }
 0x26b   : > { %v598_v3 = vld [vmem:[%s9716_s8 + $0x690] sm:$0xff]  ;;  %v8097_v7 = vcombine.high %v470_v51, %v474_v2  ;;  %v8096_v13 = vcombine.low %v470_v51, %v474_v2 }
 0x26c   : > { %6492 = vmatpush1.bf16.msra.mxu1 %v8152_v23  ;;  %v602_v4 = vld [vmem:[%s9716_s8 + $0x6b0] sm:$0xff] }
 0x26d   : > { %6493 = vmatprep.subr.bf16.mxu1 %v8145_v25  ;;  %6451 = vmatpush1.bf16.msra.mxu0 %v8016_v30  ;;  %v8225_v8 = vcombine.high %v598_v3, %v602_v4  ;;  %v462_v9 = vld [vmem:[%s9716_s8 + $0x250] sm:$0xff]  ;;  %v8224_v14 = vcombine.low %v598_v3, %v602_v4 }
 0x26e   : > { %6452 = vmatprep.subr.bf16.mxu0 %v8137_v33  ;;  %v466_v10 = vld [vmem:[%s9716_s8 + $0x270] sm:$0xff] }
 0x26f   : > { %v590_v11 = vld [vmem:[%s9716_s8 + $0x650] sm:$0xff]  ;;  %v8089_v15 = vcombine.high %v462_v9, %v466_v10  ;;  %v8088_v21 = vcombine.low %v462_v9, %v466_v10 }
 0x270   : > { %6494 = vmatpush1.bf16.msra.mxu1 %v8144_v32  ;;  %v594_v12 = vld [vmem:[%s9716_s8 + $0x670] sm:$0xff] }
 0x271   : > { %6495 = vmatprep.subr.bf16.mxu1 %v8265_v34  ;;  %6453 = vmatpush2.bf16.msra.mxu0 %v8136_v40  ;;  %v8217_v16 = vcombine.high %v590_v11, %v594_v12  ;;  %v454_v17 = vld [vmem:[%s9716_s8 + $0x210] sm:$0xff]  ;;  %v8216_v23 = vcombine.low %v590_v11, %v594_v12 }
 0x272   : > { %6454 = vmatprep.subr.bf16.mxu0 %v8129_v43  ;;  %v458_v18 = vld [vmem:[%s9716_s8 + $0x230] sm:$0xff] }
 0x273   : > { %v582_v19 = vld [vmem:[%s9716_s8 + $0x610] sm:$0xff]  ;;  %v8081_v24 = vcombine.high %v454_v17, %v458_v18  ;;  %v8080_v30 = vcombine.low %v454_v17, %v458_v18 }
 0x274   : > { %6496 = vmatpush2.bf16.msra.mxu1 %v8264_v42  ;;  %v586_v20 = vld [vmem:[%s9716_s8 + $0x630] sm:$0xff] }
 0x275   : > { %6497 = vmatprep.subr.bf16.mxu1 %v8257_v44  ;;  %6455 = vmatpush2.bf16.msra.mxu0 %v8128_v48  ;;  %v8209_v25 = vcombine.high %v582_v19, %v586_v20  ;;  %v702_v26 = vld [vmem:[%s9716_s8 + $0x9d0] sm:$0xff]  ;;  %v8208_v32 = vcombine.low %v582_v19, %v586_v20 }
 0x276   : > { %6456 = vmatprep.subr.bf16.mxu0 %v8121_v50  ;;  %v706_v27 = vld [vmem:[%s9716_s8 + $0x9f0] sm:$0xff] }
 0x277   : > { %v830_v28 = vld [vmem:[%s9716_s8 + $0xdd0] sm:$0xff]  ;;  %v8329_v33 = vcombine.high %v702_v26, %v706_v27  ;;  %v8328_v40 = vcombine.low %v702_v26, %v706_v27 }
 0x278   : > { %6498 = vmatpush2.bf16.msra.mxu1 %v8256_v49  ;;  %v834_v29 = vld [vmem:[%s9716_s8 + $0xdf0] sm:$0xff] }
 0x279   : > { %6499 = vmatprep.subr.bf16.mxu1 %v8249_v52  ;;  %6457 = vmatpush2.bf16.msra.mxu0 %v8120_v55  ;;  %v8457_v34 = vcombine.high %v830_v28, %v834_v29  ;;  %v694_v35 = vld [vmem:[%s9716_s8 + $0x990] sm:$0xff]  ;;  %v8456_v42 = vcombine.low %v830_v28, %v834_v29 }
 0x27a   : > { %6458 = vmatprep.subr.bf16.mxu0 %v8113_v58  ;;  %v698_v36 = vld [vmem:[%s9716_s8 + $0x9b0] sm:$0xff] }
 0x27b   : > { %v822_v38 = vld [vmem:[%s9716_s8 + $0xd90] sm:$0xff]  ;;  %v8321_v43 = vcombine.high %v694_v35, %v698_v36  ;;  %v8320_v50 = vcombine.low %v694_v35, %v698_v36 }
 0x27c   : > { %6500 = vmatpush2.bf16.msra.mxu1 %v8248_v56  ;;  %v826_v39 = vld [vmem:[%s9716_s8 + $0xdb0] sm:$0xff] }
 0x27d   : > { %6501 = vmatprep.subr.bf16.mxu1 %v8241_v59  ;;  %6459 = vmatpush2.bf16.msra.mxu0 %v8112_v62  ;;  %v8449_v44 = vcombine.high %v822_v38, %v826_v39  ;;  %v686_v45 = vld [vmem:[%s9716_s8 + $0x950] sm:$0xff]  ;;  %v8448_v52 = vcombine.low %v822_v38, %v826_v39 }
 0x27e   : > { %6460 = vmatprep.subr.bf16.mxu0 %v8105_v0  ;;  %v690_v46 = vld [vmem:[%s9716_s8 + $0x970] sm:$0xff] }
 0x27f   : > { %v9219_v22 = vld [vmem:[%s9709_s29] ss:$56 sps:$4 sm:$0xff]   ;;  %v8313_v53 = vcombine.high %v686_v45, %v690_v46  ;;  %v9221_v55 = vld [vmem:[%s9709_s29 + $0x14] ss:$56 sps:$4 sm:$0xff]   ;;  %v8312_v41 = vcombine.low %v686_v45, %v690_v46 }
 0x280   : > { %6502 = vmatpush2.bf16.msra.mxu1 %v8240_v63  ;;  %v814_v37 = vld [vmem:[%s9716_s8 + $0xd50] sm:$0xff] }
 0x281   : > { %6503 = vmatprep.subr.bf16.mxu1 %v8233_v1  ;;  %6461 = vmatpush2.bf16.msra.mxu0 %v8104_v5  ;;  %v818_v48 = vld [vmem:[%s9716_s8 + $0xd70] sm:$0xff] }
 0x282   : > { %6462 = vmatprep.subr.bf16.mxu0 %v8097_v7  ;;  %v9220_v49 = vld [vmem:[%s9709_s29 + $0x8] ss:$56 sps:$4 sm:$0xff]   ;;  %v8441_v31 = vcombine.high %v814_v37, %v818_v48  ;;  %v9222_v59 = vld [vmem:[%s9709_s29 + $0x1c] ss:$56 sps:$4 sm:$0xff]   ;;  %v8440_v57 = vcombine.low %v814_v37, %v818_v48 }
 0x283   : > { %v678_v47 = vld [vmem:[%s9716_s8 + $0x910] sm:$0xff] }
 0x284   : > { %6504 = vmatpush2.bf16.msra.mxu1 %v8232_v6  ;;  %v682_v54 = vld [vmem:[%s9716_s8 + $0x930] sm:$0xff] }
 0x285   : > { %6505 = vmatprep.subr.bf16.mxu1 %v8225_v8  ;;  %6463 = vmatpush2.bf16.msra.mxu0 %v8096_v13  ;;  %v806_v56 = vld [vmem:[%s9716_s8 + $0xd10] sm:$0xff]  ;;  %v8305_v60 = vcombine.high %v678_v47, %v682_v54  ;;  %v8304_v51 = vcombine.low %v678_v47, %v682_v54 }
 0x286   : > { %6464 = vmatprep.subr.bf16.mxu0 %v8089_v15  ;;  %v810_v58 = vld [vmem:[%s9716_s8 + $0xd30] sm:$0xff] }
 0x287   : > { %v8433_v61 = vcombine.high %v806_v56, %v810_v58  ;;  %v670_v62 = vld [vmem:[%s9716_s8 + $0x8d0] sm:$0xff]  ;;  %v8432_v2 = vcombine.low %v806_v56, %v810_v58 }
 0x288   : > { %6506 = vmatpush2.bf16.msra.mxu1 %v8224_v14  ;;  %v674_v63 = vld [vmem:[%s9716_s8 + $0x8f0] sm:$0xff] }
 0x289   : > { %6507 = vmatprep.subr.bf16.mxu1 %v8217_v16  ;;  %6465 = vmatpush2.bf16.msra.mxu0 %v8088_v21  ;;  %v798_v0 = vld [vmem:[%s9716_s8 + $0xcd0] sm:$0xff]  ;;  %v8297_v3 = vcombine.high %v670_v62, %v674_v63  ;;  %v8296_v9 = vcombine.low %v670_v62, %v674_v63 }
 0x28a   : > { %6466 = vmatprep.subr.bf16.mxu0 %v8081_v24  ;;  %v802_v1 = vld [vmem:[%s9716_s8 + $0xcf0] sm:$0xff] }
 0x28b   : > { %v8425_v4 = vcombine.high %v798_v0, %v802_v1  ;;  %v662_v5 = vld [vmem:[%s9716_s8 + $0x890] sm:$0xff]  ;;  %v8424_v10 = vcombine.low %v798_v0, %v802_v1 }
 0x28c   : > { %6508 = vmatpush2.bf16.msra.mxu1 %v8216_v23  ;;  %v666_v6 = vld [vmem:[%s9716_s8 + $0x8b0] sm:$0xff] }
 0x28d   : > { %6509 = vmatprep.subr.bf16.mxu1 %v8209_v25  ;;  %6467 = vmatpush2.bf16.msra.mxu0 %v8080_v30  ;;  %v790_v7 = vld [vmem:[%s9716_s8 + $0xc90] sm:$0xff]  ;;  %v8289_v11 = vcombine.high %v662_v5, %v666_v6  ;;  %v8288_v17 = vcombine.low %v662_v5, %v666_v6 }
 0x28e   : > { %6522 = vmatprep.subr.bf16.mxu0 %v8329_v33  ;;  %v794_v8 = vld [vmem:[%s9716_s8 + $0xcb0] sm:$0xff] }
 0x28f   : > { %v8417_v12 = vcombine.high %v790_v7, %v794_v8  ;;  %v654_v13 = vld [vmem:[%s9716_s8 + $0x850] sm:$0xff]  ;;  %v8416_v18 = vcombine.low %v790_v7, %v794_v8 }
 0x290   : > { %6510 = vmatpush2.bf16.msra.mxu1 %v8208_v32  ;;  %6469 = vmatmul.mubr.bf16.vlgmr.msra.gmra.mxu0 %v9219_v22  ;;  %v658_v14 = vld [vmem:[%s9716_s8 + $0x870] sm:$0xff] }
 0x291   : > { %6565 = vmatprep.subr.bf16.mxu1 %v8457_v34  ;;  %6523 = vmatpush1.bf16.msra.mxu0 %v8328_v40  ;;  %v782_v15 = vld [vmem:[%s9716_s8 + $0xc50] sm:$0xff]  ;;  %v8281_v19 = vcombine.high %v654_v13, %v658_v14  ;;  %v8280_v26 = vcombine.low %v654_v13, %v658_v14 }
 0x292   : > { %6524 = vmatprep.subr.bf16.mxu0 %v8321_v43  ;;  %6554 = vmatprep.mubr.bf16.mxu0 %v9221_v55  ;;  %v786_v16 = vld [vmem:[%s9716_s8 + $0xc70] sm:$0xff] }
 0x293   : > { %6512 = vmatmul.mubr.bf16.vlgmr.msra.gmra.mxu1 %v9220_v49  ;;  %v8409_v20 = vcombine.high %v782_v15, %v786_v16  ;;  %v646_v21 = vld [vmem:[%s9716_s8 + $0x810] sm:$0xff]  ;;  %v8408_v27 = vcombine.low %v782_v15, %v786_v16 }
 0x294   : > { %6566 = vmatpush1.bf16.msra.mxu1 %v8456_v42  ;;  %6597 = vmatprep.mubr.bf16.mxu1 %v9222_v59  ;;  %v650_v23 = vld [vmem:[%s9716_s8 + $0x830] sm:$0xff] }
 0x295   : > { %6567 = vmatprep.subr.bf16.mxu1 %v8449_v44  ;;  %6525 = vmatpush1.bf16.msra.mxu0 %v8320_v50  ;;  %v774_v24 = vld [vmem:[%s9716_s8 + $0xc10] sm:$0xff]  ;;  %v8273_v28 = vcombine.high %v646_v21, %v650_v23  ;;  %v8272_v35 = vcombine.low %v646_v21, %v650_v23 }
 0x296   : > { %6526 = vmatprep.subr.bf16.mxu0 %v8313_v53  ;;  %v778_v25 = vld [vmem:[%s9716_s8 + $0xc30] sm:$0xff] }
 0x297   : > { %v8401_v29 = vcombine.high %v774_v24, %v778_v25  ;;  %v766_v30 = vld [vmem:[%s9716_s8 + $0xbd0] sm:$0xff]  ;;  %v8400_v36 = vcombine.low %v774_v24, %v778_v25 }
 0x298   : > { %6568 = vmatpush1.bf16.msra.mxu1 %v8448_v52  ;;  %v770_v32 = vld [vmem:[%s9716_s8 + $0xbf0] sm:$0xff] }
 0x299   : > { %6569 = vmatprep.subr.bf16.mxu1 %v8441_v31  ;;  %6527 = vmatpush1.bf16.msra.mxu0 %v8312_v41  ;;  %v894_v33 = vld [vmem:[%s9716_s8 + $0xfd0] sm:$0xff]  ;;  %v8393_v38 = vcombine.high %v766_v30, %v770_v32  ;;  %v8392_v45 = vcombine.low %v766_v30, %v770_v32 }
 0x29a   : > { %6528 = vmatprep.subr.bf16.mxu0 %v8305_v60  ;;  %v898_v34 = vld [vmem:[%s9716_s8 + $0xff0] sm:$0xff] }
 0x29b   : > { %v8521_v39 = vcombine.high %v894_v33, %v898_v34  ;;  %v758_v40 = vld [vmem:[%s9716_s8 + $0xb90] sm:$0xff]  ;;  %v8520_v46 = vcombine.low %v894_v33, %v898_v34 }
 0x29c   : > { %6570 = vmatpush1.bf16.msra.mxu1 %v8440_v57  ;;  %v762_v42 = vld [vmem:[%s9716_s8 + $0xbb0] sm:$0xff] }
 0x29d   : > { %6571 = vmatprep.subr.bf16.mxu1 %v8433_v61  ;;  %6529 = vmatpush1.bf16.msra.mxu0 %v8304_v51  ;;  %v886_v43 = vld [vmem:[%s9716_s8 + $0xf90] sm:$0xff]  ;;  %v8385_v22 = vcombine.high %v758_v40, %v762_v42  ;;  %v8384_v53 = vcombine.low %v758_v40, %v762_v42 }
 0x29e   : > { %6530 = vmatprep.subr.bf16.mxu0 %v8297_v3  ;;  %v890_v44 = vld [vmem:[%s9716_s8 + $0xfb0] sm:$0xff] }
 0x29f   : > { %v8513_v37 = vcombine.high %v886_v43, %v890_v44  ;;  %v750_v48 = vld [vmem:[%s9716_s8 + $0xb50] sm:$0xff]  ;;  %v8512_v31 = vcombine.low %v886_v43, %v890_v44 }
 0x2a0   : > { %6572 = vmatpush1.bf16.msra.mxu1 %v8432_v2  ;;  %v754_v49 = vld [vmem:[%s9716_s8 + $0xb70] sm:$0xff] }
 0x2a1   : > { %6573 = vmatprep.subr.bf16.mxu1 %v8425_v4  ;;  %6531 = vmatpush1.bf16.msra.mxu0 %v8296_v9  ;;  %v878_v50 = vld [vmem:[%s9716_s8 + $0xf50] sm:$0xff]  ;;  %v8377_v47 = vcombine.high %v750_v48, %v754_v49  ;;  %v8376_v41 = vcombine.low %v750_v48, %v754_v49 }
 0x2a2   : > { %6532 = vmatprep.subr.bf16.mxu0 %v8289_v11  ;;  %v882_v52 = vld [vmem:[%s9716_s8 + $0xf70] sm:$0xff] }
 0x2a3   : > { %v8505_v54 = vcombine.high %v878_v50, %v882_v52  ;;  %v742_v55 = vld [vmem:[%s9716_s8 + $0xb10] sm:$0xff]  ;;  %v8504_v57 = vcombine.low %v878_v50, %v882_v52 }
 0x2a4   : > { %6574 = vmatpush1.bf16.msra.mxu1 %v8424_v10  ;;  %v746_v56 = vld [vmem:[%s9716_s8 + $0xb30] sm:$0xff] }
 0x2a5   : > { %6575 = vmatprep.subr.bf16.mxu1 %v8417_v12  ;;  %6533 = vmatpush1.bf16.msra.mxu0 %v8288_v17  ;;  %v870_v58 = vld [vmem:[%s9716_s8 + $0xf10] sm:$0xff]  ;;  %v8369_v60 = vcombine.high %v742_v55, %v746_v56  ;;  %v8368_v51 = vcombine.low %v742_v55, %v746_v56 }
 0x2a6   : > { %6534 = vmatprep.subr.bf16.mxu0 %v8281_v19  ;;  %v874_v59 = vld [vmem:[%s9716_s8 + $0xf30] sm:$0xff] }
 0x2a7   : > { %v8497_v61 = vcombine.high %v870_v58, %v874_v59  ;;  %v734_v62 = vld [vmem:[%s9716_s8 + $0xad0] sm:$0xff]  ;;  %v8496_v2 = vcombine.low %v870_v58, %v874_v59 }
 0x2a8   : > { %6576 = vmatpush1.bf16.msra.mxu1 %v8416_v18  ;;  %v738_v63 = vld [vmem:[%s9716_s8 + $0xaf0] sm:$0xff] }
 0x2a9   : > { %6577 = vmatprep.subr.bf16.mxu1 %v8409_v20  ;;  %6535 = vmatpush1.bf16.msra.mxu0 %v8280_v26  ;;  %v862_v0 = vld [vmem:[%s9716_s8 + $0xed0] sm:$0xff]  ;;  %v8361_v3 = vcombine.high %v734_v62, %v738_v63  ;;  %v8360_v9 = vcombine.low %v734_v62, %v738_v63 }
 0x2aa   : > { %6536 = vmatprep.subr.bf16.mxu0 %v8273_v28  ;;  %v866_v1 = vld [vmem:[%s9716_s8 + $0xef0] sm:$0xff] }
 0x2ab   : > { %v8489_v4 = vcombine.high %v862_v0, %v866_v1  ;;  %v726_v5 = vld [vmem:[%s9716_s8 + $0xa90] sm:$0xff]  ;;  %v8488_v10 = vcombine.low %v862_v0, %v866_v1 }
 0x2ac   : > { %6578 = vmatpush1.bf16.msra.mxu1 %v8408_v27  ;;  %v730_v6 = vld [vmem:[%s9716_s8 + $0xab0] sm:$0xff] }
 0x2ad   : > { %6579 = vmatprep.subr.bf16.mxu1 %v8401_v29  ;;  %6537 = vmatpush1.bf16.msra.mxu0 %v8272_v35  ;;  %v854_v7 = vld [vmem:[%s9716_s8 + $0xe90] sm:$0xff]  ;;  %v8353_v11 = vcombine.high %v726_v5, %v730_v6  ;;  %v8352_v17 = vcombine.low %v726_v5, %v730_v6 }
 0x2ae   : > { %6538 = vmatprep.subr.bf16.mxu0 %v8393_v38  ;;  %v858_v8 = vld [vmem:[%s9716_s8 + $0xeb0] sm:$0xff] }
 0x2af   : > { %v8481_v12 = vcombine.high %v854_v7, %v858_v8  ;;  %v718_v13 = vld [vmem:[%s9716_s8 + $0xa50] sm:$0xff]  ;;  %v8480_v18 = vcombine.low %v854_v7, %v858_v8 }
 0x2b0   : > { %6580 = vmatpush1.bf16.msra.mxu1 %v8400_v36  ;;  %v722_v14 = vld [vmem:[%s9716_s8 + $0xa70] sm:$0xff] }
 0x2b1   : > { %6581 = vmatprep.subr.bf16.mxu1 %v8521_v39  ;;  %6539 = vmatpush2.bf16.msra.mxu0 %v8392_v45  ;;  %v846_v15 = vld [vmem:[%s9716_s8 + $0xe50] sm:$0xff]  ;;  %v8345_v19 = vcombine.high %v718_v13, %v722_v14  ;;  %v8344_v26 = vcombine.low %v718_v13, %v722_v14 }
 0x2b2   : > { %6540 = vmatprep.subr.bf16.mxu0 %v8385_v22  ;;  %v850_v16 = vld [vmem:[%s9716_s8 + $0xe70] sm:$0xff] }
 0x2b3   : > { %v8473_v20 = vcombine.high %v846_v15, %v850_v16  ;;  %v710_v21 = vld [vmem:[%s9716_s8 + $0xa10] sm:$0xff]  ;;  %v8472_v27 = vcombine.low %v846_v15, %v850_v16 }
 0x2b4   : > { %6582 = vmatpush2.bf16.msra.mxu1 %v8520_v46  ;;  %v714_v23 = vld [vmem:[%s9716_s8 + $0xa30] sm:$0xff] }
 0x2b5   : > { %6583 = vmatprep.subr.bf16.mxu1 %v8513_v37  ;;  %6541 = vmatpush2.bf16.msra.mxu0 %v8384_v53  ;;  %v838_v24 = vld [vmem:[%s9716_s8 + $0xe10] sm:$0xff]  ;;  %v8337_v28 = vcombine.high %v710_v21, %v714_v23  ;;  %v8336_v35 = vcombine.low %v710_v21, %v714_v23 }
 0x2b6   : > { %6542 = vmatprep.subr.bf16.mxu0 %v8377_v47  ;;  %v842_v25 = vld [vmem:[%s9716_s8 + $0xe30] sm:$0xff] }
 0x2b7   : > { %v8465_v29 = vcombine.high %v838_v24, %v842_v25  ;;  %v958_v30 = vld [vmem:[%s9716_s8 + $0x11d0] sm:$0xff]  ;;  %v8464_v36 = vcombine.low %v838_v24, %v842_v25 }
 0x2b8   : > { %6584 = vmatpush2.bf16.msra.mxu1 %v8512_v31  ;;  %v962_v32 = vld [vmem:[%s9716_s8 + $0x11f0] sm:$0xff] }
 0x2b9   : > { %6585 = vmatprep.subr.bf16.mxu1 %v8505_v54  ;;  %6543 = vmatpush2.bf16.msra.mxu0 %v8376_v41  ;;  %v1086_v33 = vld [vmem:[%s9716_s8 + $0x15d0] sm:$0xff]  ;;  %v8585_v38 = vcombine.high %v958_v30, %v962_v32  ;;  %v8584_v45 = vcombine.low %v958_v30, %v962_v32 }
 0x2ba   : > { %6544 = vmatprep.subr.bf16.mxu0 %v8369_v60  ;;  %v1090_v34 = vld [vmem:[%s9716_s8 + $0x15f0] sm:$0xff] }
 0x2bb   : > { %v8713_v39 = vcombine.high %v1086_v33, %v1090_v34  ;;  %v950_v40 = vld [vmem:[%s9716_s8 + $0x1190] sm:$0xff]  ;;  %v8712_v46 = vcombine.low %v1086_v33, %v1090_v34  ;;  %v10405_v34 = vpop.f32.mrf.mxu1 }
 0x2bc   : > { %6586 = vmatpush2.bf16.msra.mxu1 %v8504_v57  ;;  %v954_v42 = vld [vmem:[%s9716_s8 + $0x11b0] sm:$0xff] }
 0x2bd   : > { %6587 = vmatprep.subr.bf16.mxu1 %v8497_v61  ;;  %6545 = vmatpush2.bf16.msra.mxu0 %v8368_v51  ;;  %v1078_v43 = vld [vmem:[%s9716_s8 + $0x1590] sm:$0xff]  ;;  %v8577_v22 = vcombine.high %v950_v40, %v954_v42  ;;  %v8576_v47 = vcombine.low %v950_v40, %v954_v42 }
 0x2be   : > { %6546 = vmatprep.subr.bf16.mxu0 %v8361_v3  ;;  %v1082_v44 = vld [vmem:[%s9716_s8 + $0x15b0] sm:$0xff] }
 0x2bf   : > { %v8705_v37 = vcombine.high %v1078_v43, %v1082_v44  ;;  %v942_v48 = vld [vmem:[%s9716_s8 + $0x1150] sm:$0xff]  ;;  %v8704_v54 = vcombine.low %v1078_v43, %v1082_v44 }
 0x2c0   : > { %6588 = vmatpush2.bf16.msra.mxu1 %v8496_v2  ;;  %v946_v49 = vld [vmem:[%s9716_s8 + $0x1170] sm:$0xff] }
 0x2c1   : > { %6589 = vmatprep.subr.bf16.mxu1 %v8489_v4  ;;  %6547 = vmatpush2.bf16.msra.mxu0 %v8360_v9  ;;  %v9223_v50 = vld [vmem:[%s9709_s29 + $0x10] ss:$56 sps:$4 sm:$0xff]   ;;  %v8569_v55 = vcombine.high %v942_v48, %v946_v49  ;;  %v9225_v41 = vld [vmem:[%s9709_s29 + $0x24] ss:$56 sps:$4 sm:$0xff]   ;;  %v8568_v62 = vcombine.low %v942_v48, %v946_v49 }
 0x2c2   : > { %6548 = vmatprep.subr.bf16.mxu0 %v8353_v11  ;;  %v1070_v52 = vld [vmem:[%s9716_s8 + $0x1550] sm:$0xff] }
 0x2c3   : > { %v1074_v53 = vld [vmem:[%s9716_s8 + $0x1570] sm:$0xff] }
 0x2c4   : > { %6590 = vmatpush2.bf16.msra.mxu1 %v8488_v10  ;;  %v9224_v31 = vld [vmem:[%s9709_s29 + $0x18] ss:$56 sps:$4 sm:$0xff]   ;;  %v8697_v56 = vcombine.high %v1070_v52, %v1074_v53  ;;  %v9226_v61 = vld [vmem:[%s9709_s29 + $0x2c] ss:$56 sps:$4 sm:$0xff]   ;;  %v8696_v63 = vcombine.low %v1070_v52, %v1074_v53 }
 0x2c5   : > { %6591 = vmatprep.subr.bf16.mxu1 %v8481_v12  ;;  %6549 = vmatpush2.bf16.msra.mxu0 %v8352_v17  ;;  %v934_v58 = vld [vmem:[%s9716_s8 + $0x1110] sm:$0xff] }
 0x2c6   : > { %6550 = vmatprep.subr.bf16.mxu0 %v8345_v19  ;;  %v938_v59 = vld [vmem:[%s9716_s8 + $0x1130] sm:$0xff] }
 0x2c7   : > { %v1062_v57 = vld [vmem:[%s9716_s8 + $0x1510] sm:$0xff]  ;;  %v8561_v0 = vcombine.high %v934_v58, %v938_v59  ;;  %v8560_v5 = vcombine.low %v934_v58, %v938_v59 }
 0x2c8   : > { %6592 = vmatpush2.bf16.msra.mxu1 %v8480_v18  ;;  %v1066_v60 = vld [vmem:[%s9716_s8 + $0x1530] sm:$0xff] }
 0x2c9   : > { %6593 = vmatprep.subr.bf16.mxu1 %v8473_v20  ;;  %6551 = vmatpush2.bf16.msra.mxu0 %v8344_v26  ;;  %v8689_v1 = vcombine.high %v1062_v57, %v1066_v60  ;;  %v926_v51 = vld [vmem:[%s9716_s8 + $0x10d0] sm:$0xff]  ;;  %v8688_v6 = vcombine.low %v1062_v57, %v1066_v60 }
 0x2ca   : > { %6552 = vmatprep.subr.bf16.mxu0 %v8337_v28  ;;  %v930_v2 = vld [vmem:[%s9716_s8 + $0x10f0] sm:$0xff] }
 0x2cb   : > { %v1054_v3 = vld [vmem:[%s9716_s8 + $0x14d0] sm:$0xff]  ;;  %v8553_v7 = vcombine.high %v926_v51, %v930_v2  ;;  %v8552_v13 = vcombine.low %v926_v51, %v930_v2 }
 0x2cc   : > { %6594 = vmatpush2.bf16.msra.mxu1 %v8472_v27  ;;  %v1058_v4 = vld [vmem:[%s9716_s8 + $0x14f0] sm:$0xff] }
 0x2cd   : > { %6595 = vmatprep.subr.bf16.mxu1 %v8465_v29  ;;  %6553 = vmatpush2.bf16.msra.mxu0 %v8336_v35  ;;  %v8681_v8 = vcombine.high %v1054_v3, %v1058_v4  ;;  %v918_v9 = vld [vmem:[%s9716_s8 + $0x1090] sm:$0xff]  ;;  %v8680_v14 = vcombine.low %v1054_v3, %v1058_v4 }
 0x2ce   : > { %6608 = vmatprep.subr.bf16.mxu0 %v8585_v38  ;;  %v922_v10 = vld [vmem:[%s9716_s8 + $0x10b0] sm:$0xff] }
 0x2cf   : > { %v1046_v11 = vld [vmem:[%s9716_s8 + $0x1490] sm:$0xff]  ;;  %v8545_v15 = vcombine.high %v918_v9, %v922_v10  ;;  %v8544_v21 = vcombine.low %v918_v9, %v922_v10 }
 0x2d0   : > { %6596 = vmatpush2.bf16.msra.mxu1 %v8464_v36  ;;  %6555 = vmatmul.mubr.bf16.vlgmr.msra.gmra.mxu0 %v9223_v50  ;;  %v1050_v12 = vld [vmem:[%s9716_s8 + $0x14b0] sm:$0xff] }
 0x2d1   : > { %6651 = vmatprep.subr.bf16.mxu1 %v8713_v39  ;;  %6609 = vmatpush1.bf16.msra.mxu0 %v8584_v45  ;;  %v8673_v16 = vcombine.high %v1046_v11, %v1050_v12  ;;  %v910_v17 = vld [vmem:[%s9716_s8 + $0x1050] sm:$0xff]  ;;  %v8672_v23 = vcombine.low %v1046_v11, %v1050_v12  ;;  %v10411_v45 = vpop.f32.mrf.mxu1 }
 0x2d2   : > { %6610 = vmatprep.subr.bf16.mxu0 %v8577_v22  ;;  %6640 = vmatprep.mubr.bf16.mxu0 %v9225_v41  ;;  %v914_v18 = vld [vmem:[%s9716_s8 + $0x1070] sm:$0xff] }
 0x2d3   : > { %6598 = vmatmul.mubr.bf16.vlgmr.msra.gmra.mxu1 %v9224_v31  ;;  %v1038_v19 = vld [vmem:[%s9716_s8 + $0x1450] sm:$0xff]  ;;  %v8537_v24 = vcombine.high %v910_v17, %v914_v18  ;;  %v8536_v30 = vcombine.low %v910_v17, %v914_v18  ;;  %v10417_v31 = vpop.f32.mrf.mxu1 }
 0x2d4   : > { %6652 = vmatpush1.bf16.msra.mxu1 %v8712_v46  ;;  %6683 = vmatprep.mubr.bf16.mxu1 %v9226_v61  ;;  %v1042_v20 = vld [vmem:[%s9716_s8 + $0x1470] sm:$0xff] }
 0x2d5   : > { %6653 = vmatprep.subr.bf16.mxu1 %v8705_v37  ;;  %6611 = vmatpush1.bf16.msra.mxu0 %v8576_v47  ;;  %v8665_v25 = vcombine.high %v1038_v19, %v1042_v20  ;;  %v902_v26 = vld [vmem:[%s9716_s8 + $0x1010] sm:$0xff]  ;;  %v8664_v32 = vcombine.low %v1038_v19, %v1042_v20  ;;  %v10423_v60 = vpop.f32.mrf.mxu1 }
 0x2d6   : > { %6612 = vmatprep.subr.bf16.mxu0 %v8569_v55  ;;  %v906_v27 = vld [vmem:[%s9716_s8 + $0x1030] sm:$0xff] }
 0x2d7   : > { %v1030_v28 = vld [vmem:[%s9716_s8 + $0x1410] sm:$0xff]  ;;  %v8529_v33 = vcombine.high %v902_v26, %v906_v27  ;;  %v8528_v42 = vcombine.low %v902_v26, %v906_v27  ;;  %v10429_v2 = vpop.f32.mrf.mxu1 }
 0x2d8   : > { %6654 = vmatpush1.bf16.msra.mxu1 %v8704_v54  ;;  %v1034_v29 = vld [vmem:[%s9716_s8 + $0x1430] sm:$0xff] }
 0x2d9   : > { %6655 = vmatprep.subr.bf16.mxu1 %v8697_v56  ;;  %6613 = vmatpush1.bf16.msra.mxu0 %v8568_v62  ;;  %v8657_v35 = vcombine.high %v1030_v28, %v1034_v29  ;;  %v1022_v36 = vld [vmem:[%s9716_s8 + $0x13d0] sm:$0xff]  ;;  %v8656_v43 = vcombine.low %v1030_v28, %v1034_v29  ;;  %v10435_v12 = vpop.f32.mrf.mxu1 }
 0x2da   : > { %6614 = vmatprep.subr.bf16.mxu0 %v8561_v0  ;;  %v1026_v38 = vld [vmem:[%s9716_s8 + $0x13f0] sm:$0xff]  ;;  %v6212_v0 = vpop.f32.mrf.mxu0 }
 0x2db   : > { %v1150_v39 = vld [vmem:[%s9716_s8 + $0x17d0] sm:$0xff]  ;;  %v8649_v44 = vcombine.high %v1022_v36, %v1026_v38  ;;  %v8648_v50 = vcombine.low %v1022_v36, %v1026_v38 }
 0x2dc   : > { %6656 = vmatpush1.bf16.msra.mxu1 %v8696_v63  ;;  %v1154_v40 = vld [vmem:[%s9716_s8 + $0x17f0] sm:$0xff]  ;;  %v6214_v9 = vpop.f32.mrf.mxu0 }
 0x2dd   : > { %6657 = vmatprep.subr.bf16.mxu1 %v8689_v1  ;;  %6615 = vmatpush1.bf16.msra.mxu0 %v8560_v5  ;;  %v8777_v46 = vcombine.high %v1150_v39, %v1154_v40  ;;  %v1014_v22 = vld [vmem:[%s9716_s8 + $0x1390] sm:$0xff]  ;;  %v8776_v52 = vcombine.low %v1150_v39, %v1154_v40 }
 0x2de   : > { %6616 = vmatprep.subr.bf16.mxu0 %v8553_v7  ;;  %v1018_v37 = vld [vmem:[%s9716_s8 + $0x13b0] sm:$0xff]  ;;  %v6216_v19 = vpop.f32.mrf.mxu0 }
 0x2df   : > { %v1142_v48 = vld [vmem:[%s9716_s8 + $0x1790] sm:$0xff]  ;;  %v8641_v53 = vcombine.high %v1014_v22, %v1018_v37  ;;  %v8640_v59 = vcombine.low %v1014_v22, %v1018_v37 }
 0x2e0   : > { %6658 = vmatpush1.bf16.msra.mxu1 %v8688_v6  ;;  %v1146_v49 = vld [vmem:[%s9716_s8 + $0x17b0] sm:$0xff] }
 0x2e1   : > { %6659 = vmatprep.subr.bf16.mxu1 %v8681_v8  ;;  %6617 = vmatpush1.bf16.msra.mxu0 %v8552_v13  ;;  %v8769_v47 = vcombine.high %v1142_v48, %v1146_v49  ;;  %v1006_v54 = vld [vmem:[%s9716_s8 + $0x1350] sm:$0xff]  ;;  %v8768_v41 = vcombine.low %v1142_v48, %v1146_v49  ;;  %v6213_v48 = vadd.f32 %v6212_v0, %v10405_v34 }
 0x2e2   : > { %6618 = vmatprep.subr.bf16.mxu0 %v8545_v15  ;;  %v1010_v55 = vld [vmem:[%s9716_s8 + $0x1370] sm:$0xff]  ;;  %v6217_v34 = vadd.f32 %v6216_v19, %v10417_v31  ;;  %v10473_v19 = vld [vmem:[%s9716_s8 + $0x158] sm:$0xff] }
 0x2e3   : > { %v1134_v56 = vld [vmem:[%s9716_s8 + $0x1750] sm:$0xff]  ;;  %v8633_v57 = vcombine.high %v1006_v54, %v1010_v55  ;;  %v8632_v3 = vcombine.low %v1006_v54, %v1010_v55 }
 0x2e4   : > { %6660 = vmatpush1.bf16.msra.mxu1 %v8680_v14  ;;  %v1138_v58 = vld [vmem:[%s9716_s8 + $0x1770] sm:$0xff] }
 0x2e5   : > { %6661 = vmatprep.subr.bf16.mxu1 %v8673_v16  ;;  %6619 = vmatpush1.bf16.msra.mxu0 %v8544_v21  ;;  %v8761_v61 = vcombine.high %v1134_v56, %v1138_v58  ;;  %v998_v62 = vld [vmem:[%s9716_s8 + $0x1310] sm:$0xff]  ;;  %v8760_v4 = vcombine.low %v1134_v56, %v1138_v58 }
 0x2e6   : > { %6620 = vmatprep.subr.bf16.mxu0 %v8537_v24  ;;  %v1002_v63 = vld [vmem:[%s9716_s8 + $0x1330] sm:$0xff] }
 0x2e7   : > { %v1126_v1 = vld [vmem:[%s9716_s8 + $0x1710] sm:$0xff]  ;;  %v8625_v5 = vcombine.high %v998_v62, %v1002_v63  ;;  %v8624_v13 = vcombine.low %v998_v62, %v1002_v63 }
 0x2e8   : > { %6662 = vmatpush1.bf16.msra.mxu1 %v8672_v23  ;;  %v1130_v51 = vld [vmem:[%s9716_s8 + $0x1730] sm:$0xff]  ;;  %v10441_v23 = vpop.f32.mrf.mxu1 }
 0x2e9   : > { %6663 = vmatprep.subr.bf16.mxu1 %v8665_v25  ;;  %6621 = vmatpush1.bf16.msra.mxu0 %v8536_v30  ;;  %v8753_v6 = vcombine.high %v1126_v1, %v1130_v51  ;;  %v990_v7 = vld [vmem:[%s9716_s8 + $0x12d0] sm:$0xff]  ;;  %v8752_v14 = vcombine.low %v1126_v1, %v1130_v51  ;;  %v6218_v30 = vpop.f32.mrf.mxu0 }
 0x2ea   : > { %6622 = vmatprep.subr.bf16.mxu0 %v8529_v33  ;;  %v994_v8 = vld [vmem:[%s9716_s8 + $0x12f0] sm:$0xff]  ;;  %v6219_v1 = vadd.f32 %v6218_v30, %v10423_v60  ;;  %v360_v30 = vld [vmem:[#allocation2 + $0x58] sm:$0xff] }
 0x2eb   : > { %v1118_v10 = vld [vmem:[%s9716_s8 + $0x16d0] sm:$0xff]  ;;  %v8617_v15 = vcombine.high %v990_v7, %v994_v8  ;;  %v8616_v24 = vcombine.low %v990_v7, %v994_v8  ;;  %v6298_v38 = vpop.f32.mrf.mxu0  ;;  %v6260_v7 = vadd.f32 %v10441_v23, %v6217_v34 }
 0x2ec   : > { %6664 = vmatpush1.bf16.msra.mxu1 %v8664_v32  ;;  %v1122_v11 = vld [vmem:[%s9716_s8 + $0x16f0] sm:$0xff] }
 0x2ed   : > { %6665 = vmatprep.subr.bf16.mxu1 %v8657_v35  ;;  %6623 = vmatpush1.bf16.msra.mxu0 %v8528_v42  ;;  %v8745_v16 = vcombine.high %v1118_v10, %v1122_v11  ;;  %v982_v17 = vld [vmem:[%s9716_s8 + $0x1290] sm:$0xff]  ;;  %v8744_v25 = vcombine.low %v1118_v10, %v1122_v11  ;;  %v6261_v35 = vpop.f32.mrf.mxu1 }
 0x2ee   : > { %6624 = vmatprep.subr.bf16.mxu0 %v8649_v44  ;;  %v986_v18 = vld [vmem:[%s9716_s8 + $0x12b0] sm:$0xff] }
 0x2ef   : > { %v1110_v20 = vld [vmem:[%s9716_s8 + $0x1690] sm:$0xff]  ;;  %v8609_v26 = vcombine.high %v982_v17, %v986_v18  ;;  %v8608_v36 = vcombine.low %v982_v17, %v986_v18  ;;  %v6341_v42 = vpop.f32.mrf.mxu1 }
 0x2f0   : > { %6666 = vmatpush1.bf16.msra.mxu1 %v8656_v43  ;;  %v1114_v21 = vld [vmem:[%s9716_s8 + $0x16b0] sm:$0xff] }
 0x2f1   : > { %6667 = vmatprep.subr.bf16.mxu1 %v8777_v46  ;;  %6625 = vmatpush2.bf16.msra.mxu0 %v8648_v50  ;;  %v8737_v27 = vcombine.high %v1110_v20, %v1114_v21  ;;  %v974_v28 = vld [vmem:[%s9716_s8 + $0x1250] sm:$0xff]  ;;  %v8736_v39 = vcombine.low %v1110_v20, %v1114_v21  ;;  %v6300_v50 = vpop.f32.mrf.mxu0  ;;  %v6343_v54 = vpop.f32.mrf.mxu1  ;;  %v10476_v20 = vld [vmem:[%s9716_s8 + $0x178] sm:$0xff] }
 0x2f2   : > { %6626 = vmatprep.subr.bf16.mxu0 %v8641_v53  ;;  %v978_v29 = vld [vmem:[%s9716_s8 + $0x1270] sm:$0xff] }
 0x2f3   : > { %v1102_v32 = vld [vmem:[%s9716_s8 + $0x1650] sm:$0xff]  ;;  %v8601_v40 = vcombine.high %v974_v28, %v978_v29  ;;  %v8600_v49 = vcombine.low %v974_v28, %v978_v29  ;;  %v6302_v62 = vpop.f32.mrf.mxu0 }
 0x2f4   : > { %6668 = vmatpush2.bf16.msra.mxu1 %v8776_v52  ;;  %v1106_v33 = vld [vmem:[%s9716_s8 + $0x1670] sm:$0xff] }
 0x2f5   : > { %6669 = vmatprep.subr.bf16.mxu1 %v8769_v47  ;;  %6627 = vmatpush2.bf16.msra.mxu0 %v8640_v59  ;;  %v8729_v43 = vcombine.high %v1102_v32, %v1106_v33  ;;  %v966_v44 = vld [vmem:[%s9716_s8 + $0x1210] sm:$0xff]  ;;  %v8728_v52 = vcombine.low %v1102_v32, %v1106_v33  ;;  %v6215_v47 = vadd.f32 %v6214_v9, %v10411_v45  ;;  %v447_v59 = vld [vmem:[%s9716_s8 + $0x1d8] sm:$0xff]  ;;  %v6304_v10 = vpop.f32.mrf.mxu0 }
 0x2f6   : > { %6628 = vmatprep.subr.bf16.mxu0 %v8633_v57  ;;  %v970_v46 = vld [vmem:[%s9716_s8 + $0x1230] sm:$0xff]  ;;  %v6256_v57 = vadd.f32 %v10429_v2, %v6213_v48 }
 0x2f7   : > { %v1094_v22 = vld [vmem:[%s9716_s8 + $0x1610] sm:$0xff]  ;;  %v8593_v53 = vcombine.high %v966_v44, %v970_v46  ;;  %v6258_v0 = vadd.f32 %v10435_v12, %v6215_v47 }
 0x2f8   : > { %6670 = vmatpush2.bf16.msra.mxu1 %v8768_v41  ;;  %v1098_v37 = vld [vmem:[%s9716_s8 + $0x1630] sm:$0xff]  ;;  %v451_v41 = vld [vmem:[%s9716_s8 + $0x1f8] sm:$0xff]  ;;  %v6299_v51 = vadd.f32 %v6298_v38, %v6256_v57 }
 0x2f9   : > { %6671 = vmatprep.subr.bf16.mxu1 %v8761_v61  ;;  %6629 = vmatpush2.bf16.msra.mxu0 %v8632_v3  ;;  %v8721_v55 = vcombine.high %v1094_v22, %v1098_v37  ;;  %v1214_v56 = vld [vmem:[%s9716_s8 + $0x19d0] sm:$0xff]  ;;  %v8592_v61 = vcombine.low %v966_v44, %v970_v46  ;;  %v8720_v45 = vcombine.low %v1094_v22, %v1098_v37  ;;  %v6345_v3 = vpop.f32.mrf.mxu1  ;;  %v361_v22 = vld [vmem:[#allocation2 + $0x18] sm:$0xff] }
 0x2fa   : > { %6630 = vmatprep.subr.bf16.mxu0 %v8625_v5  ;;  %v1218_v58 = vld [vmem:[%s9716_s8 + $0x19f0] sm:$0xff]  ;;  %v8075_v2 = vcombine.high %v447_v59, %v451_v41  ;;  %v439_v5 = vld [vmem:[%s9716_s8 + $0x198] sm:$0xff]  ;;  %v6301_v8 = vadd.f32 %v6300_v50, %v6258_v0  ;;  %v8074_v60 = vcombine.low %v447_v59, %v451_v41  ;;  %v8058_v41 = vcombine.low %v10473_v19, %v10476_v20 }
 0x2fb   : > { %v8841_v63 = vcombine.high %v1214_v56, %v1218_v58  ;;  %v1210_v31 = vld [vmem:[%s9716_s8 + $0x19b0] sm:$0xff]  ;;  %v8840_v9 = vcombine.low %v1214_v56, %v1218_v58  ;;  %v427_v50 = vld [vmem:[%s9716_s8 + $0x138] sm:$0xff] }
 0x2fc   : > { %6672 = vmatpush2.bf16.msra.mxu1 %v8760_v4  ;;  %v1206_v4 = vld [vmem:[%s9716_s8 + $0x1990] sm:$0xff] }
 0x2fd   : > { %6673 = vmatprep.subr.bf16.mxu1 %v8753_v6  ;;  %6631 = vmatpush2.bf16.msra.mxu0 %v8624_v13  ;;  %v443_v6 = vld [vmem:[%s9716_s8 + $0x1b8] sm:$0xff]  ;;  %v8833_v11 = vcombine.high %v1206_v4, %v1210_v31  ;;  %v10467_v12 = vld [vmem:[%s9716_s8 + $0x1950] sm:$0xff]  ;;  %v6262_v13 = vadd.f32 %v6261_v35, %v6219_v1 }
 0x2fe   : > { %6632 = vmatprep.subr.bf16.mxu0 %v8617_v15  ;;  %v6303_v15 = vadd.f32 %v6302_v62, %v6260_v7  ;;  %v8067_v17 = vcombine.high %v439_v5, %v443_v6  ;;  %v10470_v18 = vld [vmem:[%s9716_s8 + $0x1970] sm:$0xff]  ;;  %v8066_v33 = vcombine.low %v439_v5, %v443_v6  ;;  %v369_v1 = vld [vmem:[#allocation2 + $0x38] sm:$0xff] }
 0x2ff   : > { %v9227_v23 = vld [vmem:[%s9709_s29 + $0x20] ss:$56 sps:$4 sm:$0xff]   ;;  %v8825_v35 = vcombine.high %v10467_v12, %v10470_v18  ;;  %v9229_v46 = vld [vmem:[%s9709_s29 + $0x34] ss:$56 sps:$4 sm:$0xff]   ;;  %v8824_v48 = vcombine.low %v10467_v12, %v10470_v18 }
 0x300   : > { %6674 = vmatpush2.bf16.msra.mxu1 %v8752_v14  ;;  %v6342_v14 = vadd.f32 %v6341_v42, %v6299_v51  ;;  %v9228_v29 = vld [vmem:[%s9709_s29 + $0x28] ss:$56 sps:$4 sm:$0xff]   ;;  %v6346_v38 = vadd.f32 %v6345_v3, %v6303_v15 }
 0x301   : > { %6675 = vmatprep.subr.bf16.mxu1 %v8745_v16  ;;  %6633 = vmatpush2.bf16.msra.mxu0 %v8616_v24  ;;  %v6347_v16 = vpop.f32.mrf.mxu1  ;;  %v8832_v24 = vcombine.low %v1206_v4, %v1210_v31  ;;  %v1194_v44 = vld [vmem:[%s9716_s8 + $0x1930] sm:$0xff]  ;;  %v415_v3 = vld [vmem:[%s9716_s8 + $0xd8] sm:$0xff] }
 0x302   : > { %6634 = vmatprep.subr.bf16.mxu0 %v8609_v26  ;;  %v6305_v26 = vadd.f32 %v6304_v10, %v6262_v13  ;;  %v368_v58 = vld [vmem:[#allocation2 + $0x10] sm:$0xff]  ;;  %v411_v12 = vld [vmem:[%s9716_s8 + $0xb8] sm:$0xff] }
 0x303   : > { %v1186_v0 = vld [vmem:[%s9716_s8 + $0x18f0] sm:$0xff] }
 0x304   : > { %6676 = vmatpush2.bf16.msra.mxu1 %v8744_v25  ;;  %v6344_v25 = vadd.f32 %v6343_v54, %v6301_v8  ;;  %v1174_v10 = vld [vmem:[%s9716_s8 + $0x1890] sm:$0xff] }
 0x305   : > { %6677 = vmatprep.subr.bf16.mxu1 %v8737_v27  ;;  %6635 = vmatpush2.bf16.msra.mxu0 %v8608_v36  ;;  %v8059_v36 = vcombine.high %v10473_v19, %v10476_v20  ;;  %v1170_v18 = vld [vmem:[%s9716_s8 + $0x1870] sm:$0xff]  ;;  %v399_v19 = vld [vmem:[%s9716_s8 + $0x58] sm:$0xff] }
 0x306   : > { %6636 = vmatprep.subr.bf16.mxu0 %v8601_v40  ;;  %v403_v20 = vld [vmem:[%s9716_s8 + $0x78] sm:$0xff] }
 0x308   : > { %6678 = vmatpush2.bf16.msra.mxu1 %v8736_v39 }
 0x309   : > { %6679 = vmatprep.subr.bf16.mxu1 %v8729_v43  ;;  %6637 = vmatpush2.bf16.msra.mxu0 %v8600_v49  ;;  %v1190_v43 = vld [vmem:[%s9716_s8 + $0x1910] sm:$0xff]  ;;  %v423_v49 = vld [vmem:[%s9716_s8 + $0x118] sm:$0xff] }
 0x30a   : > { %6638 = vmatprep.subr.bf16.mxu0 %v8593_v53  ;;  %v6348_v53 = vadd.f32 %v6347_v16, %v6305_v26  ;;  %v8817_v57 = vcombine.high %v1190_v43, %v1194_v44  ;;  %v8816_v5 = vcombine.low %v1190_v43, %v1194_v44  ;;  %v8050_v6 = vcombine.low %v423_v49, %v427_v50  ;;  %v1158_v26 = vld [vmem:[%s9716_s8 + $0x1810] sm:$0xff] }
 0x30c   : > { %6680 = vmatpush2.bf16.msra.mxu1 %v8728_v52  ;;  %v9230_v52 = vld [vmem:[%s9709_s29 + $0x4] ss:$56 sps:$4 sm:$0xff]  }
 0x30d   : > { %6681 = vmatprep.subr.bf16.mxu1 %v8721_v55  ;;  %6639 = vmatpush2.bf16.msra.mxu0 %v8592_v61 }
 0x30e   : > { %6694 = vmatprep.subr.bf16.mxu0 %v8841_v63  ;;  %v1182_v63 = vld [vmem:[%s9716_s8 + $0x18d0] sm:$0xff] }
 0x30f   : > { %v8809_v7 = vcombine.high %v1182_v63, %v1186_v0  ;;  %v8808_v13 = vcombine.low %v1182_v63, %v1186_v0  ;;  %v491_v63 = vld [vmem:[%s9716_s8 + $0x338] sm:$0xff] }
 0x310   : > { %6682 = vmatpush2.bf16.msra.mxu1 %v8720_v45  ;;  %v6384_v21 = vpop.f32.mrf.mxu0  ;;  %6641 = vmatmul.mubr.bf16.vlgmr.msra.gmra.mxu0 %v9227_v23  ;;  %v8051_v45 = vcombine.high %v423_v49, %v427_v50  ;;  %v507_v49 = vld [vmem:[%s9716_s8 + $0x3b8] sm:$0xff] }
 0x311   : > { %6737 = vmatprep.subr.bf16.mxu1 %v8075_v2  ;;  %v6385_v27 = vadd.f32 %v6384_v21, %v6342_v14  ;;  %6695 = vmatpush1.bf16.msra.mxu0 %v8840_v9  ;;  %v419_v2 = vld [vmem:[%s9716_s8 + $0xf8] sm:$0xff] }
 0x312   : > { %v6386_v32 = vpop.f32.mrf.mxu0  ;;  %6696 = vmatprep.subr.bf16.mxu0 %v8833_v11  ;;  %6726 = vmatprep.mubr.bf16.mxu0 %v9229_v46  ;;  %v8043_v9 = vcombine.high %v415_v3, %v419_v2  ;;  %v407_v11 = vld [vmem:[%s9716_s8 + $0x98] sm:$0xff]  ;;  %v8042_v14 = vcombine.low %v415_v3, %v419_v2  ;;  %v1246_v2 = vld [vmem:[%s9716_s8 + $0x1ad0] sm:$0xff] }
 0x313   : > { %v6427_v28 = vpop.f32.mrf.mxu1  ;;  %6684 = vmatmul.mubr.bf16.vlgmr.msra.gmra.mxu1 %v9228_v29  ;;  %v6387_v40 = vadd.f32 %v6386_v32, %v6344_v25  ;;  %v8035_v16 = vcombine.high %v407_v11, %v411_v12  ;;  %v8034_v23 = vcombine.low %v407_v11, %v411_v12  ;;  %v8027_v25 = vcombine.high %v399_v19, %v403_v20  ;;  %v395_v29 = vld [vmem:[%s9716_s8 + $0x38] sm:$0xff] }
 0x314   : > { %6738 = vmatpush1.bf16.msra.mxu1 %v8074_v60  ;;  %v6428_v39 = vadd.f32 %v6427_v28, %v6385_v27  ;;  %v6388_v37 = vpop.f32.mrf.mxu0  ;;  %6769 = vmatprep.mubr.bf16.mxu1 %v9230_v52  ;;  %v1178_v60 = vld [vmem:[%s9716_s8 + $0x18b0] sm:$0xff]  ;;  %v391_v28 = vld [vmem:[%s9716_s8 + $0x18] sm:$0xff]  ;;  %v8026_v32 = vcombine.low %v399_v19, %v403_v20 }
 0x315   : > { %v6429_v42 = vpop.f32.mrf.mxu1  ;;  %6739 = vmatprep.subr.bf16.mxu1 %v8067_v17  ;;  %v6389_v55 = vadd.f32 %v6388_v37, %v6346_v38  ;;  %6697 = vmatpush1.bf16.msra.mxu0 %v8832_v24  ;;  %v8801_v15 = vcombine.high %v1174_v10, %v1178_v60  ;;  %v1166_v17 = vld [vmem:[%s9716_s8 + $0x1850] sm:$0xff]  ;;  %v8800_v21 = vcombine.low %v1174_v10, %v1178_v60  ;;  %v471_v11 = vld [vmem:[%s9716_s8 + $0x298] sm:$0xff] }
 0x316   : > { %v7040_v47 = vadd.f32 %v6428_v39, %v360_v30  ;;  %v6430_v54 = vadd.f32 %v6429_v42, %v6387_v40  ;;  %v6390_v59 = vpop.f32.mrf.mxu0  ;;  %6698 = vmatprep.subr.bf16.mxu0 %v8825_v35  ;;  %v8793_v24 = vcombine.high %v1166_v17, %v1170_v18  ;;  %v1162_v27 = vld [vmem:[%s9716_s8 + $0x1830] sm:$0xff]  ;;  %v8792_v30 = vcombine.low %v1166_v17, %v1170_v18  ;;  %v511_v39 = vld [vmem:[%s9716_s8 + $0x3d8] sm:$0xff] }
 0x317   : > { %v6431_v56 = vpop.f32.mrf.mxu1  ;;  %v6391_v62 = vadd.f32 %v6390_v59, %v6348_v53  ;;  %v8019_v35 = vcombine.high %v391_v28, %v395_v29  ;;  %v1282_v38 = vld [vmem:[%s9716_s8 + $0x1bf0] sm:$0xff]  ;;  %v515_v40 = vld [vmem:[%s9716_s8 + $0x3f8] sm:$0xff]  ;;  %v8784_v42 = vcombine.low %v1158_v26, %v1162_v27  ;;  %v8018_v43 = vcombine.low %v391_v28, %v395_v29 }
 0x318   : > { %6740 = vmatpush1.bf16.msra.mxu1 %v8066_v33  ;;  %7056 = vst [vmem:[#allocation2 + $0x58] sm:$0xff] %v7040_v47  ;;  %v7041_v34 = vadd.f32 %v6430_v54, %v361_v22  ;;  %v6432_v61 = vadd.f32 %v6431_v56, %v6389_v55  ;;  %v8785_v33 = vcombine.high %v1158_v26, %v1162_v27  ;;  %v1270_v22 = vld [vmem:[%s9716_s8 + $0x1b90] sm:$0xff]  ;;  %v495_v56 = vld [vmem:[%s9716_s8 + $0x358] sm:$0xff] }
 0x319   : > { %6741 = vmatprep.subr.bf16.mxu1 %v8059_v36  ;;  %v6433_v51 = vpop.f32.mrf.mxu1  ;;  %6699 = vmatpush1.bf16.msra.mxu0 %v8824_v48  ;;  %v1278_v36 = vld [vmem:[%s9716_s8 + $0x1bd0] sm:$0xff]  ;;  %v8139_v46 = vcombine.high %v511_v39, %v515_v40  ;;  %v503_v48 = vld [vmem:[%s9716_s8 + $0x398] sm:$0xff]  ;;  %v8138_v52 = vcombine.low %v511_v39, %v515_v40 }
 0x31a   : > { %7057 = vst [vmem:[#allocation2 + $0x18] sm:$0xff] %v7041_v34  ;;  %v7048_v4 = vadd.f32 %v6432_v61, %v368_v58  ;;  %v6434_v31 = vadd.f32 %v6433_v51, %v6391_v62  ;;  %6700 = vmatprep.subr.bf16.mxu0 %v8817_v57  ;;  %v8905_v44 = vcombine.high %v1278_v36, %v1282_v38  ;;  %v1274_v37 = vld [vmem:[%s9716_s8 + $0x1bb0] sm:$0xff]  ;;  %v499_v58 = vld [vmem:[%s9716_s8 + $0x378] sm:$0xff] }
 0x31b   : > { %v8904_v50 = vcombine.low %v1278_v36, %v1282_v38  ;;  %v8897_v53 = vcombine.high %v1270_v22, %v1274_v37  ;;  %v8131_v47 = vcombine.high %v503_v48, %v507_v49  ;;  %v1262_v54 = vld [vmem:[%s9716_s8 + $0x1b50] sm:$0xff]  ;;  %v8896_v59 = vcombine.low %v1270_v22, %v1274_v37  ;;  %v475_v12 = vld [vmem:[%s9716_s8 + $0x2b8] sm:$0xff] }
 0x31c   : > { %6742 = vmatpush1.bf16.msra.mxu1 %v8058_v41  ;;  %7064 = vst [vmem:[#allocation2 + $0x10] sm:$0xff] %v7048_v4  ;;  %v7049_v8 = vadd.f32 %v6434_v31, %v369_v1  ;;  %v1266_v55 = vld [vmem:[%s9716_s8 + $0x1b70] sm:$0xff]  ;;  %v8130_v41 = vcombine.low %v503_v48, %v507_v49  ;;  %v8123_v34 = vcombine.high %v495_v56, %v499_v58  ;;  %v479_v31 = vld [vmem:[%s9716_s8 + $0x2d8] sm:$0xff] }
 0x31d   : > { %6743 = vmatprep.subr.bf16.mxu1 %v8051_v45  ;;  %6701 = vmatpush1.bf16.msra.mxu0 %v8816_v5  ;;  %v8889_v57 = vcombine.high %v1262_v54, %v1266_v55  ;;  %v1254_v61 = vld [vmem:[%s9716_s8 + $0x1b10] sm:$0xff]  ;;  %v487_v45 = vld [vmem:[%s9716_s8 + $0x318] sm:$0xff]  ;;  %v8888_v0 = vcombine.low %v1262_v54, %v1266_v55  ;;  %v8122_v1 = vcombine.low %v495_v56, %v499_v58 }
 0x31e   : > { %7065 = vst [vmem:[#allocation2 + $0x38] sm:$0xff] %v7049_v8  ;;  %6702 = vmatprep.subr.bf16.mxu0 %v8809_v7  ;;  %v1258_v62 = vld [vmem:[%s9716_s8 + $0x1b30] sm:$0xff]  ;;  %v8115_v3 = vcombine.high %v487_v45, %v491_v63  ;;  %v483_v5 = vld [vmem:[%s9716_s8 + $0x2f8] sm:$0xff]  ;;  %v8114_v7 = vcombine.low %v487_v45, %v491_v63 }
 0x31f   : > { %v8881_v51 = vcombine.high %v1254_v61, %v1258_v62  ;;  %v1250_v4 = vld [vmem:[%s9716_s8 + $0x1af0] sm:$0xff]  ;;  %v463_v19 = vld [vmem:[%s9716_s8 + $0x258] sm:$0xff] }
 0x320   : > { %6744 = vmatpush1.bf16.msra.mxu1 %v8050_v6  ;;  %v8880_v6 = vcombine.low %v1254_v61, %v1258_v62  ;;  %v8873_v8 = vcombine.high %v1246_v2, %v1250_v4  ;;  %v1238_v10 = vld [vmem:[%s9716_s8 + $0x1a90] sm:$0xff]  ;;  %v467_v20 = vld [vmem:[%s9716_s8 + $0x278] sm:$0xff] }
 0x321   : > { %6745 = vmatprep.subr.bf16.mxu1 %v8043_v9  ;;  %6703 = vmatpush1.bf16.msra.mxu0 %v8808_v13  ;;  %v8107_v9 = vcombine.high %v479_v31, %v483_v5  ;;  %v1242_v60 = vld [vmem:[%s9716_s8 + $0x1ab0] sm:$0xff]  ;;  %v8872_v13 = vcombine.low %v1246_v2, %v1250_v4  ;;  %v455_v28 = vld [vmem:[%s9716_s8 + $0x218] sm:$0xff] }
 0x322   : > { %6704 = vmatprep.subr.bf16.mxu0 %v8801_v15  ;;  %v8865_v15 = vcombine.high %v1238_v10, %v1242_v60  ;;  %v1230_v17 = vld [vmem:[%s9716_s8 + $0x1a50] sm:$0xff]  ;;  %v459_v29 = vld [vmem:[%s9716_s8 + $0x238] sm:$0xff] }
 0x323   : > { %v1234_v18 = vld [vmem:[%s9716_s8 + $0x1a70] sm:$0xff]  ;;  %v575_v36 = vld [vmem:[%s9716_s8 + $0x5d8] sm:$0xff] }
 0x324   : > { %6746 = vmatpush1.bf16.msra.mxu1 %v8042_v14  ;;  %v8106_v14 = vcombine.low %v479_v31, %v483_v5  ;;  %v1222_v26 = vld [vmem:[%s9716_s8 + $0x1a10] sm:$0xff]  ;;  %v579_v38 = vld [vmem:[%s9716_s8 + $0x5f8] sm:$0xff] }
 0x325   : > { %6747 = vmatprep.subr.bf16.mxu1 %v8035_v16  ;;  %6705 = vmatpush1.bf16.msra.mxu0 %v8800_v21  ;;  %v8099_v16 = vcombine.high %v471_v11, %v475_v12  ;;  %v8864_v21 = vcombine.low %v1238_v10, %v1242_v60  ;;  %v1226_v27 = vld [vmem:[%s9716_s8 + $0x1a30] sm:$0xff]  ;;  %v703_v39 = vld [vmem:[%s9716_s8 + $0x9d8] sm:$0xff] }
 0x326   : > { %6706 = vmatprep.subr.bf16.mxu0 %v8793_v24  ;;  %v8857_v24 = vcombine.high %v1230_v17, %v1234_v18  ;;  %v707_v40 = vld [vmem:[%s9716_s8 + $0x9f8] sm:$0xff] }
 0x327   : > { %v567_v22 = vld [vmem:[%s9716_s8 + $0x598] sm:$0xff] }
 0x328   : > { %6748 = vmatpush1.bf16.msra.mxu1 %v8034_v23  ;;  %v8098_v23 = vcombine.low %v471_v11, %v475_v12  ;;  %v571_v37 = vld [vmem:[%s9716_s8 + $0x5b8] sm:$0xff] }
 0x329   : > { %6749 = vmatprep.subr.bf16.mxu1 %v8027_v25  ;;  %6707 = vmatpush1.bf16.msra.mxu0 %v8792_v30  ;;  %v8091_v25 = vcombine.high %v463_v19, %v467_v20  ;;  %v8856_v30 = vcombine.low %v1230_v17, %v1234_v18  ;;  %v695_v48 = vld [vmem:[%s9716_s8 + $0x998] sm:$0xff] }
 0x32a   : > { %6708 = vmatprep.subr.bf16.mxu0 %v8785_v33  ;;  %v8849_v33 = vcombine.high %v1222_v26, %v1226_v27  ;;  %v699_v49 = vld [vmem:[%s9716_s8 + $0x9b8] sm:$0xff] }
 0x32b   : > { %v559_v54 = vld [vmem:[%s9716_s8 + $0x558] sm:$0xff] }
 0x32c   : > { %6750 = vmatpush1.bf16.msra.mxu1 %v8026_v32  ;;  %v8090_v32 = vcombine.low %v463_v19, %v467_v20  ;;  %v563_v55 = vld [vmem:[%s9716_s8 + $0x578] sm:$0xff] }
 0x32d   : > { %6751 = vmatprep.subr.bf16.mxu1 %v8019_v35  ;;  %6709 = vmatpush1.bf16.msra.mxu0 %v8784_v42  ;;  %v8083_v35 = vcombine.high %v455_v28, %v459_v29  ;;  %v8848_v42 = vcombine.low %v1222_v26, %v1226_v27  ;;  %v9231_v56 = vld [vmem:[%s9709_s29 + $0x30] ss:$56 sps:$4 sm:$0xff]   ;;  %v8187_v61 = vcombine.high %v559_v54, %v563_v55 }
 0x32e   : > { %6710 = vmatprep.subr.bf16.mxu0 %v8905_v44  ;;  %v8203_v44 = vcombine.high %v575_v36, %v579_v38  ;;  %v687_v58 = vld [vmem:[%s9716_s8 + $0x958] sm:$0xff]  ;;  %v8186_v2 = vcombine.low %v559_v54, %v563_v55 }
 0x32f   : > { %v551_v45 = vld [vmem:[%s9716_s8 + $0x518] sm:$0xff] }
 0x330   : > { %6752 = vmatpush1.bf16.msra.mxu1 %v8018_v43  ;;  %v8082_v43 = vcombine.low %v455_v28, %v459_v29  ;;  %v555_v63 = vld [vmem:[%s9716_s8 + $0x538] sm:$0xff] }
 0x331   : > { %6753 = vmatprep.subr.bf16.mxu1 %v8139_v46  ;;  %6711 = vmatpush2.bf16.msra.mxu0 %v8904_v50  ;;  %v8331_v46 = vcombine.high %v703_v39, %v707_v40  ;;  %v8202_v50 = vcombine.low %v575_v36, %v579_v38  ;;  %v8179_v31 = vcombine.high %v551_v45, %v555_v63 }
 0x332   : > { %6712 = vmatprep.subr.bf16.mxu0 %v8897_v53  ;;  %v8195_v53 = vcombine.high %v567_v22, %v571_v37  ;;  %v8178_v10 = vcombine.low %v551_v45, %v555_v63 }
 0x334   : > { %6754 = vmatpush2.bf16.msra.mxu1 %v8138_v52  ;;  %v8330_v52 = vcombine.low %v703_v39, %v707_v40 }
 0x335   : > { %6755 = vmatprep.subr.bf16.mxu1 %v8131_v47  ;;  %6713 = vmatpush2.bf16.msra.mxu0 %v8896_v59  ;;  %v8323_v47 = vcombine.high %v695_v48, %v699_v49  ;;  %v691_v59 = vld [vmem:[%s9716_s8 + $0x978] sm:$0xff] }
 0x336   : > { %6714 = vmatprep.subr.bf16.mxu0 %v8889_v57  ;;  %v8194_v57 = vcombine.low %v567_v22, %v571_v37  ;;  %v8315_v62 = vcombine.high %v687_v58, %v691_v59  ;;  %v8314_v4 = vcombine.low %v687_v58, %v691_v59  ;;  %v623_v59 = vld [vmem:[%s9716_s8 + $0x758] sm:$0xff] }
 0x338   : > { %6756 = vmatpush2.bf16.msra.mxu1 %v8130_v41  ;;  %v9232_v41 = vld [vmem:[%s9709_s29] ss:$56 sps:$4 sm:$0xff]  }
 0x339   : > { %6757 = vmatprep.subr.bf16.mxu1 %v8123_v34  ;;  %6715 = vmatpush2.bf16.msra.mxu0 %v8888_v0  ;;  %v8322_v34 = vcombine.low %v695_v48, %v699_v49  ;;  %v9233_v0 = vld [vmem:[%s9709_s29 + $0xc] ss:$56 sps:$4 sm:$0xff]  }
 0x33a   : > { %6716 = vmatprep.subr.bf16.mxu0 %v8881_v51  ;;  %v683_v51 = vld [vmem:[%s9716_s8 + $0x938] sm:$0xff] }
 0x33c   : > { %6758 = vmatpush2.bf16.msra.mxu1 %v8122_v1  ;;  %v679_v1 = vld [vmem:[%s9716_s8 + $0x918] sm:$0xff] }
 0x33d   : > { %6759 = vmatprep.subr.bf16.mxu1 %v8115_v3  ;;  %6717 = vmatpush2.bf16.msra.mxu0 %v8880_v6  ;;  %v9234_v3 = vld [vmem:[%s9709_s29 + $0x14] ss:$56 sps:$4 sm:$0xff]   ;;  %v8307_v5 = vcombine.high %v679_v1, %v683_v51  ;;  %v8306_v60 = vcombine.low %v679_v1, %v683_v51 }
 0x33e   : > { %6718 = vmatprep.subr.bf16.mxu0 %v8873_v8  ;;  %v543_v6 = vld [vmem:[%s9716_s8 + $0x4d8] sm:$0xff] }
 0x33f   : > { %v671_v8 = vld [vmem:[%s9716_s8 + $0x8d8] sm:$0xff] }
 0x340   : > { %6760 = vmatpush2.bf16.msra.mxu1 %v8114_v7  ;;  %v547_v7 = vld [vmem:[%s9716_s8 + $0x4f8] sm:$0xff] }
 0x341   : > { %6761 = vmatprep.subr.bf16.mxu1 %v8107_v9  ;;  %6719 = vmatpush2.bf16.msra.mxu0 %v8872_v13  ;;  %v675_v9 = vld [vmem:[%s9716_s8 + $0x8f8] sm:$0xff]  ;;  %v8171_v11 = vcombine.high %v543_v6, %v547_v7  ;;  %v8170_v17 = vcombine.low %v543_v6, %v547_v7 }
 0x342   : > { %6720 = vmatprep.subr.bf16.mxu0 %v8865_v15  ;;  %v8299_v12 = vcombine.high %v671_v8, %v675_v9  ;;  %v535_v13 = vld [vmem:[%s9716_s8 + $0x498] sm:$0xff]  ;;  %v8298_v18 = vcombine.low %v671_v8, %v675_v9 }
 0x343   : > { %v663_v15 = vld [vmem:[%s9716_s8 + $0x898] sm:$0xff] }
 0x344   : > { %6762 = vmatpush2.bf16.msra.mxu1 %v8106_v14  ;;  %v539_v14 = vld [vmem:[%s9716_s8 + $0x4b8] sm:$0xff] }
 0x345   : > { %6763 = vmatprep.subr.bf16.mxu1 %v8099_v16  ;;  %6721 = vmatpush2.bf16.msra.mxu0 %v8864_v21  ;;  %v667_v16 = vld [vmem:[%s9716_s8 + $0x8b8] sm:$0xff]  ;;  %v8163_v19 = vcombine.high %v535_v13, %v539_v14  ;;  %v8162_v26 = vcombine.low %v535_v13, %v539_v14 }
 0x346   : > { %6722 = vmatprep.subr.bf16.mxu0 %v8857_v24  ;;  %v8291_v20 = vcombine.high %v663_v15, %v667_v16  ;;  %v527_v21 = vld [vmem:[%s9716_s8 + $0x458] sm:$0xff]  ;;  %v8290_v27 = vcombine.low %v663_v15, %v667_v16 }
 0x347   : > { %v655_v24 = vld [vmem:[%s9716_s8 + $0x858] sm:$0xff] }
 0x348   : > { %6764 = vmatpush2.bf16.msra.mxu1 %v8098_v23  ;;  %v531_v23 = vld [vmem:[%s9716_s8 + $0x478] sm:$0xff] }
 0x349   : > { %6765 = vmatprep.subr.bf16.mxu1 %v8091_v25  ;;  %6723 = vmatpush2.bf16.msra.mxu0 %v8856_v30  ;;  %v659_v25 = vld [vmem:[%s9716_s8 + $0x878] sm:$0xff]  ;;  %v8155_v28 = vcombine.high %v527_v21, %v531_v23  ;;  %v8154_v36 = vcombine.low %v527_v21, %v531_v23 }
 0x34a   : > { %6724 = vmatprep.subr.bf16.mxu0 %v8849_v33  ;;  %v8283_v29 = vcombine.high %v655_v24, %v659_v25  ;;  %v519_v30 = vld [vmem:[%s9716_s8 + $0x418] sm:$0xff]  ;;  %v8282_v38 = vcombine.low %v655_v24, %v659_v25 }
 0x34b   : > { %v647_v33 = vld [vmem:[%s9716_s8 + $0x818] sm:$0xff] }
 0x34c   : > { %6766 = vmatpush2.bf16.msra.mxu1 %v8090_v32  ;;  %v523_v32 = vld [vmem:[%s9716_s8 + $0x438] sm:$0xff] }
 0x34d   : > { %6767 = vmatprep.subr.bf16.mxu1 %v8083_v35  ;;  %6725 = vmatpush2.bf16.msra.mxu0 %v8848_v42  ;;  %v651_v35 = vld [vmem:[%s9716_s8 + $0x838] sm:$0xff]  ;;  %v8147_v39 = vcombine.high %v519_v30, %v523_v32  ;;  %v8146_v22 = vcombine.low %v519_v30, %v523_v32 }
 0x34e   : > { %6780 = vmatprep.subr.bf16.mxu0 %v8203_v44  ;;  %v8275_v40 = vcombine.high %v647_v33, %v651_v35  ;;  %v639_v42 = vld [vmem:[%s9716_s8 + $0x7d8] sm:$0xff]  ;;  %v8274_v37 = vcombine.low %v647_v33, %v651_v35 }
 0x34f   : > { %v767_v44 = vld [vmem:[%s9716_s8 + $0xbd8] sm:$0xff] }
 0x350   : > { %6768 = vmatpush2.bf16.msra.mxu1 %v8082_v43  ;;  %6727 = vmatmul.mubr.bf16.vlgmr.msra.gmra.mxu0 %v9231_v56  ;;  %v643_v43 = vld [vmem:[%s9716_s8 + $0x7f8] sm:$0xff] }
 0x351   : > { %6823 = vmatprep.subr.bf16.mxu1 %v8331_v46  ;;  %6781 = vmatpush1.bf16.msra.mxu0 %v8202_v50  ;;  %v771_v46 = vld [vmem:[%s9716_s8 + $0xbf8] sm:$0xff]  ;;  %v8267_v48 = vcombine.high %v639_v42, %v643_v43  ;;  %v8266_v54 = vcombine.low %v639_v42, %v643_v43 }
 0x352   : > { %6782 = vmatprep.subr.bf16.mxu0 %v8195_v53  ;;  %6812 = vmatprep.mubr.bf16.mxu0 %v9233_v0  ;;  %v8395_v49 = vcombine.high %v767_v44, %v771_v46  ;;  %v631_v50 = vld [vmem:[%s9716_s8 + $0x798] sm:$0xff]  ;;  %v8394_v55 = vcombine.low %v767_v44, %v771_v46 }
 0x353   : > { %6770 = vmatmul.mubr.bf16.vlgmr.msra.gmra.mxu1 %v9232_v41  ;;  %v759_v53 = vld [vmem:[%s9716_s8 + $0xb98] sm:$0xff] }
 0x354   : > { %6824 = vmatpush1.bf16.msra.mxu1 %v8330_v52  ;;  %6855 = vmatprep.mubr.bf16.mxu1 %v9234_v3  ;;  %v635_v52 = vld [vmem:[%s9716_s8 + $0x7b8] sm:$0xff] }
 0x355   : > { %6825 = vmatprep.subr.bf16.mxu1 %v8323_v47  ;;  %6783 = vmatpush1.bf16.msra.mxu0 %v8194_v57  ;;  %v763_v47 = vld [vmem:[%s9716_s8 + $0xbb8] sm:$0xff]  ;;  %v8259_v56 = vcombine.high %v631_v50, %v635_v52 }
 0x356   : > { %6784 = vmatprep.subr.bf16.mxu0 %v8187_v61  ;;  %v8387_v58 = vcombine.high %v759_v53, %v763_v47  ;;  %v627_v41 = vld [vmem:[%s9716_s8 + $0x778] sm:$0xff]  ;;  %v8258_v61 = vcombine.low %v631_v50, %v635_v52 }
 0x357   : > { %v751_v57 = vld [vmem:[%s9716_s8 + $0xb58] sm:$0xff]  ;;  %v8251_v45 = vcombine.high %v623_v59, %v627_v41 }
 0x358   : > { %6826 = vmatpush1.bf16.msra.mxu1 %v8322_v34  ;;  %v755_v34 = vld [vmem:[%s9716_s8 + $0xb78] sm:$0xff] }
 0x359   : > { %6827 = vmatprep.subr.bf16.mxu1 %v8315_v62  ;;  %6785 = vmatpush1.bf16.msra.mxu0 %v8186_v2  ;;  %v8386_v62 = vcombine.low %v759_v53, %v763_v47  ;;  %v8379_v63 = vcombine.high %v751_v57, %v755_v34  ;;  %v615_v0 = vld [vmem:[%s9716_s8 + $0x718] sm:$0xff]  ;;  %v8250_v2 = vcombine.low %v623_v59, %v627_v41 }
 0x35a   : > { %6786 = vmatprep.subr.bf16.mxu0 %v8179_v31  ;;  %v619_v1 = vld [vmem:[%s9716_s8 + $0x738] sm:$0xff] }
 0x35b   : > { %v743_v51 = vld [vmem:[%s9716_s8 + $0xb18] sm:$0xff]  ;;  %v8243_v31 = vcombine.high %v615_v0, %v619_v1 }
 0x35c   : > { %6828 = vmatpush1.bf16.msra.mxu1 %v8314_v4  ;;  %v747_v3 = vld [vmem:[%s9716_s8 + $0xb38] sm:$0xff]  ;;  %v8378_v4 = vcombine.low %v751_v57, %v755_v34 }
 0x35d   : > { %6829 = vmatprep.subr.bf16.mxu1 %v8307_v5  ;;  %6787 = vmatpush1.bf16.msra.mxu0 %v8178_v10  ;;  %v8371_v5 = vcombine.high %v743_v51, %v747_v3  ;;  %v607_v6 = vld [vmem:[%s9716_s8 + $0x6d8] sm:$0xff]  ;;  %v8242_v10 = vcombine.low %v615_v0, %v619_v1 }
 0x35e   : > { %6788 = vmatprep.subr.bf16.mxu0 %v8171_v11  ;;  %v611_v7 = vld [vmem:[%s9716_s8 + $0x6f8] sm:$0xff] }
 0x35f   : > { %v735_v8 = vld [vmem:[%s9716_s8 + $0xad8] sm:$0xff]  ;;  %v8235_v11 = vcombine.high %v607_v6, %v611_v7 }
 0x360   : > { %6830 = vmatpush1.bf16.msra.mxu1 %v8306_v60  ;;  %v739_v9 = vld [vmem:[%s9716_s8 + $0xaf8] sm:$0xff]  ;;  %v8370_v60 = vcombine.low %v743_v51, %v747_v3 }
 0x361   : > { %6831 = vmatprep.subr.bf16.mxu1 %v8299_v12  ;;  %6789 = vmatpush1.bf16.msra.mxu0 %v8170_v17  ;;  %v8363_v12 = vcombine.high %v735_v8, %v739_v9  ;;  %v599_v13 = vld [vmem:[%s9716_s8 + $0x698] sm:$0xff]  ;;  %v8234_v17 = vcombine.low %v607_v6, %v611_v7 }
 0x362   : > { %6790 = vmatprep.subr.bf16.mxu0 %v8163_v19  ;;  %v603_v14 = vld [vmem:[%s9716_s8 + $0x6b8] sm:$0xff] }
 0x363   : > { %v727_v15 = vld [vmem:[%s9716_s8 + $0xa98] sm:$0xff]  ;;  %v8227_v19 = vcombine.high %v599_v13, %v603_v14 }
 0x364   : > { %6832 = vmatpush1.bf16.msra.mxu1 %v8298_v18  ;;  %v731_v16 = vld [vmem:[%s9716_s8 + $0xab8] sm:$0xff]  ;;  %v8362_v18 = vcombine.low %v735_v8, %v739_v9 }
 0x365   : > { %6833 = vmatprep.subr.bf16.mxu1 %v8291_v20  ;;  %6791 = vmatpush1.bf16.msra.mxu0 %v8162_v26  ;;  %v8355_v20 = vcombine.high %v727_v15, %v731_v16  ;;  %v591_v21 = vld [vmem:[%s9716_s8 + $0x658] sm:$0xff]  ;;  %v8226_v26 = vcombine.low %v599_v13, %v603_v14 }
 0x366   : > { %6792 = vmatprep.subr.bf16.mxu0 %v8155_v28  ;;  %v595_v23 = vld [vmem:[%s9716_s8 + $0x678] sm:$0xff] }
 0x367   : > { %v719_v24 = vld [vmem:[%s9716_s8 + $0xa58] sm:$0xff]  ;;  %v8219_v28 = vcombine.high %v591_v21, %v595_v23 }
 0x368   : > { %6834 = vmatpush1.bf16.msra.mxu1 %v8290_v27  ;;  %v723_v25 = vld [vmem:[%s9716_s8 + $0xa78] sm:$0xff]  ;;  %v8354_v27 = vcombine.low %v727_v15, %v731_v16 }
 0x369   : > { %6835 = vmatprep.subr.bf16.mxu1 %v8283_v29  ;;  %6793 = vmatpush1.bf16.msra.mxu0 %v8154_v36  ;;  %v8347_v29 = vcombine.high %v719_v24, %v723_v25  ;;  %v583_v30 = vld [vmem:[%s9716_s8 + $0x618] sm:$0xff]  ;;  %v8218_v36 = vcombine.low %v591_v21, %v595_v23 }
 0x36a   : > { %6794 = vmatprep.subr.bf16.mxu0 %v8147_v39  ;;  %v587_v32 = vld [vmem:[%s9716_s8 + $0x638] sm:$0xff] }
 0x36b   : > { %v711_v33 = vld [vmem:[%s9716_s8 + $0xa18] sm:$0xff]  ;;  %v8211_v39 = vcombine.high %v583_v30, %v587_v32 }
 0x36c   : > { %6836 = vmatpush1.bf16.msra.mxu1 %v8282_v38  ;;  %v715_v35 = vld [vmem:[%s9716_s8 + $0xa38] sm:$0xff]  ;;  %v8346_v38 = vcombine.low %v719_v24, %v723_v25 }
 0x36d   : > { %6837 = vmatprep.subr.bf16.mxu1 %v8275_v40  ;;  %6795 = vmatpush1.bf16.msra.mxu0 %v8146_v22  ;;  %v8339_v40 = vcombine.high %v711_v33, %v715_v35  ;;  %v831_v42 = vld [vmem:[%s9716_s8 + $0xdd8] sm:$0xff]  ;;  %v8210_v22 = vcombine.low %v583_v30, %v587_v32 }
 0x36e   : > { %6796 = vmatprep.subr.bf16.mxu0 %v8267_v48  ;;  %v835_v43 = vld [vmem:[%s9716_s8 + $0xdf8] sm:$0xff] }
 0x36f   : > { %v959_v44 = vld [vmem:[%s9716_s8 + $0x11d8] sm:$0xff]  ;;  %v8459_v48 = vcombine.high %v831_v42, %v835_v43 }
 0x370   : > { %6838 = vmatpush1.bf16.msra.mxu1 %v8274_v37  ;;  %v963_v46 = vld [vmem:[%s9716_s8 + $0x11f8] sm:$0xff]  ;;  %v8338_v37 = vcombine.low %v711_v33, %v715_v35 }
 0x371   : > { %6839 = vmatprep.subr.bf16.mxu1 %v8395_v49  ;;  %6797 = vmatpush2.bf16.msra.mxu0 %v8266_v54  ;;  %v8587_v49 = vcombine.high %v959_v44, %v963_v46  ;;  %v823_v50 = vld [vmem:[%s9716_s8 + $0xd98] sm:$0xff]  ;;  %v8458_v54 = vcombine.low %v831_v42, %v835_v43 }
 0x372   : > { %6798 = vmatprep.subr.bf16.mxu0 %v8259_v56  ;;  %v827_v52 = vld [vmem:[%s9716_s8 + $0xdb8] sm:$0xff] }
 0x373   : > { %v951_v53 = vld [vmem:[%s9716_s8 + $0x1198] sm:$0xff]  ;;  %v8451_v56 = vcombine.high %v823_v50, %v827_v52 }
 0x374   : > { %6840 = vmatpush2.bf16.msra.mxu1 %v8394_v55  ;;  %v955_v47 = vld [vmem:[%s9716_s8 + $0x11b8] sm:$0xff]  ;;  %v8586_v55 = vcombine.low %v959_v44, %v963_v46 }
 0x375   : > { %6841 = vmatprep.subr.bf16.mxu1 %v8387_v58  ;;  %6799 = vmatpush2.bf16.msra.mxu0 %v8258_v61  ;;  %v8579_v58 = vcombine.high %v951_v53, %v955_v47  ;;  %v815_v59 = vld [vmem:[%s9716_s8 + $0xd58] sm:$0xff] }
 0x376   : > { %6800 = vmatprep.subr.bf16.mxu0 %v8251_v45  ;;  %v819_v41 = vld [vmem:[%s9716_s8 + $0xd78] sm:$0xff]  ;;  %v8450_v45 = vcombine.low %v823_v50, %v827_v52 }
 0x377   : > { %v9235_v57 = vld [vmem:[%s9709_s29 + $0x8] ss:$56 sps:$4 sm:$0xff]   ;;  %v8443_v0 = vcombine.high %v815_v59, %v819_v41  ;;  %v8442_v6 = vcombine.low %v815_v59, %v819_v41 }
 0x378   : > { %6842 = vmatpush2.bf16.msra.mxu1 %v8386_v62  ;;  %v943_v34 = vld [vmem:[%s9716_s8 + $0x1158] sm:$0xff] }
 0x379   : > { %6843 = vmatprep.subr.bf16.mxu1 %v8379_v63  ;;  %6801 = vmatpush2.bf16.msra.mxu0 %v8250_v2  ;;  %v947_v61 = vld [vmem:[%s9716_s8 + $0x1178] sm:$0xff]  ;;  %v8578_v63 = vcombine.low %v951_v53, %v955_v47 }
 0x37a   : > { %6802 = vmatprep.subr.bf16.mxu0 %v8243_v31  ;;  %v9236_v62 = vld [vmem:[%s9709_s29 + $0x10] ss:$56 sps:$4 sm:$0xff]   ;;  %v8571_v1 = vcombine.high %v943_v34, %v947_v61  ;;  %v9237_v2 = vld [vmem:[%s9709_s29 + $0x1c] ss:$56 sps:$4 sm:$0xff]   ;;  %v8570_v7 = vcombine.low %v943_v34, %v947_v61 }
 0x37b   : > { %v807_v51 = vld [vmem:[%s9716_s8 + $0xd18] sm:$0xff] }
 0x37c   : > { %6844 = vmatpush2.bf16.msra.mxu1 %v8378_v4  ;;  %v811_v3 = vld [vmem:[%s9716_s8 + $0xd38] sm:$0xff] }
 0x37d   : > { %6845 = vmatprep.subr.bf16.mxu1 %v8371_v5  ;;  %6803 = vmatpush2.bf16.msra.mxu0 %v8242_v10  ;;  %v935_v4 = vld [vmem:[%s9716_s8 + $0x1118] sm:$0xff]  ;;  %v8435_v8 = vcombine.high %v807_v51, %v811_v3  ;;  %v8434_v13 = vcombine.low %v807_v51, %v811_v3 }
 0x37e   : > { %6804 = vmatprep.subr.bf16.mxu0 %v8235_v11  ;;  %v939_v31 = vld [vmem:[%s9716_s8 + $0x1138] sm:$0xff] }
 0x37f   : > { %v9238_v5 = vld [vmem:[%s9709_s29 + $0x24] ss:$56 sps:$4 sm:$0xff]   ;;  %v8563_v9 = vcombine.high %v935_v4, %v939_v31  ;;  %v8562_v14 = vcombine.low %v935_v4, %v939_v31 }
 0x380   : > { %6846 = vmatpush2.bf16.msra.mxu1 %v8370_v60  ;;  %v799_v10 = vld [vmem:[%s9716_s8 + $0xcd8] sm:$0xff] }
 0x381   : > { %6847 = vmatprep.subr.bf16.mxu1 %v8363_v12  ;;  %6805 = vmatpush2.bf16.msra.mxu0 %v8234_v17  ;;  %v803_v60 = vld [vmem:[%s9716_s8 + $0xcf8] sm:$0xff] }
 0x382   : > { %6806 = vmatprep.subr.bf16.mxu0 %v8227_v19  ;;  %v927_v11 = vld [vmem:[%s9716_s8 + $0x10d8] sm:$0xff]  ;;  %v8427_v15 = vcombine.high %v799_v10, %v803_v60  ;;  %v8426_v21 = vcombine.low %v799_v10, %v803_v60 }
 0x383   : > { %v931_v12 = vld [vmem:[%s9716_s8 + $0x10f8] sm:$0xff] }
 0x384   : > { %6848 = vmatpush2.bf16.msra.mxu1 %v8362_v18  ;;  %v8555_v16 = vcombine.high %v927_v11, %v931_v12  ;;  %v791_v17 = vld [vmem:[%s9716_s8 + $0xc98] sm:$0xff]  ;;  %v8554_v23 = vcombine.low %v927_v11, %v931_v12 }
 0x385   : > { %6849 = vmatprep.subr.bf16.mxu1 %v8355_v20  ;;  %6807 = vmatpush2.bf16.msra.mxu0 %v8226_v26  ;;  %v795_v18 = vld [vmem:[%s9716_s8 + $0xcb8] sm:$0xff] }
 0x386   : > { %6808 = vmatprep.subr.bf16.mxu0 %v8219_v28  ;;  %v919_v19 = vld [vmem:[%s9716_s8 + $0x1098] sm:$0xff]  ;;  %v8419_v24 = vcombine.high %v791_v17, %v795_v18  ;;  %v8418_v30 = vcombine.low %v791_v17, %v795_v18 }
 0x387   : > { %v923_v20 = vld [vmem:[%s9716_s8 + $0x10b8] sm:$0xff] }
 0x388   : > { %6850 = vmatpush2.bf16.msra.mxu1 %v8354_v27  ;;  %v8547_v25 = vcombine.high %v919_v19, %v923_v20  ;;  %v783_v26 = vld [vmem:[%s9716_s8 + $0xc58] sm:$0xff]  ;;  %v8546_v32 = vcombine.low %v919_v19, %v923_v20 }
 0x389   : > { %6851 = vmatprep.subr.bf16.mxu1 %v8347_v29  ;;  %6809 = vmatpush2.bf16.msra.mxu0 %v8218_v36  ;;  %v787_v27 = vld [vmem:[%s9716_s8 + $0xc78] sm:$0xff] }
 0x38a   : > { %6810 = vmatprep.subr.bf16.mxu0 %v8211_v39  ;;  %v911_v28 = vld [vmem:[%s9716_s8 + $0x1058] sm:$0xff]  ;;  %v8411_v33 = vcombine.high %v783_v26, %v787_v27  ;;  %v8410_v42 = vcombine.low %v783_v26, %v787_v27 }
 0x38b   : > { %v915_v29 = vld [vmem:[%s9716_s8 + $0x1078] sm:$0xff] }
 0x38c   : > { %6852 = vmatpush2.bf16.msra.mxu1 %v8346_v38  ;;  %v8539_v35 = vcombine.high %v911_v28, %v915_v29  ;;  %v775_v36 = vld [vmem:[%s9716_s8 + $0xc18] sm:$0xff]  ;;  %v8538_v43 = vcombine.low %v911_v28, %v915_v29 }
 0x38d   : > { %6853 = vmatprep.subr.bf16.mxu1 %v8339_v40  ;;  %6811 = vmatpush2.bf16.msra.mxu0 %v8210_v22  ;;  %v779_v38 = vld [vmem:[%s9716_s8 + $0xc38] sm:$0xff] }
 0x38e   : > { %6866 = vmatprep.subr.bf16.mxu0 %v8459_v48  ;;  %v903_v39 = vld [vmem:[%s9716_s8 + $0x1018] sm:$0xff]  ;;  %v8403_v44 = vcombine.high %v775_v36, %v779_v38  ;;  %v8402_v50 = vcombine.low %v775_v36, %v779_v38 }
 0x38f   : > { %v907_v40 = vld [vmem:[%s9716_s8 + $0x1038] sm:$0xff] }
 0x390   : > { %6854 = vmatpush2.bf16.msra.mxu1 %v8338_v37  ;;  %6813 = vmatmul.mubr.bf16.vlgmr.msra.gmra.mxu0 %v9235_v57  ;;  %v8531_v46 = vcombine.high %v903_v39, %v907_v40  ;;  %v895_v22 = vld [vmem:[%s9716_s8 + $0xfd8] sm:$0xff]  ;;  %v8530_v52 = vcombine.low %v903_v39, %v907_v40 }
 0x391   : > { %6909 = vmatprep.subr.bf16.mxu1 %v8587_v49  ;;  %6867 = vmatpush1.bf16.msra.mxu0 %v8458_v54  ;;  %v899_v37 = vld [vmem:[%s9716_s8 + $0xff8] sm:$0xff] }
 0x392   : > { %6868 = vmatprep.subr.bf16.mxu0 %v8451_v56  ;;  %6898 = vmatprep.mubr.bf16.mxu0 %v9237_v2  ;;  %v1023_v48 = vld [vmem:[%s9716_s8 + $0x13d8] sm:$0xff]  ;;  %v8523_v53 = vcombine.high %v895_v22, %v899_v37  ;;  %v8522_v59 = vcombine.low %v895_v22, %v899_v37 }
 0x393   : > { %6856 = vmatmul.mubr.bf16.vlgmr.msra.gmra.mxu1 %v9236_v62  ;;  %v1027_v49 = vld [vmem:[%s9716_s8 + $0x13f8] sm:$0xff] }
 0x394   : > { %6910 = vmatpush1.bf16.msra.mxu1 %v8586_v55  ;;  %6941 = vmatprep.mubr.bf16.mxu1 %v9238_v5  ;;  %v8651_v47 = vcombine.high %v1023_v48, %v1027_v49  ;;  %v887_v54 = vld [vmem:[%s9716_s8 + $0xf98] sm:$0xff]  ;;  %v8650_v41 = vcombine.low %v1023_v48, %v1027_v49 }
 0x395   : > { %6911 = vmatprep.subr.bf16.mxu1 %v8579_v58  ;;  %6869 = vmatpush1.bf16.msra.mxu0 %v8450_v45  ;;  %v891_v55 = vld [vmem:[%s9716_s8 + $0xfb8] sm:$0xff] }
 0x396   : > { %6870 = vmatprep.subr.bf16.mxu0 %v8443_v0  ;;  %v1015_v56 = vld [vmem:[%s9716_s8 + $0x1398] sm:$0xff]  ;;  %v8515_v57 = vcombine.high %v887_v54, %v891_v55  ;;  %v8514_v0 = vcombine.low %v887_v54, %v891_v55 }
 0x397   : > { %v1019_v58 = vld [vmem:[%s9716_s8 + $0x13b8] sm:$0xff] }
 0x398   : > { %6912 = vmatpush1.bf16.msra.mxu1 %v8578_v63  ;;  %v8643_v34 = vcombine.high %v1015_v56, %v1019_v58  ;;  %v879_v61 = vld [vmem:[%s9716_s8 + $0xf58] sm:$0xff] }
 0x399   : > { %6913 = vmatprep.subr.bf16.mxu1 %v8571_v1  ;;  %6871 = vmatpush1.bf16.msra.mxu0 %v8442_v6  ;;  %v883_v62 = vld [vmem:[%s9716_s8 + $0xf78] sm:$0xff]  ;;  %v8642_v1 = vcombine.low %v1015_v56, %v1019_v58 }
 0x39a   : > { %6872 = vmatprep.subr.bf16.mxu0 %v8435_v8  ;;  %v1007_v45 = vld [vmem:[%s9716_s8 + $0x1358] sm:$0xff]  ;;  %v8507_v51 = vcombine.high %v879_v61, %v883_v62  ;;  %v8506_v6 = vcombine.low %v879_v61, %v883_v62 }
 0x39b   : > { %v1011_v63 = vld [vmem:[%s9716_s8 + $0x1378] sm:$0xff] }
 0x39c   : > { %6914 = vmatpush1.bf16.msra.mxu1 %v8570_v7  ;;  %v8635_v3 = vcombine.high %v1007_v45, %v1011_v63  ;;  %v871_v2 = vld [vmem:[%s9716_s8 + $0xf18] sm:$0xff]  ;;  %v8634_v7 = vcombine.low %v1007_v45, %v1011_v63 }
 0x39d   : > { %6915 = vmatprep.subr.bf16.mxu1 %v8563_v9  ;;  %6873 = vmatpush1.bf16.msra.mxu0 %v8434_v13  ;;  %v875_v4 = vld [vmem:[%s9716_s8 + $0xf38] sm:$0xff] }
 0x39e   : > { %6874 = vmatprep.subr.bf16.mxu0 %v8427_v15  ;;  %v999_v31 = vld [vmem:[%s9716_s8 + $0x1318] sm:$0xff]  ;;  %v8499_v8 = vcombine.high %v871_v2, %v875_v4  ;;  %v8498_v13 = vcombine.low %v871_v2, %v875_v4 }
 0x39f   : > { %v1003_v5 = vld [vmem:[%s9716_s8 + $0x1338] sm:$0xff] }
 0x3a0   : > { %6916 = vmatpush1.bf16.msra.mxu1 %v8562_v14  ;;  %v8627_v9 = vcombine.high %v999_v31, %v1003_v5  ;;  %v863_v10 = vld [vmem:[%s9716_s8 + $0xed8] sm:$0xff]  ;;  %v8626_v14 = vcombine.low %v999_v31, %v1003_v5 }
 0x3a1   : > { %6917 = vmatprep.subr.bf16.mxu1 %v8555_v16  ;;  %6875 = vmatpush1.bf16.msra.mxu0 %v8426_v21  ;;  %v867_v60 = vld [vmem:[%s9716_s8 + $0xef8] sm:$0xff] }
 0x3a2   : > { %6876 = vmatprep.subr.bf16.mxu0 %v8419_v24  ;;  %v991_v11 = vld [vmem:[%s9716_s8 + $0x12d8] sm:$0xff]  ;;  %v8491_v15 = vcombine.high %v863_v10, %v867_v60  ;;  %v8490_v21 = vcombine.low %v863_v10, %v867_v60 }
 0x3a3   : > { %v995_v12 = vld [vmem:[%s9716_s8 + $0x12f8] sm:$0xff] }
 0x3a4   : > { %6918 = vmatpush1.bf16.msra.mxu1 %v8554_v23  ;;  %v8619_v16 = vcombine.high %v991_v11, %v995_v12  ;;  %v855_v17 = vld [vmem:[%s9716_s8 + $0xe98] sm:$0xff]  ;;  %v8618_v23 = vcombine.low %v991_v11, %v995_v12 }
 0x3a5   : > { %6919 = vmatprep.subr.bf16.mxu1 %v8547_v25  ;;  %6877 = vmatpush1.bf16.msra.mxu0 %v8418_v30  ;;  %v859_v18 = vld [vmem:[%s9716_s8 + $0xeb8] sm:$0xff] }
 0x3a6   : > { %6878 = vmatprep.subr.bf16.mxu0 %v8411_v33  ;;  %v983_v19 = vld [vmem:[%s9716_s8 + $0x1298] sm:$0xff]  ;;  %v8483_v24 = vcombine.high %v855_v17, %v859_v18  ;;  %v8482_v30 = vcombine.low %v855_v17, %v859_v18 }
 0x3a7   : > { %v987_v20 = vld [vmem:[%s9716_s8 + $0x12b8] sm:$0xff] }
 0x3a8   : > { %6920 = vmatpush1.bf16.msra.mxu1 %v8546_v32  ;;  %v8611_v25 = vcombine.high %v983_v19, %v987_v20  ;;  %v847_v26 = vld [vmem:[%s9716_s8 + $0xe58] sm:$0xff]  ;;  %v8610_v32 = vcombine.low %v983_v19, %v987_v20 }
 0x3a9   : > { %6921 = vmatprep.subr.bf16.mxu1 %v8539_v35  ;;  %6879 = vmatpush1.bf16.msra.mxu0 %v8410_v42  ;;  %v851_v27 = vld [vmem:[%s9716_s8 + $0xe78] sm:$0xff] }
 0x3aa   : > { %6880 = vmatprep.subr.bf16.mxu0 %v8403_v44  ;;  %v975_v28 = vld [vmem:[%s9716_s8 + $0x1258] sm:$0xff]  ;;  %v8475_v33 = vcombine.high %v847_v26, %v851_v27  ;;  %v8474_v42 = vcombine.low %v847_v26, %v851_v27 }
 0x3ab   : > { %v979_v29 = vld [vmem:[%s9716_s8 + $0x1278] sm:$0xff] }
 0x3ac   : > { %6922 = vmatpush1.bf16.msra.mxu1 %v8538_v43  ;;  %v8603_v35 = vcombine.high %v975_v28, %v979_v29  ;;  %v839_v36 = vld [vmem:[%s9716_s8 + $0xe18] sm:$0xff]  ;;  %v8602_v43 = vcombine.low %v975_v28, %v979_v29 }
 0x3ad   : > { %6923 = vmatprep.subr.bf16.mxu1 %v8531_v46  ;;  %6881 = vmatpush1.bf16.msra.mxu0 %v8402_v50  ;;  %v843_v38 = vld [vmem:[%s9716_s8 + $0xe38] sm:$0xff] }
 0x3ae   : > { %6882 = vmatprep.subr.bf16.mxu0 %v8523_v53  ;;  %v967_v39 = vld [vmem:[%s9716_s8 + $0x1218] sm:$0xff]  ;;  %v8467_v44 = vcombine.high %v839_v36, %v843_v38  ;;  %v8466_v50 = vcombine.low %v839_v36, %v843_v38 }
 0x3af   : > { %v971_v40 = vld [vmem:[%s9716_s8 + $0x1238] sm:$0xff] }
 0x3b0   : > { %6924 = vmatpush1.bf16.msra.mxu1 %v8530_v52  ;;  %v8595_v46 = vcombine.high %v967_v39, %v971_v40  ;;  %v1087_v22 = vld [vmem:[%s9716_s8 + $0x15d8] sm:$0xff]  ;;  %v8594_v52 = vcombine.low %v967_v39, %v971_v40 }
 0x3b1   : > { %6925 = vmatprep.subr.bf16.mxu1 %v8651_v47  ;;  %6883 = vmatpush2.bf16.msra.mxu0 %v8522_v59  ;;  %v1091_v37 = vld [vmem:[%s9716_s8 + $0x15f8] sm:$0xff] }
 0x3b2   : > { %6884 = vmatprep.subr.bf16.mxu0 %v8515_v57  ;;  %v1215_v48 = vld [vmem:[%s9716_s8 + $0x19d8] sm:$0xff]  ;;  %v8715_v53 = vcombine.high %v1087_v22, %v1091_v37  ;;  %v8714_v59 = vcombine.low %v1087_v22, %v1091_v37  ;;  %v10714_v37 = vpop.f32.mrf.mxu0 }
 0x3b3   : > { %v1219_v49 = vld [vmem:[%s9716_s8 + $0x19f8] sm:$0xff] }
 0x3b4   : > { %6926 = vmatpush2.bf16.msra.mxu1 %v8650_v41  ;;  %v8843_v47 = vcombine.high %v1215_v48, %v1219_v49  ;;  %v1079_v54 = vld [vmem:[%s9716_s8 + $0x1598] sm:$0xff]  ;;  %v8842_v41 = vcombine.low %v1215_v48, %v1219_v49 }
 0x3b5   : > { %6927 = vmatprep.subr.bf16.mxu1 %v8643_v34  ;;  %6885 = vmatpush2.bf16.msra.mxu0 %v8514_v0  ;;  %v1083_v55 = vld [vmem:[%s9716_s8 + $0x15b8] sm:$0xff] }
 0x3b6   : > { %6886 = vmatprep.subr.bf16.mxu0 %v8507_v51  ;;  %v1207_v56 = vld [vmem:[%s9716_s8 + $0x1998] sm:$0xff]  ;;  %v8707_v57 = vcombine.high %v1079_v54, %v1083_v55  ;;  %v8706_v51 = vcombine.low %v1079_v54, %v1083_v55 }
 0x3b7   : > { %v1211_v58 = vld [vmem:[%s9716_s8 + $0x19b8] sm:$0xff] }
 0x3b8   : > { %6928 = vmatpush2.bf16.msra.mxu1 %v8642_v1  ;;  %v8835_v34 = vcombine.high %v1207_v56, %v1211_v58  ;;  %v1071_v61 = vld [vmem:[%s9716_s8 + $0x1558] sm:$0xff] }
 0x3b9   : > { %6929 = vmatprep.subr.bf16.mxu1 %v8635_v3  ;;  %6887 = vmatpush2.bf16.msra.mxu0 %v8506_v6  ;;  %v1075_v62 = vld [vmem:[%s9716_s8 + $0x1578] sm:$0xff]  ;;  %v8834_v3 = vcombine.low %v1207_v56, %v1211_v58  ;;  %v10720_v56 = vpop.f32.mrf.mxu0 }
 0x3ba   : > { %6888 = vmatprep.subr.bf16.mxu0 %v8499_v8  ;;  %v9239_v45 = vld [vmem:[%s9709_s29 + $0x18] ss:$56 sps:$4 sm:$0xff]   ;;  %v8699_v2 = vcombine.high %v1071_v61, %v1075_v62  ;;  %v9241_v6 = vld [vmem:[%s9709_s29 + $0x2c] ss:$56 sps:$4 sm:$0xff]   ;;  %v8698_v10 = vcombine.low %v1071_v61, %v1075_v62  ;;  %v10724_v61 = vpop.f32.mrf.mxu1 }
 0x3bb   : > { %v1199_v63 = vld [vmem:[%s9716_s8 + $0x1958] sm:$0xff] }
 0x3bc   : > { %6930 = vmatpush2.bf16.msra.mxu1 %v8634_v7  ;;  %v1203_v0 = vld [vmem:[%s9716_s8 + $0x1978] sm:$0xff] }
 0x3bd   : > { %6931 = vmatprep.subr.bf16.mxu1 %v8627_v9  ;;  %6889 = vmatpush2.bf16.msra.mxu0 %v8498_v13  ;;  %v9240_v1 = vld [vmem:[%s9709_s29 + $0x20] ss:$56 sps:$4 sm:$0xff]   ;;  %v8827_v4 = vcombine.high %v1199_v63, %v1203_v0  ;;  %v9242_v9 = vld [vmem:[%s9709_s29 + $0x34] ss:$56 sps:$4 sm:$0xff]   ;;  %v8826_v60 = vcombine.low %v1199_v63, %v1203_v0  ;;  %v10728_v0 = vpop.f32.mrf.mxu0 }
 0x3be   : > { %6890 = vmatprep.subr.bf16.mxu0 %v8491_v15  ;;  %v1063_v31 = vld [vmem:[%s9716_s8 + $0x1518] sm:$0xff] }
 0x3bf   : > { %v1067_v5 = vld [vmem:[%s9716_s8 + $0x1538] sm:$0xff] }
 0x3c0   : > { %6932 = vmatpush2.bf16.msra.mxu1 %v8626_v14  ;;  %v1191_v7 = vld [vmem:[%s9716_s8 + $0x1918] sm:$0xff]  ;;  %v8691_v11 = vcombine.high %v1063_v31, %v1067_v5  ;;  %v8690_v17 = vcombine.low %v1063_v31, %v1067_v5  ;;  %v10732_v31 = vpop.f32.mrf.mxu1 }
 0x3c1   : > { %6933 = vmatprep.subr.bf16.mxu1 %v8619_v16  ;;  %6891 = vmatpush2.bf16.msra.mxu0 %v8490_v21  ;;  %v1195_v8 = vld [vmem:[%s9716_s8 + $0x1938] sm:$0xff] }
 0x3c2   : > { %6892 = vmatprep.subr.bf16.mxu0 %v8483_v24  ;;  %v8819_v12 = vcombine.high %v1191_v7, %v1195_v8  ;;  %v1055_v13 = vld [vmem:[%s9716_s8 + $0x14d8] sm:$0xff]  ;;  %v8818_v18 = vcombine.low %v1191_v7, %v1195_v8  ;;  %v10736_v8 = vpop.f32.mrf.mxu0 }
 0x3c3   : > { %v1059_v14 = vld [vmem:[%s9716_s8 + $0x14f8] sm:$0xff] }
 0x3c4   : > { %6934 = vmatpush2.bf16.msra.mxu1 %v8618_v23  ;;  %v1183_v15 = vld [vmem:[%s9716_s8 + $0x18d8] sm:$0xff]  ;;  %v8683_v19 = vcombine.high %v1055_v13, %v1059_v14  ;;  %v8682_v26 = vcombine.low %v1055_v13, %v1059_v14  ;;  %v10740_v13 = vpop.f32.mrf.mxu1  ;;  %v6556_v14 = vpop.f32.mrf.mxu0 }
 0x3c5   : > { %6935 = vmatprep.subr.bf16.mxu1 %v8611_v25  ;;  %6893 = vmatpush2.bf16.msra.mxu0 %v8482_v30  ;;  %v1187_v16 = vld [vmem:[%s9716_s8 + $0x18f8] sm:$0xff] }
 0x3c6   : > { %6894 = vmatprep.subr.bf16.mxu0 %v8475_v33  ;;  %v8811_v20 = vcombine.high %v1183_v15, %v1187_v16  ;;  %v1047_v21 = vld [vmem:[%s9716_s8 + $0x1498] sm:$0xff]  ;;  %v8810_v27 = vcombine.low %v1183_v15, %v1187_v16 }
 0x3c7   : > { %v1051_v23 = vld [vmem:[%s9716_s8 + $0x14b8] sm:$0xff] }
 0x3c8   : > { %6936 = vmatpush2.bf16.msra.mxu1 %v8610_v32  ;;  %v1175_v24 = vld [vmem:[%s9716_s8 + $0x1898] sm:$0xff]  ;;  %v8675_v28 = vcombine.high %v1047_v21, %v1051_v23  ;;  %v8674_v36 = vcombine.low %v1047_v21, %v1051_v23 }
 0x3c9   : > { %6937 = vmatprep.subr.bf16.mxu1 %v8603_v35  ;;  %6895 = vmatpush2.bf16.msra.mxu0 %v8474_v42  ;;  %v1179_v25 = vld [vmem:[%s9716_s8 + $0x18b8] sm:$0xff] }
 0x3ca   : > { %6896 = vmatprep.subr.bf16.mxu0 %v8467_v44  ;;  %v8803_v29 = vcombine.high %v1175_v24, %v1179_v25  ;;  %v1039_v30 = vld [vmem:[%s9716_s8 + $0x1458] sm:$0xff]  ;;  %v8802_v38 = vcombine.low %v1175_v24, %v1179_v25  ;;  %v6519_v24 = vpop.f32.mrf.mxu1  ;;  %v6558_v25 = vpop.f32.mrf.mxu0 }
 0x3cb   : > { %v1043_v32 = vld [vmem:[%s9716_s8 + $0x1478] sm:$0xff] }
 0x3cc   : > { %6938 = vmatpush2.bf16.msra.mxu1 %v8602_v43  ;;  %v1167_v33 = vld [vmem:[%s9716_s8 + $0x1858] sm:$0xff]  ;;  %v8667_v39 = vcombine.high %v1039_v30, %v1043_v32  ;;  %v8666_v22 = vcombine.low %v1039_v30, %v1043_v32 }
 0x3cd   : > { %6939 = vmatprep.subr.bf16.mxu1 %v8595_v46  ;;  %6897 = vmatpush2.bf16.msra.mxu0 %v8466_v50  ;;  %v1171_v35 = vld [vmem:[%s9716_s8 + $0x1878] sm:$0xff] }
 0x3ce   : > { %6952 = vmatprep.subr.bf16.mxu0 %v8715_v53  ;;  %v8795_v40 = vcombine.high %v1167_v33, %v1171_v35  ;;  %v1031_v42 = vld [vmem:[%s9716_s8 + $0x1418] sm:$0xff]  ;;  %v8794_v48 = vcombine.low %v1167_v33, %v1171_v35 }
 0x3cf   : > { %v1035_v43 = vld [vmem:[%s9716_s8 + $0x1438] sm:$0xff] }
 0x3d0   : > { %6940 = vmatpush2.bf16.msra.mxu1 %v8594_v52  ;;  %6899 = vmatmul.mubr.bf16.vlgmr.msra.gmra.mxu0 %v9239_v45  ;;  %v1159_v44 = vld [vmem:[%s9716_s8 + $0x1818] sm:$0xff]  ;;  %v8659_v49 = vcombine.high %v1031_v42, %v1035_v43  ;;  %v8658_v55 = vcombine.low %v1031_v42, %v1035_v43 }
 0x3d1   : > { %6995 = vmatprep.subr.bf16.mxu1 %v8843_v47  ;;  %6953 = vmatpush1.bf16.msra.mxu0 %v8714_v59  ;;  %v1163_v46 = vld [vmem:[%s9716_s8 + $0x1838] sm:$0xff] }
 0x3d2   : > { %6954 = vmatprep.subr.bf16.mxu0 %v8707_v57  ;;  %6984 = vmatprep.mubr.bf16.mxu0 %v9241_v6  ;;  %v8787_v50 = vcombine.high %v1159_v44, %v1163_v46  ;;  %v1151_v52 = vld [vmem:[%s9716_s8 + $0x17d8] sm:$0xff]  ;;  %v8786_v58 = vcombine.low %v1159_v44, %v1163_v46 }
 0x3d3   : > { %6942 = vmatmul.mubr.bf16.vlgmr.msra.gmra.mxu1 %v9240_v1  ;;  %v1155_v53 = vld [vmem:[%s9716_s8 + $0x17f8] sm:$0xff] }
 0x3d4   : > { %6996 = vmatpush1.bf16.msra.mxu1 %v8842_v41  ;;  %7027 = vmatprep.mubr.bf16.mxu1 %v9242_v9  ;;  %v1279_v47 = vld [vmem:[%s9716_s8 + $0x1bd8] sm:$0xff]  ;;  %v8779_v59 = vcombine.high %v1151_v52, %v1155_v53  ;;  %v8778_v63 = vcombine.low %v1151_v52, %v1155_v53 }
 0x3d5   : > { %6997 = vmatprep.subr.bf16.mxu1 %v8835_v34  ;;  %6955 = vmatpush1.bf16.msra.mxu0 %v8706_v51  ;;  %v1283_v54 = vld [vmem:[%s9716_s8 + $0x1bf8] sm:$0xff] }
 0x3d6   : > { %6956 = vmatprep.subr.bf16.mxu0 %v8699_v2  ;;  %v8907_v41 = vcombine.high %v1279_v47, %v1283_v54  ;;  %v1143_v57 = vld [vmem:[%s9716_s8 + $0x1798] sm:$0xff]  ;;  %v8906_v1 = vcombine.low %v1279_v47, %v1283_v54 }
 0x3d7   : > { %v1147_v34 = vld [vmem:[%s9716_s8 + $0x17b8] sm:$0xff] }
 0x3d8   : > { %6998 = vmatpush1.bf16.msra.mxu1 %v8834_v3  ;;  %v1271_v62 = vld [vmem:[%s9716_s8 + $0x1b98] sm:$0xff]  ;;  %v8771_v51 = vcombine.high %v1143_v57, %v1147_v34  ;;  %v8770_v7 = vcombine.low %v1143_v57, %v1147_v34 }
 0x3d9   : > { %6999 = vmatprep.subr.bf16.mxu1 %v8827_v4  ;;  %6957 = vmatpush1.bf16.msra.mxu0 %v8698_v10  ;;  %v1275_v45 = vld [vmem:[%s9716_s8 + $0x1bb8] sm:$0xff] }
 0x3da   : > { %6958 = vmatprep.subr.bf16.mxu0 %v8691_v11  ;;  %v8899_v3 = vcombine.high %v1271_v62, %v1275_v45  ;;  %v1135_v2 = vld [vmem:[%s9716_s8 + $0x1758] sm:$0xff]  ;;  %v8898_v9 = vcombine.low %v1271_v62, %v1275_v45 }
 0x3db   : > { %v1139_v4 = vld [vmem:[%s9716_s8 + $0x1778] sm:$0xff] }
 0x3dc   : > { %7000 = vmatpush1.bf16.msra.mxu1 %v8826_v60  ;;  %v1263_v5 = vld [vmem:[%s9716_s8 + $0x1b58] sm:$0xff]  ;;  %v8763_v10 = vcombine.high %v1135_v2, %v1139_v4 }
 0x3dd   : > { %7001 = vmatprep.subr.bf16.mxu1 %v8819_v12  ;;  %6959 = vmatpush1.bf16.msra.mxu0 %v8690_v17  ;;  %v1267_v6 = vld [vmem:[%s9716_s8 + $0x1b78] sm:$0xff]  ;;  %v8762_v17 = vcombine.low %v1135_v2, %v1139_v4 }
 0x3de   : > { %6960 = vmatprep.subr.bf16.mxu0 %v8683_v19  ;;  %v8891_v60 = vcombine.high %v1263_v5, %v1267_v6  ;;  %v1127_v11 = vld [vmem:[%s9716_s8 + $0x1718] sm:$0xff] }
 0x3df   : > { %v1131_v12 = vld [vmem:[%s9716_s8 + $0x1738] sm:$0xff] }
 0x3e0   : > { %7002 = vmatpush1.bf16.msra.mxu1 %v8818_v18  ;;  %v1255_v15 = vld [vmem:[%s9716_s8 + $0x1b18] sm:$0xff]  ;;  %v8890_v18 = vcombine.low %v1263_v5, %v1267_v6  ;;  %v8755_v19 = vcombine.high %v1127_v11, %v1131_v12 }
 0x3e1   : > { %7003 = vmatprep.subr.bf16.mxu1 %v8811_v20  ;;  %6961 = vmatpush1.bf16.msra.mxu0 %v8682_v26  ;;  %v1259_v16 = vld [vmem:[%s9716_s8 + $0x1b38] sm:$0xff] }
 0x3e2   : > { %6962 = vmatprep.subr.bf16.mxu0 %v8675_v28  ;;  %v8883_v20 = vcombine.high %v1255_v15, %v1259_v16  ;;  %v1119_v21 = vld [vmem:[%s9716_s8 + $0x16d8] sm:$0xff]  ;;  %v8754_v28 = vcombine.low %v1127_v11, %v1131_v12  ;;  %v8882_v30 = vcombine.low %v1255_v15, %v1259_v16 }
 0x3e3   : > { %v1123_v23 = vld [vmem:[%s9716_s8 + $0x16f8] sm:$0xff] }
 0x3e4   : > { %7004 = vmatpush1.bf16.msra.mxu1 %v8810_v27  ;;  %v1247_v26 = vld [vmem:[%s9716_s8 + $0x1ad8] sm:$0xff]  ;;  %v8747_v32 = vcombine.high %v1119_v21, %v1123_v23  ;;  %v8746_v42 = vcombine.low %v1119_v21, %v1123_v23  ;;  %v362_v23 = vld [vmem:[#allocation2 + $0x50] sm:$0xff] }
 0x3e5   : > { %7005 = vmatprep.subr.bf16.mxu1 %v8803_v29  ;;  %6963 = vmatpush1.bf16.msra.mxu0 %v8674_v36  ;;  %v1251_v27 = vld [vmem:[%s9716_s8 + $0x1af8] sm:$0xff]  ;;  %v6599_v29 = vpop.f32.mrf.mxu1 }
 0x3e6   : > { %6964 = vmatprep.subr.bf16.mxu0 %v8667_v39  ;;  %v8875_v33 = vcombine.high %v1247_v26, %v1251_v27  ;;  %v1111_v35 = vld [vmem:[%s9716_s8 + $0x1698] sm:$0xff]  ;;  %v8874_v44 = vcombine.low %v1247_v26, %v1251_v27 }
 0x3e7   : > { %v1115_v36 = vld [vmem:[%s9716_s8 + $0x16b8] sm:$0xff]  ;;  %v6601_v43 = vpop.f32.mrf.mxu1 }
 0x3e8   : > { %7006 = vmatpush1.bf16.msra.mxu1 %v8802_v38  ;;  %v6560_v38 = vpop.f32.mrf.mxu0  ;;  %v1239_v39 = vld [vmem:[%s9716_s8 + $0x1a98] sm:$0xff]  ;;  %v8739_v46 = vcombine.high %v1111_v35, %v1115_v36  ;;  %v8738_v47 = vcombine.low %v1111_v35, %v1115_v36 }
 0x3e9   : > { %7007 = vmatprep.subr.bf16.mxu1 %v8795_v40  ;;  %6965 = vmatpush1.bf16.msra.mxu0 %v8666_v22  ;;  %v1243_v40 = vld [vmem:[%s9716_s8 + $0x1ab8] sm:$0xff]  ;;  %v6603_v54 = vpop.f32.mrf.mxu1 }
 0x3ea   : > { %6966 = vmatprep.subr.bf16.mxu0 %v8659_v49  ;;  %v8867_v22 = vcombine.high %v1239_v39, %v1243_v40  ;;  %v1107_v49 = vld [vmem:[%s9716_s8 + $0x1678] sm:$0xff] }
 0x3eb   : > { %v1231_v52 = vld [vmem:[%s9716_s8 + $0x1a58] sm:$0xff]  ;;  %v6605_v2 = vpop.f32.mrf.mxu1 }
 0x3ec   : > { %7008 = vmatpush1.bf16.msra.mxu1 %v8794_v48  ;;  %v1103_v48 = vld [vmem:[%s9716_s8 + $0x1658] sm:$0xff] }
 0x3ed   : > { %7009 = vmatprep.subr.bf16.mxu1 %v8787_v50  ;;  %6967 = vmatpush1.bf16.msra.mxu0 %v8658_v55  ;;  %v6562_v50 = vpop.f32.mrf.mxu0  ;;  %v1235_v53 = vld [vmem:[%s9716_s8 + $0x1a78] sm:$0xff] }
 0x3ee   : > { %6968 = vmatprep.subr.bf16.mxu0 %v8779_v59  ;;  %v8731_v59 = vcombine.high %v1103_v48, %v1107_v49  ;;  %v8859_v57 = vcombine.high %v1231_v52, %v1235_v53  ;;  %v1095_v34 = vld [vmem:[%s9716_s8 + $0x1618] sm:$0xff]  ;;  %v8858_v5 = vcombine.low %v1231_v52, %v1235_v53 }
 0x3ef   : > { %v6642_v55 = vpop.f32.mrf.mxu0  ;;  %v1099_v62 = vld [vmem:[%s9716_s8 + $0x1638] sm:$0xff] }
 0x3f0   : > { %7010 = vmatpush1.bf16.msra.mxu1 %v8786_v58  ;;  %v8866_v58 = vcombine.low %v1239_v39, %v1243_v40  ;;  %v1223_v45 = vld [vmem:[%s9716_s8 + $0x1a18] sm:$0xff]  ;;  %v8723_v6 = vcombine.high %v1095_v34, %v1099_v62  ;;  %v370_v39 = vld [vmem:[#allocation2 + $0x60] sm:$0xff] }
 0x3f1   : > { %7011 = vmatprep.subr.bf16.mxu1 %v8907_v41  ;;  %6969 = vmatpush2.bf16.msra.mxu0 %v8778_v63  ;;  %v6514_v41 = vadd.f32 %v10724_v61, %v10714_v37  ;;  %v1227_v63 = vld [vmem:[%s9716_s8 + $0x1a38] sm:$0xff]  ;;  %v6644_v4 = vpop.f32.mrf.mxu0  ;;  %v6518_v37 = vadd.f32 %v10740_v13, %v10728_v0 }
 0x3f2   : > { %6970 = vmatprep.subr.bf16.mxu0 %v8771_v51  ;;  %v8850_v12 = vcombine.low %v1223_v45, %v1227_v63 }
 0x3f3   : > { %v6557_v51 = vadd.f32 %v6556_v14, %v6514_v41  ;;  %v6646_v11 = vpop.f32.mrf.mxu0 }
 0x3f4   : > { %7012 = vmatpush2.bf16.msra.mxu1 %v8906_v1  ;;  %v6516_v1 = vadd.f32 %v10732_v31, %v10720_v56  ;;  %v6561_v56 = vadd.f32 %v6560_v38, %v6518_v37  ;;  %v8722_v31 = vcombine.low %v1095_v34, %v1099_v62 }
 0x3f5   : > { %7013 = vmatprep.subr.bf16.mxu1 %v8899_v3  ;;  %6971 = vmatpush2.bf16.msra.mxu0 %v8770_v7  ;;  %v8730_v3 = vcombine.low %v1103_v48, %v1107_v49  ;;  %v8851_v7 = vcombine.high %v1223_v45, %v1227_v63 }
 0x3f6   : > { %6972 = vmatprep.subr.bf16.mxu0 %v8763_v10  ;;  %v6559_v61 = vadd.f32 %v6558_v25, %v6516_v1  ;;  %v6520_v10 = vadd.f32 %v6519_v24, %v10736_v8  ;;  %v6604_v13 = vadd.f32 %v6603_v54, %v6561_v56  ;;  %v9243_v25 = vld [vmem:[%s9709_s29 + $0x28] ss:$56 sps:$4 sm:$0xff]  }
 0x3f8   : > { %7014 = vmatpush2.bf16.msra.mxu1 %v8898_v9  ;;  %v6685_v9 = vpop.f32.mrf.mxu1  ;;  %v6602_v14 = vadd.f32 %v6601_v43, %v6559_v61  ;;  %v6563_v15 = vadd.f32 %v6562_v50, %v6520_v10 }
 0x3f9   : > { %7015 = vmatprep.subr.bf16.mxu1 %v8891_v60  ;;  %6973 = vmatpush2.bf16.msra.mxu0 %v8762_v17  ;;  %v6600_v60 = vadd.f32 %v6599_v29, %v6557_v51  ;;  %v9244_v29 = vld [vmem:[%s9709_s29 + $0x30] ss:$56 sps:$4 sm:$0xff]  }
 0x3fa   : > { %6974 = vmatprep.subr.bf16.mxu0 %v8755_v19  ;;  %v6687_v0 = vpop.f32.mrf.mxu1  ;;  %v6645_v17 = vadd.f32 %v6644_v4, %v6602_v14  ;;  %v6606_v8 = vadd.f32 %v6605_v2, %v6563_v15 }
 0x3fb   : > { %v6643_v16 = vadd.f32 %v6642_v55, %v6600_v60 }
 0x3fc   : > { %7016 = vmatpush2.bf16.msra.mxu1 %v8890_v18  ;;  %v6648_v18 = vpop.f32.mrf.mxu0  ;;  %v6689_v21 = vpop.f32.mrf.mxu1  ;;  %v6688_v26 = vadd.f32 %v6687_v0, %v6645_v17 }
 0x3fd   : > { %7017 = vmatprep.subr.bf16.mxu1 %v8883_v20  ;;  %6975 = vmatpush2.bf16.msra.mxu0 %v8754_v28  ;;  %v6686_v19 = vadd.f32 %v6685_v9, %v6643_v16  ;;  %v6647_v20 = vadd.f32 %v6646_v11, %v6604_v13  ;;  %v6649_v27 = vadd.f32 %v6648_v18, %v6606_v8  ;;  %v364_v8 = vld [vmem:[#allocation2 + $0x8] sm:$0xff] }
 0x3fe   : > { %6976 = vmatprep.subr.bf16.mxu0 %v8747_v32  ;;  %v6691_v38 = vpop.f32.mrf.mxu1 }
 0x400   : > { %7018 = vmatpush2.bf16.msra.mxu1 %v8882_v30  ;;  %v363_v30 = vld [vmem:[#allocation2 + $0x68] sm:$0xff] }
 0x401   : > { %7019 = vmatprep.subr.bf16.mxu1 %v8875_v33  ;;  %6977 = vmatpush2.bf16.msra.mxu0 %v8746_v42  ;;  %v6690_v33 = vadd.f32 %v6689_v21, %v6647_v20  ;;  %v6692_v42 = vadd.f32 %v6691_v38, %v6649_v27 }
 0x402   : > { %6978 = vmatprep.subr.bf16.mxu0 %v8739_v46  ;;  %v371_v46 = vld [vmem:[#allocation2 + $0x70] sm:$0xff] }
 0x404   : > { %7020 = vmatpush2.bf16.msra.mxu1 %v8874_v44 }
 0x405   : > { %7021 = vmatprep.subr.bf16.mxu1 %v8867_v22  ;;  %6979 = vmatpush2.bf16.msra.mxu0 %v8738_v47 }
 0x406   : > { %6980 = vmatprep.subr.bf16.mxu0 %v8731_v59 }
 0x408   : > { %7022 = vmatpush2.bf16.msra.mxu1 %v8866_v58 }
 0x409   : > { %7023 = vmatprep.subr.bf16.mxu1 %v8859_v57  ;;  %6981 = vmatpush2.bf16.msra.mxu0 %v8730_v3 }
 0x40a   : > { %6982 = vmatprep.subr.bf16.mxu0 %v8723_v6 }
 0x40c   : > { %7024 = vmatpush2.bf16.msra.mxu1 %v8858_v5 }
 0x40d   : > { %7025 = vmatprep.subr.bf16.mxu1 %v8851_v7  ;;  %6983 = vmatpush2.bf16.msra.mxu0 %v8722_v31 }
 0x410   : > { %7026 = vmatpush2.bf16.msra.mxu1 %v8850_v12  ;;  %v6728_v24 = vpop.f32.mrf.mxu0  ;;  %6985 = vmatmul.mubr.bf16.vlgmr.msra.gmra.mxu0 %v9243_v25  ;;  %v365_v25 = vld [vmem:[#allocation2 + $0x48] sm:$0xff] }
 0x411   : > { %v6729_v28 = vadd.f32 %v6728_v24, %v6686_v19 }
 0x412   : > { %v6730_v32 = vpop.f32.mrf.mxu0 }
 0x413   : > { %7028 = vmatmul.mubr.bf16.vlgmr.msra.gmra.mxu1 %v9244_v29  ;;  %v7042_v35 = vadd.f32 %v6729_v28, %v362_v23  ;;  %v6731_v36 = vadd.f32 %v6730_v32, %v6688_v26  ;;  %v6771_v52 = vpop.f32.mrf.mxu1 }
 0x414   : > { %v6732_v40 = vpop.f32.mrf.mxu0 }
 0x415   : > { %7058 = vst [vmem:[#allocation2 + $0x50] sm:$0xff] %v7042_v35  ;;  %v7043_v43 = vadd.f32 %v6731_v36, %v363_v30  ;;  %v6733_v44 = vadd.f32 %v6732_v40, %v6690_v33  ;;  %v6773_v53 = vpop.f32.mrf.mxu1  ;;  %v372_v33 = vld [vmem:[#allocation2 + $0x78] sm:$0xff]  ;;  %v373_v40 = vld [vmem:[#allocation2 + $0x28] sm:$0xff] }
 0x416   : > { %v6734_v22 = vpop.f32.mrf.mxu0 }
 0x417   : > { %7059 = vst [vmem:[#allocation2 + $0x68] sm:$0xff] %v7043_v43  ;;  %v7050_v48 = vadd.f32 %v6733_v44, %v370_v39  ;;  %v6735_v49 = vadd.f32 %v6734_v22, %v6692_v42  ;;  %v6775_v47 = vpop.f32.mrf.mxu1 }
 0x419   : > { %7066 = vst [vmem:[#allocation2 + $0x60] sm:$0xff] %v7050_v48  ;;  %v7051_v50 = vadd.f32 %v6735_v49, %v371_v46  ;;  %v6777_v54 = vpop.f32.mrf.mxu1 }
 0x41b   : > { %7067 = vst [vmem:[#allocation2 + $0x70] sm:$0xff] %v7051_v50 }
 0x450   : > { %v6814_v55 = vpop.f32.mrf.mxu0 }
 0x451   : > { %v6815_v51 = vadd.f32 %v6814_v55, %v6771_v52 }
 0x452   : > { %v6816_v59 = vpop.f32.mrf.mxu0 }
 0x453   : > { %v6857_v58 = vpop.f32.mrf.mxu1  ;;  %v6817_v2 = vadd.f32 %v6816_v59, %v6773_v53 }
 0x454   : > { %v6818_v57 = vpop.f32.mrf.mxu0  ;;  %v6858_v5 = vadd.f32 %v6857_v58, %v6815_v51 }
 0x455   : > { %v6859_v41 = vpop.f32.mrf.mxu1  ;;  %v6819_v6 = vadd.f32 %v6818_v57, %v6775_v47 }
 0x456   : > { %v6820_v62 = vpop.f32.mrf.mxu0  ;;  %v6860_v61 = vadd.f32 %v6859_v41, %v6817_v2 }
 0x457   : > { %v6861_v34 = vpop.f32.mrf.mxu1  ;;  %v6821_v7 = vadd.f32 %v6820_v62, %v6777_v54 }
 0x458   : > { %v6862_v60 = vadd.f32 %v6861_v34, %v6819_v6 }
 0x459   : > { %v6863_v45 = vpop.f32.mrf.mxu1 }
 0x45a   : > { %v6864_v11 = vadd.f32 %v6863_v45, %v6821_v7 }
 0x490   : > { %v6900_v63 = vpop.f32.mrf.mxu0 }
 0x491   : > { %v6901_v9 = vadd.f32 %v6900_v63, %v6858_v5 }
 0x492   : > { %v6902_v3 = vpop.f32.mrf.mxu0 }
 0x493   : > { %v6943_v1 = vpop.f32.mrf.mxu1  ;;  %v6903_v56 = vadd.f32 %v6902_v3, %v6860_v61 }
 0x494   : > { %v6904_v37 = vpop.f32.mrf.mxu0  ;;  %v6944_v12 = vadd.f32 %v6943_v1, %v6901_v9 }
 0x495   : > { %v6945_v4 = vpop.f32.mrf.mxu1  ;;  %v6905_v14 = vadd.f32 %v6904_v37, %v6862_v60 }
 0x496   : > { %v6906_v31 = vpop.f32.mrf.mxu0  ;;  %v6946_v0 = vadd.f32 %v6945_v4, %v6903_v56 }
 0x497   : > { %v6947_v10 = vpop.f32.mrf.mxu1  ;;  %v6907_v13 = vadd.f32 %v6906_v31, %v6864_v11 }
 0x498   : > { %v6948_v20 = vadd.f32 %v6947_v10, %v6905_v14 }
 0x499   : > { %v6949_v15 = vpop.f32.mrf.mxu1 }
 0x49a   : > { %v6950_v27 = vadd.f32 %v6949_v15, %v6907_v13 }
 0x4d0   : > { %v6986_v16 = vpop.f32.mrf.mxu0 }
 0x4d1   : > { %v6987_v17 = vadd.f32 %v6986_v16, %v6944_v12 }
 0x4d2   : > { %v6988_v19 = vpop.f32.mrf.mxu0 }
 0x4d3   : > { %v7029_v18 = vpop.f32.mrf.mxu1  ;;  %v6989_v23 = vadd.f32 %v6988_v19, %v6946_v0 }
 0x4d4   : > { %v7030_v21 = vadd.f32 %v7029_v18, %v6987_v17  ;;  %v6990_v26 = vpop.f32.mrf.mxu0 }
 0x4d5   : > { %v7031_v24 = vpop.f32.mrf.mxu1  ;;  %v6991_v30 = vadd.f32 %v6990_v26, %v6948_v20 }
 0x4d6   : > { %v7044_v28 = vadd.f32 %v7030_v21, %v364_v8  ;;  %v7032_v29 = vadd.f32 %v7031_v24, %v6989_v23  ;;  %v6992_v35 = vpop.f32.mrf.mxu0 }
 0x4d7   : > { %v7033_v32 = vpop.f32.mrf.mxu1  ;;  %v6993_v39 = vadd.f32 %v6992_v35, %v6950_v27 }
 0x4d8   : > { %7060 = vst [vmem:[#allocation2 + $0x8] sm:$0xff] %v7044_v28  ;;  %v7045_v36 = vadd.f32 %v7032_v29, %v365_v25  ;;  %v7034_v38 = vadd.f32 %v7033_v32, %v6991_v30 }
 0x4d9   : > { %v7035_v42 = vpop.f32.mrf.mxu1 }
 0x4da   : > { %7061 = vst [vmem:[#allocation2 + $0x48] sm:$0xff] %v7045_v36  ;;  %v7052_v43 = vadd.f32 %v7034_v38, %v372_v33  ;;  %v7036_v44 = vadd.f32 %v7035_v42, %v6993_v39  ;;  %7073 = sbr.rel (%p8908_p7) target bundleno = 1519 (0x5ef), region = 68 }
 0x4dc   : > { %7068 = vst [vmem:[#allocation2 + $0x78] sm:$0xff] %v7052_v43  ;;  %v7053_v46 = vadd.f32 %v7036_v44, %v373_v40 }
 0x4de   : > { %7069 = vst [vmem:[#allocation2 + $0x28] sm:$0xff] %v7053_v46 }
 0x4df   : > { %v9245_v22 = vld [vmem:[#allocation9 + $0x78] sm:$0xff]   ;;  %v9249_v52 = vld [vmem:[#allocation9 + $0x70] sm:$0xff]   ;;  %v9253_v55 = vld [vmem:[#allocation9 + $0x68] sm:$0xff]   ;;  %v7092_v3 = vlaneseq }
 0x4e0   : > { %v9246_v48 = vld [vmem:[#allocation9 + $0xf8] sm:$0xff]   ;;  %8982 = vmatprep.subr.bf16.mxu0 %v9245_v22  ;;  %v9250_v53 = vld [vmem:[#allocation9 + $0xf0] sm:$0xff]   ;;  %v9254_v58 = vld [vmem:[#allocation9 + $0xe8] sm:$0xff]  }
 0x4e1   : > { %v9247_v49 = vld [vmem:[#allocation9 + $0x38] sm:$0xff]   ;;  %9004 = vmatprep.subr.bf16.mxu1 %v9246_v48  ;;  %v9251_v47 = vld [vmem:[#allocation9 + $0x30] sm:$0xff]   ;;  %v9255_v59 = vld [vmem:[#allocation9 + $0x28] sm:$0xff]   ;;  %v10770_v37 = vshrl.u32 %v7092_v3, 7 }
 0x4e2   : > { %v9248_v50 = vld [vmem:[#allocation9 + $0xb8] sm:$0xff]   ;;  %8983 = vmatpush3.bf16.msra.mxu0 %v9247_v49  ;;  %v9252_v54 = vld [vmem:[#allocation9 + $0xb0] sm:$0xff]   ;;  %v9256_v41 = vld [vmem:[#allocation9 + $0xa8] sm:$0xff]  }
 0x4e3   : > { %9005 = vmatpush3.bf16.msra.mxu1 %v9248_v50  ;;  %8984 = vmatprep.subr.bf16.mxu0 %v9249_v52  ;;  %v9257_v57 = vld [vmem:[#allocation9 + $0x60] sm:$0xff]   ;;  %v9261_v63 = vld [vmem:[#allocation9 + $0x58] sm:$0xff]   ;;  %v9265_v4 = vld [vmem:[#allocation9 + $0x50] sm:$0xff]   ;;  %v7098_v60 = vsub.s32 1, %v10770_v37  ;;  %v7106_v31 = vsub.s32 3, %v10770_v37  ;;  %v7094_v12 = vsub.s32 0, %v10770_v37 }
 0x4e4   : > { %9006 = vmatprep.subr.bf16.mxu1 %v9250_v53  ;;  %v9258_v34 = vld [vmem:[#allocation9 + $0xe0] sm:$0xff]   ;;  %v9262_v1 = vld [vmem:[#allocation9 + $0xd8] sm:$0xff]   ;;  %v9266_v5 = vld [vmem:[#allocation9 + $0xd0] sm:$0xff]   ;;  %v7102_v15 = vsub.s32 2, %v10770_v37 }
 0x4e5   : > { %v9259_v62 = vld [vmem:[#allocation9 + $0x20] sm:$0xff]   ;;  %v9263_v51 = vld [vmem:[#allocation9 + $0x18] sm:$0xff]   ;;  %v9267_v6 = vld [vmem:[#allocation9 + $0x10] sm:$0xff]  }
 0x4e6   : > { %8985 = vmatpush3.bf16.msra.mxu0 %v9251_v47  ;;  %v9260_v45 = vld [vmem:[#allocation9 + $0xa0] sm:$0xff]   ;;  %v9264_v2 = vld [vmem:[#allocation9 + $0x98] sm:$0xff]   ;;  %v9268_v61 = vld [vmem:[#allocation9 + $0x90] sm:$0xff]  }
 0x4e7   : > { %9007 = vmatpush3.bf16.msra.mxu1 %v9252_v54  ;;  %8986 = vmatprep.subr.bf16.mxu0 %v9253_v55  ;;  %v9269_v7 = vld [vmem:[#allocation9 + $0x48] sm:$0xff]   ;;  %v9273_v11 = vld [vmem:[#allocation9 + $0x40] sm:$0xff]   ;;  %v7075_v13 = vld [vmem:[#allocation2] sm:$0xff] }
 0x4e8   : > { %9008 = vmatprep.subr.bf16.mxu1 %v9254_v58  ;;  %v9270_v9 = vld [vmem:[#allocation9 + $0xc8] sm:$0xff]   ;;  %v9274_v14 = vld [vmem:[#allocation9 + $0xc0] sm:$0xff]   ;;  %v7083_v17 = vld [vmem:[#allocation2 + $0x20] sm:$0xff] }
 0x4e9   : > { %v9271_v10 = vld [vmem:[#allocation9 + $0x8] sm:$0xff]   ;;  %v9275_v16 = vld [vmem:[#allocation9] sm:$0xff]   ;;  %v10776_v18 = vld [vmem:[#allocation8] sm:$0xff] }
 0x4ea   : > { %8987 = vmatpush3.bf16.msra.mxu0 %v9255_v59  ;;  %v9272_v56 = vld [vmem:[#allocation9 + $0x88] sm:$0xff]   ;;  %v9276_v0 = vld [vmem:[#allocation9 + $0x80] sm:$0xff]   ;;  %v7099_v8 = vrot.slane %v10776_v18, %v7098_v60  ;;  %v7077_v19 = vld [vmem:[#allocation2 + $0x18] sm:$0xff]  ;;  %v7107_v21 = vrot.slane %v10776_v18, %v7106_v31  ;;  %v7095_v24 = vrot.slane %v10776_v18, %v7094_v12  ;;  %v7103_v25 = vrot.slane %v10776_v18, %v7102_v15 }
 0x4eb   : > { %9009 = vmatpush3.bf16.msra.mxu1 %v9256_v41  ;;  %8988 = vmatprep.subr.bf16.mxu0 %v9257_v57  ;;  %v7085_v20 = vld [vmem:[#allocation2 + $0x38] sm:$0xff]  ;;  %v7074_v23 = vld [vmem:[#allocation2 + $0x30] sm:$0xff]  ;;  %v7082_v26 = vld [vmem:[#allocation2 + $0x40] sm:$0xff] }
 0x4ec   : > { %9010 = vmatprep.subr.bf16.mxu1 %v9258_v34  ;;  %v7076_v27 = vld [vmem:[#allocation2 + $0x58] sm:$0xff]  ;;  %v7084_v28 = vld [vmem:[#allocation2 + $0x10] sm:$0xff]  ;;  %v7133_v29 = vadd.f32 %v7099_v8, %v7075_v13  ;;  %v7141_v30 = vadd.f32 %v7099_v8, %v7083_v17  ;;  %v7135_v32 = vadd.f32 %v7107_v21, %v7077_v19  ;;  %v7143_v33 = vadd.f32 %v7107_v21, %v7085_v20  ;;  %v9277_v35 = vld [vmem:[#allocation9 + $0x178] sm:$0xff]  }
 0x4ed   : > { %v7132_v36 = vadd.f32 %v7095_v24, %v7074_v23  ;;  %v7140_v38 = vadd.f32 %v7095_v24, %v7082_v26  ;;  %v7134_v39 = vadd.f32 %v7103_v25, %v7076_v27  ;;  %v7142_v40 = vadd.f32 %v7103_v25, %v7084_v28  ;;  %v9278_v42 = vld [vmem:[#allocation9 + $0x1f8] sm:$0xff]   ;;  %v9281_v41 = vld [vmem:[#allocation9 + $0x170] sm:$0xff]   ;;  %v9289_v3 = vld [vmem:[#allocation9 + $0x160] sm:$0xff]  }
 0x4ee   : > { %8989 = vmatpush3.bf16.msra.mxu0 %v9259_v62  ;;  %v7149_v43 = vmax.f32 %v7133_v29, 0.0  ;;  %v7157_v44 = vmax.f32 %v7141_v30, 0.0  ;;  %v7151_v46 = vmax.f32 %v7135_v32, 0.0  ;;  %v7159_v22 = vmax.f32 %v7143_v33, 0.0  ;;  %v9279_v54 = vld [vmem:[#allocation9 + $0x138] sm:$0xff]   ;;  %v9282_v57 = vld [vmem:[#allocation9 + $0x1f0] sm:$0xff]  }
 0x4ef   : > { %9011 = vmatpush3.bf16.msra.mxu1 %v9260_v45  ;;  %8990 = vmatprep.subr.bf16.mxu0 %v9261_v63  ;;  %v7148_v48 = vmax.f32 %v7132_v36, 0.0  ;;  %v7156_v49 = vmax.f32 %v7140_v38, 0.0  ;;  %v7150_v50 = vmax.f32 %v7134_v39, 0.0  ;;  %v7158_v52 = vmax.f32 %v7142_v40, 0.0  ;;  %v9280_v59 = vld [vmem:[#allocation9 + $0x1b8] sm:$0xff]   ;;  %v9283_v34 = vld [vmem:[#allocation9 + $0x130] sm:$0xff]  }
 0x4f0   : > { %9012 = vmatprep.subr.bf16.mxu1 %v9262_v1  ;;  %v7165_v53 = vpack.c.bf16 %v7157_v44, %v7149_v43  ;;  %v7167_v47 = vpack.c.bf16 %v7159_v22, %v7151_v46  ;;  %v9284_v62 = vld [vmem:[#allocation9 + $0x1b0] sm:$0xff]   ;;  %v9285_v45 = vld [vmem:[#allocation9 + $0x168] sm:$0xff]   ;;  %v7118_v13 = vsub.s32 6, %v10770_v37  ;;  %v9305_v8 = vld [vmem:[#allocation9 + $0x140] sm:$0xff]  }
 0x4f1   : > { %v7164_v55 = vpack.c.bf16 %v7156_v49, %v7148_v48  ;;  %v7166_v58 = vpack.c.bf16 %v7158_v52, %v7150_v50  ;;  %v9286_v63 = vld [vmem:[#allocation9 + $0x1e8] sm:$0xff]   ;;  %v9298_v60 = vld [vmem:[#allocation9 + $0x1d0] sm:$0xff]   ;;  %v9306_v20 = vld [vmem:[#allocation9 + $0x1c0] sm:$0xff]  }
 0x4f2   : > { %8991 = vmatpush3.bf16.msra.mxu0 %v9263_v51  ;;  %7723 = vmatprep.mubr.bf16.mxu0 %v7165_v53  ;;  %v9287_v1 = vld [vmem:[#allocation9 + $0x128] sm:$0xff]   ;;  %v9300_v31 = vld [vmem:[#allocation9 + $0x190] sm:$0xff]   ;;  %v9307_v24 = vld [vmem:[#allocation9 + $0x100] sm:$0xff]   ;;  %v7119_v25 = vrot.slane %v10776_v18, %v7118_v13 }
 0x4f3   : > { %9013 = vmatpush3.bf16.msra.mxu1 %v9264_v2  ;;  %8992 = vmatprep.subr.bf16.mxu0 %v9265_v4  ;;  %v9288_v51 = vld [vmem:[#allocation9 + $0x1a8] sm:$0xff]   ;;  %v9290_v2 = vld [vmem:[#allocation9 + $0x1e0] sm:$0xff]   ;;  %v7086_v38 = vld [vmem:[#allocation2 + $0x60] sm:$0xff] }
 0x4f4   : > { %9014 = vmatprep.subr.bf16.mxu1 %v9266_v5  ;;  %7764 = vmatprep.mubr.bf16.mxu1 %v7167_v47  ;;  %v9291_v4 = vld [vmem:[#allocation9 + $0x120] sm:$0xff]   ;;  %v9301_v12 = vld [vmem:[#allocation9 + $0x148] sm:$0xff]  }
 0x4f5   : > { %v9292_v5 = vld [vmem:[#allocation9 + $0x1a0] sm:$0xff]   ;;  %v9302_v15 = vld [vmem:[#allocation9 + $0x1c8] sm:$0xff]  }
 0x4f6   : > { %8993 = vmatpush3.bf16.msra.mxu0 %v9267_v6  ;;  %v9293_v6 = vld [vmem:[#allocation9 + $0x158] sm:$0xff]   ;;  %v9304_v17 = vld [vmem:[#allocation9 + $0x188] sm:$0xff]   ;;  %v9308_v26 = vld [vmem:[#allocation9 + $0x180] sm:$0xff]  }
 0x4f7   : > { %9015 = vmatpush3.bf16.msra.mxu1 %v9268_v61  ;;  %8994 = vmatprep.subr.bf16.mxu0 %v9269_v7  ;;  %v9294_v61 = vld [vmem:[#allocation9 + $0x1d8] sm:$0xff]   ;;  %v7087_v27 = vld [vmem:[#allocation2 + $0x70] sm:$0xff]  ;;  %v7081_v30 = vld [vmem:[#allocation2 + $0x48] sm:$0xff] }
 0x4f8   : > { %9016 = vmatprep.subr.bf16.mxu1 %v9270_v9  ;;  %v9295_v7 = vld [vmem:[#allocation9 + $0x118] sm:$0xff]   ;;  %v7089_v32 = vld [vmem:[#allocation2 + $0x28] sm:$0xff]  ;;  %v7078_v33 = vld [vmem:[#allocation2 + $0x50] sm:$0xff] }
 0x4f9   : > { %v9296_v9 = vld [vmem:[#allocation9 + $0x198] sm:$0xff]   ;;  %v7080_v40 = vld [vmem:[#allocation2 + $0x8] sm:$0xff] }
 0x4fa   : > { %8995 = vmatpush3.bf16.msra.mxu0 %v9271_v10  ;;  %v9297_v10 = vld [vmem:[#allocation9 + $0x150] sm:$0xff]   ;;  %v7138_v46 = vadd.f32 %v7119_v25, %v7080_v40 }
 0x4fb   : > { %9017 = vmatpush3.bf16.msra.mxu1 %v9272_v56  ;;  %8996 = vmatprep.subr.bf16.mxu0 %v9273_v11  ;;  %v9299_v56 = vld [vmem:[#allocation9 + $0x110] sm:$0xff]   ;;  %v7114_v11 = vsub.s32 5, %v10770_v37 }
 0x4fc   : > { %9018 = vmatprep.subr.bf16.mxu1 %v9274_v14  ;;  %v7122_v14 = vsub.s32 7, %v10770_v37  ;;  %v7154_v47 = vmax.f32 %v7138_v46, 0.0 }
 0x4fd   : > { %v7115_v19 = vrot.slane %v10776_v18, %v7114_v11 }
 0x4fe   : > { %8997 = vmatpush3.bf16.msra.mxu0 %v9275_v16  ;;  %v7110_v16 = vsub.s32 4, %v10770_v37  ;;  %v7123_v21 = vrot.slane %v10776_v18, %v7122_v14  ;;  %v7079_v37 = vld [vmem:[#allocation2 + $0x68] sm:$0xff] }
 0x4ff   : > { %9019 = vmatpush3.bf16.msra.mxu1 %v9276_v0  ;;  %9026 = vmatprep.subr.bf16.mxu0 %v9277_v35  ;;  %v9303_v0 = vld [vmem:[#allocation9 + $0x108] sm:$0xff]   ;;  %v7137_v28 = vadd.f32 %v7115_v19, %v7079_v37  ;;  %v7145_v29 = vadd.f32 %v7115_v19, %v7087_v27 }
 0x500   : > { %9048 = vmatprep.subr.bf16.mxu1 %v9278_v42  ;;  %v7111_v23 = vrot.slane %v10776_v18, %v7110_v16  ;;  %v7139_v35 = vadd.f32 %v7123_v21, %v7081_v30  ;;  %v7147_v36 = vadd.f32 %v7123_v21, %v7089_v32  ;;  %v7088_v42 = vld [vmem:[#allocation2 + $0x78] sm:$0xff] }
 0x501   : > { %7724 = vmatmul.mubr.bf16.vlgmr.msra.gmra.mxu0 %v7164_v55  ;;  %v7153_v43 = vmax.f32 %v7137_v28, 0.0  ;;  %v7161_v18 = vmax.f32 %v7145_v29, 0.0  ;;  %v7146_v50 = vadd.f32 %v7119_v25, %v7088_v42 }
 0x502   : > { %7765 = vmatmul.mubr.bf16.vlgmr.msra.gmra.mxu1 %v7166_v58  ;;  %9027 = vmatpush3.bf16.msra.mxu0 %v9279_v54  ;;  %v7136_v39 = vadd.f32 %v7111_v23, %v7078_v33  ;;  %v7144_v44 = vadd.f32 %v7111_v23, %v7086_v38  ;;  %v7155_v22 = vmax.f32 %v7139_v35, 0.0  ;;  %v7163_v48 = vmax.f32 %v7147_v36, 0.0 }
 0x503   : > { %9049 = vmatpush3.bf16.msra.mxu1 %v9280_v59  ;;  %9028 = vmatprep.subr.bf16.mxu0 %v9281_v41  ;;  %v7169_v52 = vpack.c.bf16 %v7161_v18, %v7153_v43  ;;  %v7162_v55 = vmax.f32 %v7146_v50, 0.0 }
 0x504   : > { %9050 = vmatprep.subr.bf16.mxu1 %v9282_v57  ;;  %v7152_v49 = vmax.f32 %v7136_v39, 0.0  ;;  %v7160_v53 = vmax.f32 %v7144_v44, 0.0  ;;  %v7171_v54 = vpack.c.bf16 %v7163_v48, %v7155_v22 }
 0x505   : > { %7805 = vmatprep.mubr.bf16.mxu0 %v7169_v52  ;;  %v7170_v59 = vpack.c.bf16 %v7162_v55, %v7154_v47 }
 0x506   : > { %9029 = vmatpush3.bf16.msra.mxu0 %v9283_v34  ;;  %v7168_v58 = vpack.c.bf16 %v7160_v53, %v7152_v49  ;;  %7846 = vmatprep.mubr.bf16.mxu1 %v7171_v54 }
 0x507   : > { %9051 = vmatpush3.bf16.msra.mxu1 %v9284_v62  ;;  %9030 = vmatprep.subr.bf16.mxu0 %v9285_v45 }
 0x508   : > { %9052 = vmatprep.subr.bf16.mxu1 %v9286_v63 }
 0x50a   : > { %9031 = vmatpush3.bf16.msra.mxu0 %v9287_v1 }
 0x50b   : > { %9053 = vmatpush3.bf16.msra.mxu1 %v9288_v51  ;;  %9032 = vmatprep.subr.bf16.mxu0 %v9289_v3  ;;  %v8909_v51 = vld [vmem:[#allocation11] ss:$0 sm:$0xff] }
 0x50c   : > { %9054 = vmatprep.subr.bf16.mxu1 %v9290_v2 }
 0x50e   : > { %9033 = vmatpush3.bf16.msra.mxu0 %v9291_v4 }
 0x50f   : > { %9055 = vmatpush3.bf16.msra.mxu1 %v9292_v5  ;;  %9034 = vmatprep.subr.bf16.mxu0 %v9293_v6 }
 0x510   : > { %9056 = vmatprep.subr.bf16.mxu1 %v9294_v61 }
 0x512   : > { %9035 = vmatpush3.bf16.msra.mxu0 %v9295_v7 }
 0x513   : > { %9057 = vmatpush3.bf16.msra.mxu1 %v9296_v9  ;;  %9036 = vmatprep.subr.bf16.mxu0 %v9297_v10 }
 0x514   : > { %9058 = vmatprep.subr.bf16.mxu1 %v9298_v60 }
 0x516   : > { %9037 = vmatpush3.bf16.msra.mxu0 %v9299_v56 }
 0x517   : > { %9059 = vmatpush3.bf16.msra.mxu1 %v9300_v31  ;;  %9038 = vmatprep.subr.bf16.mxu0 %v9301_v12 }
 0x518   : > { %9060 = vmatprep.subr.bf16.mxu1 %v9302_v15 }
 0x51a   : > { %9039 = vmatpush3.bf16.msra.mxu0 %v9303_v0 }
 0x51b   : > { %9061 = vmatpush3.bf16.msra.mxu1 %v9304_v17  ;;  %9040 = vmatprep.subr.bf16.mxu0 %v9305_v8 }
 0x51c   : > { %9062 = vmatprep.subr.bf16.mxu1 %v9306_v20 }
 0x51e   : > { %9041 = vmatpush3.bf16.msra.mxu0 %v9307_v24 }
 0x51f   : > { %9063 = vmatpush3.bf16.msra.mxu1 %v9308_v26 }
 0x521   : > { %7806 = vmatmul.mubr.bf16.vlgmr.msra.gmra.mxu0 %v7168_v58 }
 0x522   : > { %7847 = vmatmul.mubr.bf16.vlgmr.msra.gmra.mxu1 %v7170_v59 }
 0x5c1   : > { %v8998_v41 = vpop.f32.mrf.mxu0 }
 0x5c2   : > { %v9020_v57 = vpop.f32.mrf.mxu1 }
 0x5c3   : > { %v8999_v34 = vpop.f32.mrf.mxu0 }
 0x5c4   : > { %v9021_v62 = vpop.f32.mrf.mxu1  ;;  %v9000_v63 = vadd.f32 %v8999_v34, %v8998_v41 }
 0x5c5   : > { %v9001_v45 = vpop.f32.mrf.mxu0  ;;  %v9022_v4 = vadd.f32 %v9021_v62, %v9020_v57 }
 0x5c6   : > { %v9023_v1 = vpop.f32.mrf.mxu1  ;;  %v7726_v2 = vadd.f32 %v9000_v63, %v8909_v51 }
 0x5c7   : > { %v9002_v3 = vpop.f32.mrf.mxu0 }
 0x5c8   : > { %v9003_v5 = vadd.f32 %v9002_v3, %v9001_v45  ;;  %v9024_v6 = vpop.f32.mrf.mxu1  ;;  %v7767_v10 = vadd.f32 %v9022_v4, %v7726_v2 }
 0x5c9   : > { %v9025_v12 = vadd.f32 %v9024_v6, %v9023_v1 }
 0x5ca   : > { %v7729_v60 = vadd.f32 %v9003_v5, %v8909_v51 }
 0x5cc   : > { %v7770_v13 = vadd.f32 %v9025_v12, %v7729_v60 }
 0x5e1   : > { %v9042_v61 = vpop.f32.mrf.mxu0 }
 0x5e2   : > { %v9064_v7 = vpop.f32.mrf.mxu1 }
 0x5e3   : > { %v9043_v9 = vpop.f32.mrf.mxu0 }
 0x5e4   : > { %v9044_v56 = vadd.f32 %v9043_v9, %v9042_v61  ;;  %v9065_v31 = vpop.f32.mrf.mxu1 }
 0x5e5   : > { %v9045_v11 = vpop.f32.mrf.mxu0  ;;  %v9066_v15 = vadd.f32 %v9065_v31, %v9064_v7 }
 0x5e6   : > { %v7808_v14 = vadd.f32 %v9044_v56, %v7767_v10  ;;  %v9067_v16 = vpop.f32.mrf.mxu1 }
 0x5e7   : > { %v9046_v0 = vpop.f32.mrf.mxu0 }
 0x5e8   : > { %v7849_v17 = vadd.f32 %v9066_v15, %v7808_v14  ;;  %v9047_v8 = vadd.f32 %v9046_v0, %v9045_v11  ;;  %v9068_v19 = vpop.f32.mrf.mxu1 }
 0x5e9   : > { %v9069_v21 = vadd.f32 %v9068_v19, %v9067_v16 }
 0x5ea   : > { %7855 = vst [vmem:[#allocation12] sm:$0xff] %v7849_v17  ;;  %v7811_v20 = vadd.f32 %v9047_v8, %v7770_v13 }
 0x5ec   : > { %v7852_v23 = vadd.f32 %v9069_v21, %v7811_v20 }
 0x5ee   : > { %7856 = vst [vmem:[#allocation12 + $0x8] sm:$0xff] %v7852_v23 }
 0x5ef PF: > { %p9118_p9 = scmp.eq.s32.totalorder %s9610_s24, 6  ;;  %s9548_s21 = smov [#allocation12]  }
 0x5f0   : > { %s7866_s26 = sshll.u32 %s9548_s21, 4  ;;  %s7867_s26 = int_to_ptr.vmem [resolvable:$true] %s7866_s26 }
 0x5f1   : > { %s9443_s27 = scalar_lea.vmem %s7867_s26, 256  ;;  %p9450_p0 = scmp.lt.s32.totalorder %s7867_s26, %s7867_s26 }
 0x5f2   : > { %p9444_p4 = scmp.ne.s32.totalorder %s7867_s26, %s9443_s27  ;;  %p9451_p1 = scmp.lt.s32.totalorder %s9443_s27, %s9443_s27 }
 0x5f4   : > { %p9445_p13 = pnand %p9444_p4, %p9118_p9  ;;  %p9452_p5 = por %p9451_p1, %p9450_p0 }
 0x5f6   : > { %p9446_p10 = pneg %p9445_p13 }
 0x5f8   : > { %p9453_p11 = pnand %p9452_p5, %p9446_p10 }
 0x5fa   : > { %9456 = shalt.err (!%p9453_p11)
}
 0x5fb   : > { %s9549_s25 = smov 128   ;;  %s9550_s11 = smov 8  }
 0x5fc   : > { %9091 = dma.vmem_to_hbm [thread:$0]  (%p9118_p9), %s7867_s26, 256, %s10825_s5, [#allocation5], %s9549_s25, %s9549_s25, %s9550_s11  }
 0x5fd   : > { %9508 = dma.done.wait (%p9118_p9), [#allocation5], 256  }
 0x5fe   : > { %9510 = vsyncadd (%p9118_p9), [#allocation5], 4294967040 }
 0x5ff PF: > { %s23_s23 = sadd.s32 1, %s9533_s23   ;;  %s10849_s16 = smov %s9685_s18 }
 0x600   : > { %p20_p12 = scmp.ge.s32.totalorder %s23_s23, 9   ;;  %s10850_s9 = sld [smem:[#allocation18_spill]] }
 0x601   : > { %s10851_s18 = smov %s9517_s19  ;;  %s10852_s19 = smov %s9521_s20 }
 0x602   : > { %s10853_s20 = smov %s10849_s16  ;;  %s10854_s21 = smov %s9529_s22 }
 0x603   :  { %22 = sbr.rel (!%p20_p12) target bundleno = 13 (0xd), region = 111 }
 0x606   : > { %s10855_s22 = smov %s10850_s9 }
 0x608   :  { %7882 = vsyncpa [#allocation4], 1 }
 0x609   :  { %7884 = vsyncpa [#allocation4 + $0x1], 1 }
 0x60a   :  { %7885 = vsyncpa [#allocation7], 1 }
 0x60b   :  { %7887 = vsyncpa [#allocation7 + $0x1], 1 }
 0x60c   :  { %7888 = vsyncpa [#allocation10], 1 }
 0x60d   :  { %7889 = vsyncpa [#allocation5], 1 }
 0x60e   :  { %7891 = vsyncpa [#allocation5 + $0x1], 1 }

</bundles_post_ra>
